<compile_context>
chip_gen: v6e
topology: v6e:2x2x1
jax: 0.10.0
libtpu: 0.0.40
codegen_flags: <defaults>
</compile_context>

<pallas_src>
import functools

import jax
import jax.numpy as jnp
from jax.experimental import pallas as pl
from jax.experimental.pallas import tpu as pltpu


# ---------------------------------------------------------------------------
# Fused kernel: in-kernel im2col conv (9 shifted matmuls) + bias + ReLU +
# masked global average pool + linear classifier.  One grid step = one batch
# block; no cross-step state, so no scratch accumulators are needed.
# ---------------------------------------------------------------------------
def _fused_reid_kernel(x_ref, cw_ref, cb_ref, fw_ref, fb_ref, pw_ref, out_ref,
                       *, wp, n_rows):
    # x_ref:   (B_blk, (H+2)*(W+2), C_in)  bf16  zero-padded input, spatial flattened
    # cw_ref:  (9, C_in, F)                f32   3x3 conv weight, tap-major (kh*3+kw)
    # cb_ref:  (1, F)                      f32   conv bias
    # fw_ref:  (F, NC)                     f32   classifier weight
    # fb_ref:  (1, NC)                     f32   classifier bias
    # pw_ref:  (n_rows, 1)                 f32   pool weights: 1/(H*W) on real pixels, 0 on junk rows
    # out_ref: (B_blk, F + NC)             f32   [features || logits]
    b_blk = x_ref.shape[0]
    c_in, feat = cw_ref.shape[1], cw_ref.shape[2]

    # One upcast of the bf16 HBM stream; every later slice is on a vanilla f32
    # (8, 128) layout (no packed-sublane shifts).
    x = x_ref[...].astype(jnp.float32)                         # (B_blk, HPWP, C_in)

    # 3x3 conv as 9 shifted batched matmuls: for output row r = h*(W+2)+w the
    # (kh, kw) tap reads input row r + kh*(W+2) + kw of the padded image.
    acc = None
    for t in range(9):                                         # static unroll
        shift = (t // 3) * wp + (t % 3)
        win = x[:, shift:shift + n_rows, :]                    # (B_blk, n_rows, C_in)
        w_t = jnp.broadcast_to(cw_ref[t], (b_blk, c_in, feat))  # (B_blk, C_in, F)
        part = jnp.einsum("brc,bcf->brf", win, w_t,
                          preferred_element_type=jnp.float32)
        acc = part if acc is None else acc + part              # (B_blk, n_rows, F) f32

    acc = jnp.maximum(acc + cb_ref[...], 0.0)                  # conv bias + ReLU

    # Masked global average pool: pool weights are 1/(H*W) on rows that map to
    # real output pixels and 0 on rows that fall inside the zero padding.
    feats = jnp.sum(acc * pw_ref[...], axis=1)                 # (B_blk, F)

    # Fused classifier.
    logits = jnp.dot(feats, fw_ref[...],
                     preferred_element_type=jnp.float32) + fb_ref[...]

    # One lane-packed store per step (features || logits).
    out_ref[...] = jnp.concatenate([feats, logits], axis=-1)


def _pick_batch_block(batch, cap=16):
    """Images per grid step.

    Tiny batches (incl. the B=2 test) run as ONE grid step: real HBM traffic is
    only ~2.6 KB/image, so extra steps are pure ~0.35 us/step overhead.  Larger
    batches use 8-aligned blocks (keeps the (B, F+NC) output BlockSpec legal)
    with >= 2 steps so both v7x TensorCores get work under
    dimension_semantics=('parallel',).  The cap is set by VMEM, not HBM: with
    C_in=4 / F=32 every tile is padded to 128 lanes, so one image costs roughly
    0.5-0.7 MiB of padded VMEM across the double-buffered input block, its f32
    upcast and the conv accumulator; cap=16 keeps a step near ~12 MiB, inside
    the 32 MiB scoped VMEM requested below (v5e default is 16 MiB, v7x physical
    VMEM is 64 MiB).
    """
    if batch < 16:
        return batch                                # single grid step
    return min(cap, ((batch // 2) + 7) // 8 * 8)    # 8-aligned, >= 2 steps


# ---------------------------------------------------------------------------
# PersonReidModel.forward
# ---------------------------------------------------------------------------
def person_reid_forward(x_nchw, params, *, batch_block=None):
    """x_nchw: (B, C_in, H, W) float32 -> dict(features=(B, F), logits=(B, NC))."""
    B, c_in, H, W = x_nchw.shape
    hp, wp = H + 2, W + 2                       # padded spatial dims (pad=1)
    n_rows = (H - 1) * wp + W                   # rows of the shifted matmul we keep
    conv_w, conv_b = params["conv_w"], params["conv_b"]
    fc_w, fc_b = params["fc_w"], params["fc_b"]
    feat, ncls = conv_w.shape[-1], fc_w.shape[-1]

    # --- layout prep (cheap, 1x-sized; no 9x im2col materialisation) ---
    x_pad = jnp.pad(jnp.transpose(x_nchw, (0, 2, 3, 1)),
                    ((0, 0), (1, 1), (1, 1), (0, 0)))                 # (B, H+2, W+2, C)
    x_flat = x_pad.reshape(B, hp * wp, c_in).astype(jnp.bfloat16)     # dominant HBM stream, bf16
    cw = conv_w.reshape(9, c_in, feat).astype(jnp.float32)            # tap-major (kh*3+kw)

    # Pool weights: 1/(H*W) on rows r = h*(W+2)+w with w < W, h < H (real pixels).
    r = jnp.arange(n_rows)
    valid = ((r % wp) < W) & ((r // wp) < H)
    pool_w = jnp.where(valid, 1.0 / (H * W), 0.0).astype(jnp.float32)[:, None]

    b_blk = batch_block or _pick_batch_block(B)
    b_pad = -(-B // b_blk) * b_blk              # batch rounded up to a block multiple
    if b_pad != B:
        x_flat = jnp.pad(x_flat, ((0, b_pad - B), (0, 0), (0, 0)))
    grid = (b_pad // b_blk,)

    flops = 2 * b_pad * n_rows * 9 * c_in * feat + 2 * b_pad * feat * ncls
    bytes_accessed = (x_flat.size * 2
                      + (cw.size + conv_b.size + fc_w.size + fc_b.size
                         + pool_w.size + b_pad * (feat + ncls)) * 4)

    kernel = functools.partial(_fused_reid_kernel, wp=wp, n_rows=n_rows)
    out = pl.pallas_call(
        kernel,
        out_shape=jax.ShapeDtypeStruct((b_pad, feat + ncls), jnp.float32),
        grid_spec=pltpu.PrefetchScalarGridSpec(
            num_scalar_prefetch=0,
            grid=grid,
            in_specs=[
                pl.BlockSpec((b_blk, hp * wp, c_in), lambda i: (i, 0, 0)),
                pl.BlockSpec((9, c_in, feat), lambda i: (0, 0, 0)),
                pl.BlockSpec((1, feat), lambda i: (0, 0)),
                pl.BlockSpec((feat, ncls), lambda i: (0, 0)),
                pl.BlockSpec((1, ncls), lambda i: (0, 0)),
                pl.BlockSpec((n_rows, 1), lambda i: (0, 0)),
            ],
            out_specs=pl.BlockSpec((b_blk, feat + ncls), lambda i: (i, 0)),
        ),
        compiler_params=pltpu.CompilerParams(
            dimension_semantics=("parallel",),
            vmem_limit_bytes=32 * 1024 * 1024,
        ),
        cost_estimate=pl.CostEstimate(
            flops=flops, transcendentals=0, bytes_accessed=bytes_accessed),
    )(x_flat, cw, conv_b, fc_w, fc_b, pool_w)

    out = out[:B]
    return dict(features=out[:, :feat], logits=out[:, feat:])


def init_params(key, c_in=4, feat_dim=32, num_classes=16):
    k1, k2, k3, k4 = jax.random.split(key, 4)
    return {
        # conv weight layout (kh, kw, C_in, F); PyTorch ckpts need .transpose(2, 3, 1, 0).
        "conv_w": 0.1 * jax.random.normal(k1, (3, 3, c_in, feat_dim), jnp.float32),
        "conv_b": 0.1 * jax.random.normal(k2, (1, feat_dim), jnp.float32),
        "fc_w": 0.1 * jax.random.normal(k3, (feat_dim, num_classes), jnp.float32),
        "fc_b": 0.1 * jax.random.normal(k4, (1, num_classes), jnp.float32),
    }


def _reference(x_nchw, params):
    """Pure-XLA reference (independent of the shifted-row trick) for validation."""
    x_nhwc = jnp.transpose(x_nchw, (0, 2, 3, 1))
    conv = jax.lax.conv_general_dilated(
        x_nhwc, params["conv_w"], window_strides=(1, 1), padding="SAME",
        dimension_numbers=("NHWC", "HWIO", "NHWC"),
        precision=jax.lax.Precision.HIGHEST)
    conv = jnp.maximum(conv + params["conv_b"][0], 0.0)
    feats = conv.mean(axis=(1, 2))                              # (B, F)
    logits = jnp.dot(feats, params["fc_w"],
                     precision=jax.lax.Precision.HIGHEST) + params["fc_b"][0]
    return feats, logits


if __name__ == "__main__":
    B, C_IN, H, W = 2, 4, 16, 16
    FEAT_DIM, NUM_CLASSES = 32, 16

    key = jax.random.PRNGKey(0)
    k_x, k_p = jax.random.split(key)
    x = jax.random.normal(k_x, (B, C_IN, H, W), jnp.float32)   # NCHW, as in PyTorch
    params = init_params(k_p, C_IN, FEAT_DIM, NUM_CLASSES)

    out = jax.jit(person_reid_forward)(x, params)
    jax.block_until_ready(out)

    assert out["features"].shape == (B, FEAT_DIM)
    assert out["logits"].shape == (B, NUM_CLASSES)

    ref_feats, ref_logits = _reference(x, params)
    # bf16 input stream + f32 accumulation => tiny drift vs the f32 HIGHEST reference.
    assert jnp.allclose(out["features"], ref_feats, atol=1e-2, rtol=1e-2)
    assert jnp.allclose(out["logits"], ref_logits, atol=1e-2, rtol=1e-2)

    print("KERNEL_OK")
</pallas_src>

<mosaic_0001>
module attributes {stable_mosaic.version = 11 : i64} {
  func.func @_fused_reid_kernel(%arg0: i32, %arg1: memref<2x324x4xbf16, #tpu.memory_space<vmem>>, %arg2: memref<9x4x32xf32, #tpu.memory_space<vmem>>, %arg3: memref<1x32xf32, #tpu.memory_space<vmem>>, %arg4: memref<32x16xf32, #tpu.memory_space<vmem>>, %arg5: memref<1x16xf32, #tpu.memory_space<vmem>>, %arg6: memref<286x1xf32, #tpu.memory_space<vmem>>, %arg7: memref<2x48xf32, #tpu.memory_space<vmem>>) attributes {dimension_semantics = [#tpu.dimension_semantics<parallel>], iteration_bounds = array<i64: 1>, scalar_prefetch = 0 : i64, scratch_operands = 0 : i64, tpu.core_type = #tpu.core_type<tc>, window_params = [{transform_indices = @transform_0, window_bounds = array<i64: 2, 324, 4>}, {pipeline_mode = #tpu.pipeline_mode<synchronous>, transform_indices = @transform_1, window_bounds = array<i64: 9, 4, 32>}, {pipeline_mode = #tpu.pipeline_mode<synchronous>, transform_indices = @transform_2, window_bounds = array<i64: 1, 32>}, {pipeline_mode = #tpu.pipeline_mode<synchronous>, transform_indices = @transform_3, window_bounds = array<i64: 32, 16>}, {pipeline_mode = #tpu.pipeline_mode<synchronous>, transform_indices = @transform_4, window_bounds = array<i64: 1, 16>}, {pipeline_mode = #tpu.pipeline_mode<synchronous>, transform_indices = @transform_5, window_bounds = array<i64: 286, 1>}, {transform_indices = @transform_6, window_bounds = array<i64: 2, 48>}]} {
    %c0 = arith.constant 0 : index
    %c0_0 = arith.constant 0 : index
    %c0_1 = arith.constant 0 : index
    %0 = vector.load %arg1[%c0, %c0_0, %c0_1] : memref<2x324x4xbf16, #tpu.memory_space<vmem>>, vector<2x324x4xbf16>
    %1 = arith.extf %0 : vector<2x324x4xbf16> to vector<2x324x4xf32>
    %2 = vector.extract_strided_slice %1 {offsets = [0, 0, 0], sizes = [2, 286, 4], strides = [1, 1, 1]} : vector<2x324x4xf32> to vector<2x286x4xf32>
    %c0_2 = arith.constant 0 : index
    %c0_3 = arith.constant 0 : index
    %c0_4 = arith.constant 0 : index
    %3 = vector.load %arg2[%c0_2, %c0_3, %c0_4] : memref<9x4x32xf32, #tpu.memory_space<vmem>>, vector<1x4x32xf32>
    %4 = vector.shape_cast %3 : vector<1x4x32xf32> to vector<4x32xf32>
    %5 = vector.shape_cast %4 : vector<4x32xf32> to vector<1x4x32xf32>
    %6 = vector.broadcast %5 : vector<1x4x32xf32> to vector<2x4x32xf32>
    "tpu.trace_start"() <{level = 10 : i32, message = "brc,bcf->brf"}> : () -> ()
    %cst = arith.constant dense<0.000000e+00> : vector<2x286x32xf32>
    %7 = tpu.matmul %2, %6, %cst {dimension_numbers = #tpu.dot_dimension_numbers<[2], [1], [1], [2], [0, 0, 0, 1, 1, 2], [0], [0]>} : vector<2x286x4xf32>, vector<2x4x32xf32>, vector<2x286x32xf32> -> vector<2x286x32xf32>
    "tpu.trace_stop"() : () -> ()
    %8 = vector.extract_strided_slice %1 {offsets = [0, 1, 0], sizes = [2, 286, 4], strides = [1, 1, 1]} : vector<2x324x4xf32> to vector<2x286x4xf32>
    %c1 = arith.constant 1 : index
    %c0_5 = arith.constant 0 : index
    %c0_6 = arith.constant 0 : index
    %9 = vector.load %arg2[%c1, %c0_5, %c0_6] : memref<9x4x32xf32, #tpu.memory_space<vmem>>, vector<1x4x32xf32>
    %10 = vector.shape_cast %9 : vector<1x4x32xf32> to vector<4x32xf32>
    %11 = vector.shape_cast %10 : vector<4x32xf32> to vector<1x4x32xf32>
    %12 = vector.broadcast %11 : vector<1x4x32xf32> to vector<2x4x32xf32>
    "tpu.trace_start"() <{level = 10 : i32, message = "brc,bcf->brf"}> : () -> ()
    %cst_7 = arith.constant dense<0.000000e+00> : vector<2x286x32xf32>
    %13 = tpu.matmul %8, %12, %cst_7 {dimension_numbers = #tpu.dot_dimension_numbers<[2], [1], [1], [2], [0, 0, 0, 1, 1, 2], [0], [0]>} : vector<2x286x4xf32>, vector<2x4x32xf32>, vector<2x286x32xf32> -> vector<2x286x32xf32>
    "tpu.trace_stop"() : () -> ()
    %14 = arith.addf %7, %13 : vector<2x286x32xf32>
    %15 = vector.extract_strided_slice %1 {offsets = [0, 2, 0], sizes = [2, 286, 4], strides = [1, 1, 1]} : vector<2x324x4xf32> to vector<2x286x4xf32>
    %c2 = arith.constant 2 : index
    %c0_8 = arith.constant 0 : index
    %c0_9 = arith.constant 0 : index
    %16 = vector.load %arg2[%c2, %c0_8, %c0_9] : memref<9x4x32xf32, #tpu.memory_space<vmem>>, vector<1x4x32xf32>
    %17 = vector.shape_cast %16 : vector<1x4x32xf32> to vector<4x32xf32>
    %18 = vector.shape_cast %17 : vector<4x32xf32> to vector<1x4x32xf32>
    %19 = vector.broadcast %18 : vector<1x4x32xf32> to vector<2x4x32xf32>
    "tpu.trace_start"() <{level = 10 : i32, message = "brc,bcf->brf"}> : () -> ()
    %cst_10 = arith.constant dense<0.000000e+00> : vector<2x286x32xf32>
    %20 = tpu.matmul %15, %19, %cst_10 {dimension_numbers = #tpu.dot_dimension_numbers<[2], [1], [1], [2], [0, 0, 0, 1, 1, 2], [0], [0]>} : vector<2x286x4xf32>, vector<2x4x32xf32>, vector<2x286x32xf32> -> vector<2x286x32xf32>
    "tpu.trace_stop"() : () -> ()
    %21 = arith.addf %14, %20 : vector<2x286x32xf32>
    %22 = vector.extract_strided_slice %1 {offsets = [0, 18, 0], sizes = [2, 286, 4], strides = [1, 1, 1]} : vector<2x324x4xf32> to vector<2x286x4xf32>
    %c3 = arith.constant 3 : index
    %c0_11 = arith.constant 0 : index
    %c0_12 = arith.constant 0 : index
    %23 = vector.load %arg2[%c3, %c0_11, %c0_12] : memref<9x4x32xf32, #tpu.memory_space<vmem>>, vector<1x4x32xf32>
    %24 = vector.shape_cast %23 : vector<1x4x32xf32> to vector<4x32xf32>
    %25 = vector.shape_cast %24 : vector<4x32xf32> to vector<1x4x32xf32>
    %26 = vector.broadcast %25 : vector<1x4x32xf32> to vector<2x4x32xf32>
    "tpu.trace_start"() <{level = 10 : i32, message = "brc,bcf->brf"}> : () -> ()
    %cst_13 = arith.constant dense<0.000000e+00> : vector<2x286x32xf32>
    %27 = tpu.matmul %22, %26, %cst_13 {dimension_numbers = #tpu.dot_dimension_numbers<[2], [1], [1], [2], [0, 0, 0, 1, 1, 2], [0], [0]>} : vector<2x286x4xf32>, vector<2x4x32xf32>, vector<2x286x32xf32> -> vector<2x286x32xf32>
    "tpu.trace_stop"() : () -> ()
    %28 = arith.addf %21, %27 : vector<2x286x32xf32>
    %29 = vector.extract_strided_slice %1 {offsets = [0, 19, 0], sizes = [2, 286, 4], strides = [1, 1, 1]} : vector<2x324x4xf32> to vector<2x286x4xf32>
    %c4 = arith.constant 4 : index
    %c0_14 = arith.constant 0 : index
    %c0_15 = arith.constant 0 : index
    %30 = vector.load %arg2[%c4, %c0_14, %c0_15] : memref<9x4x32xf32, #tpu.memory_space<vmem>>, vector<1x4x32xf32>
    %31 = vector.shape_cast %30 : vector<1x4x32xf32> to vector<4x32xf32>
    %32 = vector.shape_cast %31 : vector<4x32xf32> to vector<1x4x32xf32>
    %33 = vector.broadcast %32 : vector<1x4x32xf32> to vector<2x4x32xf32>
    "tpu.trace_start"() <{level = 10 : i32, message = "brc,bcf->brf"}> : () -> ()
    %cst_16 = arith.constant dense<0.000000e+00> : vector<2x286x32xf32>
    %34 = tpu.matmul %29, %33, %cst_16 {dimension_numbers = #tpu.dot_dimension_numbers<[2], [1], [1], [2], [0, 0, 0, 1, 1, 2], [0], [0]>} : vector<2x286x4xf32>, vector<2x4x32xf32>, vector<2x286x32xf32> -> vector<2x286x32xf32>
    "tpu.trace_stop"() : () -> ()
    %35 = arith.addf %28, %34 : vector<2x286x32xf32>
    %36 = vector.extract_strided_slice %1 {offsets = [0, 20, 0], sizes = [2, 286, 4], strides = [1, 1, 1]} : vector<2x324x4xf32> to vector<2x286x4xf32>
    %c5 = arith.constant 5 : index
    %c0_17 = arith.constant 0 : index
    %c0_18 = arith.constant 0 : index
    %37 = vector.load %arg2[%c5, %c0_17, %c0_18] : memref<9x4x32xf32, #tpu.memory_space<vmem>>, vector<1x4x32xf32>
    %38 = vector.shape_cast %37 : vector<1x4x32xf32> to vector<4x32xf32>
    %39 = vector.shape_cast %38 : vector<4x32xf32> to vector<1x4x32xf32>
    %40 = vector.broadcast %39 : vector<1x4x32xf32> to vector<2x4x32xf32>
    "tpu.trace_start"() <{level = 10 : i32, message = "brc,bcf->brf"}> : () -> ()
    %cst_19 = arith.constant dense<0.000000e+00> : vector<2x286x32xf32>
    %41 = tpu.matmul %36, %40, %cst_19 {dimension_numbers = #tpu.dot_dimension_numbers<[2], [1], [1], [2], [0, 0, 0, 1, 1, 2], [0], [0]>} : vector<2x286x4xf32>, vector<2x4x32xf32>, vector<2x286x32xf32> -> vector<2x286x32xf32>
    "tpu.trace_stop"() : () -> ()
    %42 = arith.addf %35, %41 : vector<2x286x32xf32>
    %43 = vector.extract_strided_slice %1 {offsets = [0, 36, 0], sizes = [2, 286, 4], strides = [1, 1, 1]} : vector<2x324x4xf32> to vector<2x286x4xf32>
    %c6 = arith.constant 6 : index
    %c0_20 = arith.constant 0 : index
    %c0_21 = arith.constant 0 : index
    %44 = vector.load %arg2[%c6, %c0_20, %c0_21] : memref<9x4x32xf32, #tpu.memory_space<vmem>>, vector<1x4x32xf32>
    %45 = vector.shape_cast %44 : vector<1x4x32xf32> to vector<4x32xf32>
    %46 = vector.shape_cast %45 : vector<4x32xf32> to vector<1x4x32xf32>
    %47 = vector.broadcast %46 : vector<1x4x32xf32> to vector<2x4x32xf32>
    "tpu.trace_start"() <{level = 10 : i32, message = "brc,bcf->brf"}> : () -> ()
    %cst_22 = arith.constant dense<0.000000e+00> : vector<2x286x32xf32>
    %48 = tpu.matmul %43, %47, %cst_22 {dimension_numbers = #tpu.dot_dimension_numbers<[2], [1], [1], [2], [0, 0, 0, 1, 1, 2], [0], [0]>} : vector<2x286x4xf32>, vector<2x4x32xf32>, vector<2x286x32xf32> -> vector<2x286x32xf32>
    "tpu.trace_stop"() : () -> ()
    %49 = arith.addf %42, %48 : vector<2x286x32xf32>
    %50 = vector.extract_strided_slice %1 {offsets = [0, 37, 0], sizes = [2, 286, 4], strides = [1, 1, 1]} : vector<2x324x4xf32> to vector<2x286x4xf32>
    %c7 = arith.constant 7 : index
    %c0_23 = arith.constant 0 : index
    %c0_24 = arith.constant 0 : index
    %51 = vector.load %arg2[%c7, %c0_23, %c0_24] : memref<9x4x32xf32, #tpu.memory_space<vmem>>, vector<1x4x32xf32>
    %52 = vector.shape_cast %51 : vector<1x4x32xf32> to vector<4x32xf32>
    %53 = vector.shape_cast %52 : vector<4x32xf32> to vector<1x4x32xf32>
    %54 = vector.broadcast %53 : vector<1x4x32xf32> to vector<2x4x32xf32>
    "tpu.trace_start"() <{level = 10 : i32, message = "brc,bcf->brf"}> : () -> ()
    %cst_25 = arith.constant dense<0.000000e+00> : vector<2x286x32xf32>
    %55 = tpu.matmul %50, %54, %cst_25 {dimension_numbers = #tpu.dot_dimension_numbers<[2], [1], [1], [2], [0, 0, 0, 1, 1, 2], [0], [0]>} : vector<2x286x4xf32>, vector<2x4x32xf32>, vector<2x286x32xf32> -> vector<2x286x32xf32>
    "tpu.trace_stop"() : () -> ()
    %56 = arith.addf %49, %55 : vector<2x286x32xf32>
    %57 = vector.extract_strided_slice %1 {offsets = [0, 38, 0], sizes = [2, 286, 4], strides = [1, 1, 1]} : vector<2x324x4xf32> to vector<2x286x4xf32>
    %c8 = arith.constant 8 : index
    %c0_26 = arith.constant 0 : index
    %c0_27 = arith.constant 0 : index
    %58 = vector.load %arg2[%c8, %c0_26, %c0_27] : memref<9x4x32xf32, #tpu.memory_space<vmem>>, vector<1x4x32xf32>
    %59 = vector.shape_cast %58 : vector<1x4x32xf32> to vector<4x32xf32>
    %60 = vector.shape_cast %59 : vector<4x32xf32> to vector<1x4x32xf32>
    %61 = vector.broadcast %60 : vector<1x4x32xf32> to vector<2x4x32xf32>
    "tpu.trace_start"() <{level = 10 : i32, message = "brc,bcf->brf"}> : () -> ()
    %cst_28 = arith.constant dense<0.000000e+00> : vector<2x286x32xf32>
    %62 = tpu.matmul %57, %61, %cst_28 {dimension_numbers = #tpu.dot_dimension_numbers<[2], [1], [1], [2], [0, 0, 0, 1, 1, 2], [0], [0]>} : vector<2x286x4xf32>, vector<2x4x32xf32>, vector<2x286x32xf32> -> vector<2x286x32xf32>
    "tpu.trace_stop"() : () -> ()
    %63 = arith.addf %56, %62 : vector<2x286x32xf32>
    %c0_29 = arith.constant 0 : index
    %c0_30 = arith.constant 0 : index
    %64 = vector.load %arg3[%c0_29, %c0_30] : memref<1x32xf32, #tpu.memory_space<vmem>>, vector<1x32xf32>
    %65 = vector.shape_cast %64 : vector<1x32xf32> to vector<1x1x32xf32>
    %66 = vector.broadcast %65 : vector<1x1x32xf32> to vector<2x286x32xf32>
    %67 = arith.addf %63, %66 : vector<2x286x32xf32>
    %cst_31 = arith.constant 0.000000e+00 : f32
    %68 = vector.broadcast %cst_31 : f32 to vector<2x286x32xf32>
    %69 = arith.maximumf %67, %68 : vector<2x286x32xf32>
    %c0_32 = arith.constant 0 : index
    %c0_33 = arith.constant 0 : index
    %70 = vector.load %arg6[%c0_32, %c0_33] : memref<286x1xf32, #tpu.memory_space<vmem>>, vector<286x1xf32>
    %71 = vector.shape_cast %70 : vector<286x1xf32> to vector<1x286x1xf32>
    %72 = vector.broadcast %71 : vector<1x286x1xf32> to vector<2x286x32xf32>
    %73 = arith.mulf %69, %72 : vector<2x286x32xf32>
    %cst_34 = arith.constant dense<0.000000e+00> : vector<2x32xf32>
    %74 = vector.multi_reduction <add>, %73, %cst_34 [1] : vector<2x286x32xf32> to vector<2x32xf32>
    %c0_35 = arith.constant 0 : index
    %c0_36 = arith.constant 0 : index
    %75 = vector.load %arg4[%c0_35, %c0_36] : memref<32x16xf32, #tpu.memory_space<vmem>>, vector<32x16xf32>
    %cst_37 = arith.constant dense<0.000000e+00> : vector<2x16xf32>
    %76 = tpu.matmul %74, %75, %cst_37 {dimension_numbers = #tpu.dot_dimension_numbers<[1], [0], [0], [1], [0, 0, 1, 1], [], []>} : vector<2x32xf32>, vector<32x16xf32>, vector<2x16xf32> -> vector<2x16xf32>
    %c0_38 = arith.constant 0 : index
    %c0_39 = arith.constant 0 : index
    %77 = vector.load %arg5[%c0_38, %c0_39] : memref<1x16xf32, #tpu.memory_space<vmem>>, vector<1x16xf32>
    %78 = vector.broadcast %77 : vector<1x16xf32> to vector<2x16xf32>
    %79 = arith.addf %76, %78 : vector<2x16xf32>
    %80 = tpu.concatenate %74, %79 in 1 : vector<2x32xf32>, vector<2x16xf32> -> vector<2x48xf32>
    %c0_40 = arith.constant 0 : index
    %c0_41 = arith.constant 0 : index
    %81 = vector.load %arg7[%c0_40, %c0_41] : memref<2x48xf32, #tpu.memory_space<vmem>>, vector<2x48xf32>
    tpu.vector_store %arg7[%c0_40, %c0_41], %80 {strides = array<i32>} : memref<2x48xf32, #tpu.memory_space<vmem>>, vector<2x48xf32>,
    return
  }
  func.func @transform_0(%arg0: i32) -> (i32, i32, i32) {
    %c0_i32 = arith.constant 0 : i32
    %c0_i32_0 = arith.constant 0 : i32
    %c0_i32_1 = arith.constant 0 : i32
    return %arg0, %c0_i32, %c0_i32_0 : i32, i32, i32
  }
  func.func @transform_1(%arg0: i32) -> (i32, i32, i32) {
    %c0_i32 = arith.constant 0 : i32
    %c0_i32_0 = arith.constant 0 : i32
    %c0_i32_1 = arith.constant 0 : i32
    %c0_i32_2 = arith.constant 0 : i32
    return %c0_i32, %c0_i32_0, %c0_i32_1 : i32, i32, i32
  }
  func.func @transform_2(%arg0: i32) -> (i32, i32) {
    %c0_i32 = arith.constant 0 : i32
    %c0_i32_0 = arith.constant 0 : i32
    %c0_i32_1 = arith.constant 0 : i32
    return %c0_i32, %c0_i32_0 : i32, i32
  }
  func.func @transform_3(%arg0: i32) -> (i32, i32) {
    %c0_i32 = arith.constant 0 : i32
    %c0_i32_0 = arith.constant 0 : i32
    %c0_i32_1 = arith.constant 0 : i32
    return %c0_i32, %c0_i32_0 : i32, i32
  }
  func.func @transform_4(%arg0: i32) -> (i32, i32) {
    %c0_i32 = arith.constant 0 : i32
    %c0_i32_0 = arith.constant 0 : i32
    %c0_i32_1 = arith.constant 0 : i32
    return %c0_i32, %c0_i32_0 : i32, i32
  }
  func.func @transform_5(%arg0: i32) -> (i32, i32) {
    %c0_i32 = arith.constant 0 : i32
    %c0_i32_0 = arith.constant 0 : i32
    %c0_i32_1 = arith.constant 0 : i32
    return %c0_i32, %c0_i32_0 : i32, i32
  }
  func.func @transform_6(%arg0: i32) -> (i32, i32) {
    %c0_i32 = arith.constant 0 : i32
    %c0_i32_0 = arith.constant 0 : i32
    return %arg0, %c0_i32 : i32, i32
  }
}

</mosaic_0001>

<bundles_post_ra>
// kernel: person_reid_forward.1
= control target key start
LH: loop header
LB: loop body
LE: loop exit
PB: predicated region body
PF: predicated region fallthrough
CT: control target
= control target key end

     0   :  { %vm371_vm0 = vcmask 1043456   ;;  %vm226_vm1 = vcmask 1046528   ;;  %vm298_vm2 = vcmask 31744   ;;  %vm1683_vm3 = vcmask 1045504   ;;  %s10412_s12 = smov 32   ;;  %s15090_s1 = inlined_call_operand.vmem [shape: f32[9,4,32], index: 1, kind: input, shape index: {}]   ;;  %s15091_s0 = inlined_call_operand.vmem [shape: bf16[2,324,4], index: 0, kind: input, shape index: {}]   ;;  %s15092_s5 = inlined_call_operand.vmem [shape: f32[286,1], index: 5, kind: input, shape index: {}]   ;;  %s15093_s3 = inlined_call_operand.vmem [shape: f32[32,16], index: 3, kind: input, shape index: {}]   ;;  %s15094_s2 = inlined_call_operand.vmem [shape: f32[1,32], index: 2, kind: input, shape index: {}]   ;;  %s15095_s4 = inlined_call_operand.vmem [shape: f32[1,16], index: 4, kind: input, shape index: {}]   ;;  %s15096_s6 = inlined_call_operand.vmem [shape: f32[2,48], index: 6, kind: output, shape index: {}]  }
   0x1   :  { %v7840_v0 = vld [vmem:[%s15090_s1 + $0x4] sm:$0xf]  ;;  %v8692_v5 = vld [vmem:[%s15091_s0 + $0xa8] sm:$0xff]   ;;  %v187_v7 = vld [vmem:[%s15090_s1] sm:$0xf]  ;;  %vm3129_vm4 = vcmask 1044480  }
   0x2   :  { %v8518_v1 = vld [vmem:[%s15091_s0] sm:$0xff]   ;;  %9382 = vmatprep.subr.msk.mxu0 %vm371_vm0, %v7840_v0  ;;  %9438 = vmatprep.subr.msk.mxu1 %vm371_vm0, %v7840_v0  ;;  %v8673_v8 = vld [vmem:[%s15091_s0 + $0x8] sm:$0xff]   ;;  %v10476_v9 = vunpack.c.l.bf16 %v8692_v5  ;;  %v10478_v10 = vunpack.c.h.bf16 %v8692_v5  ;;  %v8693_v13 = vld [vmem:[%s15091_s0 + $0xb0] sm:$0xff]   ;;  %vm5432_vm5 = vcmask 1042432   ;;  %vm6290_vm6 = vcmask 1041408  }
   0x3   :  { %v64_v2 = vld [vmem:[%s15091_s0 + $0xa4] sm:$0xf]  ;;  %v10459_v3 = vunpack.c.l.bf16 %v8518_v1  ;;  %v10461_v4 = vunpack.c.h.bf16 %v8518_v1  ;;  %9383 = vmatpush3.msk.msra.mxu0 %vm371_vm0, %v7840_v0  ;;  %9439 = vmatpush3.msk.msra.mxu1 %vm371_vm0, %v7840_v0  ;;  %v10480_v11 = vunpack.c.l.bf16 %v8673_v8  ;;  %v10482_v12 = vunpack.c.h.bf16 %v8673_v8  ;;  %v8674_v14 = vld [vmem:[%s15091_s0 + $0x10] sm:$0xff]   ;;  %v8694_v27 = vld [vmem:[%s15091_s0 + $0xb8] sm:$0xff]  }
   0x4   :  { %v10466_v6 = vunpack.c.l.bf16 %v64_v2  ;;  %15326 = vst [vmem:[#allocation2_spill] sm:$0xff] %v10478_v10  ;;  %9494 = vmatprep.subr.msk.mxu0 %vm371_vm0, %v187_v7  ;;  %9550 = vmatprep.subr.msk.mxu1 %vm371_vm0, %v187_v7  ;;  %v10495_v18 = vunpack.c.l.bf16 %v8693_v13  ;;  %v657_v19 = vrot.slane %v10476_v9, 1  ;;  %v659_v21 = vrot.slane %v10478_v10, 1  ;;  %v8675_v28 = vld [vmem:[%s15091_s0 + $0x18] sm:$0xff]   ;;  %v8695_v33 = vld [vmem:[%s15091_s0 + $0xc0] sm:$0xff]   ;;  %v8696_v55 = vld [vmem:[%s15091_s0 + $0xc8] sm:$0xff]  }
   0x5   :  { %15327 = vst [vmem:[#allocation3_spill] sm:$0xff] %v10480_v11  ;;  %15328 = vst [vmem:[#allocation4_spill] sm:$0xff] %v10482_v12  ;;  %v227_v15 = vrot.slane %v10459_v3, 1  ;;  %v228_v16 = vrot.slane %v10461_v4, 1  ;;  %v230_v20 = vrot.slane %v10480_v11, 1  ;;  %v232_v22 = vrot.slane %v10482_v12, 1 }
   0x6   :  { %v656_v17 = vrot.slane %v10466_v6, 1  ;;  %15329 = vst [vmem:[#allocation5_spill] sm:$0xff] %v10495_v18  ;;  %v10502_v24 = vunpack.c.h.bf16 %v8693_v13  ;;  %v661_v25 = vrot.slane %v10495_v18, 1  ;;  %v10505_v26 = vunpack.c.l.bf16 %v8674_v14  ;;  %v8676_v42 = vld [vmem:[%s15091_s0 + $0x20] sm:$0xff]   ;;  %v8677_v56 = vld [vmem:[%s15091_s0 + $0x28] sm:$0xff]   ;;  %v8697_v61 = vld [vmem:[%s15091_s0 + $0xd0] sm:$0xff]  }
   0x7   :  { %v229_v23 = vsel %vm226_vm1, %v227_v15, %v228_v16  ;;  %v231_v30 = vsel %vm226_vm1, %v228_v16, %v230_v20  ;;  %v660_v31 = vsel %vm226_vm1, %v657_v19, %v659_v21  ;;  %v233_v32 = vsel %vm226_vm1, %v230_v20, %v232_v22  ;;  %v10584_v2 = vld [vmem:[%s15090_s1 + $0x8] sm:$0xf] }
   0x8   :  { %15330 = vst [vmem:[#allocation6_spill] sm:$0xff] %v10502_v24  ;;  %15331 = vst [vmem:[#allocation7_spill] sm:$0xff] %v10505_v26  ;;  %9384 = vmatprep.mubr.msk.f32.mxu0 %vm298_vm2, %v229_v23  ;;  %v658_v29 = vsel %vm226_vm1, %v656_v17, %v657_v19  ;;  %v662_v34 = vsel %vm226_vm1, %v659_v21, %v661_v25  ;;  %v234_v35 = vrot.slane %v10505_v26, 1  ;;  %v663_v36 = vrot.slane %v10502_v24, 1 }
   0x9   :  { %9440 = vmatprep.mubr.msk.f32.mxu1 %vm298_vm2, %v658_v29  ;;  %9385 = vmatmul.mubr.msk.f32.vlgmr.msra.gmra.mxu0 %vm298_vm2, %v231_v30  ;;  %v10526_v37 = vunpack.c.h.bf16 %v8674_v14  ;;  %v10530_v38 = vunpack.c.l.bf16 %v8694_v27  ;;  %v10532_v39 = vunpack.c.l.bf16 %v8675_v28  ;;  %v10534_v40 = vunpack.c.h.bf16 %v8694_v27  ;;  %v8678_v14 = vld [vmem:[%s15091_s0 + $0x30] sm:$0xff]   ;;  %v8698_v29 = vld [vmem:[%s15091_s0 + $0xd8] sm:$0xff]  }
   0xa   :  { %9441 = vmatmul.mubr.msk.f32.vlgmr.msra.gmra.mxu1 %vm298_vm2, %v660_v31  ;;  %9495 = vmatpush3.msk.msra.mxu0 %vm371_vm0, %v187_v7  ;;  %v10536_v41 = vunpack.c.h.bf16 %v8675_v28  ;;  %v235_v43 = vsel %vm226_vm1, %v232_v22, %v234_v35  ;;  %v664_v44 = vsel %vm226_vm1, %v661_v25, %v663_v36  ;;  %v10546_v46 = vunpack.c.l.bf16 %v8695_v33  ;;  %v8679_v30 = vld [vmem:[%s15091_s0 + $0x38] sm:$0xff]  }
   0xb   :  { %15332 = vst [vmem:[#allocation8_spill] sm:$0xff] %v10526_v37  ;;  %15333 = vst [vmem:[#allocation9_spill] sm:$0xff] %v10530_v38  ;;  %9551 = vmatpush3.msk.msra.mxu1 %vm371_vm0, %v187_v7  ;;  %9387 = vmatprep.mubr.msk.f32.mxu0 %vm298_vm2, %v233_v32  ;;  %v236_v45 = vrot.slane %v10526_v37, 1  ;;  %v665_v47 = vrot.slane %v10530_v38, 1  ;;  %v238_v48 = vrot.slane %v10532_v39, 1  ;;  %v667_v49 = vrot.slane %v10534_v40, 1 }
   0xc   :  { %15334 = vst [vmem:[#allocation10_spill] sm:$0xff] %v10532_v39  ;;  %15335 = vst [vmem:[#allocation11_spill] sm:$0xff] %v10534_v40  ;;  %9443 = vmatprep.mubr.msk.f32.mxu1 %vm298_vm2, %v662_v34  ;;  %v240_v50 = vrot.slane %v10536_v41, 1  ;;  %v669_v52 = vrot.slane %v10546_v46, 1  ;;  %v10556_v53 = vunpack.c.l.bf16 %v8676_v42  ;;  %v10558_v54 = vunpack.c.h.bf16 %v8695_v33  ;;  %9606 = vmatprep.subr.msk.mxu0 %vm371_vm0, %v10584_v2 }
   0xd   :  { %15336 = vst [vmem:[#allocation12_spill] sm:$0xff] %v10536_v41  ;;  %15337 = vst [vmem:[#allocation13_spill] sm:$0xff] %v10546_v46  ;;  %9388 = vmatmul.mubr.msk.f32.gmra.mxu0 %vm298_vm2, %v235_v43  ;;  %v237_v51 = vsel %vm226_vm1, %v234_v35, %v236_v45  ;;  %v666_v57 = vsel %vm226_vm1, %v663_v36, %v665_v47  ;;  %v239_v58 = vsel %vm226_vm1, %v236_v45, %v238_v48  ;;  %v8699_v36 = vld [vmem:[%s15091_s0 + $0xe0] sm:$0xff]   ;;  %vm10411_vm7 = vmmov 0  }
   0xe   :  { %15338 = vst [vmem:[#allocation14_spill] sm:$0xff] %v10556_v53  ;;  %15339 = vst [vmem:[#allocation15_spill] sm:$0xff] %v10558_v54  ;;  %9444 = vmatmul.mubr.msk.f32.gmra.mxu1 %vm298_vm2, %v664_v44  ;;  %9390 = vmatprep.mubr.msk.f32.mxu0 %vm298_vm2, %v237_v51  ;;  %v668_v59 = vsel %vm226_vm1, %v665_v47, %v667_v49  ;;  %v10571_v60 = vunpack.c.h.bf16 %v8676_v42  ;;  %v241_v62 = vsel %vm226_vm1, %v238_v48, %v240_v50  ;;  %v8680_v51 = vld [vmem:[%s15091_s0 + $0x40] sm:$0xff]   ;;  %vm7585_vm8 = vcmask 261120  }
   0xf   :  { %9446 = vmatprep.mubr.msk.f32.mxu1 %vm298_vm2, %v666_v57  ;;  %v670_v63 = vsel %vm226_vm1, %v667_v49, %v669_v52  ;;  %v242_v0 = vrot.slane %v10556_v53, 1  ;;  %v671_v1 = vrot.slane %v10558_v54, 1  ;;  %v10587_v7 = vunpack.c.l.bf16 %v8696_v55  ;;  %9662 = vmatprep.subr.msk.mxu1 %vm371_vm0, %v10584_v2 }
  0x10   :  { %15340 = vst [vmem:[#allocation16_spill] sm:$0xff] %v10571_v60  ;;  %v244_v5 = vrot.slane %v10571_v60, 1  ;;  %v10589_v8 = vunpack.c.l.bf16 %v8677_v56  ;;  %v10591_v13 = vunpack.c.h.bf16 %v8696_v55  ;;  %v10602_v16 = vunpack.c.h.bf16 %v8677_v56 }
  0x11   :  { %15341 = vst [vmem:[#allocation17_spill] sm:$0xff] %v10587_v7  ;;  %9391 = vmatmul.mubr.msk.f32.gmra.mxu0 %vm298_vm2, %v239_v58  ;;  %v243_v15 = vsel %vm226_vm1, %v240_v50, %v242_v0  ;;  %v10604_v17 = vunpack.c.l.bf16 %v8697_v61  ;;  %v672_v19 = vsel %vm226_vm1, %v669_v52, %v671_v1  ;;  %v673_v21 = vrot.slane %v10587_v7, 1  ;;  %v8700_v58 = vld [vmem:[%s15091_s0 + $0xe8] sm:$0xff]  }
  0x12   :  { %15342 = vst [vmem:[#allocation18_spill] sm:$0xff] %v10589_v8  ;;  %15343 = vst [vmem:[#allocation19_spill] sm:$0xff] %v10591_v13  ;;  %9447 = vmatmul.mubr.msk.f32.gmra.mxu1 %vm298_vm2, %v668_v59  ;;  %9393 = vmatprep.mubr.msk.f32.mxu0 %vm298_vm2, %v241_v62  ;;  %v245_v20 = vsel %vm226_vm1, %v242_v0, %v244_v5  ;;  %v246_v22 = vrot.slane %v10589_v8, 1  ;;  %v675_v23 = vrot.slane %v10591_v13, 1  ;;  %v248_v25 = vrot.slane %v10602_v16, 1  ;;  %v8681_v0 = vld [vmem:[%s15091_s0 + $0x48] sm:$0xff]  }
  0x13   :  { %15344 = vst [vmem:[#allocation20_spill] sm:$0xff] %v10602_v16  ;;  %15345 = vst [vmem:[#allocation21_spill] sm:$0xff] %v10604_v17  ;;  %9449 = vmatprep.mubr.msk.f32.mxu1 %vm298_vm2, %v670_v63  ;;  %v10615_v27 = vunpack.c.l.bf16 %v8678_v14  ;;  %v10617_v28 = vunpack.c.h.bf16 %v8697_v61  ;;  %v674_v31 = vsel %vm226_vm1, %v671_v1, %v673_v21  ;;  %v677_v32 = vrot.slane %v10604_v17, 1 }
  0x14   :  { %v10627_v33 = vunpack.c.h.bf16 %v8678_v14  ;;  %v247_v34 = vsel %vm226_vm1, %v244_v5, %v246_v22  ;;  %v10639_v44 = vunpack.c.l.bf16 %v8698_v29  ;;  %v10641_v45 = vunpack.c.l.bf16 %v8679_v30 }
  0x15   :  { %15346 = vst [vmem:[#allocation22_spill] sm:$0xff] %v10615_v27  ;;  %15347 = vst [vmem:[#allocation23_spill] sm:$0xff] %v10617_v28  ;;  %9394 = vmatmul.mubr.msk.f32.gmra.mxu0 %vm298_vm2, %v243_v15  ;;  %v250_v35 = vrot.slane %v10615_v27, 1  ;;  %v679_v42 = vrot.slane %v10617_v28, 1  ;;  %v676_v47 = vsel %vm226_vm1, %v673_v21, %v675_v23  ;;  %v249_v48 = vsel %vm226_vm1, %v246_v22, %v248_v25 }
  0x16   :  { %15348 = vst [vmem:[#allocation24_spill] sm:$0xff] %v10627_v33  ;;  %9450 = vmatmul.mubr.msk.f32.gmra.mxu1 %vm298_vm2, %v672_v19  ;;  %9396 = vmatprep.mubr.msk.f32.mxu0 %vm298_vm2, %v245_v20  ;;  %v252_v43 = vrot.slane %v10627_v33, 1  ;;  %15349 = vst [vmem:[#allocation25_spill] sm:$0xff] %v10639_v44  ;;  %v10646_v49 = vunpack.c.h.bf16 %v8698_v29  ;;  %v10648_v50 = vunpack.c.h.bf16 %v8679_v30  ;;  %v678_v52 = vsel %vm226_vm1, %v675_v23, %v677_v32  ;;  %v8701_v23 = vld [vmem:[%s15091_s0 + $0xf0] sm:$0xff]  }
  0x17   :  { %15350 = vst [vmem:[#allocation26_spill] sm:$0xff] %v10641_v45  ;;  %9452 = vmatprep.mubr.msk.f32.mxu1 %vm298_vm2, %v674_v31  ;;  %v681_v55 = vrot.slane %v10639_v44, 1  ;;  %v10655_v56 = vunpack.c.l.bf16 %v8699_v36  ;;  %v251_v57 = vsel %vm226_vm1, %v248_v25, %v250_v35  ;;  %v680_v59 = vsel %vm226_vm1, %v677_v32, %v679_v42 }
  0x18   :  { %15351 = vst [vmem:[#allocation27_spill] sm:$0xff] %v10646_v49  ;;  %15352 = vst [vmem:[#allocation28_spill] sm:$0xff] %v10648_v50  ;;  %v253_v61 = vsel %vm226_vm1, %v250_v35, %v252_v43  ;;  %v254_v62 = vrot.slane %v10641_v45, 1  ;;  %v10667_v63 = vunpack.c.l.bf16 %v8680_v51  ;;  %v683_v1 = vrot.slane %v10646_v49, 1 }
  0x19   :  { %15353 = vst [vmem:[#allocation29_spill] sm:$0xff] %v10655_v56  ;;  %9397 = vmatmul.mubr.msk.f32.gmra.mxu0 %vm298_vm2, %v247_v34  ;;  %v256_v5 = vrot.slane %v10648_v50, 1  ;;  %v10675_v14 = vunpack.c.h.bf16 %v8699_v36  ;;  %v10677_v15 = vunpack.c.h.bf16 %v8680_v51  ;;  %v682_v19 = vsel %vm226_vm1, %v679_v42, %v681_v55  ;;  %v8682_v42 = vld [vmem:[%s15091_s0 + $0x50] sm:$0xff]  }
  0x1a   :  { %9453 = vmatmul.mubr.msk.f32.gmra.mxu1 %vm298_vm2, %v676_v47  ;;  %9399 = vmatprep.mubr.msk.f32.mxu0 %vm298_vm2, %v249_v48  ;;  %15354 = vst [vmem:[#allocation30_spill] sm:$0xff] %v10667_v63  ;;  %v685_v20 = vrot.slane %v10655_v56, 1  ;;  %v10681_v21 = vunpack.c.l.bf16 %v8700_v58  ;;  %v10684_v22 = vunpack.c.l.bf16 %v8681_v0  ;;  %v255_v25 = vsel %vm226_vm1, %v252_v43, %v254_v62 }
  0x1b   :  { %9455 = vmatprep.mubr.msk.f32.mxu1 %vm298_vm2, %v678_v52  ;;  %15355 = vst [vmem:[#allocation31_spill] sm:$0xff] %v10675_v14  ;;  %15356 = vst [vmem:[#allocation32_spill] sm:$0xff] %v10677_v15  ;;  %v258_v29 = vrot.slane %v10667_v63, 1  ;;  %v10693_v30 = vunpack.c.h.bf16 %v8700_v58  ;;  %v10695_v31 = vunpack.c.h.bf16 %v8681_v0  ;;  %v684_v32 = vsel %vm226_vm1, %v681_v55, %v683_v1  ;;  %v8702_v52 = vld [vmem:[%s15091_s0 + $0xf8] sm:$0xff]  }
  0x1c   :  { %15357 = vst [vmem:[#allocation33_spill] sm:$0xff] %v10681_v21  ;;  %15358 = vst [vmem:[#allocation34_spill] sm:$0xff] %v10684_v22  ;;  %v257_v34 = vsel %vm226_vm1, %v254_v62, %v256_v5  ;;  %v687_v35 = vrot.slane %v10675_v14, 1  ;;  %v260_v36 = vrot.slane %v10677_v15, 1  ;;  %v686_v43 = vsel %vm226_vm1, %v683_v1, %v685_v20 }
  0x1d   :  { %9400 = vmatmul.mubr.msk.f32.gmra.mxu0 %vm298_vm2, %v251_v57  ;;  %15359 = vst [vmem:[#allocation35_spill] sm:$0xff] %v10693_v30  ;;  %15360 = vst [vmem:[#allocation36_spill] sm:$0xff] %v10695_v31  ;;  %v689_v47 = vrot.slane %v10681_v21, 1  ;;  %v10707_v48 = vunpack.c.l.bf16 %v8701_v23  ;;  %v262_v51 = vrot.slane %v10684_v22, 1  ;;  %v259_v55 = vsel %vm226_vm1, %v256_v5, %v258_v29  ;;  %v8683_v5 = vld [vmem:[%s15091_s0 + $0x58] sm:$0xff]  }
  0x1e   :  { %9456 = vmatmul.mubr.msk.f32.gmra.mxu1 %vm298_vm2, %v680_v59  ;;  %9402 = vmatprep.mubr.msk.f32.mxu0 %vm298_vm2, %v253_v61  ;;  %v691_v57 = vrot.slane %v10693_v30, 1  ;;  %v264_v58 = vrot.slane %v10695_v31, 1  ;;  %v10719_v59 = vunpack.c.l.bf16 %v8682_v42  ;;  %v688_v61 = vsel %vm226_vm1, %v685_v20, %v687_v35 }
  0x1f   :  { %9458 = vmatprep.mubr.msk.f32.mxu1 %vm298_vm2, %v682_v19  ;;  %15361 = vst [vmem:[#allocation37_spill] sm:$0xff] %v10707_v48  ;;  %v261_v62 = vsel %vm226_vm1, %v258_v29, %v260_v36  ;;  %v10724_v0 = vunpack.c.h.bf16 %v8701_v23  ;;  %v10726_v1 = vunpack.c.h.bf16 %v8682_v42  ;;  %v690_v19 = vsel %vm226_vm1, %v687_v35, %v689_v47  ;;  %v8703_v23 = vld [vmem:[%s15091_s0 + $0x100] sm:$0xff]  }
  0x20   :  { %15362 = vst [vmem:[#allocation38_spill] sm:$0xff] %v10719_v59  ;;  %v263_v20 = vsel %vm226_vm1, %v260_v36, %v262_v51  ;;  %v692_v29 = vsel %vm226_vm1, %v689_v47, %v691_v57  ;;  %v266_v35 = vrot.slane %v10719_v59, 1  ;;  %v10745_v42 = vunpack.c.l.bf16 %v8683_v5  ;;  %v8684_v36 = vld [vmem:[%s15091_s0 + $0x60] sm:$0xff]  }
  0x21   :  { %9403 = vmatmul.mubr.msk.f32.gmra.mxu0 %vm298_vm2, %v255_v25  ;;  %15363 = vst [vmem:[#allocation39_spill] sm:$0xff] %v10724_v0  ;;  %15364 = vst [vmem:[#allocation40_spill] sm:$0xff] %v10726_v1  ;;  %v693_v25 = vrot.slane %v10707_v48, 1  ;;  %v10759_v59 = vunpack.c.l.bf16 %v8703_v23  ;;  %v10762_v48 = vunpack.c.l.bf16 %v8684_v36  ;;  %vm7655_vm9 = vcmask 259072  }
  0x22   :  { %9459 = vmatmul.mubr.msk.f32.gmra.mxu1 %vm298_vm2, %v684_v32  ;;  %9405 = vmatprep.mubr.msk.f32.mxu0 %vm298_vm2, %v257_v34  ;;  %v10733_v32 = vunpack.c.l.bf16 %v8702_v52  ;;  %v265_v34 = vsel %vm226_vm1, %v262_v51, %v264_v58  ;;  %15366 = vst [vmem:[#allocation42_spill] sm:$0xff] %v10745_v42  ;;  %vm7754_vm10 = vcmask 1041409   ;;  %vm7834_vm11 = vcmask 386048  }
  0x23   :  { %9461 = vmatprep.mubr.msk.f32.mxu1 %vm298_vm2, %v686_v43  ;;  %v695_v43 = vrot.slane %v10724_v0, 1  ;;  %v694_v47 = vsel %vm226_vm1, %v691_v57, %v693_v25  ;;  %15369 = vst [vmem:[#allocation45_spill] sm:$0xff] %v10759_v59  ;;  %15370 = vst [vmem:[#allocation46_spill] sm:$0xff] %v10762_v48  ;;  %v270_v57 = vrot.slane %v10745_v42, 1 }
  0x24   :  { %15365 = vst [vmem:[#allocation41_spill] sm:$0xff] %v10733_v32  ;;  %v697_v51 = vrot.slane %v10733_v32, 1  ;;  %v10773_v32 = vunpack.c.h.bf16 %v8684_v36 }
  0x25   :  { %9406 = vmatmul.mubr.msk.f32.gmra.mxu0 %vm298_vm2, %v259_v55  ;;  %v268_v55 = vrot.slane %v10726_v1, 1 }
  0x26   :  { %9462 = vmatmul.mubr.msk.f32.gmra.mxu1 %vm298_vm2, %v688_v61  ;;  %9408 = vmatprep.mubr.msk.f32.mxu0 %vm298_vm2, %v261_v62  ;;  %v10753_v61 = vunpack.c.h.bf16 %v8702_v52  ;;  %v10755_v62 = vunpack.c.h.bf16 %v8683_v5  ;;  %v267_v52 = vsel %vm226_vm1, %v264_v58, %v266_v35  ;;  %v10771_v5 = vunpack.c.h.bf16 %v8703_v23  ;;  %15372 = vst [vmem:[#allocation48_spill] sm:$0xff] %v10773_v32  ;;  %v8685_v58 = vld [vmem:[%s15091_s0 + $0x68] sm:$0xff]  }
  0x27   :  { %9464 = vmatprep.mubr.msk.f32.mxu1 %vm298_vm2, %v690_v19  ;;  %v8704_v19 = vld [vmem:[%s15091_s0 + $0x108] sm:$0xff]   ;;  %v269_v1 = vsel %vm226_vm1, %v266_v35, %v268_v55  ;;  %v701_v23 = vrot.slane %v10759_v59, 1  ;;  %v8705_v35 = vld [vmem:[%s15091_s0 + $0x110] sm:$0xff]   ;;  %v276_v59 = vrot.slane %v10773_v32, 1  ;;  %v10804_v42 = vunpack.c.h.bf16 %v8685_v58 }
  0x28   :  { %15367 = vst [vmem:[#allocation43_spill] sm:$0xff] %v10753_v61  ;;  %15368 = vst [vmem:[#allocation44_spill] sm:$0xff] %v10755_v62  ;;  %v699_v0 = vrot.slane %v10753_v61, 1  ;;  %v10785_v36 = vunpack.c.l.bf16 %v8704_v19  ;;  %v10802_v61 = vunpack.c.h.bf16 %v8704_v19  ;;  %v10811_v32 = vunpack.c.l.bf16 %v8705_v35  ;;  %v8706_v19 = vld [vmem:[%s15091_s0 + $0x118] sm:$0xff]  }
  0x29   :  { %9409 = vmatmul.mubr.msk.f32.gmra.mxu0 %vm298_vm2, %v263_v20  ;;  %15371 = vst [vmem:[#allocation47_spill] sm:$0xff] %v10771_v5  ;;  %v696_v20 = vsel %vm226_vm1, %v693_v25, %v695_v43  ;;  %v274_v25 = vrot.slane %v10762_v48, 1  ;;  %15376 = vst [vmem:[#allocation52_spill] sm:$0xff] %v10804_v42 }
  0x2a   :  { %9465 = vmatmul.mubr.msk.f32.gmra.mxu1 %vm298_vm2, %v692_v29  ;;  %9411 = vmatprep.mubr.msk.f32.mxu0 %vm298_vm2, %v265_v34  ;;  %v272_v29 = vrot.slane %v10755_v62, 1  ;;  %v698_v34 = vsel %vm226_vm1, %v695_v43, %v697_v51  ;;  %15373 = vst [vmem:[#allocation49_spill] sm:$0xff] %v10785_v36  ;;  %v703_v43 = vrot.slane %v10771_v5, 1  ;;  %v10797_v62 = vunpack.c.l.bf16 %v8685_v58  ;;  %15375 = vst [vmem:[#allocation51_spill] sm:$0xff] %v10802_v61 }
  0x2b   :  { %9467 = vmatprep.mubr.msk.f32.mxu1 %vm298_vm2, %v694_v47  ;;  %v271_v47 = vsel %vm226_vm1, %v268_v55, %v270_v57  ;;  %v702_v55 = vsel %vm226_vm1, %v699_v0, %v701_v23  ;;  %15377 = vst [vmem:[#allocation53_spill] sm:$0xff] %v10811_v32 }
  0x2c   :  { %15374 = vst [vmem:[#allocation50_spill] sm:$0xff] %v10797_v62  ;;  %v273_v48 = vsel %vm226_vm1, %v270_v57, %v272_v29  ;;  %v704_v57 = vsel %vm226_vm1, %v701_v23, %v703_v43  ;;  %v278_v58 = vrot.slane %v10797_v62, 1  ;;  %v10837_v62 = vunpack.c.l.bf16 %v8706_v19 }
  0x2d   :  { %9412 = vmatmul.mubr.msk.f32.gmra.mxu0 %vm298_vm2, %v267_v52  ;;  %v700_v52 = vsel %vm226_vm1, %v697_v51, %v699_v0  ;;  %v275_v51 = vsel %vm226_vm1, %v272_v29, %v274_v25  ;;  %v277_v0 = vsel %vm226_vm1, %v274_v25, %v276_v59  ;;  %v8687_v29 = vld [vmem:[%s15091_s0 + $0x78] sm:$0xff]   ;;  %v709_v25 = vrot.slane %v10811_v32, 1 }
  0x2e   :  { %9468 = vmatmul.mubr.msk.f32.gmra.mxu1 %vm298_vm2, %v696_v20  ;;  %9414 = vmatprep.mubr.msk.f32.mxu0 %vm298_vm2, %v269_v1  ;;  %v8686_v1 = vld [vmem:[%s15091_s0 + $0x70] sm:$0xff]   ;;  %v705_v20 = vrot.slane %v10785_v36, 1  ;;  %v10831_v36 = vunpack.c.h.bf16 %v8705_v35  ;;  %15381 = vst [vmem:[#allocation57_spill] sm:$0xff] %v10837_v62  ;;  %v10840_v5 = vunpack.c.l.bf16 %v8687_v29  ;;  %v279_v35 = vsel %vm226_vm1, %v276_v59, %v278_v58  ;;  %v8688_v59 = vld [vmem:[%s15091_s0 + $0x80] sm:$0xff]  }
  0x2f   :  { %9470 = vmatprep.mubr.msk.f32.mxu1 %vm298_vm2, %v698_v34  ;;  %v10823_v34 = vunpack.c.l.bf16 %v8686_v1  ;;  %v10851_v32 = vunpack.c.h.bf16 %v8687_v29 }
  0x30   :  { %15379 = vst [vmem:[#allocation55_spill] sm:$0xff] %v10831_v36  ;;  %v706_v23 = vsel %vm226_vm1, %v703_v43, %v705_v20  ;;  %15382 = vst [vmem:[#allocation58_spill] sm:$0xff] %v10840_v5 }
  0x31   :  { %9415 = vmatmul.mubr.msk.f32.gmra.mxu0 %vm298_vm2, %v271_v47  ;;  %15378 = vst [vmem:[#allocation54_spill] sm:$0xff] %v10823_v34  ;;  %v707_v47 = vrot.slane %v10802_v61, 1  ;;  %v282_v43 = vrot.slane %v10823_v34, 1  ;;  %15384 = vst [vmem:[#allocation60_spill] sm:$0xff] %v10851_v32  ;;  %v711_v61 = vrot.slane %v10831_v36, 1  ;;  %v10882_v34 = vunpack.c.h.bf16 %v8688_v59 }
  0x32   :  { %9471 = vmatmul.mubr.msk.f32.gmra.mxu1 %vm298_vm2, %v700_v52  ;;  %9417 = vmatprep.mubr.msk.f32.mxu0 %vm298_vm2, %v273_v48  ;;  %v280_v52 = vrot.slane %v10804_v42, 1  ;;  %v10833_v48 = vunpack.c.h.bf16 %v8686_v1  ;;  %v10849_v1 = vunpack.c.h.bf16 %v8706_v19  ;;  %v713_v19 = vrot.slane %v10837_v62, 1 }
  0x33   :  { %9473 = vmatprep.mubr.msk.f32.mxu1 %vm298_vm2, %v702_v55  ;;  %v8707_v55 = vld [vmem:[%s15091_s0 + $0x120] sm:$0xff]   ;;  %v288_v62 = vrot.slane %v10851_v32, 1  ;;  %15388 = vst [vmem:[#allocation64_spill] sm:$0xff] %v10882_v34 }
  0x34   :  { %15380 = vst [vmem:[#allocation56_spill] sm:$0xff] %v10833_v48  ;;  %15383 = vst [vmem:[#allocation59_spill] sm:$0xff] %v10849_v1  ;;  %v281_v42 = vsel %vm226_vm1, %v278_v58, %v280_v52  ;;  %v10863_v29 = vunpack.c.l.bf16 %v8707_v55  ;;  %v8708_v58 = vld [vmem:[%s15091_s0 + $0x128] sm:$0xff]   ;;  %v10880_v36 = vunpack.c.h.bf16 %v8707_v55  ;;  %v10896_v55 = vld [vmem:[%s15091_s0 + $0x130] sm:$0xff]  }
  0x35   :  { %9418 = vmatmul.mubr.msk.f32.gmra.mxu0 %vm298_vm2, %v275_v51  ;;  %v708_v51 = vsel %vm226_vm1, %v705_v20, %v707_v47  ;;  %v286_v20 = vrot.slane %v10840_v5, 1  ;;  %v10889_v32 = vunpack.c.l.bf16 %v8708_v58  ;;  %15390 = vst [vmem:[#allocation66_spill] sm:$0xff] %v10896_v55 }
  0x36   :  { %9474 = vmatmul.mubr.msk.f32.gmra.mxu1 %vm298_vm2, %v704_v57  ;;  %9420 = vmatprep.mubr.msk.f32.mxu0 %vm298_vm2, %v277_v0  ;;  %v284_v57 = vrot.slane %v10833_v48, 1  ;;  %v710_v0 = vsel %vm226_vm1, %v707_v47, %v709_v25  ;;  %15385 = vst [vmem:[#allocation61_spill] sm:$0xff] %v10863_v29  ;;  %v715_v47 = vrot.slane %v10849_v1, 1  ;;  %v10875_v48 = vunpack.c.l.bf16 %v8688_v59  ;;  %15387 = vst [vmem:[#allocation63_spill] sm:$0xff] %v10880_v36 }
  0x37   :  { %9476 = vmatprep.mubr.msk.f32.mxu1 %vm298_vm2, %v706_v23  ;;  %v283_v23 = vsel %vm226_vm1, %v280_v52, %v282_v43  ;;  %v714_v52 = vsel %vm226_vm1, %v711_v61, %v713_v19  ;;  %15389 = vst [vmem:[#allocation65_spill] sm:$0xff] %v10889_v32 }
  0x38   :  { %15386 = vst [vmem:[#allocation62_spill] sm:$0xff] %v10875_v48  ;;  %v285_v5 = vsel %vm226_vm1, %v282_v43, %v284_v57  ;;  %v716_v43 = vsel %vm226_vm1, %v713_v19, %v715_v47  ;;  %v290_v59 = vrot.slane %v10875_v48, 1  ;;  %v721_v19 = vrot.slane %v10889_v32, 1 }
  0x39   :  { %9421 = vmatmul.mubr.msk.f32.gmra.mxu0 %vm298_vm2, %v279_v35  ;;  %v712_v35 = vsel %vm226_vm1, %v709_v25, %v711_v61  ;;  %v287_v25 = vsel %vm226_vm1, %v284_v57, %v286_v20  ;;  %v289_v61 = vsel %vm226_vm1, %v286_v20, %v288_v62  ;;  %v719_v57 = vrot.slane %v10880_v36, 1 }
  0x3a   :  { %9477 = vmatmul.mubr.msk.f32.gmra.mxu1 %vm298_vm2, %v708_v51  ;;  %9423 = vmatprep.mubr.msk.f32.mxu0 %vm298_vm2, %v281_v42  ;;  %v8689_v42 = vld [vmem:[%s15091_s0 + $0x88] sm:$0xff]   ;;  %v717_v51 = vrot.slane %v10863_v29, 1  ;;  %v10908_v29 = vunpack.c.h.bf16 %v8708_v58  ;;  %v10915_v20 = vunpack.c.l.bf16 %v10896_v55 }
  0x3b   :  { %9479 = vmatprep.mubr.msk.f32.mxu1 %vm298_vm2, %v710_v0  ;;  %v10903_v0 = vunpack.c.l.bf16 %v8689_v42  ;;  %v10910_v1 = vunpack.c.h.bf16 %v8689_v42 }
  0x3c   :  { %15392 = vst [vmem:[#allocation68_spill] sm:$0xff] %v10908_v29  ;;  %15394 = vst [vmem:[#allocation70_spill] sm:$0xff] %v10915_v20  ;;  %v720_v42 = vsel %vm226_vm1, %v717_v51, %v719_v57 }
  0x3d   :  { %9424 = vmatmul.mubr.msk.f32.gmra.mxu0 %vm298_vm2, %v283_v23  ;;  %15391 = vst [vmem:[#allocation67_spill] sm:$0xff] %v10903_v0  ;;  %v292_v23 = vrot.slane %v10882_v34, 1  ;;  %15393 = vst [vmem:[#allocation69_spill] sm:$0xff] %v10910_v1  ;;  %v294_v58 = vrot.slane %v10903_v0, 1  ;;  %v296_v55 = vrot.slane %v10910_v1, 1 }
  0x3e   :  { %9480 = vmatmul.mubr.msk.f32.gmra.mxu1 %vm298_vm2, %v712_v35  ;;  %9426 = vmatprep.mubr.msk.f32.mxu0 %vm298_vm2, %v285_v5  ;;  %v718_v5 = vsel %vm226_vm1, %v715_v47, %v717_v51  ;;  %v291_v35 = vsel %vm226_vm1, %v288_v62, %v290_v59 }
  0x3f   :  { %9482 = vmatprep.mubr.msk.f32.mxu1 %vm298_vm2, %v714_v52  ;;  %v293_v47 = vsel %vm226_vm1, %v290_v59, %v292_v23  ;;  %v723_v52 = vrot.slane %v10908_v29, 1  ;;  %v295_v62 = vsel %vm226_vm1, %v292_v23, %v294_v58  ;;  %v15397_v23 = vld [vmem:[#allocation39_spill] sm:$0xff] }
  0x41   :  { %9427 = vmatmul.mubr.msk.f32.gmra.mxu0 %vm298_vm2, %v287_v25  ;;  %v722_v25 = vsel %vm226_vm1, %v719_v57, %v721_v19  ;;  %v724_v51 = vsel %vm226_vm1, %v721_v19, %v723_v52  ;;  %v10952_v57 = vld [vmem:[%s15090_s1 + $0xc] sm:$0xf]  ;;  %v15399_v19 = vld [vmem:[#allocation41_spill] sm:$0xff] }
  0x42   :  { %9483 = vmatmul.mubr.msk.f32.gmra.mxu1 %vm298_vm2, %v716_v43  ;;  %9429 = vmatprep.mubr.msk.f32.mxu0 %vm298_vm2, %v289_v61  ;;  %v725_v43 = vrot.slane %v10915_v20, 1  ;;  %v297_v61 = vsel %vm226_vm1, %v294_v58, %v296_v55  ;;  %v15401_v58 = vld [vmem:[#allocation43_spill] sm:$0xff] }
  0x43   :  { %9485 = vmatprep.mubr.msk.f32.mxu1 %vm298_vm2, %v718_v5  ;;  %v15398_v5 = vld [vmem:[#allocation40_spill] sm:$0xff] }
  0x44   :  { %v726_v59 = vsel %vm226_vm1, %v723_v52, %v725_v43  ;;  %v15404_v52 = vld [vmem:[#allocation46_spill] sm:$0xff] }
  0x45   :  { %9430 = vmatmul.mubr.msk.f32.gmra.mxu0 %vm298_vm2, %v291_v35  ;;  %v15400_v35 = vld [vmem:[#allocation42_spill] sm:$0xff] }
  0x46   :  { %9486 = vmatmul.mubr.msk.f32.gmra.mxu1 %vm298_vm2, %v720_v42  ;;  %9432 = vmatprep.mubr.msk.f32.mxu0 %vm298_vm2, %v293_v47  ;;  %v15402_v42 = vld [vmem:[#allocation44_spill] sm:$0xff]  ;;  %v15403_v47 = vld [vmem:[#allocation45_spill] sm:$0xff] }
  0x47   :  { %9488 = vmatprep.mubr.msk.f32.mxu1 %vm298_vm2, %v722_v25  ;;  %v15405_v25 = vld [vmem:[#allocation47_spill] sm:$0xff] }
  0x49   :  { %9433 = vmatmul.mubr.msk.f32.gmra.mxu0 %vm298_vm2, %v295_v62  ;;  %v15407_v62 = vld [vmem:[#allocation49_spill] sm:$0xff] }
  0x4a   :  { %9489 = vmatmul.mubr.msk.f32.gmra.mxu1 %vm298_vm2, %v724_v51  ;;  %9435 = vmatprep.mubr.msk.f32.mxu0 %vm298_vm2, %v297_v61  ;;  %v15408_v51 = vld [vmem:[#allocation50_spill] sm:$0xff]  ;;  %v15409_v61 = vld [vmem:[#allocation51_spill] sm:$0xff] }
  0x4b   :  { %9491 = vmatprep.mubr.msk.f32.mxu1 %vm298_vm2, %v726_v59  ;;  %v15410_v59 = vld [vmem:[#allocation52_spill] sm:$0xff] }
  0x4d   :  { %9436 = vmatmul.mubr.msk.f32.gmra.mxu0 %vm298_vm2, %v296_v55  ;;  %v15396_v55 = vld [vmem:[#allocation38_spill] sm:$0xff] }
  0x4e   :  { %9492 = vmatmul.mubr.msk.f32.gmra.mxu1 %vm298_vm2, %v725_v43  ;;  %9496 = vmatprep.mubr.msk.f32.mxu0 %vm298_vm2, %v10459_v3  ;;  %v15406_v43 = vld [vmem:[#allocation48_spill] sm:$0xff] }
  0x4f   :  { %9552 = vmatprep.mubr.msk.f32.mxu1 %vm298_vm2, %v10466_v6 }
  0x51   :  { %9497 = vmatmul.mubr.msk.f32.vlgmr.msra.gmra.mxu0 %vm298_vm2, %v10461_v4 }
  0x52   :  { %9553 = vmatmul.mubr.msk.f32.vlgmr.msra.gmra.mxu1 %vm298_vm2, %v10476_v9  ;;  %9607 = vmatpush3.msk.msra.mxu0 %vm371_vm0, %v10584_v2 }
  0x53   :  { %9663 = vmatpush3.msk.msra.mxu1 %vm371_vm0, %v10584_v2  ;;  %9499 = vmatprep.mubr.msk.f32.mxu0 %vm298_vm2, %v10480_v11  ;;  %v15395_v2 = vld [vmem:[#allocation37_spill] sm:$0xff] }
  0x54   :  { %9555 = vmatprep.mubr.msk.f32.mxu1 %vm298_vm2, %v10478_v10  ;;  %9718 = vmatprep.subr.msk.mxu0 %vm371_vm0, %v10952_v57 }
  0x55   :  { %9500 = vmatmul.mubr.msk.f32.gmra.mxu0 %vm298_vm2, %v10482_v12  ;;  %9774 = vmatprep.subr.msk.mxu1 %vm371_vm0, %v10952_v57 }
  0x56   :  { %9556 = vmatmul.mubr.msk.f32.gmra.mxu1 %vm298_vm2, %v10495_v18  ;;  %9502 = vmatprep.mubr.msk.f32.mxu0 %vm298_vm2, %v10505_v26 }
  0x57   :  { %9558 = vmatprep.mubr.msk.f32.mxu1 %vm298_vm2, %v10502_v24 }
  0x59   :  { %9503 = vmatmul.mubr.msk.f32.gmra.mxu0 %vm298_vm2, %v10526_v37 }
  0x5a   :  { %9559 = vmatmul.mubr.msk.f32.gmra.mxu1 %vm298_vm2, %v10530_v38  ;;  %9505 = vmatprep.mubr.msk.f32.mxu0 %vm298_vm2, %v10532_v39 }
  0x5b   :  { %9561 = vmatprep.mubr.msk.f32.mxu1 %vm298_vm2, %v10534_v40 }
  0x5d   :  { %9506 = vmatmul.mubr.msk.f32.gmra.mxu0 %vm298_vm2, %v10536_v41 }
  0x5e   :  { %9562 = vmatmul.mubr.msk.f32.gmra.mxu1 %vm298_vm2, %v10546_v46  ;;  %9508 = vmatprep.mubr.msk.f32.mxu0 %vm298_vm2, %v10556_v53 }
  0x5f   :  { %9564 = vmatprep.mubr.msk.f32.mxu1 %vm298_vm2, %v10558_v54 }
  0x61   :  { %9509 = vmatmul.mubr.msk.f32.gmra.mxu0 %vm298_vm2, %v10571_v60 }
  0x62   :  { %9565 = vmatmul.mubr.msk.f32.gmra.mxu1 %vm298_vm2, %v10587_v7  ;;  %9511 = vmatprep.mubr.msk.f32.mxu0 %vm298_vm2, %v10589_v8 }
  0x63   :  { %9567 = vmatprep.mubr.msk.f32.mxu1 %vm298_vm2, %v10591_v13 }
  0x65   :  { %9512 = vmatmul.mubr.msk.f32.gmra.mxu0 %vm298_vm2, %v10602_v16 }
  0x66   :  { %9568 = vmatmul.mubr.msk.f32.gmra.mxu1 %vm298_vm2, %v10604_v17  ;;  %9514 = vmatprep.mubr.msk.f32.mxu0 %vm298_vm2, %v10615_v27 }
  0x67   :  { %9570 = vmatprep.mubr.msk.f32.mxu1 %vm298_vm2, %v10617_v28 }
  0x69   :  { %9515 = vmatmul.mubr.msk.f32.gmra.mxu0 %vm298_vm2, %v10627_v33 }
  0x6a   :  { %9571 = vmatmul.mubr.msk.f32.gmra.mxu1 %vm298_vm2, %v10639_v44  ;;  %9517 = vmatprep.mubr.msk.f32.mxu0 %vm298_vm2, %v10641_v45 }
  0x6b   :  { %9573 = vmatprep.mubr.msk.f32.mxu1 %vm298_vm2, %v10646_v49 }
  0x6d   :  { %9518 = vmatmul.mubr.msk.f32.gmra.mxu0 %vm298_vm2, %v10648_v50 }
  0x6e   :  { %9574 = vmatmul.mubr.msk.f32.gmra.mxu1 %vm298_vm2, %v10655_v56  ;;  %9520 = vmatprep.mubr.msk.f32.mxu0 %vm298_vm2, %v10667_v63 }
  0x6f   :  { %9576 = vmatprep.mubr.msk.f32.mxu1 %vm298_vm2, %v10675_v14 }
  0x71   :  { %9521 = vmatmul.mubr.msk.f32.gmra.mxu0 %vm298_vm2, %v10677_v15 }
  0x72   :  { %9577 = vmatmul.mubr.msk.f32.gmra.mxu1 %vm298_vm2, %v10681_v21  ;;  %9523 = vmatprep.mubr.msk.f32.mxu0 %vm298_vm2, %v10684_v22 }
  0x73   :  { %9579 = vmatprep.mubr.msk.f32.mxu1 %vm298_vm2, %v10693_v30 }
  0x75   :  { %9524 = vmatmul.mubr.msk.f32.gmra.mxu0 %vm298_vm2, %v10695_v31 }
  0x76   :  { %9580 = vmatmul.mubr.msk.f32.gmra.mxu1 %vm298_vm2, %v15395_v2  ;;  %9526 = vmatprep.mubr.msk.f32.mxu0 %vm298_vm2, %v15396_v55 }
  0x77   :  { %9582 = vmatprep.mubr.msk.f32.mxu1 %vm298_vm2, %v15397_v23 }
  0x79   :  { %9527 = vmatmul.mubr.msk.f32.gmra.mxu0 %vm298_vm2, %v15398_v5 }
  0x7a   :  { %9583 = vmatmul.mubr.msk.f32.gmra.mxu1 %vm298_vm2, %v15399_v19  ;;  %9529 = vmatprep.mubr.msk.f32.mxu0 %vm298_vm2, %v15400_v35 }
  0x7b   :  { %9585 = vmatprep.mubr.msk.f32.mxu1 %vm298_vm2, %v15401_v58 }
  0x7d   :  { %9530 = vmatmul.mubr.msk.f32.gmra.mxu0 %vm298_vm2, %v15402_v42 }
  0x7e   :  { %9586 = vmatmul.mubr.msk.f32.gmra.mxu1 %vm298_vm2, %v15403_v47  ;;  %9532 = vmatprep.mubr.msk.f32.mxu0 %vm298_vm2, %v15404_v52  ;;  %v15411_v47 = vld [vmem:[#allocation53_spill] sm:$0xff]  ;;  %v15412_v52 = vld [vmem:[#allocation54_spill] sm:$0xff] }
  0x7f   :  { %9588 = vmatprep.mubr.msk.f32.mxu1 %vm298_vm2, %v15405_v25  ;;  %v15413_v25 = vld [vmem:[#allocation55_spill] sm:$0xff] }
  0x81   :  { %9533 = vmatmul.mubr.msk.f32.gmra.mxu0 %vm298_vm2, %v15406_v43  ;;  %v15414_v43 = vld [vmem:[#allocation56_spill] sm:$0xff] }
  0x82   :  { %9589 = vmatmul.mubr.msk.f32.gmra.mxu1 %vm298_vm2, %v15407_v62  ;;  %9535 = vmatprep.mubr.msk.f32.mxu0 %vm298_vm2, %v15408_v51  ;;  %v15415_v62 = vld [vmem:[#allocation57_spill] sm:$0xff]  ;;  %v15416_v51 = vld [vmem:[#allocation58_spill] sm:$0xff] }
  0x83   :  { %9591 = vmatprep.mubr.msk.f32.mxu1 %vm298_vm2, %v15409_v61  ;;  %v15417_v61 = vld [vmem:[#allocation59_spill] sm:$0xff] }
  0x85   :  { %9536 = vmatmul.mubr.msk.f32.gmra.mxu0 %vm298_vm2, %v15410_v59  ;;  %v15418_v59 = vld [vmem:[#allocation60_spill] sm:$0xff] }
  0x86   :  { %9592 = vmatmul.mubr.msk.f32.gmra.mxu1 %vm298_vm2, %v15411_v47  ;;  %9538 = vmatprep.mubr.msk.f32.mxu0 %vm298_vm2, %v15412_v52  ;;  %v15419_v47 = vld [vmem:[#allocation61_spill] sm:$0xff] }
  0x87   :  { %9594 = vmatprep.mubr.msk.f32.mxu1 %vm298_vm2, %v15413_v25 }
  0x89   :  { %9539 = vmatmul.mubr.msk.f32.gmra.mxu0 %vm298_vm2, %v15414_v43  ;;  %v1685_v43 = vrot.slane %v10461_v4, 2  ;;  %v2078_v4 = vrot.slane %v10478_v10, 2  ;;  %v2082_v10 = vrot.slane %v10502_v24, 2 }
  0x8a   :  { %9595 = vmatmul.mubr.msk.f32.gmra.mxu1 %vm298_vm2, %v15415_v62  ;;  %9541 = vmatprep.mubr.msk.f32.mxu0 %vm298_vm2, %v15416_v51  ;;  %v1684_v62 = vrot.slane %v10459_v3, 2  ;;  %v2075_v51 = vrot.slane %v10466_v6, 2 }
  0x8b   :  { %9597 = vmatprep.mubr.msk.f32.mxu1 %vm298_vm2, %v15417_v61  ;;  %v2076_v61 = vrot.slane %v10476_v9, 2  ;;  %v1689_v9 = vrot.slane %v10482_v12, 2  ;;  %v1693_v12 = vrot.slane %v10526_v37, 2  ;;  %v15428_v37 = vld [vmem:[#allocation48_spill] sm:$0xff] }
  0x8c   :  { %v1686_v3 = vsel %vm1683_vm3, %v1684_v62, %v1685_v43  ;;  %v1691_v62 = vrot.slane %v10505_v26, 2  ;;  %v1733_v24 = vrot.slane %v15428_v37, 2  ;;  %v15434_v37 = vld [vmem:[#allocation51_spill] sm:$0xff] }
  0x8d   :  { %9542 = vmatmul.mubr.msk.f32.gmra.mxu0 %vm298_vm2, %v15418_v59  ;;  %v2077_v6 = vsel %vm1683_vm3, %v2075_v51, %v2076_v61  ;;  %v2079_v51 = vsel %vm1683_vm3, %v2076_v61, %v2078_v4  ;;  %v1695_v61 = vrot.slane %v10532_v39, 2 }
  0x8e   :  { %9598 = vmatmul.mubr.msk.f32.gmra.mxu1 %vm298_vm2, %v15419_v47  ;;  %9544 = vmatprep.mubr.msk.f32.mxu0 %vm298_vm2, %v10875_v48 }
  0x8f   :  { %9600 = vmatprep.mubr.msk.f32.mxu1 %vm298_vm2, %v10880_v36  ;;  %v1687_v36 = vrot.slane %v10480_v11, 2 }
  0x91   :  { %9545 = vmatmul.mubr.msk.f32.gmra.mxu0 %vm298_vm2, %v10882_v34  ;;  %v1688_v11 = vsel %vm1683_vm3, %v1685_v43, %v1687_v36  ;;  %v11128_v43 = vld [vmem:[%s15090_s1 + $0x10] sm:$0xf] }
  0x92   :  { %9601 = vmatmul.mubr.msk.f32.gmra.mxu1 %vm298_vm2, %v10889_v32  ;;  %9547 = vmatprep.mubr.msk.f32.mxu0 %vm298_vm2, %v10903_v0  ;;  %v2080_v32 = vrot.slane %v10495_v18, 2  ;;  %v2084_v18 = vrot.slane %v10530_v38, 2 }
  0x93   :  { %9603 = vmatprep.mubr.msk.f32.mxu1 %vm298_vm2, %v10908_v29 }
  0x95   :  { %9548 = vmatmul.mubr.msk.f32.gmra.mxu0 %vm298_vm2, %v10910_v1  ;;  %v11118_v1 = vsel %vm1683_vm3, %v1687_v36, %v1689_v9  ;;  %v11134_v36 = vsel %vm1683_vm3, %v1689_v9, %v1691_v62  ;;  %v11152_v9 = vsel %vm1683_vm3, %v2082_v10, %v2084_v18 }
  0x96   :  { %9604 = vmatmul.mubr.msk.f32.gmra.mxu1 %vm298_vm2, %v10915_v20  ;;  %9608 = vmatprep.mubr.msk.f32.mxu0 %vm298_vm2, %v1686_v3  ;;  %v11123_v3 = vsel %vm1683_vm3, %v2078_v4, %v2080_v32  ;;  %v11145_v4 = vsel %vm1683_vm3, %v1691_v62, %v1693_v12 }
  0x97   :  { %9664 = vmatprep.mubr.msk.f32.mxu1 %vm298_vm2, %v2077_v6  ;;  %v2086_v6 = vrot.slane %v10534_v40, 2  ;;  %v1701_v40 = vrot.slane %v10571_v60, 2  ;;  %v2094_v60 = vrot.slane %v10591_v13, 2  ;;  %v1709_v13 = vrot.slane %v10627_v33, 2 }
  0x98   :  { %v2102_v33 = vrot.slane %v10646_v49, 2  ;;  %v1717_v49 = vrot.slane %v10677_v15, 2  ;;  %v2110_v15 = vrot.slane %v10693_v30, 2  ;;  %v1725_v30 = vrot.slane %v15398_v5, 2 }
  0x99   :  { %9609 = vmatmul.mubr.msk.f32.vlgmr.msra.gmra.mxu0 %vm298_vm2, %v1688_v11  ;;  %v11142_v11 = vsel %vm1683_vm3, %v2080_v32, %v2082_v10  ;;  %v11166_v10 = vsel %vm1683_vm3, %v1693_v12, %v1695_v61  ;;  %v1699_v32 = vrot.slane %v10556_v53, 2  ;;  %v11172_v62 = vsel %vm1683_vm3, %v2084_v18, %v2086_v6 }
  0x9a   :  { %9665 = vmatmul.mubr.msk.f32.vlgmr.msra.gmra.mxu1 %vm298_vm2, %v2079_v51  ;;  %9719 = vmatpush3.msk.msra.mxu0 %vm371_vm0, %v10952_v57  ;;  %v1697_v51 = vrot.slane %v10536_v41, 2  ;;  %v2090_v41 = vrot.slane %v10558_v54, 2  ;;  %v2092_v12 = vrot.slane %v10587_v7, 2  ;;  %v1705_v54 = vrot.slane %v10602_v16, 2 }
  0x9b   :  { %9775 = vmatpush3.msk.msra.mxu1 %vm371_vm0, %v10952_v57  ;;  %9611 = vmatprep.mubr.msk.f32.mxu0 %vm298_vm2, %v11118_v1  ;;  %v2088_v57 = vrot.slane %v10546_v46, 2  ;;  %v11199_v7 = vsel %vm1683_vm3, %v1699_v32, %v1701_v40  ;;  %v2098_v16 = vrot.slane %v10617_v28, 2  ;;  %v1713_v28 = vrot.slane %v10648_v50, 2 }
  0x9c   :  { %9667 = vmatprep.mubr.msk.f32.mxu1 %vm298_vm2, %v11123_v3  ;;  %9830 = vmatprep.subr.msk.mxu0 %vm371_vm0, %v11128_v43  ;;  %v11175_v46 = vsel %vm1683_vm3, %v1695_v61, %v1697_v51  ;;  %v11190_v18 = vsel %vm1683_vm3, %v1697_v51, %v1699_v32  ;;  %v1703_v61 = vrot.slane %v10589_v8, 2  ;;  %v11204_v53 = vsel %vm1683_vm3, %v2090_v41, %v2092_v12 }
  0x9d   :  { %9612 = vmatmul.mubr.msk.f32.gmra.mxu0 %vm298_vm2, %v11134_v36  ;;  %9886 = vmatprep.subr.msk.mxu1 %vm371_vm0, %v11128_v43  ;;  %v11180_v39 = vsel %vm1683_vm3, %v2086_v6, %v2088_v57  ;;  %v11196_v6 = vsel %vm1683_vm3, %v2088_v57, %v2090_v41  ;;  %v2096_v51 = vrot.slane %v10604_v17, 2  ;;  %v1707_v32 = vrot.slane %v10615_v27, 2 }
  0x9e   :  { %9668 = vmatmul.mubr.msk.f32.gmra.mxu1 %vm298_vm2, %v11142_v11  ;;  %9614 = vmatprep.mubr.msk.f32.mxu0 %vm298_vm2, %v11145_v4  ;;  %v11214_v57 = vsel %vm1683_vm3, %v1701_v40, %v1703_v61  ;;  %v11220_v41 = vsel %vm1683_vm3, %v2092_v12, %v2094_v60  ;;  %v11223_v17 = vsel %vm1683_vm3, %v1703_v61, %v1705_v54  ;;  %v2100_v40 = vrot.slane %v10639_v44, 2 }
  0x9f   :  { %9670 = vmatprep.mubr.msk.f32.mxu1 %vm298_vm2, %v11152_v9  ;;  %v11228_v8 = vsel %vm1683_vm3, %v2094_v60, %v2096_v51  ;;  %v11238_v12 = vsel %vm1683_vm3, %v1705_v54, %v1707_v32  ;;  %v1711_v61 = vrot.slane %v10641_v45, 2  ;;  %v11244_v60 = vsel %vm1683_vm3, %v2096_v51, %v2098_v16 }
  0xa0   :  { %v11247_v44 = vsel %vm1683_vm3, %v1707_v32, %v1709_v13  ;;  %v11252_v27 = vsel %vm1683_vm3, %v2098_v16, %v2100_v40  ;;  %v2104_v54 = vrot.slane %v10655_v56, 2  ;;  %v1715_v32 = vrot.slane %v10667_v63, 2 }
  0xa1   :  { %9615 = vmatmul.mubr.msk.f32.gmra.mxu0 %vm298_vm2, %v11166_v10  ;;  %v11262_v51 = vsel %vm1683_vm3, %v1709_v13, %v1711_v61  ;;  %v11268_v16 = vsel %vm1683_vm3, %v2100_v40, %v2102_v33  ;;  %v11271_v56 = vsel %vm1683_vm3, %v1711_v61, %v1713_v28  ;;  %v2106_v50 = vrot.slane %v10675_v14, 2 }
  0xa2   :  { %9671 = vmatmul.mubr.msk.f32.gmra.mxu1 %vm298_vm2, %v11172_v62  ;;  %9617 = vmatprep.mubr.msk.f32.mxu0 %vm298_vm2, %v11175_v46  ;;  %v11276_v45 = vsel %vm1683_vm3, %v2102_v33, %v2104_v54  ;;  %v2108_v13 = vrot.slane %v10681_v21, 2  ;;  %v11286_v40 = vsel %vm1683_vm3, %v1713_v28, %v1715_v32  ;;  %v1719_v61 = vrot.slane %v10684_v22, 2 }
  0xa3   :  { %9673 = vmatprep.mubr.msk.f32.mxu1 %vm298_vm2, %v11180_v39  ;;  %v11292_v33 = vsel %vm1683_vm3, %v2104_v54, %v2106_v50  ;;  %v11295_v21 = vsel %vm1683_vm3, %v1715_v32, %v1717_v49  ;;  %v1721_v14 = vrot.slane %v10695_v31, 2  ;;  %v2112_v28 = vrot.slane %v15395_v2, 2 }
  0xa4   :  { %v11300_v63 = vsel %vm1683_vm3, %v2106_v50, %v2108_v13  ;;  %v11310_v54 = vsel %vm1683_vm3, %v1717_v49, %v1719_v61  ;;  %v1723_v32 = vrot.slane %v15396_v55, 2  ;;  %v11316_v50 = vsel %vm1683_vm3, %v2108_v13, %v2110_v15 }
  0xa5   :  { %9618 = vmatmul.mubr.msk.f32.gmra.mxu0 %vm298_vm2, %v11190_v18  ;;  %v11319_v2 = vsel %vm1683_vm3, %v1719_v61, %v1721_v14  ;;  %v2114_v31 = vrot.slane %v15397_v23, 2  ;;  %v11324_v22 = vsel %vm1683_vm3, %v2110_v15, %v2112_v28  ;;  %v2116_v49 = vrot.slane %v15399_v19, 2 }
  0xa6   :  { %9674 = vmatmul.mubr.msk.f32.gmra.mxu1 %vm298_vm2, %v11196_v6  ;;  %9620 = vmatprep.mubr.msk.f32.mxu0 %vm298_vm2, %v11199_v7  ;;  %v11334_v13 = vsel %vm1683_vm3, %v1721_v14, %v1723_v32  ;;  %v1727_v61 = vrot.slane %v15400_v35, 2  ;;  %v11343_v19 = vsel %vm1683_vm3, %v1723_v32, %v1725_v30  ;;  %v2118_v5 = vrot.slane %v15401_v58, 2  ;;  %v15422_v14 = vld [vmem:[#allocation45_spill] sm:$0xff]  ;;  %v15424_v32 = vld [vmem:[#allocation46_spill] sm:$0xff] }
  0xa7   :  { %9676 = vmatprep.mubr.msk.f32.mxu1 %vm298_vm2, %v11204_v53  ;;  %v11340_v15 = vsel %vm1683_vm3, %v2112_v28, %v2114_v31  ;;  %15420 = vst [vmem:[#allocation71_spill] sm:$0xff] %v11343_v19  ;;  %v1729_v23 = vrot.slane %v15402_v42, 2  ;;  %v11348_v55 = vsel %vm1683_vm3, %v2114_v31, %v2116_v49  ;;  %v2120_v38 = vrot.slane %v15422_v14, 2  ;;  %v15427_v42 = vld [vmem:[#allocation47_spill] sm:$0xff] }
  0xa8   :  { %15421 = vst [vmem:[#allocation72_spill] sm:$0xff] %v11348_v55  ;;  %v11358_v28 = vsel %vm1683_vm3, %v1725_v30, %v1727_v61  ;;  %v1731_v58 = vrot.slane %v15424_v32, 2  ;;  %v11364_v31 = vsel %vm1683_vm3, %v2116_v49, %v2118_v5  ;;  %v2122_v35 = vrot.slane %v15427_v42, 2  ;;  %v15429_v30 = vld [vmem:[#allocation49_spill] sm:$0xff] }
  0xa9   :  { %9621 = vmatmul.mubr.msk.f32.gmra.mxu0 %vm298_vm2, %v11214_v57  ;;  %15423 = vst [vmem:[#allocation73_spill] sm:$0xff] %v11358_v28  ;;  %15425 = vst [vmem:[#allocation74_spill] sm:$0xff] %v11364_v31  ;;  %v11367_v14 = vsel %vm1683_vm3, %v1727_v61, %v1729_v23  ;;  %v11372_v26 = vsel %vm1683_vm3, %v2118_v5, %v2120_v38  ;;  %v15431_v61 = vld [vmem:[#allocation50_spill] sm:$0xff]  ;;  %v2126_v32 = vrot.slane %v15434_v37, 2  ;;  %v15439_v37 = vld [vmem:[#allocation56_spill] sm:$0xff] }
  0xaa   :  { %9677 = vmatmul.mubr.msk.f32.gmra.mxu1 %vm298_vm2, %v11220_v41  ;;  %9623 = vmatprep.mubr.msk.f32.mxu0 %vm298_vm2, %v11223_v17  ;;  %15426 = vst [vmem:[#allocation75_spill] sm:$0xff] %v11367_v14  ;;  %v11382_v49 = vsel %vm1683_vm3, %v1729_v23, %v1731_v58  ;;  %v1735_v42 = vrot.slane %v15431_v61, 2  ;;  %v11388_v5 = vsel %vm1683_vm3, %v2120_v38, %v2122_v35  ;;  %v15436_v23 = vld [vmem:[#allocation53_spill] sm:$0xff]  ;;  %v1741_v61 = vrot.slane %v15439_v37, 2 }
  0xab   :  { %9679 = vmatprep.mubr.msk.f32.mxu1 %vm298_vm2, %v11228_v8  ;;  %15430 = vst [vmem:[#allocation76_spill] sm:$0xff] %v11382_v49  ;;  %15432 = vst [vmem:[#allocation77_spill] sm:$0xff] %v11388_v5 }
  0xac   :  { %v11406_v38 = vsel %vm1683_vm3, %v1733_v24, %v1735_v42 }
  0xad   :  { %9624 = vmatmul.mubr.msk.f32.gmra.mxu0 %vm298_vm2, %v11238_v12 }
  0xae   :  { %9680 = vmatmul.mubr.msk.f32.gmra.mxu1 %vm298_vm2, %v11244_v60  ;;  %9626 = vmatprep.mubr.msk.f32.mxu0 %vm298_vm2, %v11247_v44 }
  0xaf   :  { %9682 = vmatprep.mubr.msk.f32.mxu1 %vm298_vm2, %v11252_v27 }
  0xb1   :  { %9627 = vmatmul.mubr.msk.f32.gmra.mxu0 %vm298_vm2, %v11262_v51 }
  0xb2   :  { %9683 = vmatmul.mubr.msk.f32.gmra.mxu1 %vm298_vm2, %v11268_v16  ;;  %9629 = vmatprep.mubr.msk.f32.mxu0 %vm298_vm2, %v11271_v56 }
  0xb3   :  { %9685 = vmatprep.mubr.msk.f32.mxu1 %vm298_vm2, %v11276_v45 }
  0xb5   :  { %9630 = vmatmul.mubr.msk.f32.gmra.mxu0 %vm298_vm2, %v11286_v40 }
  0xb6   :  { %9686 = vmatmul.mubr.msk.f32.gmra.mxu1 %vm298_vm2, %v11292_v33  ;;  %9632 = vmatprep.mubr.msk.f32.mxu0 %vm298_vm2, %v11295_v21 }
  0xb7   :  { %9688 = vmatprep.mubr.msk.f32.mxu1 %vm298_vm2, %v11300_v63 }
  0xb9   :  { %9633 = vmatmul.mubr.msk.f32.gmra.mxu0 %vm298_vm2, %v11310_v54 }
  0xba   :  { %9689 = vmatmul.mubr.msk.f32.gmra.mxu1 %vm298_vm2, %v11316_v50  ;;  %9635 = vmatprep.mubr.msk.f32.mxu0 %vm298_vm2, %v11319_v2 }
  0xbb   :  { %9691 = vmatprep.mubr.msk.f32.mxu1 %vm298_vm2, %v11324_v22 }
  0xbd   :  { %9636 = vmatmul.mubr.msk.f32.gmra.mxu0 %vm298_vm2, %v11334_v13 }
  0xbe   :  { %9692 = vmatmul.mubr.msk.f32.gmra.mxu1 %vm298_vm2, %v11340_v15  ;;  %9638 = vmatprep.mubr.msk.f32.mxu0 %vm298_vm2, %v11343_v19  ;;  %v2124_v19 = vrot.slane %v15429_v30, 2  ;;  %v11391_v30 = vsel %vm1683_vm3, %v1731_v58, %v1733_v24  ;;  %v1739_v58 = vrot.slane %v15412_v52, 2  ;;  %v15440_v24 = vld [vmem:[#allocation57_spill] sm:$0xff] }
  0xbf   :  { %9694 = vmatprep.mubr.msk.f32.mxu1 %vm298_vm2, %v11348_v55  ;;  %15433 = vst [vmem:[#allocation78_spill] sm:$0xff] %v11391_v30  ;;  %v2128_v55 = vrot.slane %v15436_v23, 2 }
  0xc1   :  { %9639 = vmatmul.mubr.msk.f32.gmra.mxu0 %vm298_vm2, %v11358_v28 }
  0xc2   :  { %9695 = vmatmul.mubr.msk.f32.gmra.mxu1 %vm298_vm2, %v11364_v31  ;;  %9641 = vmatprep.mubr.msk.f32.mxu0 %vm298_vm2, %v11367_v14  ;;  %v15435_v31 = vld [vmem:[#allocation52_spill] sm:$0xff]  ;;  %v11396_v14 = vsel %vm1683_vm3, %v2122_v35, %v2124_v19  ;;  %v11412_v35 = vsel %vm1683_vm3, %v2124_v19, %v2126_v32 }
  0xc3   :  { %9697 = vmatprep.mubr.msk.f32.mxu1 %vm298_vm2, %v11372_v26  ;;  %v1737_v28 = vrot.slane %v15435_v31, 2  ;;  %15437 = vst [vmem:[#allocation79_spill] sm:$0xff] %v11412_v35  ;;  %v2130_v31 = vrot.slane %v15413_v25, 2 }
  0xc5   :  { %9642 = vmatmul.mubr.msk.f32.gmra.mxu0 %vm298_vm2, %v11382_v49  ;;  %v11415_v23 = vsel %vm1683_vm3, %v1735_v42, %v1737_v28  ;;  %v11434_v19 = vsel %vm1683_vm3, %v1737_v28, %v1739_v58  ;;  %v15443_v42 = vld [vmem:[#allocation58_spill] sm:$0xff] }
  0xc6   :  { %9698 = vmatmul.mubr.msk.f32.gmra.mxu1 %vm298_vm2, %v11388_v5  ;;  %9644 = vmatprep.mubr.msk.f32.mxu0 %vm298_vm2, %v11391_v30  ;;  %15438 = vst [vmem:[#allocation80_spill] sm:$0xff] %v11415_v23  ;;  %v11420_v30 = vsel %vm1683_vm3, %v2126_v32, %v2128_v55  ;;  %v2132_v5 = vrot.slane %v15440_v24, 2  ;;  %v1743_v32 = vrot.slane %v15443_v42, 2  ;;  %v15447_v24 = vld [vmem:[#allocation59_spill] sm:$0xff] }
  0xc7   :  { %9700 = vmatprep.mubr.msk.f32.mxu1 %vm298_vm2, %v11396_v14  ;;  %v2134_v25 = vrot.slane %v15447_v24, 2  ;;  %v1749_v24 = vrot.slane %v10882_v34, 2  ;;  %v15459_v34 = vld [vmem:[#allocation69_spill] sm:$0xff] }
  0xc8   :  { %v11452_v28 = vsel %vm1683_vm3, %v2130_v31, %v2132_v5 }
  0xc9   :  { %v11423_v49 = vpop.f32.mrf.mxu0  ;;  %9645 = vmatmul.mubr.msk.f32.gmra.mxu0 %vm298_vm2, %v11406_v38 }
  0xca   :  { %15441 = vst [vmem:[#allocation81_spill] sm:$0xff] %v11423_v49  ;;  %v11427_v52 = vpop.f32.mrf.mxu1  ;;  %9701 = vmatmul.mubr.msk.f32.gmra.mxu1 %vm298_vm2, %v11412_v35  ;;  %9647 = vmatprep.mubr.msk.f32.mxu0 %vm298_vm2, %v11415_v23  ;;  %v11442_v49 = vsel %vm1683_vm3, %v2128_v55, %v2130_v31  ;;  %v1745_v23 = vrot.slane %v15418_v59, 2  ;;  %v1747_v31 = vrot.slane %v10875_v48, 2  ;;  %v15455_v48 = vld [vmem:[#allocation65_spill] sm:$0xff] }
  0xcb   :  { %15442 = vst [vmem:[#allocation82_spill] sm:$0xff] %v11427_v52  ;;  %v11437_v37 = vpop.f32.mrf.mxu0  ;;  %9703 = vmatprep.mubr.msk.f32.mxu1 %vm298_vm2, %v11420_v30  ;;  %15445 = vst [vmem:[#allocation84_spill] sm:$0xff] %v11442_v49  ;;  %v11445_v52 = vsel %vm1683_vm3, %v1739_v58, %v1741_v61  ;;  %v11466_v58 = vsel %vm1683_vm3, %v1741_v61, %v1743_v32 }
  0xcc   :  { %15444 = vst [vmem:[#allocation83_spill] sm:$0xff] %v11437_v37  ;;  %15446 = vst [vmem:[#allocation85_spill] sm:$0xff] %v11445_v52  ;;  %v11449_v35 = vpop.f32.mrf.mxu1  ;;  %v2136_v37 = vrot.slane %v15419_v47, 2  ;;  %v15452_v47 = vld [vmem:[#allocation63_spill] sm:$0xff] }
  0xcd   :  { %15448 = vst [vmem:[#allocation86_spill] sm:$0xff] %v11449_v35  ;;  %v11455_v42 = vpop.f32.mrf.mxu0  ;;  %9648 = vmatmul.mubr.msk.f32.gmra.mxu0 %vm298_vm2, %v11434_v19  ;;  %v2138_v59 = vrot.slane %v15452_v47, 2  ;;  %v11513_v47 = vrot.slane %v15459_v34, 2 }
  0xce   :  { %15449 = vst [vmem:[#allocation87_spill] sm:$0xff] %v11455_v42  ;;  %v11459_v55 = vpop.f32.mrf.mxu1  ;;  %9704 = vmatmul.mubr.msk.f32.gmra.mxu1 %vm298_vm2, %v11442_v49  ;;  %9650 = vmatprep.mubr.msk.f32.mxu0 %vm298_vm2, %v11445_v52  ;;  %v11474_v42 = vsel %vm1683_vm3, %v2132_v5, %v2134_v25  ;;  %v11484_v61 = vsel %vm1683_vm3, %v2134_v25, %v2136_v37  ;;  %v1751_v25 = vrot.slane %v10903_v0, 2 }
  0xcf   :  { %15450 = vst [vmem:[#allocation88_spill] sm:$0xff] %v11459_v55  ;;  %v11469_v35 = vpop.f32.mrf.mxu0  ;;  %9706 = vmatprep.mubr.msk.f32.mxu1 %vm298_vm2, %v11452_v28  ;;  %v11477_v55 = vsel %vm1683_vm3, %v1743_v32, %v1745_v23  ;;  %15454 = vst [vmem:[#allocation91_spill] sm:$0xff] %v11484_v61  ;;  %v11498_v32 = vsel %vm1683_vm3, %v1745_v23, %v1747_v31 }
  0xd0   :  { %15451 = vst [vmem:[#allocation89_spill] sm:$0xff] %v11469_v35  ;;  %v11481_v52 = vpop.f32.mrf.mxu1  ;;  %v2140_v35 = vrot.slane %v15455_v48, 2  ;;  %v2142_v48 = vrot.slane %v10908_v29, 2 }
  0xd1   :  { %15453 = vst [vmem:[#allocation90_spill] sm:$0xff] %v11481_v52  ;;  %v11487_v49 = vpop.f32.mrf.mxu0  ;;  %9651 = vmatmul.mubr.msk.f32.gmra.mxu0 %vm298_vm2, %v11466_v58 }
  0xd2   :  { %15456 = vst [vmem:[#allocation92_spill] sm:$0xff] %v11487_v49  ;;  %v11491_v5 = vpop.f32.mrf.mxu1  ;;  %9707 = vmatmul.mubr.msk.f32.gmra.mxu1 %vm298_vm2, %v11474_v42  ;;  %9653 = vmatprep.mubr.msk.f32.mxu0 %vm298_vm2, %v11477_v55  ;;  %v11506_v49 = vsel %vm1683_vm3, %v2136_v37, %v2138_v59  ;;  %v11518_v0 = vsel %vm1683_vm3, %v2138_v59, %v2140_v35 }
  0xd3   :  { %15457 = vst [vmem:[#allocation93_spill] sm:$0xff] %v11491_v5  ;;  %v11501_v52 = vpop.f32.mrf.mxu0  ;;  %9709 = vmatprep.mubr.msk.f32.mxu1 %vm298_vm2, %v11484_v61  ;;  %v11509_v5 = vsel %vm1683_vm3, %v1747_v31, %v1749_v24  ;;  %v11534_v31 = vsel %vm1683_vm3, %v1749_v24, %v1751_v25 }
  0xd4   :  { %15458 = vst [vmem:[#allocation94_spill] sm:$0xff] %v11501_v52  ;;  %v11515_v23 = vpop.f32.mrf.mxu1  ;;  %v11521_v52 = vrot.slane %v10915_v20, 2 }
  0xd5   :  { %15460 = vst [vmem:[#allocation95_spill] sm:$0xff] %v11515_v23  ;;  %v11523_v61 = vpop.f32.mrf.mxu0  ;;  %9654 = vmatmul.mubr.msk.f32.gmra.mxu0 %vm298_vm2, %v11498_v32 }
  0xd6   :  { %15461 = vst [vmem:[#allocation96_spill] sm:$0xff] %v11523_v61  ;;  %v11527_v37 = vpop.f32.mrf.mxu1  ;;  %9710 = vmatmul.mubr.msk.f32.gmra.mxu1 %vm298_vm2, %v11506_v49  ;;  %9656 = vmatprep.mubr.msk.f32.mxu0 %vm298_vm2, %v11509_v5  ;;  %v11541_v61 = vsel %vm1683_vm3, %v2140_v35, %v2142_v48  ;;  %v11551_v20 = vsel %vm1683_vm3, %v2142_v48, %v11521_v52 }
  0xd7   :  { %15462 = vst [vmem:[#allocation97_spill] sm:$0xff] %v11527_v37  ;;  %v11536_v59 = vpop.f32.mrf.mxu0  ;;  %9712 = vmatprep.mubr.msk.f32.mxu1 %vm298_vm2, %v11518_v0  ;;  %v11545_v37 = vsel %vm1683_vm3, %v1751_v25, %v11513_v47 }
  0xd8   :  { %15463 = vst [vmem:[#allocation98_spill] sm:$0xff] %v11536_v59  ;;  %v11547_v23 = vpop.f32.mrf.mxu1 }
  0xd9   :  { %v11553_v24 = vpop.f32.mrf.mxu0  ;;  %9657 = vmatmul.mubr.msk.f32.gmra.mxu0 %vm298_vm2, %v11534_v31 }
  0xda   :  { %15464 = vst [vmem:[#allocation99_spill] sm:$0xff] %v11553_v24  ;;  %v11557_v59 = vpop.f32.mrf.mxu1  ;;  %9713 = vmatmul.mubr.msk.f32.gmra.mxu1 %vm298_vm2, %v11541_v61  ;;  %9659 = vmatprep.mubr.msk.f32.mxu0 %vm298_vm2, %v11545_v37 }
  0xdb   :  { %15465 = vst [vmem:[#allocation100_spill] sm:$0xff] %v11557_v59  ;;  %v11563_v35 = vpop.f32.mrf.mxu0  ;;  %9715 = vmatprep.mubr.msk.f32.mxu1 %vm298_vm2, %v11551_v20 }
  0xdc   :  { %15466 = vst [vmem:[#allocation101_spill] sm:$0xff] %v11563_v35  ;;  %v11567_v48 = vpop.f32.mrf.mxu1 }
  0xdd   :  { %15467 = vst [vmem:[#allocation102_spill] sm:$0xff] %v11567_v48  ;;  %v11569_v25 = vpop.f32.mrf.mxu0  ;;  %9660 = vmatmul.mubr.msk.f32.gmra.mxu0 %vm298_vm2, %v11513_v47 }
  0xde   :  { %15468 = vst [vmem:[#allocation103_spill] sm:$0xff] %v11569_v25  ;;  %v11573_v24 = vpop.f32.mrf.mxu1  ;;  %9716 = vmatmul.mubr.msk.f32.gmra.mxu1 %vm298_vm2, %v11521_v52  ;;  %9720 = vmatprep.mubr.msk.f32.mxu0 %vm298_vm2, %v11118_v1 }
  0xdf   :  { %15469 = vst [vmem:[#allocation104_spill] sm:$0xff] %v11573_v24  ;;  %v11579_v59 = vpop.f32.mrf.mxu0  ;;  %9776 = vmatprep.mubr.msk.f32.mxu1 %vm298_vm2, %v11123_v3  ;;  %v11592_v24 = vld [vmem:[%s15090_s1 + $0x14] sm:$0xf] }
  0xe0   :  { %15470 = vst [vmem:[#allocation105_spill] sm:$0xff] %v11579_v59  ;;  %v11583_v35 = vpop.f32.mrf.mxu1 }
  0xe1   :  { %15471 = vst [vmem:[#allocation106_spill] sm:$0xff] %v11583_v35  ;;  %v11585_v48 = vpop.f32.mrf.mxu0  ;;  %9721 = vmatmul.mubr.msk.f32.vlgmr.msra.gmra.mxu0 %vm298_vm2, %v11134_v36 }
  0xe2   :  { %15472 = vst [vmem:[#allocation107_spill] sm:$0xff] %v11585_v48  ;;  %v11594_v25 = vpop.f32.mrf.mxu1  ;;  %9777 = vmatmul.mubr.msk.f32.vlgmr.msra.gmra.mxu1 %vm298_vm2, %v11142_v11  ;;  %9831 = vmatpush3.msk.msra.mxu0 %vm371_vm0, %v11128_v43  ;;  %v15558_v48 = vld [vmem:[#allocation15_spill] sm:$0xff] }
  0xe3   :  { %15473 = vst [vmem:[#allocation108_spill] sm:$0xff] %v11594_v25  ;;  %9887 = vmatpush3.msk.msra.mxu1 %vm371_vm0, %v11128_v43  ;;  %v11602_v1 = vpop.f32.mrf.mxu0  ;;  %9723 = vmatprep.mubr.msk.f32.mxu0 %vm298_vm2, %v11145_v4  ;;  %v15556_v25 = vld [vmem:[#allocation14_spill] sm:$0xff] }
  0xe4   :  { %15474 = vst [vmem:[#allocation109_spill] sm:$0xff] %v11602_v1  ;;  %v11606_v3 = vpop.f32.mrf.mxu1  ;;  %9779 = vmatprep.mubr.msk.f32.mxu1 %vm298_vm2, %v11152_v9  ;;  %9942 = vmatprep.subr.msk.mxu0 %vm371_vm0, %v11592_v24 }
  0xe5   :  { %15475 = vst [vmem:[#allocation110_spill] sm:$0xff] %v11606_v3  ;;  %v11612_v36 = vpop.f32.mrf.mxu0  ;;  %9724 = vmatmul.mubr.msk.f32.gmra.mxu0 %vm298_vm2, %v11166_v10  ;;  %9998 = vmatprep.subr.msk.mxu1 %vm371_vm0, %v11592_v24  ;;  %v15552_v3 = vld [vmem:[#allocation13_spill] sm:$0xff] }
  0xe6   :  { %15476 = vst [vmem:[#allocation111_spill] sm:$0xff] %v11612_v36  ;;  %v11618_v43 = vpop.f32.mrf.mxu1  ;;  %9780 = vmatmul.mubr.msk.f32.gmra.mxu1 %vm298_vm2, %v11172_v62  ;;  %9726 = vmatprep.mubr.msk.f32.mxu0 %vm298_vm2, %v11175_v46 }
  0xe7   :  { %15477 = vst [vmem:[#allocation112_spill] sm:$0xff] %v11618_v43  ;;  %v11624_v11 = vpop.f32.mrf.mxu0  ;;  %9782 = vmatprep.mubr.msk.f32.mxu1 %vm298_vm2, %v11180_v39 }
  0xe8   :  { %15478 = vst [vmem:[#allocation113_spill] sm:$0xff] %v11624_v11  ;;  %v11628_v4 = vpop.f32.mrf.mxu1  ;;  %v15550_v11 = vld [vmem:[#allocation12_spill] sm:$0xff] }
  0xe9   :  { %15479 = vst [vmem:[#allocation114_spill] sm:$0xff] %v11628_v4  ;;  %v11630_v9 = vpop.f32.mrf.mxu0  ;;  %9727 = vmatmul.mubr.msk.f32.gmra.mxu0 %vm298_vm2, %v11190_v18  ;;  %v15549_v4 = vld [vmem:[#allocation11_spill] sm:$0xff]  ;;  %v3139_v43 = vrot.slane %v15550_v11, 3 }
  0xea   :  { %15480 = vst [vmem:[#allocation115_spill] sm:$0xff] %v11630_v9  ;;  %v11634_v10 = vpop.f32.mrf.mxu1  ;;  %9783 = vmatmul.mubr.msk.f32.gmra.mxu1 %vm298_vm2, %v11196_v6  ;;  %9729 = vmatprep.mubr.msk.f32.mxu0 %vm298_vm2, %v11199_v7  ;;  %v15642_v11 = vld [vmem:[#allocation59_spill] sm:$0xff] }
  0xeb   :  { %15481 = vst [vmem:[#allocation116_spill] sm:$0xff] %v11634_v10  ;;  %v11640_v46 = vpop.f32.mrf.mxu0  ;;  %9785 = vmatprep.mubr.msk.f32.mxu1 %vm298_vm2, %v11204_v53 }
  0xec   :  { %15482 = vst [vmem:[#allocation117_spill] sm:$0xff] %v11640_v46  ;;  %v11644_v39 = vpop.f32.mrf.mxu1 }
  0xed   :  { %15483 = vst [vmem:[#allocation118_spill] sm:$0xff] %v11644_v39  ;;  %v11646_v62 = vpop.f32.mrf.mxu0  ;;  %9730 = vmatmul.mubr.msk.f32.gmra.mxu0 %vm298_vm2, %v11214_v57 }
  0xee   :  { %15484 = vst [vmem:[#allocation119_spill] sm:$0xff] %v11646_v62  ;;  %v11650_v18 = vpop.f32.mrf.mxu1  ;;  %9786 = vmatmul.mubr.msk.f32.gmra.mxu1 %vm298_vm2, %v11220_v41  ;;  %9732 = vmatprep.mubr.msk.f32.mxu0 %vm298_vm2, %v11223_v17 }
  0xef   :  { %15485 = vst [vmem:[#allocation120_spill] sm:$0xff] %v11650_v18  ;;  %v11656_v7 = vpop.f32.mrf.mxu0  ;;  %9788 = vmatprep.mubr.msk.f32.mxu1 %vm298_vm2, %v11228_v8  ;;  %v15544_v18 = vld [vmem:[#allocation8_spill] sm:$0xff] }
  0xf0   :  { %15486 = vst [vmem:[#allocation121_spill] sm:$0xff] %v11656_v7  ;;  %v11660_v53 = vpop.f32.mrf.mxu1  ;;  %v3135_v62 = vrot.slane %v15544_v18, 3 }
  0xf1   :  { %15487 = vst [vmem:[#allocation122_spill] sm:$0xff] %v11660_v53  ;;  %v11662_v6 = vpop.f32.mrf.mxu0  ;;  %9733 = vmatmul.mubr.msk.f32.gmra.mxu0 %vm298_vm2, %v11238_v12 }
  0xf2   :  { %15488 = vst [vmem:[#allocation123_spill] sm:$0xff] %v11662_v6  ;;  %v11666_v57 = vpop.f32.mrf.mxu1  ;;  %9789 = vmatmul.mubr.msk.f32.gmra.mxu1 %vm298_vm2, %v11244_v60  ;;  %9735 = vmatprep.mubr.msk.f32.mxu0 %vm298_vm2, %v11247_v44  ;;  %v15543_v6 = vld [vmem:[#allocation6_spill] sm:$0xff] }
  0xf3   :  { %15489 = vst [vmem:[#allocation124_spill] sm:$0xff] %v11666_v57  ;;  %v11672_v17 = vpop.f32.mrf.mxu0  ;;  %9791 = vmatprep.mubr.msk.f32.mxu1 %vm298_vm2, %v11252_v27  ;;  %v3527_v53 = vrot.slane %v15543_v6, 3 }
  0xf4   :  { %15490 = vst [vmem:[#allocation125_spill] sm:$0xff] %v11672_v17  ;;  %v11676_v8 = vpop.f32.mrf.mxu1 }
  0xf5   :  { %15491 = vst [vmem:[#allocation126_spill] sm:$0xff] %v11676_v8  ;;  %v11678_v41 = vpop.f32.mrf.mxu0  ;;  %9736 = vmatmul.mubr.msk.f32.gmra.mxu0 %vm298_vm2, %v11262_v51 }
  0xf6   :  { %15492 = vst [vmem:[#allocation127_spill] sm:$0xff] %v11678_v41  ;;  %v11682_v12 = vpop.f32.mrf.mxu1  ;;  %9792 = vmatmul.mubr.msk.f32.gmra.mxu1 %vm298_vm2, %v11268_v16  ;;  %9738 = vmatprep.mubr.msk.f32.mxu0 %vm298_vm2, %v11271_v56  ;;  %v15541_v41 = vld [vmem:[#allocation5_spill] sm:$0xff] }
  0xf7   :  { %15493 = vst [vmem:[#allocation128_spill] sm:$0xff] %v11682_v12  ;;  %v11688_v44 = vpop.f32.mrf.mxu0  ;;  %9794 = vmatprep.mubr.msk.f32.mxu1 %vm298_vm2, %v11276_v45  ;;  %v3525_v8 = vrot.slane %v15541_v41, 3 }
  0xf8   :  { %15494 = vst [vmem:[#allocation129_spill] sm:$0xff] %v11688_v44  ;;  %v11692_v27 = vpop.f32.mrf.mxu1 }
  0xf9   :  { %15495 = vst [vmem:[#allocation130_spill] sm:$0xff] %v11692_v27  ;;  %v11694_v60 = vpop.f32.mrf.mxu0  ;;  %9739 = vmatmul.mubr.msk.f32.gmra.mxu0 %vm298_vm2, %v11286_v40  ;;  %v15539_v27 = vld [vmem:[#allocation4_spill] sm:$0xff] }
  0xfa   :  { %15496 = vst [vmem:[#allocation131_spill] sm:$0xff] %v11694_v60  ;;  %v11698_v51 = vpop.f32.mrf.mxu1  ;;  %9795 = vmatmul.mubr.msk.f32.gmra.mxu1 %vm298_vm2, %v11292_v33  ;;  %9741 = vmatprep.mubr.msk.f32.mxu0 %vm298_vm2, %v11295_v21 }
  0xfb   :  { %15497 = vst [vmem:[#allocation132_spill] sm:$0xff] %v11698_v51  ;;  %v11704_v56 = vpop.f32.mrf.mxu0  ;;  %9797 = vmatprep.mubr.msk.f32.mxu1 %vm298_vm2, %v11300_v63  ;;  %v15538_v51 = vld [vmem:[#allocation3_spill] sm:$0xff] }
  0xfc   :  { %15498 = vst [vmem:[#allocation133_spill] sm:$0xff] %v11704_v56  ;;  %v11708_v45 = vpop.f32.mrf.mxu1  ;;  %v3130_v60 = vrot.slane %v15538_v51, 3 }
  0xfd   :  { %15499 = vst [vmem:[#allocation134_spill] sm:$0xff] %v11708_v45  ;;  %v11710_v16 = vpop.f32.mrf.mxu0  ;;  %9742 = vmatmul.mubr.msk.f32.gmra.mxu0 %vm298_vm2, %v11310_v54 }
  0xfe   :  { %15500 = vst [vmem:[#allocation135_spill] sm:$0xff] %v11710_v16  ;;  %v11714_v40 = vpop.f32.mrf.mxu1  ;;  %9798 = vmatmul.mubr.msk.f32.gmra.mxu1 %vm298_vm2, %v11316_v50  ;;  %9744 = vmatprep.mubr.msk.f32.mxu0 %vm298_vm2, %v11319_v2  ;;  %v15506_v50 = vld [vmem:[#allocation71_spill] sm:$0xff] }
  0xff   :  { %15501 = vst [vmem:[#allocation136_spill] sm:$0xff] %v11714_v40  ;;  %v11720_v21 = vpop.f32.mrf.mxu0  ;;  %9800 = vmatprep.mubr.msk.f32.mxu1 %vm298_vm2, %v11324_v22 }
 0x100   :  { %15502 = vst [vmem:[#allocation137_spill] sm:$0xff] %v11720_v21  ;;  %v11724_v63 = vpop.f32.mrf.mxu1  ;;  %v15508_v21 = vld [vmem:[#allocation72_spill] sm:$0xff] }
 0x101   :  { %15503 = vst [vmem:[#allocation138_spill] sm:$0xff] %v11724_v63  ;;  %v11726_v33 = vpop.f32.mrf.mxu0  ;;  %9745 = vmatmul.mubr.msk.f32.gmra.mxu0 %vm298_vm2, %v11334_v13 }
 0x102   :  { %15504 = vst [vmem:[#allocation139_spill] sm:$0xff] %v11726_v33  ;;  %v11730_v54 = vpop.f32.mrf.mxu1  ;;  %9801 = vmatmul.mubr.msk.f32.gmra.mxu1 %vm298_vm2, %v11340_v15  ;;  %9747 = vmatprep.mubr.msk.f32.mxu0 %vm298_vm2, %v15506_v50  ;;  %v15511_v33 = vld [vmem:[#allocation73_spill] sm:$0xff]  ;;  %v15514_v15 = vld [vmem:[#allocation75_spill] sm:$0xff] }
 0x103   :  { %15505 = vst [vmem:[#allocation140_spill] sm:$0xff] %v11730_v54  ;;  %v11736_v2 = vpop.f32.mrf.mxu0  ;;  %9803 = vmatprep.mubr.msk.f32.mxu1 %vm298_vm2, %v15508_v21  ;;  %v15513_v54 = vld [vmem:[#allocation74_spill] sm:$0xff] }
 0x104   :  { %15507 = vst [vmem:[#allocation71_spill] sm:$0xff] %v11736_v2  ;;  %v11740_v22 = vpop.f32.mrf.mxu1 }
 0x105   :  { %15509 = vst [vmem:[#allocation72_spill] sm:$0xff] %v11740_v22  ;;  %v11742_v63 = vpop.f32.mrf.mxu0  ;;  %9748 = vmatmul.mubr.msk.f32.gmra.mxu0 %vm298_vm2, %v15511_v33 }
 0x106   :  { %15510 = vst [vmem:[#allocation141_spill] sm:$0xff] %v11742_v63  ;;  %v11746_v13 = vpop.f32.mrf.mxu1  ;;  %9804 = vmatmul.mubr.msk.f32.gmra.mxu1 %vm298_vm2, %v15513_v54  ;;  %9750 = vmatprep.mubr.msk.f32.mxu0 %vm298_vm2, %v15514_v15  ;;  %v15518_v63 = vld [vmem:[#allocation76_spill] sm:$0xff]  ;;  %v15521_v54 = vld [vmem:[#allocation78_spill] sm:$0xff] }
 0x107   :  { %15512 = vst [vmem:[#allocation73_spill] sm:$0xff] %v11746_v13  ;;  %v11752_v50 = vpop.f32.mrf.mxu0  ;;  %9806 = vmatprep.mubr.msk.f32.mxu1 %vm298_vm2, %v11372_v26  ;;  %v15520_v13 = vld [vmem:[#allocation77_spill] sm:$0xff] }
 0x108   :  { %15515 = vst [vmem:[#allocation74_spill] sm:$0xff] %v11752_v50  ;;  %v11756_v21 = vpop.f32.mrf.mxu1 }
 0x109   :  { %15516 = vst [vmem:[#allocation75_spill] sm:$0xff] %v11756_v21  ;;  %v11758_v22 = vpop.f32.mrf.mxu0  ;;  %9751 = vmatmul.mubr.msk.f32.gmra.mxu0 %vm298_vm2, %v15518_v63 }
 0x10a   :  { %15517 = vst [vmem:[#allocation142_spill] sm:$0xff] %v11758_v22  ;;  %v11762_v33 = vpop.f32.mrf.mxu1  ;;  %9807 = vmatmul.mubr.msk.f32.gmra.mxu1 %vm298_vm2, %v15520_v13  ;;  %9753 = vmatprep.mubr.msk.f32.mxu0 %vm298_vm2, %v15521_v54  ;;  %v15527_v13 = vld [vmem:[#allocation80_spill] sm:$0xff] }
 0x10b   :  { %15519 = vst [vmem:[#allocation76_spill] sm:$0xff] %v11762_v33  ;;  %v11768_v15 = vpop.f32.mrf.mxu0  ;;  %9809 = vmatprep.mubr.msk.f32.mxu1 %vm298_vm2, %v11396_v14  ;;  %v15526_v33 = vld [vmem:[#allocation79_spill] sm:$0xff] }
 0x10c   :  { %15522 = vst [vmem:[#allocation77_spill] sm:$0xff] %v11768_v15  ;;  %v11772_v26 = vpop.f32.mrf.mxu1 }
 0x10d   :  { %15523 = vst [vmem:[#allocation78_spill] sm:$0xff] %v11772_v26  ;;  %v11774_v21 = vpop.f32.mrf.mxu0  ;;  %9754 = vmatmul.mubr.msk.f32.gmra.mxu0 %vm298_vm2, %v11406_v38 }
 0x10e   :  { %15524 = vst [vmem:[#allocation143_spill] sm:$0xff] %v11774_v21  ;;  %v11778_v63 = vpop.f32.mrf.mxu1  ;;  %9810 = vmatmul.mubr.msk.f32.gmra.mxu1 %vm298_vm2, %v15526_v33  ;;  %9756 = vmatprep.mubr.msk.f32.mxu0 %vm298_vm2, %v15527_v13  ;;  %v15531_v33 = vld [vmem:[#allocation85_spill] sm:$0xff]  ;;  %v15533_v21 = vld [vmem:[#allocation91_spill] sm:$0xff] }
 0x10f   :  { %15525 = vst [vmem:[#allocation144_spill] sm:$0xff] %v11778_v63  ;;  %v11784_v54 = vpop.f32.mrf.mxu0  ;;  %9812 = vmatprep.mubr.msk.f32.mxu1 %vm298_vm2, %v11420_v30  ;;  %v15530_v63 = vld [vmem:[#allocation84_spill] sm:$0xff] }
 0x110   :  { %15528 = vst [vmem:[#allocation79_spill] sm:$0xff] %v11784_v54  ;;  %v11788_v14 = vpop.f32.mrf.mxu1  ;;  %v8690_v30 = vld [vmem:[%s15091_s0 + $0x90] sm:$0xff]  }
 0x111   :  { %15529 = vst [vmem:[#allocation80_spill] sm:$0xff] %v11788_v14  ;;  %v11790_v26 = vpop.f32.mrf.mxu0  ;;  %9757 = vmatmul.mubr.msk.f32.gmra.mxu0 %vm298_vm2, %v11434_v19  ;;  %v11833_v22 = vunpack.c.h.bf16 %v8690_v30 }
 0x112   :  { %v11794_v38 = vpop.f32.mrf.mxu1  ;;  %9813 = vmatmul.mubr.msk.f32.gmra.mxu1 %vm298_vm2, %v15530_v63  ;;  %9759 = vmatprep.mubr.msk.f32.mxu0 %vm298_vm2, %v15531_v33  ;;  %v11816_v63 = vld [vmem:[%s15091_s0 + $0x138] sm:$0xff]  }
 0x113   :  { %v11800_v13 = vpop.f32.mrf.mxu0  ;;  %9815 = vmatprep.mubr.msk.f32.mxu1 %vm298_vm2, %v11452_v28  ;;  %v11824_v28 = vunpack.c.l.bf16 %v8690_v30  ;;  %15536 = vst [vmem:[#allocation91_spill] sm:$0xff] %v11833_v22  ;;  %v11838_v2 = vunpack.c.l.bf16 %v11816_v63  ;;  %v2541_v40 = vrot.slane %v11833_v22, 2 }
 0x114   :  { %v11807_v14 = vpop.f32.mrf.mxu1 }
 0x115   :  { %v11809_v19 = vpop.f32.mrf.mxu0  ;;  %9760 = vmatmul.mubr.msk.f32.gmra.mxu0 %vm298_vm2, %v11466_v58  ;;  %15532 = vst [vmem:[#allocation84_spill] sm:$0xff] %v11824_v28  ;;  %v15534_v58 = vld [vmem:[#allocation66_spill] sm:$0xff]  ;;  %v2801_v16 = vrot.slane %v11838_v2, 2 }
 0x116   :  { %v11818_v33 = vpop.f32.mrf.mxu1  ;;  %9816 = vmatmul.mubr.msk.f32.gmra.mxu1 %vm298_vm2, %v11474_v42  ;;  %9762 = vmatprep.mubr.msk.f32.mxu0 %vm298_vm2, %v11477_v55  ;;  %v11831_v15 = vunpack.c.h.bf16 %v15534_v58  ;;  %15537 = vst [vmem:[#allocation66_spill] sm:$0xff] %v11838_v2 }
 0x117   :  { %v11826_v54 = vpop.f32.mrf.mxu0  ;;  %9818 = vmatprep.mubr.msk.f32.mxu1 %vm298_vm2, %v15533_v21  ;;  %v2539_v21 = vrot.slane %v11824_v28, 2 }
 0x118   :  { %15535 = vst [vmem:[#allocation85_spill] sm:$0xff] %v11831_v15  ;;  %v11835_v50 = vpop.f32.mrf.mxu1  ;;  %v2799_v58 = vrot.slane %v11831_v15, 2 }
 0x119   :  { %v11840_v42 = vpop.f32.mrf.mxu0  ;;  %9763 = vmatmul.mubr.msk.f32.gmra.mxu0 %vm298_vm2, %v11498_v32 }
 0x11a   :  { %v11844_v55 = vpop.f32.mrf.mxu1  ;;  %9819 = vmatmul.mubr.msk.f32.gmra.mxu1 %vm298_vm2, %v11506_v49  ;;  %9765 = vmatprep.mubr.msk.f32.mxu0 %vm298_vm2, %v11509_v5  ;;  %v2800_v56 = vsel %vm1683_vm3, %v11521_v52, %v2799_v58  ;;  %v15542_v52 = vld [vmem:[#allocation7_spill] sm:$0xff] }
 0x11b   :  { %v11851_v30 = vpop.f32.mrf.mxu0  ;;  %9821 = vmatprep.mubr.msk.f32.mxu1 %vm298_vm2, %v11518_v0  ;;  %v2540_v0 = vsel %vm1683_vm3, %v11513_v47, %v2539_v21  ;;  %v15540_v47 = vld [vmem:[#allocation2_spill] sm:$0xff] }
 0x11c   :  { %v11857_v32 = vpop.f32.mrf.mxu1  ;;  %v3524_v12 = vrot.slane %v15540_v47, 3 }
 0x11d   :  { %v11860_v45 = vpop.f32.mrf.mxu0  ;;  %9766 = vmatmul.mubr.msk.f32.gmra.mxu0 %vm298_vm2, %v11534_v31  ;;  %v2542_v31 = vsel %vm1683_vm3, %v2539_v21, %v2541_v40  ;;  %v3133_v21 = vrot.slane %v15542_v52, 3 }
 0x11e   :  { %v11864_v49 = vpop.f32.mrf.mxu1  ;;  %9822 = vmatmul.mubr.msk.f32.gmra.mxu1 %vm298_vm2, %v11541_v61  ;;  %9768 = vmatprep.mubr.msk.f32.mxu0 %vm298_vm2, %v11545_v37  ;;  %v3131_v61 = vrot.slane %v15539_v27, 3  ;;  %v2802_v37 = vsel %vm1683_vm3, %v2799_v58, %v2801_v16 }
 0x11f   :  { %v11872_v5 = vpop.f32.mrf.mxu0  ;;  %9824 = vmatprep.mubr.msk.f32.mxu1 %vm298_vm2, %v11551_v20 }
 0x120   :  { %v11881_v44 = vpop.f32.mrf.mxu1  ;;  %v3132_v58 = vsel %vm3129_vm4, %v3130_v60, %v3131_v61  ;;  %v3134_v60 = vsel %vm3129_vm4, %v3131_v61, %v3133_v21 }
 0x121   :  { %v11886_v17 = vpop.f32.mrf.mxu0  ;;  %9769 = vmatmul.mubr.msk.f32.gmra.mxu0 %vm298_vm2, %v2540_v0  ;;  %v3526_v0 = vsel %vm3129_vm4, %v3524_v12, %v3525_v8  ;;  %v3528_v12 = vsel %vm3129_vm4, %v3525_v8, %v3527_v53  ;;  %v11930_v8 = vld [vmem:[%s15090_s1 + $0x18] sm:$0xf] }
 0x122   :  { %v11889_v20 = vpop.f32.mrf.mxu1  ;;  %9825 = vmatmul.mubr.msk.f32.gmra.mxu1 %vm298_vm2, %v2800_v56  ;;  %9771 = vmatprep.mubr.msk.f32.mxu0 %vm298_vm2, %v2542_v31  ;;  %v15545_v56 = vld [vmem:[#allocation9_spill] sm:$0xff]  ;;  %15554 = vst [vmem:[#allocation145_spill] sm:$0xff] %v11930_v8 }
 0x123   :  { %v11894_v57 = vpop.f32.mrf.mxu0  ;;  %9827 = vmatprep.mubr.msk.f32.mxu1 %vm298_vm2, %v2802_v37  ;;  %v3529_v31 = vrot.slane %v15545_v56, 3  ;;  %v15547_v37 = vld [vmem:[#allocation10_spill] sm:$0xff] }
 0x124   :  { %v11899_v7 = vpop.f32.mrf.mxu1  ;;  %v3137_v10 = vrot.slane %v15547_v37, 3 }
 0x125   :  { %v11903_v39 = vpop.f32.mrf.mxu0  ;;  %9772 = vmatmul.mubr.msk.f32.gmra.mxu0 %vm298_vm2, %v2541_v40  ;;  %v3531_v40 = vrot.slane %v15549_v4, 3  ;;  %v3530_v61 = vsel %vm3129_vm4, %v3527_v53, %v3529_v31 }
 0x126   :  { %v11907_v46 = vpop.f32.mrf.mxu1  ;;  %9828 = vmatmul.mubr.msk.f32.gmra.mxu1 %vm298_vm2, %v2801_v16  ;;  %9832 = vmatprep.mubr.msk.f32.mxu0 %vm298_vm2, %v3132_v58  ;;  %v3136_v16 = vsel %vm3129_vm4, %v3133_v21, %v3135_v62  ;;  %v3533_v58 = vrot.slane %v15552_v3, 3  ;;  %v3138_v21 = vsel %vm3129_vm4, %v3135_v62, %v3137_v10  ;;  %v15559_v3 = vld [vmem:[#allocation16_spill] sm:$0xff] }
 0x127   :  { %15546 = vst [vmem:[#allocation3_spill] sm:$0xff] %v11907_v46  ;;  %v11913_v9 = vpop.f32.mrf.mxu0  ;;  %9888 = vmatprep.mubr.msk.f32.mxu1 %vm298_vm2, %v3526_v0 }
 0x128   :  { %15548 = vst [vmem:[#allocation4_spill] sm:$0xff] %v11913_v9  ;;  %v11919_v36 = vpop.f32.mrf.mxu1  ;;  %v3534_v62 = vsel %vm3129_vm4, %v3531_v40, %v3533_v58 }
 0x129   :  { %15551 = vst [vmem:[#allocation2_spill] sm:$0xff] %v11919_v36  ;;  %v11923_v1 = vpop.f32.mrf.mxu0  ;;  %9833 = vmatmul.mubr.msk.f32.vlgmr.msra.gmra.mxu0 %vm298_vm2, %v3134_v60  ;;  %v3532_v60 = vsel %vm3129_vm4, %v3529_v31, %v3531_v40  ;;  %v3143_v36 = vrot.slane %v15559_v3, 3  ;;  %v15564_v40 = vld [vmem:[#allocation18_spill] sm:$0xff] }
 0x12a   :  { %15553 = vst [vmem:[#allocation5_spill] sm:$0xff] %v11923_v1  ;;  %v11932_v0 = vpop.f32.mrf.mxu1  ;;  %9889 = vmatmul.mubr.msk.f32.vlgmr.msra.gmra.mxu1 %vm298_vm2, %v3528_v12  ;;  %9943 = vmatpush3.msk.msra.mxu0 %vm371_vm0, %v11592_v24  ;;  %v3141_v1 = vrot.slane %v15556_v25, 3  ;;  %v3535_v12 = vrot.slane %v15558_v48, 3  ;;  %v15561_v25 = vld [vmem:[#allocation17_spill] sm:$0xff] }
 0x12b   :  { %15555 = vst [vmem:[#allocation146_spill] sm:$0xff] %v11932_v0  ;;  %9999 = vmatpush3.msk.msra.mxu1 %vm371_vm0, %v11592_v24  ;;  %v11941_v53 = vpop.f32.mrf.mxu0  ;;  %9835 = vmatprep.mubr.msk.f32.mxu0 %vm298_vm2, %v3136_v16  ;;  %v3140_v0 = vsel %vm3129_vm4, %v3137_v10, %v3139_v43  ;;  %v3537_v24 = vrot.slane %v15561_v25, 3 }
 0x12c   :  { %15557 = vst [vmem:[#allocation147_spill] sm:$0xff] %v11941_v53  ;;  %v11948_v35 = vpop.f32.mrf.mxu1  ;;  %9891 = vmatprep.mubr.msk.f32.mxu1 %vm298_vm2, %v3530_v61  ;;  %10054 = vmatprep.subr.msk.mxu0 %vm371_vm0, %v11930_v8  ;;  %v3142_v31 = vsel %vm3129_vm4, %v3139_v43, %v3141_v1  ;;  %v3145_v61 = vrot.slane %v15564_v40, 3 }
 0x12d   :  { %15560 = vst [vmem:[#allocation148_spill] sm:$0xff] %v11948_v35  ;;  %v11955_v16 = vpop.f32.mrf.mxu0  ;;  %9836 = vmatmul.mubr.msk.f32.gmra.mxu0 %vm298_vm2, %v3138_v21  ;;  %10110 = vmatprep.subr.msk.mxu1 %vm371_vm0, %v11930_v8  ;;  %v3144_v21 = vsel %vm3129_vm4, %v3141_v1, %v3143_v36  ;;  %v15566_v35 = vld [vmem:[#allocation19_spill] sm:$0xff]  ;;  %v15567_v8 = vld [vmem:[#allocation20_spill] sm:$0xff] }
 0x12e   :  { %15562 = vst [vmem:[#allocation149_spill] sm:$0xff] %v11955_v16  ;;  %v11960_v10 = vpop.f32.mrf.mxu1  ;;  %9892 = vmatmul.mubr.msk.f32.gmra.mxu1 %vm298_vm2, %v3532_v60  ;;  %9838 = vmatprep.mubr.msk.f32.mxu0 %vm298_vm2, %v3140_v0  ;;  %v3536_v16 = vsel %vm3129_vm4, %v3533_v58, %v3535_v12  ;;  %v3539_v3 = vrot.slane %v15566_v35, 3  ;;  %v3538_v0 = vsel %vm3129_vm4, %v3535_v12, %v3537_v24  ;;  %v15569_v60 = vld [vmem:[#allocation21_spill] sm:$0xff]  ;;  %v15572_v58 = vld [vmem:[#allocation22_spill] sm:$0xff] }
 0x12f   :  { %15563 = vst [vmem:[#allocation150_spill] sm:$0xff] %v11960_v10  ;;  %v11966_v25 = vpop.f32.mrf.mxu0  ;;  %9894 = vmatprep.mubr.msk.f32.mxu1 %vm298_vm2, %v3534_v62  ;;  %v3147_v10 = vrot.slane %v15567_v8, 3  ;;  %v3541_v43 = vrot.slane %v15569_v60, 3  ;;  %v3146_v1 = vsel %vm3129_vm4, %v3143_v36, %v3145_v61  ;;  %v3149_v62 = vrot.slane %v15572_v58, 3 }
 0x130   :  { %15565 = vst [vmem:[#allocation151_spill] sm:$0xff] %v11966_v25  ;;  %v11973_v53 = vpop.f32.mrf.mxu1  ;;  %v3540_v12 = vsel %vm3129_vm4, %v3537_v24, %v3539_v3 }
 0x131   :  { %15568 = vst [vmem:[#allocation152_spill] sm:$0xff] %v11973_v53  ;;  %v11977_v48 = vpop.f32.mrf.mxu0  ;;  %9839 = vmatmul.mubr.msk.f32.gmra.mxu0 %vm298_vm2, %v3142_v31  ;;  %v3148_v60 = vsel %vm3129_vm4, %v3145_v61, %v3147_v10  ;;  %v15575_v53 = vld [vmem:[#allocation24_spill] sm:$0xff]  ;;  %v3150_v24 = vsel %vm3129_vm4, %v3147_v10, %v3149_v62  ;;  %v15580_v61 = vld [vmem:[#allocation26_spill] sm:$0xff] }
 0x132   :  { %15570 = vst [vmem:[#allocation153_spill] sm:$0xff] %v11977_v48  ;;  %v11980_v25 = vpop.f32.mrf.mxu1  ;;  %9895 = vmatmul.mubr.msk.f32.gmra.mxu1 %vm298_vm2, %v3536_v16  ;;  %9841 = vmatprep.mubr.msk.f32.mxu0 %vm298_vm2, %v3144_v21  ;;  %v15574_v48 = vld [vmem:[#allocation23_spill] sm:$0xff]  ;;  %v3542_v16 = vsel %vm3129_vm4, %v3539_v3, %v3541_v43  ;;  %v15577_v21 = vld [vmem:[#allocation25_spill] sm:$0xff] }
 0x133   :  { %15571 = vst [vmem:[#allocation154_spill] sm:$0xff] %v11980_v25  ;;  %v11986_v8 = vpop.f32.mrf.mxu0  ;;  %9897 = vmatprep.mubr.msk.f32.mxu1 %vm298_vm2, %v3538_v0  ;;  %v3543_v31 = vrot.slane %v15574_v48, 3  ;;  %v3151_v25 = vrot.slane %v15575_v53, 3  ;;  %v3545_v36 = vrot.slane %v15577_v21, 3  ;;  %v3153_v0 = vrot.slane %v15580_v61, 3  ;;  %v15582_v21 = vld [vmem:[#allocation27_spill] sm:$0xff] }
 0x134   :  { %15573 = vst [vmem:[#allocation155_spill] sm:$0xff] %v11986_v8  ;;  %v11993_v35 = vpop.f32.mrf.mxu1 }
 0x135   :  { %15576 = vst [vmem:[#allocation156_spill] sm:$0xff] %v11993_v35  ;;  %v11997_v40 = vpop.f32.mrf.mxu0  ;;  %9842 = vmatmul.mubr.msk.f32.gmra.mxu0 %vm298_vm2, %v3146_v1  ;;  %v3544_v3 = vsel %vm3129_vm4, %v3541_v43, %v3543_v31  ;;  %v3547_v1 = vrot.slane %v15582_v21, 3  ;;  %v15583_v35 = vld [vmem:[#allocation28_spill] sm:$0xff]  ;;  %v3154_v43 = vsel %vm3129_vm4, %v3151_v25, %v3153_v0 }
 0x136   :  { %15578 = vst [vmem:[#allocation157_spill] sm:$0xff] %v11997_v40  ;;  %v12000_v8 = vpop.f32.mrf.mxu1  ;;  %9898 = vmatmul.mubr.msk.f32.gmra.mxu1 %vm298_vm2, %v3540_v12  ;;  %9844 = vmatprep.mubr.msk.f32.mxu0 %vm298_vm2, %v3148_v60  ;;  %v3152_v40 = vsel %vm3129_vm4, %v3149_v62, %v3151_v25  ;;  %v3546_v60 = vsel %vm3129_vm4, %v3543_v31, %v3545_v36  ;;  %v15585_v12 = vld [vmem:[#allocation29_spill] sm:$0xff]  ;;  %v15588_v62 = vld [vmem:[#allocation30_spill] sm:$0xff] }
 0x137   :  { %15579 = vst [vmem:[#allocation158_spill] sm:$0xff] %v12000_v8  ;;  %v12006_v53 = vpop.f32.mrf.mxu0  ;;  %9900 = vmatprep.mubr.msk.f32.mxu1 %vm298_vm2, %v3542_v16  ;;  %v3155_v8 = vrot.slane %v15583_v35, 3  ;;  %v3549_v10 = vrot.slane %v15585_v12, 3  ;;  %v3157_v16 = vrot.slane %v15588_v62, 3  ;;  %v3548_v31 = vsel %vm3129_vm4, %v3545_v36, %v3547_v1 }
 0x138   :  { %15581 = vst [vmem:[#allocation159_spill] sm:$0xff] %v12006_v53  ;;  %v12013_v48 = vpop.f32.mrf.mxu1 }
 0x139   :  { %15584 = vst [vmem:[#allocation160_spill] sm:$0xff] %v12013_v48  ;;  %v12017_v58 = vpop.f32.mrf.mxu0  ;;  %9845 = vmatmul.mubr.msk.f32.gmra.mxu0 %vm298_vm2, %v3150_v24  ;;  %v3156_v12 = vsel %vm3129_vm4, %v3153_v0, %v3155_v8  ;;  %v15591_v48 = vld [vmem:[#allocation32_spill] sm:$0xff]  ;;  %v3158_v36 = vsel %vm3129_vm4, %v3155_v8, %v3157_v16  ;;  %v15596_v0 = vld [vmem:[#allocation34_spill] sm:$0xff] }
 0x13a   :  { %15586 = vst [vmem:[#allocation161_spill] sm:$0xff] %v12017_v58  ;;  %v12020_v53 = vpop.f32.mrf.mxu1  ;;  %9901 = vmatmul.mubr.msk.f32.gmra.mxu1 %vm298_vm2, %v3544_v3  ;;  %9847 = vmatprep.mubr.msk.f32.mxu0 %vm298_vm2, %v3152_v40  ;;  %v15590_v58 = vld [vmem:[#allocation31_spill] sm:$0xff]  ;;  %v3550_v40 = vsel %vm3129_vm4, %v3547_v1, %v3549_v10  ;;  %v15593_v3 = vld [vmem:[#allocation33_spill] sm:$0xff] }
 0x13b   :  { %15587 = vst [vmem:[#allocation162_spill] sm:$0xff] %v12020_v53  ;;  %v12026_v35 = vpop.f32.mrf.mxu0  ;;  %9903 = vmatprep.mubr.msk.f32.mxu1 %vm298_vm2, %v3546_v60  ;;  %v3551_v24 = vrot.slane %v15590_v58, 3  ;;  %v3159_v53 = vrot.slane %v15591_v48, 3  ;;  %v3553_v25 = vrot.slane %v15593_v3, 3  ;;  %v3161_v60 = vrot.slane %v15596_v0, 3  ;;  %v15598_v3 = vld [vmem:[#allocation35_spill] sm:$0xff] }
 0x13c   :  { %15589 = vst [vmem:[#allocation163_spill] sm:$0xff] %v12026_v35  ;;  %v12033_v21 = vpop.f32.mrf.mxu1 }
 0x13d   :  { %15592 = vst [vmem:[#allocation164_spill] sm:$0xff] %v12033_v21  ;;  %v12037_v61 = vpop.f32.mrf.mxu0  ;;  %9848 = vmatmul.mubr.msk.f32.gmra.mxu0 %vm298_vm2, %v3154_v43  ;;  %v3552_v1 = vsel %vm3129_vm4, %v3549_v10, %v3551_v24  ;;  %v3555_v43 = vrot.slane %v15598_v3, 3  ;;  %v15599_v21 = vld [vmem:[#allocation36_spill] sm:$0xff]  ;;  %v3162_v10 = vsel %vm3129_vm4, %v3159_v53, %v3161_v60 }
 0x13e   :  { %15594 = vst [vmem:[#allocation165_spill] sm:$0xff] %v12037_v61  ;;  %v12040_v35 = vpop.f32.mrf.mxu1  ;;  %9904 = vmatmul.mubr.msk.f32.gmra.mxu1 %vm298_vm2, %v3548_v31  ;;  %9850 = vmatprep.mubr.msk.f32.mxu0 %vm298_vm2, %v3156_v12  ;;  %v3160_v61 = vsel %vm3129_vm4, %v3157_v16, %v3159_v53  ;;  %v3554_v12 = vsel %vm3129_vm4, %v3551_v24, %v3553_v25  ;;  %v15601_v31 = vld [vmem:[#allocation37_spill] sm:$0xff]  ;;  %v15604_v16 = vld [vmem:[#allocation38_spill] sm:$0xff] }
 0x13f   :  { %15595 = vst [vmem:[#allocation166_spill] sm:$0xff] %v12040_v35  ;;  %v12046_v48 = vpop.f32.mrf.mxu0  ;;  %9906 = vmatprep.mubr.msk.f32.mxu1 %vm298_vm2, %v3550_v40  ;;  %v3163_v35 = vrot.slane %v15599_v21, 3  ;;  %v3557_v8 = vrot.slane %v15601_v31, 3  ;;  %v3165_v40 = vrot.slane %v15604_v16, 3  ;;  %v3556_v24 = vsel %vm3129_vm4, %v3553_v25, %v3555_v43 }
 0x140   :  { %15597 = vst [vmem:[#allocation167_spill] sm:$0xff] %v12046_v48  ;;  %v12053_v58 = vpop.f32.mrf.mxu1 }
 0x141   :  { %15600 = vst [vmem:[#allocation168_spill] sm:$0xff] %v12053_v58  ;;  %v12057_v62 = vpop.f32.mrf.mxu0  ;;  %9851 = vmatmul.mubr.msk.f32.gmra.mxu0 %vm298_vm2, %v3158_v36  ;;  %v3164_v31 = vsel %vm3129_vm4, %v3161_v60, %v3163_v35  ;;  %v15607_v58 = vld [vmem:[#allocation40_spill] sm:$0xff]  ;;  %v3166_v25 = vsel %vm3129_vm4, %v3163_v35, %v3165_v40  ;;  %v15612_v60 = vld [vmem:[#allocation42_spill] sm:$0xff] }
 0x142   :  { %15602 = vst [vmem:[#allocation169_spill] sm:$0xff] %v12057_v62  ;;  %v12060_v48 = vpop.f32.mrf.mxu1  ;;  %9907 = vmatmul.mubr.msk.f32.gmra.mxu1 %vm298_vm2, %v3552_v1  ;;  %9853 = vmatprep.mubr.msk.f32.mxu0 %vm298_vm2, %v3160_v61  ;;  %v15606_v62 = vld [vmem:[#allocation39_spill] sm:$0xff]  ;;  %v3558_v61 = vsel %vm3129_vm4, %v3555_v43, %v3557_v8  ;;  %v15609_v1 = vld [vmem:[#allocation41_spill] sm:$0xff] }
 0x143   :  { %15603 = vst [vmem:[#allocation170_spill] sm:$0xff] %v12060_v48  ;;  %v12066_v21 = vpop.f32.mrf.mxu0  ;;  %9909 = vmatprep.mubr.msk.f32.mxu1 %vm298_vm2, %v3554_v12  ;;  %v3559_v36 = vrot.slane %v15606_v62, 3  ;;  %v3167_v48 = vrot.slane %v15607_v58, 3  ;;  %v3561_v53 = vrot.slane %v15609_v1, 3  ;;  %v3169_v12 = vrot.slane %v15612_v60, 3  ;;  %v15614_v1 = vld [vmem:[#allocation43_spill] sm:$0xff] }
 0x144   :  { %15605 = vst [vmem:[#allocation171_spill] sm:$0xff] %v12066_v21  ;;  %v12073_v3 = vpop.f32.mrf.mxu1 }
 0x145   :  { %15608 = vst [vmem:[#allocation172_spill] sm:$0xff] %v12073_v3  ;;  %v12077_v0 = vpop.f32.mrf.mxu0  ;;  %9854 = vmatmul.mubr.msk.f32.gmra.mxu0 %vm298_vm2, %v3162_v10  ;;  %v3560_v43 = vsel %vm3129_vm4, %v3557_v8, %v3559_v36  ;;  %v3563_v10 = vrot.slane %v15614_v1, 3  ;;  %v15615_v3 = vld [vmem:[#allocation44_spill] sm:$0xff]  ;;  %v3170_v8 = vsel %vm3129_vm4, %v3167_v48, %v3169_v12 }
 0x146   :  { %15610 = vst [vmem:[#allocation173_spill] sm:$0xff] %v12077_v0  ;;  %v12080_v21 = vpop.f32.mrf.mxu1  ;;  %9910 = vmatmul.mubr.msk.f32.gmra.mxu1 %vm298_vm2, %v3556_v24  ;;  %9856 = vmatprep.mubr.msk.f32.mxu0 %vm298_vm2, %v3164_v31  ;;  %v3168_v0 = vsel %vm3129_vm4, %v3165_v40, %v3167_v48  ;;  %v3562_v31 = vsel %vm3129_vm4, %v3559_v36, %v3561_v53  ;;  %v15617_v24 = vld [vmem:[#allocation45_spill] sm:$0xff]  ;;  %v15620_v40 = vld [vmem:[#allocation46_spill] sm:$0xff] }
 0x147   :  { %15611 = vst [vmem:[#allocation174_spill] sm:$0xff] %v12080_v21  ;;  %v12086_v58 = vpop.f32.mrf.mxu0  ;;  %9912 = vmatprep.mubr.msk.f32.mxu1 %vm298_vm2, %v3558_v61  ;;  %v3171_v21 = vrot.slane %v15615_v3, 3  ;;  %v3565_v35 = vrot.slane %v15617_v24, 3  ;;  %v3173_v61 = vrot.slane %v15620_v40, 3  ;;  %v3564_v36 = vsel %vm3129_vm4, %v3561_v53, %v3563_v10 }
 0x148   :  { %15613 = vst [vmem:[#allocation175_spill] sm:$0xff] %v12086_v58  ;;  %v12093_v62 = vpop.f32.mrf.mxu1 }
 0x149   :  { %15616 = vst [vmem:[#allocation176_spill] sm:$0xff] %v12093_v62  ;;  %v12097_v16 = vpop.f32.mrf.mxu0  ;;  %9857 = vmatmul.mubr.msk.f32.gmra.mxu0 %vm298_vm2, %v3166_v25  ;;  %v3172_v24 = vsel %vm3129_vm4, %v3169_v12, %v3171_v21  ;;  %v15623_v62 = vld [vmem:[#allocation48_spill] sm:$0xff]  ;;  %v3174_v53 = vsel %vm3129_vm4, %v3171_v21, %v3173_v61  ;;  %v15629_v12 = vld [vmem:[#allocation51_spill] sm:$0xff] }
 0x14a   :  { %15618 = vst [vmem:[#allocation177_spill] sm:$0xff] %v12097_v16  ;;  %v12100_v58 = vpop.f32.mrf.mxu1  ;;  %9913 = vmatmul.mubr.msk.f32.gmra.mxu1 %vm298_vm2, %v3560_v43  ;;  %9859 = vmatprep.mubr.msk.f32.mxu0 %vm298_vm2, %v3168_v0  ;;  %v15622_v16 = vld [vmem:[#allocation47_spill] sm:$0xff]  ;;  %v3566_v0 = vsel %vm3129_vm4, %v3563_v10, %v3565_v35  ;;  %v15625_v43 = vld [vmem:[#allocation49_spill] sm:$0xff] }
 0x14b   :  { %15619 = vst [vmem:[#allocation178_spill] sm:$0xff] %v12100_v58  ;;  %v12106_v3 = vpop.f32.mrf.mxu0  ;;  %9915 = vmatprep.mubr.msk.f32.mxu1 %vm298_vm2, %v3562_v31  ;;  %v3567_v25 = vrot.slane %v15622_v16, 3  ;;  %v3175_v58 = vrot.slane %v15623_v62, 3  ;;  %v3569_v48 = vrot.slane %v15625_v43, 3 }
 0x14c   :  { %15621 = vst [vmem:[#allocation179_spill] sm:$0xff] %v12106_v3  ;;  %v12113_v1 = vpop.f32.mrf.mxu1  ;;  %v15627_v3 = vld [vmem:[#allocation50_spill] sm:$0xff] }
 0x14d   :  { %15624 = vst [vmem:[#allocation180_spill] sm:$0xff] %v12113_v1  ;;  %v12117_v60 = vpop.f32.mrf.mxu0  ;;  %9860 = vmatmul.mubr.msk.f32.gmra.mxu0 %vm298_vm2, %v3170_v8  ;;  %v3177_v31 = vrot.slane %v15627_v3, 3  ;;  %v3571_v1 = vrot.slane %v15629_v12, 3  ;;  %v3568_v10 = vsel %vm3129_vm4, %v3565_v35, %v3567_v25  ;;  %v3176_v8 = vsel %vm3129_vm4, %v3173_v61, %v3175_v58  ;;  %v15636_v61 = vld [vmem:[#allocation54_spill] sm:$0xff] }
 0x14e   :  { %15626 = vst [vmem:[#allocation181_spill] sm:$0xff] %v12117_v60  ;;  %v12121_v40 = vpop.f32.mrf.mxu1  ;;  %9916 = vmatmul.mubr.msk.f32.gmra.mxu1 %vm298_vm2, %v3564_v36  ;;  %9862 = vmatprep.mubr.msk.f32.mxu0 %vm298_vm2, %v3172_v24  ;;  %v15631_v60 = vld [vmem:[#allocation52_spill] sm:$0xff]  ;;  %v3570_v36 = vsel %vm3129_vm4, %v3567_v25, %v3569_v48 }
 0x14f   :  { %15628 = vst [vmem:[#allocation182_spill] sm:$0xff] %v12121_v40  ;;  %v12127_v62 = vpop.f32.mrf.mxu0  ;;  %9918 = vmatprep.mubr.msk.f32.mxu1 %vm298_vm2, %v3566_v0  ;;  %v3179_v3 = vrot.slane %v15631_v60, 3  ;;  %v15633_v40 = vld [vmem:[#allocation53_spill] sm:$0xff]  ;;  %v3178_v21 = vsel %vm3129_vm4, %v3175_v58, %v3177_v31  ;;  %v3572_v35 = vsel %vm3129_vm4, %v3569_v48, %v3571_v1  ;;  %v3181_v0 = vrot.slane %v15636_v61, 3  ;;  %v15637_v60 = vld [vmem:[#allocation55_spill] sm:$0xff]  ;;  %v15644_v61 = vld [vmem:[#allocation60_spill] sm:$0xff] }
 0x150   :  { %15630 = vst [vmem:[#allocation183_spill] sm:$0xff] %v12127_v62  ;;  %v12133_v43 = vpop.f32.mrf.mxu1  ;;  %v3573_v24 = vrot.slane %v15633_v40, 3  ;;  %v3575_v25 = vrot.slane %v15637_v60, 3  ;;  %v3187_v60 = vrot.slane %v15644_v61, 3 }
 0x151   :  { %15632 = vst [vmem:[#allocation184_spill] sm:$0xff] %v12133_v43  ;;  %v12137_v16 = vpop.f32.mrf.mxu0  ;;  %9863 = vmatmul.mubr.msk.f32.gmra.mxu0 %vm298_vm2, %v3174_v53  ;;  %v15638_v43 = vld [vmem:[#allocation56_spill] sm:$0xff]  ;;  %v3180_v58 = vsel %vm3129_vm4, %v3177_v31, %v3179_v3  ;;  %v15640_v53 = vld [vmem:[#allocation57_spill] sm:$0xff]  ;;  %v3182_v31 = vsel %vm3129_vm4, %v3179_v3, %v3181_v0 }
 0x152   :  { %15634 = vst [vmem:[#allocation185_spill] sm:$0xff] %v12137_v16  ;;  %v12141_v12 = vpop.f32.mrf.mxu1  ;;  %9919 = vmatmul.mubr.msk.f32.gmra.mxu1 %vm298_vm2, %v3568_v10  ;;  %9865 = vmatprep.mubr.msk.f32.mxu0 %vm298_vm2, %v3176_v8  ;;  %v3183_v40 = vrot.slane %v15638_v43, 3  ;;  %v15641_v16 = vld [vmem:[#allocation58_spill] sm:$0xff]  ;;  %v3579_v8 = vrot.slane %v15642_v11, 3  ;;  %v3574_v48 = vsel %vm3129_vm4, %v3571_v1, %v3573_v24  ;;  %v15646_v43 = vld [vmem:[#allocation61_spill] sm:$0xff]  ;;  %v3576_v11 = vsel %vm3129_vm4, %v3573_v24, %v3575_v25 }
 0x153   :  { %15635 = vst [vmem:[#allocation186_spill] sm:$0xff] %v12141_v12  ;;  %v12149_v62 = vpop.f32.mrf.mxu0  ;;  %9921 = vmatprep.mubr.msk.f32.mxu1 %vm298_vm2, %v3570_v36  ;;  %v3577_v12 = vrot.slane %v15640_v53, 3  ;;  %v3185_v10 = vrot.slane %v15641_v16, 3  ;;  %v3581_v36 = vrot.slane %v15646_v43, 3  ;;  %v15648_v16 = vld [vmem:[#allocation62_spill] sm:$0xff] }
 0x154   :  { %15639 = vst [vmem:[#allocation187_spill] sm:$0xff] %v12149_v62  ;;  %v12156_v9 = vpop.f32.mrf.mxu1  ;;  %v3184_v1 = vsel %vm3129_vm4, %v3181_v0, %v3183_v40  ;;  %v3189_v61 = vrot.slane %v15648_v16, 3  ;;  %v15653_v16 = vld [vmem:[#allocation64_spill] sm:$0xff] }
 0x155   :  { %15643 = vst [vmem:[#allocation188_spill] sm:$0xff] %v12156_v9  ;;  %v12160_v59 = vpop.f32.mrf.mxu0  ;;  %9866 = vmatmul.mubr.msk.f32.gmra.mxu0 %vm298_vm2, %v3178_v21  ;;  %v3578_v21 = vsel %vm3129_vm4, %v3575_v25, %v3577_v12  ;;  %v3186_v43 = vsel %vm3129_vm4, %v3183_v40, %v3185_v10  ;;  %v3188_v0 = vsel %vm3129_vm4, %v3185_v10, %v3187_v60  ;;  %v3191_v9 = vrot.slane %v15653_v16, 3 }
 0x156   :  { %15645 = vst [vmem:[#allocation189_spill] sm:$0xff] %v12160_v59  ;;  %v12164_v62 = vpop.f32.mrf.mxu1  ;;  %9922 = vmatmul.mubr.msk.f32.gmra.mxu1 %vm298_vm2, %v3572_v35  ;;  %9868 = vmatprep.mubr.msk.f32.mxu0 %vm298_vm2, %v3180_v58  ;;  %v3580_v35 = vsel %vm3129_vm4, %v3577_v12, %v3579_v8  ;;  %v15651_v59 = vld [vmem:[#allocation81_spill] sm:$0xff]  ;;  %v3582_v40 = vsel %vm3129_vm4, %v3579_v8, %v3581_v36  ;;  %v15656_v12 = vld [vmem:[#allocation67_spill] sm:$0xff] }
 0x157   :  { %15647 = vst [vmem:[#allocation190_spill] sm:$0xff] %v12164_v62  ;;  %v12172_v53 = vpop.f32.mrf.mxu0  ;;  %9924 = vmatprep.mubr.msk.f32.mxu1 %vm298_vm2, %v3574_v48  ;;  %v15650_v62 = vld [vmem:[#allocation63_spill] sm:$0xff]  ;;  %v1191_v3 = vadd.f32 %v11790_v26, %v15651_v59  ;;  %v15655_v48 = vld [vmem:[#allocation82_spill] sm:$0xff]  ;;  %v3587_v59 = vrot.slane %v10908_v29, 3 }
 0x158   :  { %15649 = vst [vmem:[#allocation191_spill] sm:$0xff] %v12172_v53  ;;  %v3583_v58 = vrot.slane %v15650_v62, 3  ;;  %v12181_v24 = vpop.f32.mrf.mxu1  ;;  %v15654_v53 = vld [vmem:[#allocation65_spill] sm:$0xff]  ;;  %v1508_v25 = vadd.f32 %v11794_v38, %v15655_v48  ;;  %v3193_v62 = vrot.slane %v15656_v12, 3  ;;  %v15657_v26 = vld [vmem:[#allocation83_spill] sm:$0xff]  ;;  %v3190_v38 = vsel %vm3129_vm4, %v3187_v60, %v3189_v61  ;;  %v15658_v48 = vld [vmem:[#allocation86_spill] sm:$0xff] }
 0x159   :  { %15652 = vst [vmem:[#allocation81_spill] sm:$0xff] %v12181_v24  ;;  %v3585_v4 = vrot.slane %v15654_v53, 3  ;;  %v9610_v46 = vpop.f32.mrf.mxu0  ;;  %9869 = vmatmul.mubr.msk.f32.gmra.mxu0 %vm298_vm2, %v3182_v31  ;;  %v1186_v24 = vadd.f32 %v11800_v13, %v15657_v26  ;;  %v1503_v31 = vadd.f32 %v11807_v14, %v15658_v48  ;;  %v15659_v13 = vld [vmem:[#allocation87_spill] sm:$0xff]  ;;  %v3192_v60 = vsel %vm3129_vm4, %v3189_v61, %v3191_v9  ;;  %v15660_v14 = vld [vmem:[#allocation88_spill] sm:$0xff] }
 0x15a   :  { %v12194_v10 = vadd.f32 %v9610_v46, %v1191_v3  ;;  %v9666_v16 = vpop.f32.mrf.mxu1  ;;  %9925 = vmatmul.mubr.msk.f32.gmra.mxu1 %vm298_vm2, %v3576_v11  ;;  %9871 = vmatprep.mubr.msk.f32.mxu0 %vm298_vm2, %v3184_v1  ;;  %v3584_v29 = vsel %vm3129_vm4, %v3581_v36, %v3583_v58  ;;  %v3195_v46 = vrot.slane %v15459_v34, 3  ;;  %v1201_v3 = vadd.f32 %v11809_v19, %v15659_v13  ;;  %v8691_v19 = vld [vmem:[%s15091_s0 + $0x98] sm:$0xff]  }
 0x15b   :  { %v12201_v8 = vadd.f32 %v9666_v16, %v1508_v25  ;;  %v1896_v12 = vpop.f32.mrf.mxu0  ;;  %9927 = vmatprep.mubr.msk.f32.mxu1 %vm298_vm2, %v3578_v21  ;;  %v3586_v26 = vsel %vm3129_vm4, %v3583_v58, %v3585_v4  ;;  %v1518_v16 = vadd.f32 %v11818_v33, %v15660_v14  ;;  %v3194_v36 = vsel %vm3129_vm4, %v3191_v9, %v3193_v62  ;;  %v15662_v33 = vld [vmem:[#allocation70_spill] sm:$0xff]  ;;  %v15664_v14 = vld [vmem:[#allocation92_spill] sm:$0xff] }
 0x15c   :  { %v12208_v11 = vadd.f32 %v1896_v12, %v1186_v24  ;;  %v2284_v1 = vpop.f32.mrf.mxu1  ;;  %v3588_v48 = vsel %vm3129_vm4, %v3585_v4, %v3587_v59  ;;  %v15661_v24 = vld [vmem:[#allocation89_spill] sm:$0xff]  ;;  %v3197_v9 = vrot.slane %v11824_v28, 3  ;;  %v12244_v28 = vunpack.c.h.bf16 %v11816_v63 }
 0x15d   :  { %v12214_v25 = vadd.f32 %v2284_v1, %v1503_v31  ;;  %v9613_v21 = vpop.f32.mrf.mxu0  ;;  %9872 = vmatmul.mubr.msk.f32.gmra.mxu0 %vm298_vm2, %v3186_v43  ;;  %v1196_v61 = vadd.f32 %v11826_v54, %v15661_v24  ;;  %v3589_v43 = vrot.slane %v15662_v33, 3  ;;  %v15663_v31 = vld [vmem:[#allocation90_spill] sm:$0xff]  ;;  %v3196_v54 = vsel %vm3129_vm4, %v3193_v62, %v3195_v46 }
 0x15e   :  { %v12224_v58 = vadd.f32 %v9613_v21, %v1201_v3  ;;  %v9669_v12 = vpop.f32.mrf.mxu1  ;;  %9928 = vmatmul.mubr.msk.f32.gmra.mxu1 %vm298_vm2, %v3580_v35  ;;  %9874 = vmatprep.mubr.msk.f32.mxu0 %vm298_vm2, %v3188_v0  ;;  %v1513_v4 = vadd.f32 %v11835_v50, %v15663_v31  ;;  %v3591_v3 = vrot.slane %v11831_v15, 3  ;;  %v1211_v35 = vadd.f32 %v11840_v42, %v15664_v14  ;;  %v15665_v50 = vld [vmem:[#allocation93_spill] sm:$0xff] }
 0x15f   :  { %v12232_v13 = vadd.f32 %v9669_v12, %v1518_v16  ;;  %v1906_v1 = vpop.f32.mrf.mxu0  ;;  %9930 = vmatprep.mubr.msk.f32.mxu1 %vm298_vm2, %v3582_v40  ;;  %v12241_v24 = vunpack.c.l.bf16 %v8691_v19  ;;  %v1528_v16 = vadd.f32 %v11844_v55, %v15665_v50  ;;  %v3199_v62 = vrot.slane %v11833_v22, 3  ;;  %v15667_v55 = vld [vmem:[#allocation95_spill] sm:$0xff] }
 0x160   :  { %v12239_v0 = vadd.f32 %v1906_v1, %v1196_v61  ;;  %v2294_v21 = vpop.f32.mrf.mxu1  ;;  %v3593_v42 = vrot.slane %v11838_v2, 3  ;;  %v15666_v61 = vld [vmem:[#allocation94_spill] sm:$0xff]  ;;  %v3590_v63 = vsel %vm3129_vm4, %v3587_v59, %v3589_v43 }
 0x161   :  { %v12248_v12 = vadd.f32 %v2294_v21, %v1513_v4  ;;  %v9616_v40 = vpop.f32.mrf.mxu0  ;;  %9875 = vmatmul.mubr.msk.f32.gmra.mxu0 %vm298_vm2, %v3190_v38  ;;  %v1206_v31 = vadd.f32 %v11851_v30, %v15666_v61  ;;  %v1523_v4 = vadd.f32 %v11857_v32, %v15667_v55  ;;  %v3198_v21 = vsel %vm3129_vm4, %v3195_v46, %v3197_v9  ;;  %v15669_v32 = vld [vmem:[#allocation97_spill] sm:$0xff] }
 0x162   :  { %v12255_v19 = vadd.f32 %v9616_v40, %v1211_v35  ;;  %v9672_v1 = vpop.f32.mrf.mxu1  ;;  %9931 = vmatmul.mubr.msk.f32.gmra.mxu1 %vm298_vm2, %v3584_v29  ;;  %9877 = vmatprep.mubr.msk.f32.mxu0 %vm298_vm2, %v3192_v60  ;;  %v3592_v30 = vsel %vm3129_vm4, %v3589_v43, %v3591_v3  ;;  %v15668_v35 = vld [vmem:[#allocation96_spill] sm:$0xff]  ;;  %v3201_v59 = vrot.slane %v12241_v24, 3  ;;  %v3595_v40 = vrot.slane %v12244_v28, 3 }
 0x163   :  { %v12262_v38 = vadd.f32 %v9672_v1, %v1528_v16  ;;  %v1916_v14 = vpop.f32.mrf.mxu0  ;;  %9933 = vmatprep.mubr.msk.f32.mxu1 %vm298_vm2, %v3586_v26  ;;  %v1221_v50 = vadd.f32 %v11860_v45, %v15668_v35  ;;  %v1538_v16 = vadd.f32 %v11864_v49, %v15669_v32  ;;  %v3200_v46 = vsel %vm3129_vm4, %v3197_v9, %v3199_v62  ;;  %v15670_v45 = vld [vmem:[#allocation98_spill] sm:$0xff]  ;;  %v15671_v35 = vld [vmem:[#allocation99_spill] sm:$0xff] }
 0x164   :  { %v12269_v29 = vadd.f32 %v1916_v14, %v1206_v31  ;;  %v2304_v60 = vpop.f32.mrf.mxu1  ;;  %v3594_v43 = vsel %vm3129_vm4, %v3591_v3, %v3593_v42  ;;  %v1216_v31 = vadd.f32 %v11872_v5, %v15670_v45  ;;  %v3988_v49 = vrot.slane %v15538_v51, 4 }
 0x165   :  { %v12275_v61 = vadd.f32 %v2304_v60, %v1523_v4  ;;  %v9619_v26 = vpop.f32.mrf.mxu0  ;;  %9878 = vmatmul.mubr.msk.f32.gmra.mxu0 %vm298_vm2, %v3194_v36  ;;  %v3989_v4 = vrot.slane %v15539_v27, 4  ;;  %v1533_v36 = vadd.f32 %v11881_v44, %v11547_v23  ;;  %v4381_v5 = vrot.slane %v15540_v47, 4  ;;  %v15672_v23 = vld [vmem:[#allocation100_spill] sm:$0xff] }
 0x166   :  { %v12282_v1 = vadd.f32 %v9619_v26, %v1221_v50  ;;  %v9675_v55 = vpop.f32.mrf.mxu1  ;;  %9934 = vmatmul.mubr.msk.f32.gmra.mxu1 %vm298_vm2, %v3588_v48  ;;  %9880 = vmatprep.mubr.msk.f32.mxu0 %vm298_vm2, %v3196_v54  ;;  %v4382_v14 = vrot.slane %v15541_v41, 4  ;;  %v1231_v48 = vadd.f32 %v11886_v17, %v15671_v35  ;;  %v3202_v27 = vsel %vm3129_vm4, %v3199_v62, %v3201_v59  ;;  %v15673_v17 = vld [vmem:[#allocation101_spill] sm:$0xff]  ;;  %v15674_v26 = vld [vmem:[#allocation102_spill] sm:$0xff] }
 0x167   :  { %v12290_v9 = vadd.f32 %v9675_v55, %v1538_v16  ;;  %v1926_v3 = vpop.f32.mrf.mxu0  ;;  %9936 = vmatprep.mubr.msk.f32.mxu1 %vm298_vm2, %v3590_v63  ;;  %v3991_v50 = vrot.slane %v15542_v52, 4  ;;  %v1548_v44 = vadd.f32 %v11889_v20, %v15672_v23  ;;  %v3596_v41 = vsel %vm3129_vm4, %v3593_v42, %v3595_v40 }
 0x168   :  { %v12297_v54 = vadd.f32 %v1926_v3, %v1216_v31  ;;  %v2314_v51 = vpop.f32.mrf.mxu1  ;;  %v4384_v47 = vrot.slane %v15543_v6, 4  ;;  %v1226_v32 = vadd.f32 %v11894_v57, %v15673_v17  ;;  %v3990_v20 = vsel %vm371_vm0, %v3988_v49, %v3989_v4  ;;  %v15675_v31 = vld [vmem:[#allocation103_spill] sm:$0xff] }
 0x169   :  { %v12303_v60 = vadd.f32 %v2314_v51, %v1533_v36  ;;  %v9622_v63 = vpop.f32.mrf.mxu0  ;;  %9881 = vmatmul.mubr.msk.f32.gmra.mxu0 %vm298_vm2, %v3198_v21  ;;  %v3993_v59 = vrot.slane %v15544_v18, 4  ;;  %v1543_v21 = vadd.f32 %v11899_v7, %v15674_v26  ;;  %v4383_v57 = vsel %vm371_vm0, %v4381_v5, %v4382_v14  ;;  %v15676_v7 = vld [vmem:[#allocation104_spill] sm:$0xff]  ;;  %v15677_v3 = vld [vmem:[#allocation3_spill] sm:$0xff] }
 0x16a   :  { %v12310_v16 = vadd.f32 %v9622_v63, %v1231_v48  ;;  %v9678_v62 = vpop.f32.mrf.mxu1  ;;  %9937 = vmatmul.mubr.msk.f32.gmra.mxu1 %vm298_vm2, %v3592_v30  ;;  %9883 = vmatprep.mubr.msk.f32.mxu0 %vm298_vm2, %v3200_v46  ;;  %v4386_v45 = vrot.slane %v15545_v56, 4  ;;  %v1241_v30 = vadd.f32 %v11903_v39, %v15675_v31  ;;  %v3992_v49 = vsel %vm371_vm0, %v3989_v4, %v3991_v50  ;;  %v15678_v51 = vld [vmem:[#allocation11_spill] sm:$0xff]  ;;  %v15679_v39 = vld [vmem:[#allocation105_spill] sm:$0xff] }
 0x16b   :  { %v12318_v42 = vadd.f32 %v9678_v62, %v1548_v44  ;;  %v1936_v40 = vpop.f32.mrf.mxu0  ;;  %9939 = vmatprep.mubr.msk.f32.mxu1 %vm298_vm2, %v3594_v43  ;;  %v3995_v36 = vrot.slane %v15547_v37, 4  ;;  %v1558_v35 = vadd.f32 %v15677_v3, %v15676_v7  ;;  %v4385_v5 = vsel %vm371_vm0, %v4382_v14, %v4384_v47  ;;  %v15680_v44 = vld [vmem:[#allocation4_spill] sm:$0xff]  ;;  %v15685_v7 = vld [vmem:[#allocation107_spill] sm:$0xff] }
 0x16c   :  { %v12325_v46 = vadd.f32 %v1936_v40, %v1226_v32  ;;  %v2324_v55 = vpop.f32.mrf.mxu1  ;;  %v4388_v23 = vrot.slane %v15678_v51, 4  ;;  %v1236_v63 = vadd.f32 %v15680_v44, %v15679_v39  ;;  %v12343_v32 = vsel %vm371_vm0, %v3991_v50, %v3993_v59  ;;  %v15681_v62 = vld [vmem:[#allocation12_spill] sm:$0xff]  ;;  %v15687_v44 = vld [vmem:[#allocation14_spill] sm:$0xff] }
 0x16d   :  { %v12331_v48 = vadd.f32 %v2324_v55, %v1543_v21  ;;  %v9625_v43 = vpop.f32.mrf.mxu0  ;;  %9884 = vmatmul.mubr.msk.f32.gmra.mxu0 %vm298_vm2, %v3202_v27  ;;  %v3997_v26 = vrot.slane %v15681_v62, 4  ;;  %v15682_v27 = vld [vmem:[#allocation106_spill] sm:$0xff]  ;;  %v15684_v55 = vld [vmem:[#allocation13_spill] sm:$0xff]  ;;  %v12360_v39 = vsel %vm371_vm0, %v3993_v59, %v3995_v36 }
 0x16e   :  { %v12338_v17 = vadd.f32 %v9625_v43, %v1241_v30  ;;  %v9681_v4 = vpop.f32.mrf.mxu1  ;;  %9940 = vmatmul.mubr.msk.f32.gmra.mxu1 %vm298_vm2, %v3596_v41  ;;  %9944 = vmatprep.mubr.msk.f32.mxu0 %vm298_vm2, %v3990_v20  ;;  %v15683_v21 = vld [vmem:[#allocation2_spill] sm:$0xff]  ;;  %v12352_v30 = vsel %vm371_vm0, %v4384_v47, %v4386_v45  ;;  %v4390_v41 = vrot.slane %v15684_v55, 4  ;;  %v15686_v20 = vld [vmem:[#allocation5_spill] sm:$0xff]  ;;  %v12369_v55 = vsel %vm371_vm0, %v4386_v45, %v4388_v23 }
 0x16f   :  { %v1553_v14 = vadd.f32 %v15683_v21, %v15682_v27  ;;  %v12348_v40 = vadd.f32 %v9681_v4, %v1558_v35  ;;  %v1946_v31 = vpop.f32.mrf.mxu0  ;;  %10000 = vmatprep.mubr.msk.f32.mxu1 %vm298_vm2, %v4383_v57  ;;  %v1251_v3 = vadd.f32 %v15686_v20, %v15685_v7  ;;  %v3999_v35 = vrot.slane %v15687_v44, 4  ;;  %v15688_v4 = vld [vmem:[#allocation108_spill] sm:$0xff]  ;;  %v15689_v27 = vld [vmem:[#allocation146_spill] sm:$0xff]  ;;  %15690 = vst [vmem:[#allocation82_spill] sm:$0xff] %v12369_v55  ;;  %v15691_v7 = vld [vmem:[#allocation15_spill] sm:$0xff] }
 0x170   :  { %v12357_v50 = vadd.f32 %v1946_v31, %v1236_v63  ;;  %v2334_v43 = vpop.f32.mrf.mxu1  ;;  %v1568_v21 = vadd.f32 %v15689_v27, %v15688_v4  ;;  %v4392_v63 = vrot.slane %v15691_v7, 4  ;;  %v12375_v59 = vld [vmem:[%s15090_s1 + $0x1c] sm:$0xf]  ;;  %v15694_v20 = vld [vmem:[#allocation147_spill] sm:$0xff]  ;;  %v12385_v45 = vsel %vm371_vm0, %v3995_v36, %v3997_v26  ;;  %v15698_v27 = vld [vmem:[#allocation110_spill] sm:$0xff] }
 0x171   :  { %v12365_v57 = vadd.f32 %v2334_v43, %v1553_v14  ;;  %v9628_v47 = vpop.f32.mrf.mxu0  ;;  %9945 = vmatmul.mubr.msk.f32.vlgmr.msra.gmra.mxu0 %vm298_vm2, %v3992_v49  ;;  %15692 = vst [vmem:[#allocation83_spill] sm:$0xff] %v12375_v59  ;;  %v15693_v31 = vld [vmem:[#allocation109_spill] sm:$0xff]  ;;  %15696 = vst [vmem:[#allocation86_spill] sm:$0xff] %v12385_v45  ;;  %v15697_v49 = vld [vmem:[#allocation16_spill] sm:$0xff] }
 0x172   :  { %v1246_v44 = vadd.f32 %v15694_v20, %v15693_v31  ;;  %v12379_v62 = vadd.f32 %v9628_v47, %v1251_v3  ;;  %v9684_v14 = vpop.f32.mrf.mxu1  ;;  %10001 = vmatmul.mubr.msk.f32.vlgmr.msra.gmra.mxu1 %vm298_vm2, %v4385_v5  ;;  %v15695_v43 = vld [vmem:[#allocation145_spill] sm:$0xff]  ;;  %v4001_v4 = vrot.slane %v15697_v49, 4  ;;  %v15699_v7 = vld [vmem:[#allocation148_spill] sm:$0xff]  ;;  %9947 = vmatprep.mubr.msk.f32.mxu0 %vm298_vm2, %v12343_v32  ;;  %v12397_v5 = vsel %vm371_vm0, %v4388_v23, %v4390_v41  ;;  %v15703_v31 = vld [vmem:[#allocation111_spill] sm:$0xff] }
 0x173   :  { %10055 = vmatpush3.msk.msra.mxu0 %vm371_vm0, %v15695_v43  ;;  %v1563_v51 = vadd.f32 %v15699_v7, %v15698_v27  ;;  %v12390_v37 = vadd.f32 %v9684_v14, %v1568_v21  ;;  %10111 = vmatpush3.msk.msra.mxu1 %vm371_vm0, %v15695_v43  ;;  %v1956_v3 = vpop.f32.mrf.mxu0  ;;  %15701 = vst [vmem:[#allocation88_spill] sm:$0xff] %v12397_v5  ;;  %v15702_v47 = vld [vmem:[#allocation17_spill] sm:$0xff]  ;;  %v15707_v14 = vld [vmem:[#allocation18_spill] sm:$0xff]  ;;  %v15708_v23 = vld [vmem:[#allocation112_spill] sm:$0xff] }
 0x174   :  { %v4394_v36 = vrot.slane %v15702_v47, 4  ;;  %v15704_v20 = vld [vmem:[#allocation149_spill] sm:$0xff]  ;;  %v12402_v56 = vadd.f32 %v1956_v3, %v1246_v44  ;;  %v2344_v7 = vpop.f32.mrf.mxu1  ;;  %10003 = vmatprep.mubr.msk.f32.mxu1 %vm298_vm2, %v12352_v30  ;;  %v12407_v21 = vsel %vm371_vm0, %v3997_v26, %v3999_v35  ;;  %v4003_v43 = vrot.slane %v15707_v14, 4  ;;  %10166 = vmatprep.subr.msk.mxu0 %vm371_vm0, %v12375_v59  ;;  %v15709_v27 = vld [vmem:[#allocation150_spill] sm:$0xff]  ;;  %v15713_v3 = vld [vmem:[#allocation151_spill] sm:$0xff] }
 0x175   :  { %15700 = vst [vmem:[#allocation87_spill] sm:$0xff] %v12390_v37  ;;  %v1261_v49 = vadd.f32 %v15704_v20, %v15703_v31  ;;  %15706 = vst [vmem:[#allocation90_spill] sm:$0xff] %v12407_v21  ;;  %v1578_v47 = vadd.f32 %v15709_v27, %v15708_v23  ;;  %v12414_v6 = vadd.f32 %v2344_v7, %v1563_v51  ;;  %v9631_v31 = vpop.f32.mrf.mxu0  ;;  %9948 = vmatmul.mubr.msk.f32.gmra.mxu0 %vm298_vm2, %v12360_v39  ;;  %v15712_v26 = vld [vmem:[#allocation113_spill] sm:$0xff]  ;;  %v15717_v23 = vld [vmem:[#allocation114_spill] sm:$0xff] }
 0x176   :  { %15705 = vst [vmem:[#allocation89_spill] sm:$0xff] %v12402_v56  ;;  %v12419_v44 = vsel %vm371_vm0, %v4390_v41, %v4392_v63  ;;  %10222 = vmatprep.subr.msk.mxu1 %vm371_vm0, %v12375_v59  ;;  %v1256_v20 = vadd.f32 %v15713_v3, %v15712_v26  ;;  %v9687_v18 = vpop.f32.mrf.mxu1  ;;  %10004 = vmatmul.mubr.msk.f32.gmra.mxu1 %vm298_vm2, %v12369_v55  ;;  %v15716_v41 = vld [vmem:[#allocation19_spill] sm:$0xff]  ;;  %v15718_v27 = vld [vmem:[#allocation152_spill] sm:$0xff]  ;;  %v15723_v56 = vld [vmem:[#allocation153_spill] sm:$0xff] }
 0x177   :  { %15710 = vst [vmem:[#allocation92_spill] sm:$0xff] %v12414_v6  ;;  %15711 = vst [vmem:[#allocation93_spill] sm:$0xff] %v12419_v44  ;;  %v12425_v14 = vadd.f32 %v9631_v31, %v1261_v49  ;;  %9950 = vmatprep.mubr.msk.f32.mxu0 %vm298_vm2, %v12385_v45  ;;  %v12432_v51 = vsel %vm371_vm0, %v3999_v35, %v4001_v4  ;;  %v4396_v7 = vrot.slane %v15716_v41, 4  ;;  %v1966_v26 = vpop.f32.mrf.mxu0  ;;  %10006 = vmatprep.mubr.msk.f32.mxu1 %vm298_vm2, %v12397_v5  ;;  %v15721_v31 = vld [vmem:[#allocation20_spill] sm:$0xff] }
 0x178   :  { %15715 = vst [vmem:[#allocation95_spill] sm:$0xff] %v12432_v51  ;;  %v1573_v52 = vadd.f32 %v15718_v27, %v15717_v23  ;;  %v12437_v6 = vadd.f32 %v9687_v18, %v1578_v47  ;;  %v12442_v49 = vsel %vm371_vm0, %v4392_v63, %v4394_v36  ;;  %v4005_v3 = vrot.slane %v15721_v31, 4  ;;  %v2354_v41 = vpop.f32.mrf.mxu1  ;;  %v15726_v18 = vld [vmem:[#allocation21_spill] sm:$0xff]  ;;  %v15727_v23 = vld [vmem:[#allocation116_spill] sm:$0xff]  ;;  %v15728_v27 = vld [vmem:[#allocation154_spill] sm:$0xff] }
 0x179   :  { %15714 = vst [vmem:[#allocation94_spill] sm:$0xff] %v12425_v14  ;;  %15720 = vst [vmem:[#allocation97_spill] sm:$0xff] %v12442_v49  ;;  %v15722_v14 = vld [vmem:[#allocation115_spill] sm:$0xff]  ;;  %v12447_v45 = vadd.f32 %v1966_v26, %v1256_v20  ;;  %v12450_v37 = vsel %vm371_vm0, %v4001_v4, %v4003_v43  ;;  %v4398_v47 = vrot.slane %v15726_v18, 4  ;;  %v9634_v63 = vpop.f32.mrf.mxu0  ;;  %9951 = vmatmul.mubr.msk.f32.gmra.mxu0 %vm298_vm2, %v12407_v21  ;;  %v15730_v31 = vld [vmem:[#allocation22_spill] sm:$0xff] }
 0x17a   :  { %15719 = vst [vmem:[#allocation96_spill] sm:$0xff] %v12437_v6  ;;  %v1271_v35 = vadd.f32 %v15723_v56, %v15722_v14  ;;  %15725 = vst [vmem:[#allocation99_spill] sm:$0xff] %v12450_v37  ;;  %v1588_v6 = vadd.f32 %v15728_v27, %v15727_v23  ;;  %v12455_v5 = vadd.f32 %v2354_v41, %v1573_v52  ;;  %v4007_v59 = vrot.slane %v15730_v31, 4  ;;  %v15731_v56 = vld [vmem:[#allocation23_spill] sm:$0xff]  ;;  %v15732_v20 = vld [vmem:[#allocation117_spill] sm:$0xff]  ;;  %v9690_v55 = vpop.f32.mrf.mxu1 }
 0x17b   :  { %15724 = vst [vmem:[#allocation98_spill] sm:$0xff] %v12447_v45  ;;  %v4400_v14 = vrot.slane %v15731_v56, 4  ;;  %v15733_v26 = vld [vmem:[#allocation155_spill] sm:$0xff]  ;;  %10007 = vmatmul.mubr.msk.f32.gmra.mxu1 %vm298_vm2, %v12419_v44  ;;  %9953 = vmatprep.mubr.msk.f32.mxu0 %vm298_vm2, %v12432_v51  ;;  %v12470_v52 = vsel %vm371_vm0, %v4394_v36, %v4396_v7  ;;  %v15736_v41 = vld [vmem:[#allocation24_spill] sm:$0xff]  ;;  %v15737_v27 = vld [vmem:[#allocation118_spill] sm:$0xff]  ;;  %v12488_v44 = vsel %vm371_vm0, %v4396_v7, %v4398_v47 }
 0x17c   :  { %15729 = vst [vmem:[#allocation100_spill] sm:$0xff] %v12455_v5  ;;  %v1266_v45 = vadd.f32 %v15733_v26, %v15732_v20  ;;  %v12463_v4 = vadd.f32 %v9634_v63, %v1271_v35  ;;  %15735 = vst [vmem:[#allocation102_spill] sm:$0xff] %v12470_v52  ;;  %v4009_v23 = vrot.slane %v15736_v41, 4  ;;  %v15738_v31 = vld [vmem:[#allocation156_spill] sm:$0xff]  ;;  %v12475_v18 = vadd.f32 %v9690_v55, %v1588_v6  ;;  %v1976_v20 = vpop.f32.mrf.mxu0  ;;  %v15741_v63 = vld [vmem:[#allocation25_spill] sm:$0xff]  ;;  %v2364_v41 = vpop.f32.mrf.mxu1 }
 0x17d   :  { %v1583_v56 = vadd.f32 %v15738_v31, %v15737_v27  ;;  %10009 = vmatprep.mubr.msk.f32.mxu1 %vm298_vm2, %v12442_v49  ;;  %v12480_v35 = vsel %vm371_vm0, %v4003_v43, %v4005_v3  ;;  %v4402_v26 = vrot.slane %v15741_v63, 4  ;;  %v15743_v5 = vld [vmem:[#allocation157_spill] sm:$0xff]  ;;  %15745 = vst [vmem:[#allocation105_spill] sm:$0xff] %v12488_v44  ;;  %v15746_v6 = vld [vmem:[#allocation26_spill] sm:$0xff]  ;;  %v15747_v31 = vld [vmem:[#allocation120_spill] sm:$0xff]  ;;  %9954 = vmatmul.mubr.msk.f32.gmra.mxu0 %vm298_vm2, %v12450_v37 }
 0x17e   :  { %15734 = vst [vmem:[#allocation101_spill] sm:$0xff] %v12463_v4  ;;  %15739 = vst [vmem:[#allocation103_spill] sm:$0xff] %v12475_v18  ;;  %v15742_v4 = vld [vmem:[#allocation119_spill] sm:$0xff]  ;;  %v12485_v51 = vadd.f32 %v1976_v20, %v1266_v45  ;;  %v4011_v55 = vrot.slane %v15746_v6, 4  ;;  %v15748_v27 = vld [vmem:[#allocation158_spill] sm:$0xff]  ;;  %v9637_v43 = vpop.f32.mrf.mxu0  ;;  %v12498_v63 = vsel %vm371_vm0, %v4005_v3, %v4007_v59  ;;  %v12501_v45 = vsel %vm371_vm0, %v4398_v47, %v4400_v14  ;;  %v9693_v6 = vpop.f32.mrf.mxu1 }
 0x17f   :  { %15740 = vst [vmem:[#allocation104_spill] sm:$0xff] %v12480_v35  ;;  %v1281_v36 = vadd.f32 %v15743_v5, %v15742_v4  ;;  %v1598_v18 = vadd.f32 %v15748_v27, %v15747_v31  ;;  %v12493_v49 = vadd.f32 %v2364_v41, %v1583_v56  ;;  %15750 = vst [vmem:[#allocation106_spill] sm:$0xff] %v12498_v63  ;;  %v15752_v5 = vld [vmem:[#allocation121_spill] sm:$0xff]  ;;  %v15753_v7 = vld [vmem:[#allocation159_spill] sm:$0xff]  ;;  %10010 = vmatmul.mubr.msk.f32.gmra.mxu1 %vm298_vm2, %v12470_v52 }
 0x180   :  { %15744 = vst [vmem:[#allocation3_spill] sm:$0xff] %v12485_v51  ;;  %15751 = vst [vmem:[#allocation2_spill] sm:$0xff] %v12501_v45  ;;  %v1276_v4 = vadd.f32 %v15753_v7, %v15752_v5  ;;  %9956 = vmatprep.mubr.msk.f32.mxu0 %vm298_vm2, %v12480_v35  ;;  %v12512_v56 = vsel %vm371_vm0, %v4007_v59, %v4009_v23  ;;  %v15756_v3 = vld [vmem:[#allocation27_spill] sm:$0xff]  ;;  %v15757_v31 = vld [vmem:[#allocation122_spill] sm:$0xff]  ;;  %v1986_v5 = vpop.f32.mrf.mxu0  ;;  %10012 = vmatprep.mubr.msk.f32.mxu1 %vm298_vm2, %v12488_v44 }
 0x181   :  { %15749 = vst [vmem:[#allocation4_spill] sm:$0xff] %v12493_v49  ;;  %v12505_v20 = vadd.f32 %v9637_v43, %v1281_v36  ;;  %15755 = vst [vmem:[#allocation5_spill] sm:$0xff] %v12512_v56  ;;  %v4404_v41 = vrot.slane %v15756_v3, 4  ;;  %v15758_v47 = vld [vmem:[#allocation160_spill] sm:$0xff]  ;;  %v12517_v49 = vadd.f32 %v9693_v6, %v1598_v18  ;;  %v12522_v36 = vsel %vm371_vm0, %v4400_v14, %v4402_v26  ;;  %v15763_v51 = vld [vmem:[#allocation161_spill] sm:$0xff]  ;;  %v2374_v3 = vpop.f32.mrf.mxu1 }
 0x182   :  { %v1593_v27 = vadd.f32 %v15758_v47, %v15757_v31  ;;  %15760 = vst [vmem:[#allocation146_spill] sm:$0xff] %v12522_v36  ;;  %v15761_v43 = vld [vmem:[#allocation28_spill] sm:$0xff]  ;;  %v12527_v35 = vadd.f32 %v1986_v5, %v1276_v4  ;;  %v12530_v52 = vsel %vm371_vm0, %v4009_v23, %v4011_v55  ;;  %v15766_v18 = vld [vmem:[#allocation29_spill] sm:$0xff]  ;;  %v15768_v47 = vld [vmem:[#allocation162_spill] sm:$0xff]  ;;  %v9640_v14 = vpop.f32.mrf.mxu0  ;;  %9957 = vmatmul.mubr.msk.f32.gmra.mxu0 %vm298_vm2, %v12498_v63 }
 0x183   :  { %15754 = vst [vmem:[#allocation107_spill] sm:$0xff] %v12505_v20  ;;  %15759 = vst [vmem:[#allocation108_spill] sm:$0xff] %v12517_v49  ;;  %v4013_v7 = vrot.slane %v15761_v43, 4  ;;  %v15762_v20 = vld [vmem:[#allocation123_spill] sm:$0xff]  ;;  %v4406_v6 = vrot.slane %v15766_v18, 4  ;;  %v15767_v31 = vld [vmem:[#allocation124_spill] sm:$0xff]  ;;  %v9696_v21 = vpop.f32.mrf.mxu1  ;;  %10013 = vmatmul.mubr.msk.f32.gmra.mxu1 %vm298_vm2, %v12501_v45  ;;  %9959 = vmatprep.mubr.msk.f32.mxu0 %vm298_vm2, %v12512_v56 }
 0x184   :  { %v1291_v59 = vadd.f32 %v15763_v51, %v15762_v20  ;;  %15764 = vst [vmem:[#allocation109_spill] sm:$0xff] %v12527_v35  ;;  %15765 = vst [vmem:[#allocation147_spill] sm:$0xff] %v12530_v52  ;;  %v1608_v49 = vadd.f32 %v15768_v47, %v15767_v31  ;;  %v12535_v44 = vadd.f32 %v2374_v3, %v1593_v27  ;;  %v15770_v43 = vld [vmem:[#allocation30_spill] sm:$0xff]  ;;  %v15771_v51 = vld [vmem:[#allocation31_spill] sm:$0xff]  ;;  %10015 = vmatprep.mubr.msk.f32.mxu1 %vm298_vm2, %v12522_v36 }
 0x185   :  { %v4015_v37 = vrot.slane %v15770_v43, 4  ;;  %v4408_v4 = vrot.slane %v15771_v51, 4  ;;  %v15772_v20 = vld [vmem:[#allocation125_spill] sm:$0xff]  ;;  %v15773_v5 = vld [vmem:[#allocation163_spill] sm:$0xff]  ;;  %v12550_v3 = vsel %vm371_vm0, %v4402_v26, %v4404_v41  ;;  %v15776_v27 = vld [vmem:[#allocation32_spill] sm:$0xff]  ;;  %v12568_v45 = vsel %vm371_vm0, %v4404_v41, %v4406_v6 }
 0x186   :  { %15769 = vst [vmem:[#allocation145_spill] sm:$0xff] %v12535_v44  ;;  %v1286_v35 = vadd.f32 %v15773_v5, %v15772_v20  ;;  %v12543_v23 = vadd.f32 %v9640_v14, %v1291_v59  ;;  %15775 = vst [vmem:[#allocation148_spill] sm:$0xff] %v12550_v3  ;;  %v4017_v31 = vrot.slane %v15776_v27, 4  ;;  %v15777_v47 = vld [vmem:[#allocation126_spill] sm:$0xff]  ;;  %v15778_v43 = vld [vmem:[#allocation164_spill] sm:$0xff]  ;;  %v12555_v18 = vadd.f32 %v9696_v21, %v1608_v49  ;;  %v1996_v20 = vpop.f32.mrf.mxu0  ;;  %v2384_v27 = vpop.f32.mrf.mxu1 }
 0x187   :  { %v1603_v51 = vadd.f32 %v15778_v43, %v15777_v47  ;;  %v12560_v59 = vsel %vm371_vm0, %v4011_v55, %v4013_v7  ;;  %v15781_v14 = vld [vmem:[#allocation33_spill] sm:$0xff]  ;;  %15785 = vst [vmem:[#allocation150_spill] sm:$0xff] %v12568_v45  ;;  %v15786_v21 = vld [vmem:[#allocation34_spill] sm:$0xff]  ;;  %v15787_v43 = vld [vmem:[#allocation128_spill] sm:$0xff]  ;;  %9960 = vmatmul.mubr.msk.f32.gmra.mxu0 %vm298_vm2, %v12530_v52  ;;  %10016 = vmatmul.mubr.msk.f32.gmra.mxu1 %vm298_vm2, %v12550_v3 }
 0x188   :  { %15774 = vst [vmem:[#allocation110_spill] sm:$0xff] %v12543_v23  ;;  %15779 = vst [vmem:[#allocation111_spill] sm:$0xff] %v12555_v18  ;;  %v4410_v5 = vrot.slane %v15781_v14, 4  ;;  %v15782_v23 = vld [vmem:[#allocation127_spill] sm:$0xff]  ;;  %v15783_v44 = vld [vmem:[#allocation165_spill] sm:$0xff]  ;;  %v12565_v56 = vadd.f32 %v1996_v20, %v1286_v35  ;;  %v4019_v49 = vrot.slane %v15786_v21, 4  ;;  %v9643_v55 = vpop.f32.mrf.mxu0  ;;  %v12578_v14 = vsel %vm371_vm0, %v4013_v7, %v4015_v37  ;;  %v9699_v21 = vpop.f32.mrf.mxu1  ;;  %9962 = vmatprep.mubr.msk.f32.mxu0 %vm298_vm2, %v12560_v59 }
 0x189   :  { %15780 = vst [vmem:[#allocation149_spill] sm:$0xff] %v12560_v59  ;;  %v1301_v26 = vadd.f32 %v15783_v44, %v15782_v23  ;;  %v15788_v47 = vld [vmem:[#allocation166_spill] sm:$0xff]  ;;  %v12573_v36 = vadd.f32 %v2384_v27, %v1603_v51  ;;  %15790 = vst [vmem:[#allocation151_spill] sm:$0xff] %v12578_v14  ;;  %v12581_v44 = vsel %vm371_vm0, %v4406_v6, %v4408_v4  ;;  %v15792_v35 = vld [vmem:[#allocation129_spill] sm:$0xff]  ;;  %10018 = vmatprep.mubr.msk.f32.mxu1 %vm298_vm2, %v12568_v45 }
 0x18a   :  { %15784 = vst [vmem:[#allocation112_spill] sm:$0xff] %v12565_v56  ;;  %v1618_v18 = vadd.f32 %v15788_v47, %v15787_v43  ;;  %15791 = vst [vmem:[#allocation114_spill] sm:$0xff] %v12581_v44  ;;  %v15793_v41 = vld [vmem:[#allocation167_spill] sm:$0xff]  ;;  %v12592_v51 = vsel %vm371_vm0, %v4015_v37, %v4017_v31  ;;  %v15797_v43 = vld [vmem:[#allocation130_spill] sm:$0xff]  ;;  %v12610_v3 = vsel %vm371_vm0, %v4017_v31, %v4019_v49 }
 0x18b   :  { %15789 = vst [vmem:[#allocation113_spill] sm:$0xff] %v12573_v36  ;;  %v1296_v23 = vadd.f32 %v15793_v41, %v15792_v35  ;;  %v12585_v20 = vadd.f32 %v9643_v55, %v1301_v26  ;;  %15795 = vst [vmem:[#allocation115_spill] sm:$0xff] %v12592_v51  ;;  %v15796_v7 = vld [vmem:[#allocation35_spill] sm:$0xff]  ;;  %v15798_v6 = vld [vmem:[#allocation168_spill] sm:$0xff]  ;;  %v2006_v35 = vpop.f32.mrf.mxu0  ;;  %v12602_v26 = vsel %vm371_vm0, %v4408_v4, %v4410_v5  ;;  %9963 = vmatmul.mubr.msk.f32.gmra.mxu0 %vm298_vm2, %v12578_v14 }
 0x18c   :  { %v4412_v27 = vrot.slane %v15796_v7, 4  ;;  %v1613_v47 = vadd.f32 %v15798_v6, %v15797_v43  ;;  %v12597_v36 = vadd.f32 %v9699_v21, %v1618_v18  ;;  %15800 = vst [vmem:[#allocation116_spill] sm:$0xff] %v12602_v26  ;;  %v15801_v55 = vld [vmem:[#allocation36_spill] sm:$0xff]  ;;  %v15803_v56 = vld [vmem:[#allocation169_spill] sm:$0xff]  ;;  %v2394_v7 = vpop.f32.mrf.mxu1  ;;  %15805 = vst [vmem:[#allocation117_spill] sm:$0xff] %v12610_v3  ;;  %10019 = vmatmul.mubr.msk.f32.gmra.mxu1 %vm298_vm2, %v12581_v44  ;;  %9965 = vmatprep.mubr.msk.f32.mxu0 %vm298_vm2, %v12592_v51 }
 0x18d   :  { %15794 = vst [vmem:[#allocation152_spill] sm:$0xff] %v12585_v20  ;;  %v4021_v41 = vrot.slane %v15801_v55, 4  ;;  %v15802_v20 = vld [vmem:[#allocation131_spill] sm:$0xff]  ;;  %v12607_v59 = vadd.f32 %v2006_v35, %v1296_v23  ;;  %v15806_v18 = vld [vmem:[#allocation37_spill] sm:$0xff]  ;;  %v15807_v43 = vld [vmem:[#allocation132_spill] sm:$0xff]  ;;  %v9646_v4 = vpop.f32.mrf.mxu0  ;;  %10021 = vmatprep.mubr.msk.f32.mxu1 %vm298_vm2, %v12602_v26 }
 0x18e   :  { %15799 = vst [vmem:[#allocation153_spill] sm:$0xff] %v12597_v36  ;;  %v1311_v37 = vadd.f32 %v15803_v56, %v15802_v20  ;;  %v4414_v21 = vrot.slane %v15806_v18, 4  ;;  %v15808_v6 = vld [vmem:[#allocation170_spill] sm:$0xff]  ;;  %v12615_v45 = vadd.f32 %v2394_v7, %v1613_v47  ;;  %v15811_v56 = vld [vmem:[#allocation39_spill] sm:$0xff]  ;;  %v15812_v20 = vld [vmem:[#allocation133_spill] sm:$0xff]  ;;  %v9702_v63 = vpop.f32.mrf.mxu1  ;;  %v12630_v7 = vsel %vm371_vm0, %v4410_v5, %v4412_v27 }
 0x18f   :  { %15804 = vst [vmem:[#allocation154_spill] sm:$0xff] %v12607_v59  ;;  %v1628_v36 = vadd.f32 %v15808_v6, %v15807_v43  ;;  %v15810_v55 = vld [vmem:[#allocation38_spill] sm:$0xff]  ;;  %v4416_v23 = vrot.slane %v15811_v56, 4  ;;  %v15813_v35 = vld [vmem:[#allocation171_spill] sm:$0xff]  ;;  %15815 = vst [vmem:[#allocation156_spill] sm:$0xff] %v12630_v7  ;;  %9966 = vmatmul.mubr.msk.f32.gmra.mxu0 %vm298_vm2, %v12610_v3 }
 0x190   :  { %15809 = vst [vmem:[#allocation155_spill] sm:$0xff] %v12615_v45  ;;  %v4023_v52 = vrot.slane %v15810_v55, 4  ;;  %v1306_v59 = vadd.f32 %v15813_v35, %v15812_v20  ;;  %v12623_v31 = vadd.f32 %v9646_v4, %v1311_v37  ;;  %v15816_v47 = vld [vmem:[#allocation40_spill] sm:$0xff]  ;;  %v15817_v6 = vld [vmem:[#allocation134_spill] sm:$0xff]  ;;  %v2016_v20 = vpop.f32.mrf.mxu0  ;;  %v12640_v37 = vsel %vm371_vm0, %v4019_v49, %v4021_v41  ;;  %v15821_v4 = vld [vmem:[#allocation41_spill] sm:$0xff]  ;;  %10022 = vmatmul.mubr.msk.f32.gmra.mxu1 %vm298_vm2, %v12630_v7 }
 0x191   :  { %v4025_v43 = vrot.slane %v15816_v47, 4  ;;  %v15818_v55 = vld [vmem:[#allocation172_spill] sm:$0xff]  ;;  %v12635_v18 = vadd.f32 %v9702_v63, %v1628_v36  ;;  %15820 = vst [vmem:[#allocation157_spill] sm:$0xff] %v12640_v37  ;;  %v4418_v35 = vrot.slane %v15821_v4, 4  ;;  %v15823_v45 = vld [vmem:[#allocation173_spill] sm:$0xff]  ;;  %v2404_v47 = vpop.f32.mrf.mxu1  ;;  %v12648_v44 = vsel %vm371_vm0, %v4412_v27, %v4414_v21  ;;  %v15826_v63 = vld [vmem:[#allocation42_spill] sm:$0xff]  ;;  %9968 = vmatprep.mubr.msk.f32.mxu0 %vm298_vm2, %v12640_v37 }
 0x192   :  { %15814 = vst [vmem:[#allocation118_spill] sm:$0xff] %v12623_v31  ;;  %v1623_v56 = vadd.f32 %v15818_v55, %v15817_v6  ;;  %v15822_v31 = vld [vmem:[#allocation135_spill] sm:$0xff]  ;;  %v12645_v51 = vadd.f32 %v2016_v20, %v1306_v59  ;;  %15825 = vst [vmem:[#allocation158_spill] sm:$0xff] %v12648_v44  ;;  %v4027_v36 = vrot.slane %v15826_v63, 4  ;;  %v15827_v55 = vld [vmem:[#allocation136_spill] sm:$0xff]  ;;  %v9649_v49 = vpop.f32.mrf.mxu0  ;;  %v12658_v4 = vsel %vm371_vm0, %v4021_v41, %v4023_v52 }
 0x193   :  { %15819 = vst [vmem:[#allocation119_spill] sm:$0xff] %v12635_v18  ;;  %v1321_v5 = vadd.f32 %v15823_v45, %v15822_v31  ;;  %v15828_v6 = vld [vmem:[#allocation174_spill] sm:$0xff]  ;;  %15830 = vst [vmem:[#allocation159_spill] sm:$0xff] %v12658_v4  ;;  %v12661_v45 = vsel %vm371_vm0, %v4414_v21, %v4416_v23  ;;  %v15832_v59 = vld [vmem:[#allocation137_spill] sm:$0xff]  ;;  %v9705_v63 = vpop.f32.mrf.mxu1  ;;  %10024 = vmatprep.mubr.msk.f32.mxu1 %vm298_vm2, %v12648_v44  ;;  %9969 = vmatmul.mubr.msk.f32.gmra.mxu0 %vm298_vm2, %v12658_v4 }
 0x194   :  { %15824 = vst [vmem:[#allocation120_spill] sm:$0xff] %v12645_v51  ;;  %v1638_v18 = vadd.f32 %v15828_v6, %v15827_v55  ;;  %v12653_v26 = vadd.f32 %v2404_v47, %v1623_v56  ;;  %15831 = vst [vmem:[#allocation122_spill] sm:$0xff] %v12661_v45  ;;  %v15833_v27 = vld [vmem:[#allocation175_spill] sm:$0xff]  ;;  %v12672_v56 = vsel %vm371_vm0, %v4023_v52, %v4025_v43  ;;  %v15837_v55 = vld [vmem:[#allocation138_spill] sm:$0xff]  ;;  %10025 = vmatmul.mubr.msk.f32.gmra.mxu1 %vm298_vm2, %v12661_v45 }
 0x195   :  { %v1316_v31 = vadd.f32 %v15833_v27, %v15832_v59  ;;  %v12665_v20 = vadd.f32 %v9649_v49, %v1321_v5  ;;  %15835 = vst [vmem:[#allocation123_spill] sm:$0xff] %v12672_v56  ;;  %v15836_v41 = vld [vmem:[#allocation43_spill] sm:$0xff]  ;;  %v15838_v21 = vld [vmem:[#allocation176_spill] sm:$0xff]  ;;  %v2026_v59 = vpop.f32.mrf.mxu0  ;;  %v12682_v5 = vsel %vm371_vm0, %v4416_v23, %v4418_v35  ;;  %v15843_v51 = vld [vmem:[#allocation177_spill] sm:$0xff]  ;;  %v12690_v7 = vsel %vm371_vm0, %v4025_v43, %v4027_v36 }
 0x196   :  { %15829 = vst [vmem:[#allocation121_spill] sm:$0xff] %v12653_v26  ;;  %v4420_v47 = vrot.slane %v15836_v41, 4  ;;  %v1633_v6 = vadd.f32 %v15838_v21, %v15837_v55  ;;  %v12677_v26 = vadd.f32 %v9705_v63, %v1638_v18  ;;  %15840 = vst [vmem:[#allocation124_spill] sm:$0xff] %v12682_v5  ;;  %v15841_v49 = vld [vmem:[#allocation44_spill] sm:$0xff]  ;;  %v2414_v41 = vpop.f32.mrf.mxu1  ;;  %v15846_v18 = vld [vmem:[#allocation45_spill] sm:$0xff]  ;;  %9971 = vmatprep.mubr.msk.f32.mxu0 %vm298_vm2, %v12672_v56  ;;  %10027 = vmatprep.mubr.msk.f32.mxu1 %vm298_vm2, %v12682_v5 }
 0x197   :  { %15834 = vst [vmem:[#allocation160_spill] sm:$0xff] %v12665_v20  ;;  %v4029_v27 = vrot.slane %v15841_v49, 4  ;;  %v15842_v20 = vld [vmem:[#allocation139_spill] sm:$0xff]  ;;  %v12687_v37 = vadd.f32 %v2026_v59, %v1316_v31  ;;  %15845 = vst [vmem:[#allocation125_spill] sm:$0xff] %v12690_v7  ;;  %v4422_v63 = vrot.slane %v15846_v18, 4  ;;  %v15847_v55 = vld [vmem:[#allocation140_spill] sm:$0xff]  ;;  %v9652_v23 = vpop.f32.mrf.mxu0  ;;  %9972 = vmatmul.mubr.msk.f32.gmra.mxu0 %vm298_vm2, %v12690_v7 }
 0x198   :  { %15839 = vst [vmem:[#allocation161_spill] sm:$0xff] %v12677_v26  ;;  %v1331_v52 = vadd.f32 %v15843_v51, %v15842_v20  ;;  %v15848_v21 = vld [vmem:[#allocation178_spill] sm:$0xff]  ;;  %v12695_v44 = vadd.f32 %v2414_v41, %v1633_v6  ;;  %v15851_v51 = vld [vmem:[#allocation47_spill] sm:$0xff]  ;;  %v9708_v14 = vpop.f32.mrf.mxu1  ;;  %v12710_v41 = vsel %vm371_vm0, %v4418_v35, %v4420_v47  ;;  %v15856_v6 = vld [vmem:[#allocation48_spill] sm:$0xff] }
 0x199   :  { %15844 = vst [vmem:[#allocation162_spill] sm:$0xff] %v12687_v37  ;;  %v1648_v26 = vadd.f32 %v15848_v21, %v15847_v55  ;;  %v15850_v49 = vld [vmem:[#allocation46_spill] sm:$0xff]  ;;  %v4424_v31 = vrot.slane %v15851_v51, 4  ;;  %v15852_v20 = vld [vmem:[#allocation71_spill] sm:$0xff]  ;;  %15855 = vst [vmem:[#allocation164_spill] sm:$0xff] %v12710_v41  ;;  %v4033_v55 = vrot.slane %v15856_v6, 4  ;;  %v12728_v45 = vsel %vm371_vm0, %v4420_v47, %v4422_v63  ;;  %10028 = vmatmul.mubr.msk.f32.gmra.mxu1 %vm298_vm2, %v12710_v41 }
 0x19a   :  { %15849 = vst [vmem:[#allocation163_spill] sm:$0xff] %v12695_v44  ;;  %v4031_v3 = vrot.slane %v15850_v49, 4  ;;  %v15853_v59 = vld [vmem:[#allocation179_spill] sm:$0xff]  ;;  %v12703_v43 = vadd.f32 %v9652_v23, %v1331_v52  ;;  %v15857_v21 = vld [vmem:[#allocation72_spill] sm:$0xff]  ;;  %v12720_v52 = vsel %vm371_vm0, %v4027_v36, %v4029_v27  ;;  %v15861_v23 = vld [vmem:[#allocation49_spill] sm:$0xff]  ;;  %v2424_v6 = vpop.f32.mrf.mxu1  ;;  %10030 = vmatprep.mubr.msk.f32.mxu1 %vm298_vm2, %v12728_v45 }
 0x19b   :  { %v1326_v37 = vadd.f32 %v15853_v59, %v15852_v20  ;;  %v15858_v49 = vld [vmem:[#allocation180_spill] sm:$0xff]  ;;  %v12715_v18 = vadd.f32 %v9708_v14, %v1648_v26  ;;  %v2036_v20 = vpop.f32.mrf.mxu0  ;;  %15860 = vst [vmem:[#allocation165_spill] sm:$0xff] %v12720_v52  ;;  %v4426_v59 = vrot.slane %v15861_v23, 4  ;;  %v15863_v44 = vld [vmem:[#allocation181_spill] sm:$0xff]  ;;  %15865 = vst [vmem:[#allocation166_spill] sm:$0xff] %v12728_v45  ;;  %9974 = vmatprep.mubr.msk.f32.mxu0 %vm298_vm2, %v12720_v52 }
 0x19c   :  { %15854 = vst [vmem:[#allocation126_spill] sm:$0xff] %v12703_v43  ;;  %v1643_v51 = vadd.f32 %v15858_v49, %v15857_v21  ;;  %v15862_v43 = vld [vmem:[#allocation141_spill] sm:$0xff]  ;;  %v15866_v14 = vld [vmem:[#allocation50_spill] sm:$0xff]  ;;  %v12738_v23 = vsel %vm371_vm0, %v4029_v27, %v4031_v3  ;;  %v15871_v47 = vld [vmem:[#allocation183_spill] sm:$0xff] }
 0x19d   :  { %15859 = vst [vmem:[#allocation127_spill] sm:$0xff] %v12715_v18  ;;  %v1341_v35 = vadd.f32 %v15863_v44, %v15862_v43  ;;  %v12725_v56 = vadd.f32 %v2036_v20, %v1326_v37  ;;  %v4035_v26 = vrot.slane %v15866_v14, 4  ;;  %v15867_v49 = vld [vmem:[#allocation73_spill] sm:$0xff]  ;;  %v15868_v21 = vld [vmem:[#allocation182_spill] sm:$0xff]  ;;  %v9655_v36 = vpop.f32.mrf.mxu0  ;;  %v12741_v44 = vsel %vm371_vm0, %v4422_v63, %v4424_v31  ;;  %v9711_v14 = vpop.f32.mrf.mxu1  ;;  %v15874_v27 = vld [vmem:[#allocation51_spill] sm:$0xff]  ;;  %9975 = vmatmul.mubr.msk.f32.gmra.mxu0 %vm298_vm2, %v12738_v23 }
 0x19e   :  { %v1658_v18 = vadd.f32 %v15868_v21, %v15867_v49  ;;  %v12733_v5 = vadd.f32 %v2424_v6, %v1643_v51  ;;  %v15870_v37 = vld [vmem:[#allocation74_spill] sm:$0xff]  ;;  %v12752_v51 = vsel %vm371_vm0, %v4031_v3, %v4033_v55  ;;  %v4428_v6 = vrot.slane %v15874_v27, 4  ;;  %v15875_v49 = vld [vmem:[#allocation75_spill] sm:$0xff]  ;;  %v15876_v63 = vld [vmem:[#allocation184_spill] sm:$0xff]  ;;  %10031 = vmatmul.mubr.msk.f32.gmra.mxu1 %vm298_vm2, %v12741_v44 }
 0x19f   :  { %15864 = vst [vmem:[#allocation128_spill] sm:$0xff] %v12725_v56  ;;  %v1336_v43 = vadd.f32 %v15871_v47, %v15870_v37  ;;  %v12745_v20 = vadd.f32 %v9655_v36, %v1341_v35  ;;  %15873 = vst [vmem:[#allocation130_spill] sm:$0xff] %v12752_v51  ;;  %v1653_v21 = vadd.f32 %v15876_v63, %v15875_v49  ;;  %v2046_v37 = vpop.f32.mrf.mxu0  ;;  %v15879_v36 = vld [vmem:[#allocation52_spill] sm:$0xff]  ;;  %v15881_v56 = vld [vmem:[#allocation185_spill] sm:$0xff]  ;;  %v2434_v27 = vpop.f32.mrf.mxu1  ;;  %9977 = vmatprep.mubr.msk.f32.mxu0 %vm298_vm2, %v12752_v51 }
 0x1a0   :  { %15869 = vst [vmem:[#allocation129_spill] sm:$0xff] %v12733_v5  ;;  %v12757_v5 = vadd.f32 %v9711_v14, %v1658_v18  ;;  %v12762_v35 = vsel %vm371_vm0, %v4424_v31, %v4426_v59  ;;  %v4037_v47 = vrot.slane %v15879_v36, 4  ;;  %v12770_v41 = vsel %vm371_vm0, %v4033_v55, %v4035_v26  ;;  %v15884_v18 = vld [vmem:[#allocation53_spill] sm:$0xff]  ;;  %v15885_v49 = vld [vmem:[#allocation76_spill] sm:$0xff]  ;;  %v15886_v63 = vld [vmem:[#allocation186_spill] sm:$0xff] }
 0x1a1   :  { %15872 = vst [vmem:[#allocation167_spill] sm:$0xff] %v12745_v20  ;;  %15878 = vst [vmem:[#allocation131_spill] sm:$0xff] %v12762_v35  ;;  %v15880_v20 = vld [vmem:[#allocation142_spill] sm:$0xff]  ;;  %v12767_v52 = vadd.f32 %v2046_v37, %v1336_v43  ;;  %v4430_v14 = vrot.slane %v15884_v18, 4  ;;  %v12775_v45 = vadd.f32 %v2434_v27, %v1653_v21  ;;  %v9658_v31 = vpop.f32.mrf.mxu0  ;;  %v15891_v37 = vld [vmem:[#allocation187_spill] sm:$0xff]  ;;  %v9714_v4 = vpop.f32.mrf.mxu1  ;;  %v12790_v27 = vsel %vm371_vm0, %v4426_v59, %v4428_v6 }
 0x1a2   :  { %15877 = vst [vmem:[#allocation168_spill] sm:$0xff] %v12757_v5  ;;  %v1351_v3 = vadd.f32 %v15881_v56, %v15880_v20  ;;  %15883 = vst [vmem:[#allocation132_spill] sm:$0xff] %v12770_v41  ;;  %v1668_v5 = vadd.f32 %v15886_v63, %v15885_v49  ;;  %v15888_v36 = vld [vmem:[#allocation54_spill] sm:$0xff]  ;;  %v15889_v56 = vld [vmem:[#allocation55_spill] sm:$0xff]  ;;  %10033 = vmatprep.mubr.msk.f32.mxu1 %vm298_vm2, %v12762_v35  ;;  %9978 = vmatmul.mubr.msk.f32.gmra.mxu0 %vm298_vm2, %v12770_v41 }
 0x1a3   :  { %15882 = vst [vmem:[#allocation169_spill] sm:$0xff] %v12767_v52  ;;  %15887 = vst [vmem:[#allocation170_spill] sm:$0xff] %v12775_v45  ;;  %v4039_v7 = vrot.slane %v15888_v36, 4  ;;  %v4432_v43 = vrot.slane %v15889_v56, 4  ;;  %v15890_v20 = vld [vmem:[#allocation77_spill] sm:$0xff]  ;;  %v15893_v21 = vld [vmem:[#allocation78_spill] sm:$0xff]  ;;  %v2056_v56 = vpop.f32.mrf.mxu0  ;;  %v2444_v59 = vpop.f32.mrf.mxu1  ;;  %v12807_v51 = vsel %vm371_vm0, %v4428_v6, %v4430_v14  ;;  %10034 = vmatmul.mubr.msk.f32.gmra.mxu1 %vm298_vm2, %v12790_v27 }
 0x1a4   :  { %v1346_v52 = vadd.f32 %v15891_v37, %v15890_v20  ;;  %v12783_v55 = vadd.f32 %v9658_v31, %v1351_v3  ;;  %v15894_v49 = vld [vmem:[#allocation188_spill] sm:$0xff]  ;;  %v12794_v36 = vadd.f32 %v9714_v4, %v1668_v5  ;;  %v12799_v3 = vsel %vm371_vm0, %v4035_v26, %v4037_v47  ;;  %v15898_v37 = vld [vmem:[#allocation143_spill] sm:$0xff]  ;;  %v15899_v18 = vld [vmem:[#allocation189_spill] sm:$0xff]  ;;  %10036 = vmatprep.mubr.msk.f32.mxu1 %vm298_vm2, %v12807_v51 }
 0x1a5   :  { %v1663_v63 = vadd.f32 %v15894_v49, %v15893_v21  ;;  %15896 = vst [vmem:[#allocation134_spill] sm:$0xff] %v12799_v3  ;;  %v15897_v31 = vld [vmem:[#allocation56_spill] sm:$0xff]  ;;  %v15901_v4 = vld [vmem:[#allocation57_spill] sm:$0xff]  ;;  %v15903_v49 = vld [vmem:[#allocation190_spill] sm:$0xff]  ;;  %v9661_v26 = vpop.f32.mrf.mxu0  ;;  %9980 = vmatprep.mubr.msk.f32.mxu0 %vm298_vm2, %v12799_v3 }
 0x1a6   :  { %15892 = vst [vmem:[#allocation133_spill] sm:$0xff] %v12783_v55  ;;  %15895 = vst [vmem:[#allocation171_spill] sm:$0xff] %v12794_v36  ;;  %v4041_v20 = vrot.slane %v15897_v31, 4  ;;  %v1361_v55 = vadd.f32 %v15899_v18, %v15898_v37  ;;  %v12804_v45 = vadd.f32 %v2056_v56, %v1346_v52  ;;  %v4434_v5 = vrot.slane %v15901_v4, 4  ;;  %v15902_v21 = vld [vmem:[#allocation144_spill] sm:$0xff]  ;;  %v15905_v18 = vld [vmem:[#allocation79_spill] sm:$0xff]  ;;  %v9717_v4 = vpop.f32.mrf.mxu1 }
 0x1a7   :  { %v1678_v36 = vadd.f32 %v15903_v49, %v15902_v21  ;;  %v12812_v35 = vadd.f32 %v2444_v59, %v1663_v63  ;;  %v12817_v31 = vsel %vm371_vm0, %v4037_v47, %v4039_v7  ;;  %v12820_v52 = vsel %vm371_vm0, %v4430_v14, %v4432_v43  ;;  %v15906_v6 = vld [vmem:[#allocation191_spill] sm:$0xff]  ;;  %v15908_v63 = vld [vmem:[#allocation58_spill] sm:$0xff]  ;;  %v15910_v49 = vld [vmem:[#allocation80_spill] sm:$0xff]  ;;  %v2066_v41 = vpop.f32.mrf.mxu0 }
 0x1a8   :  { %15900 = vst [vmem:[#allocation172_spill] sm:$0xff] %v12804_v45  ;;  %v1356_v56 = vadd.f32 %v15906_v6, %v15905_v18  ;;  %v12824_v37 = vadd.f32 %v9661_v26, %v1361_v55  ;;  %v4043_v59 = vrot.slane %v15908_v63, 4  ;;  %v15909_v21 = vld [vmem:[#allocation59_spill] sm:$0xff]  ;;  %v12839_v55 = vsel %vm371_vm0, %v4039_v7, %v4041_v20  ;;  %v15912_v26 = vld [vmem:[#allocation60_spill] sm:$0xff]  ;;  %9981 = vmatmul.mubr.msk.f32.gmra.mxu0 %vm298_vm2, %v12817_v31 }
 0x1a9   :  { %15904 = vst [vmem:[#allocation135_spill] sm:$0xff] %v12812_v35  ;;  %v4436_v47 = vrot.slane %v15909_v21, 4  ;;  %v15911_v35 = vld [vmem:[#allocation81_spill] sm:$0xff]  ;;  %v12834_v45 = vadd.f32 %v9717_v4, %v1678_v36  ;;  %v4045_v18 = vrot.slane %v15912_v26, 4  ;;  %v12845_v63 = vsel %vm371_vm0, %v4432_v43, %v4434_v5  ;;  %v9722_v36 = vpop.f32.mrf.mxu0  ;;  %10037 = vmatmul.mubr.msk.f32.gmra.mxu1 %vm298_vm2, %v12820_v52  ;;  %9983 = vmatprep.mubr.msk.f32.mxu0 %vm298_vm2, %v12839_v55  ;;  %v15918_v26 = vld [vmem:[#allocation64_spill] sm:$0xff] }
 0x1aa   :  { %15907 = vst [vmem:[#allocation173_spill] sm:$0xff] %v12824_v37  ;;  %v1673_v14 = vadd.f32 %v15911_v35, %v15910_v49  ;;  %v12842_v6 = vadd.f32 %v2066_v41, %v1356_v56  ;;  %v2454_v37 = vpop.f32.mrf.mxu1  ;;  %v15913_v21 = vld [vmem:[#allocation61_spill] sm:$0xff]  ;;  %v12853_v4 = vadd.f32 %v9722_v36, %v12194_v10  ;;  %v12860_v41 = vsel %vm371_vm0, %v4041_v20, %v4043_v59  ;;  %v15915_v56 = vld [vmem:[#allocation62_spill] sm:$0xff]  ;;  %v15917_v36 = vld [vmem:[#allocation63_spill] sm:$0xff] }
 0x1ab   :  { %v4438_v3 = vrot.slane %v15913_v21, 4  ;;  %v12863_v43 = vsel %vm371_vm0, %v4434_v5, %v4436_v47  ;;  %v2618_v10 = vpop.f32.mrf.mxu0  ;;  %10039 = vmatprep.mubr.msk.f32.mxu1 %vm298_vm2, %v12845_v63  ;;  %v4440_v21 = vrot.slane %v15917_v36, 4  ;;  %v4049_v20 = vrot.slane %v15918_v26, 4 }
 0x1ac   :  { %v12848_v35 = vadd.f32 %v2454_v37, %v1673_v14  ;;  %15914 = vst [vmem:[#allocation136_spill] sm:$0xff] %v12853_v4  ;;  %v9778_v7 = vpop.f32.mrf.mxu1  ;;  %v4047_v37 = vrot.slane %v15915_v56, 4  ;;  %v12872_v14 = vsel %vm371_vm0, %v4043_v59, %v4045_v18  ;;  %v12877_v4 = vadd.f32 %v2618_v10, %v12208_v11  ;;  %9984 = vmatmul.mubr.msk.f32.gmra.mxu0 %vm298_vm2, %v12860_v41  ;;  %v15921_v10 = vld [vmem:[#allocation68_spill] sm:$0xff] }
 0x1ad   :  { %v12867_v49 = vadd.f32 %v9778_v7, %v12201_v8  ;;  %v12880_v56 = vsel %vm371_vm0, %v4436_v47, %v4438_v3  ;;  %v4442_v8 = vrot.slane %v15654_v53, 4  ;;  %10040 = vmatmul.mubr.msk.f32.gmra.mxu1 %vm298_vm2, %v12863_v43  ;;  %9986 = vmatprep.mubr.msk.f32.mxu0 %vm298_vm2, %v12872_v14  ;;  %v15920_v47 = vld [vmem:[#allocation67_spill] sm:$0xff] }
 0x1ae   :  { %v2875_v5 = vpop.f32.mrf.mxu1  ;;  %v12896_v11 = vsel %vm371_vm0, %v4045_v18, %v4047_v37  ;;  %10042 = vmatprep.mubr.msk.f32.mxu1 %vm298_vm2, %v12880_v56  ;;  %v4053_v18 = vrot.slane %v15459_v34, 4 }
 0x1af   :  { %15916 = vst [vmem:[#allocation174_spill] sm:$0xff] %v12867_v49  ;;  %v12884_v7 = vadd.f32 %v2875_v5, %v12214_v25  ;;  %v9725_v49 = vpop.f32.mrf.mxu0  ;;  %v4051_v25 = vrot.slane %v15920_v47, 4  ;;  %v4444_v5 = vrot.slane %v15921_v10, 4  ;;  %v12916_v10 = vsel %vm371_vm0, %v4440_v21, %v4442_v8 }
 0x1b0   :  { %v12889_v59 = vadd.f32 %v9725_v49, %v12224_v58  ;;  %v9781_v26 = vpop.f32.mrf.mxu1  ;;  %v12906_v58 = vsel %vm371_vm0, %v4438_v3, %v4440_v21  ;;  %v12909_v49 = vsel %vm371_vm0, %v4047_v37, %v4049_v20  ;;  %9987 = vmatmul.mubr.msk.f32.gmra.mxu0 %vm298_vm2, %v12896_v11  ;;  %v15923_v21 = vld [vmem:[#allocation84_spill] sm:$0xff] }
 0x1b1   :  { %v12901_v53 = vadd.f32 %v9781_v26, %v12232_v13  ;;  %v2628_v36 = vpop.f32.mrf.mxu0  ;;  %v4446_v13 = vrot.slane %v15662_v33, 4  ;;  %10043 = vmatmul.mubr.msk.f32.gmra.mxu1 %vm298_vm2, %v12906_v58  ;;  %9989 = vmatprep.mubr.msk.f32.mxu0 %vm298_vm2, %v12909_v49  ;;  %v4448_v33 = vrot.slane %v11831_v15, 4 }
 0x1b2   :  { %15919 = vst [vmem:[#allocation137_spill] sm:$0xff] %v12889_v59  ;;  %v12913_v59 = vadd.f32 %v2628_v36, %v12239_v0  ;;  %v2885_v47 = vpop.f32.mrf.mxu1  ;;  %v12932_v0 = vsel %vm371_vm0, %v4049_v20, %v4051_v25  ;;  %v4055_v36 = vrot.slane %v15923_v21, 4  ;;  %10045 = vmatprep.mubr.msk.f32.mxu1 %vm298_vm2, %v12916_v10  ;;  %v4057_v20 = vrot.slane %v11833_v22, 4 }
 0x1b3   :  { %15922 = vst [vmem:[#allocation175_spill] sm:$0xff] %v12901_v53  ;;  %v12920_v26 = vadd.f32 %v2885_v47, %v12248_v12  ;;  %v9728_v53 = vpop.f32.mrf.mxu0  ;;  %v12935_v12 = vsel %vm371_vm0, %v4442_v8, %v4444_v5  ;;  %v12952_v21 = vsel %vm371_vm0, %v4444_v5, %v4446_v13 }
 0x1b4   :  { %v12925_v3 = vadd.f32 %v9728_v53, %v12255_v19  ;;  %v9784_v37 = vpop.f32.mrf.mxu1  ;;  %v12944_v19 = vsel %vm371_vm0, %v4051_v25, %v4053_v18  ;;  %9990 = vmatmul.mubr.msk.f32.gmra.mxu0 %vm298_vm2, %v12932_v0 }
 0x1b5   :  { %v12939_v47 = vadd.f32 %v9784_v37, %v12262_v38  ;;  %v2638_v53 = vpop.f32.mrf.mxu0  ;;  %v4450_v38 = vrot.slane %v11838_v2, 4  ;;  %10046 = vmatmul.mubr.msk.f32.gmra.mxu1 %vm298_vm2, %v12935_v12  ;;  %9992 = vmatprep.mubr.msk.f32.mxu0 %vm298_vm2, %v12944_v19 }
 0x1b6   :  { %v12949_v34 = vadd.f32 %v2638_v53, %v12269_v29  ;;  %v2895_v8 = vpop.f32.mrf.mxu1  ;;  %v12968_v29 = vsel %vm371_vm0, %v4053_v18, %v4055_v36  ;;  %10048 = vmatprep.mubr.msk.f32.mxu1 %vm298_vm2, %v12952_v21 }
 0x1b7   :  { %15924 = vst [vmem:[#allocation138_spill] sm:$0xff] %v12939_v47  ;;  %v12956_v37 = vadd.f32 %v2895_v8, %v12275_v61  ;;  %v9731_v47 = vpop.f32.mrf.mxu0  ;;  %v15318_v8 = vrot.slane %v12244_v28, 4  ;;  %v12987_v61 = vsel %vm371_vm0, %v4448_v33, %v4450_v38 }
 0x1b8   :  { %v12961_v25 = vadd.f32 %v9731_v47, %v12282_v1  ;;  %v9787_v22 = vpop.f32.mrf.mxu1  ;;  %v12977_v1 = vsel %vm371_vm0, %v4446_v13, %v4448_v33  ;;  %v12980_v47 = vsel %vm371_vm0, %v4055_v36, %v4057_v20  ;;  %9993 = vmatmul.mubr.msk.f32.gmra.mxu0 %vm298_vm2, %v12968_v29  ;;  %v15925_v33 = vrot.slane %v12241_v24, 4 }
 0x1b9   :  { %v12972_v5 = vadd.f32 %v9787_v22, %v12290_v9  ;;  %v2648_v53 = vpop.f32.mrf.mxu0  ;;  %10049 = vmatmul.mubr.msk.f32.gmra.mxu1 %vm298_vm2, %v12977_v1  ;;  %9995 = vmatprep.mubr.msk.f32.mxu0 %vm298_vm2, %v12980_v47 }
 0x1ba   :  { %v12984_v18 = vadd.f32 %v2648_v53, %v12297_v54  ;;  %v2905_v2 = vpop.f32.mrf.mxu1  ;;  %v13004_v54 = vsel %vm371_vm0, %v4057_v20, %v15925_v33  ;;  %10051 = vmatprep.mubr.msk.f32.mxu1 %vm298_vm2, %v12987_v61 }
 0x1bb   :  { %v12990_v22 = vadd.f32 %v2905_v2, %v12303_v60  ;;  %v9734_v9 = vpop.f32.mrf.mxu0 }
 0x1bc   :  { %v12995_v13 = vadd.f32 %v9734_v9, %v12310_v16  ;;  %v9790_v36 = vpop.f32.mrf.mxu1  ;;  %v13014_v16 = vsel %vm371_vm0, %v4450_v38, %v15318_v8  ;;  %9996 = vmatmul.mubr.msk.f32.gmra.mxu0 %vm298_vm2, %v13004_v54  ;;  %v15938_v8 = vld [vmem:[#allocation90_spill] sm:$0xff] }
 0x1bd   :  { %v13007_v2 = vadd.f32 %v9790_v36, %v12318_v42  ;;  %v2658_v60 = vpop.f32.mrf.mxu0  ;;  %10052 = vmatmul.mubr.msk.f32.gmra.mxu1 %vm298_vm2, %v13014_v16  ;;  %10056 = vmatprep.mubr.msk.f32.mxu0 %vm298_vm2, %v12343_v32  ;;  %v13047_v32 = vld [vmem:[%s15090_s1 + $0x20] sm:$0xf] }
 0x1be   :  { %v13017_v53 = vadd.f32 %v2658_v60, %v12325_v46  ;;  %v2915_v9 = vpop.f32.mrf.mxu1  ;;  %10112 = vmatprep.mubr.msk.f32.mxu1 %vm298_vm2, %v12352_v30  ;;  %15926 = vst [vmem:[#allocation176_spill] sm:$0xff] %v13047_v32 }
 0x1bf   :  { %v13020_v15 = vadd.f32 %v2915_v9, %v12331_v48  ;;  %v9737_v20 = vpop.f32.mrf.mxu0  ;;  %v15928_v9 = vld [vmem:[#allocation82_spill] sm:$0xff] }
 0x1c0   :  { %v13025_v42 = vadd.f32 %v9737_v20, %v12338_v17  ;;  %v9793_v36 = vpop.f32.mrf.mxu1  ;;  %10057 = vmatmul.mubr.msk.f32.vlgmr.msra.gmra.mxu0 %vm298_vm2, %v12360_v39 }
 0x1c1   :  { %v13032_v46 = vadd.f32 %v9793_v36, %v12348_v40  ;;  %v2668_v38 = vpop.f32.mrf.mxu0  ;;  %10113 = vmatmul.mubr.msk.f32.vlgmr.msra.gmra.mxu1 %vm298_vm2, %v15928_v9  ;;  %v15932_v36 = vld [vmem:[#allocation86_spill] sm:$0xff]  ;;  %v15936_v9 = vld [vmem:[#allocation92_spill] sm:$0xff] }
 0x1c2   :  { %v13037_v48 = vadd.f32 %v2668_v38, %v12357_v50  ;;  %v2925_v33 = vpop.f32.mrf.mxu1  ;;  %v15929_v50 = vld [vmem:[#allocation83_spill] sm:$0xff]  ;;  %10059 = vmatprep.mubr.msk.f32.mxu0 %vm298_vm2, %v15932_v36  ;;  %v15933_v38 = vld [vmem:[#allocation89_spill] sm:$0xff] }
 0x1c3   :  { %v13040_v17 = vadd.f32 %v2925_v33, %v12365_v57  ;;  %v9740_v60 = vpop.f32.mrf.mxu0  ;;  %10167 = vmatpush3.msk.msra.mxu0 %vm371_vm0, %v15929_v50  ;;  %v15930_v57 = vld [vmem:[#allocation87_spill] sm:$0xff]  ;;  %10223 = vmatpush3.msk.msra.mxu1 %vm371_vm0, %v15929_v50  ;;  %v15939_v50 = vld [vmem:[#allocation94_spill] sm:$0xff] }
 0x1c4   :  { %v13050_v40 = vadd.f32 %v9740_v60, %v12379_v62  ;;  %v9796_v30 = vpop.f32.mrf.mxu1  ;;  %v15935_v60 = vld [vmem:[#allocation88_spill] sm:$0xff]  ;;  %10278 = vmatprep.subr.msk.mxu0 %vm371_vm0, %v13047_v32  ;;  %10060 = vmatmul.mubr.msk.f32.gmra.mxu0 %vm298_vm2, %v15938_v8  ;;  %v15946_v8 = vld [vmem:[#allocation98_spill] sm:$0xff] }
 0x1c5   :  { %v13057_v20 = vadd.f32 %v9796_v30, %v15930_v57  ;;  %v2678_v39 = vpop.f32.mrf.mxu0  ;;  %10115 = vmatprep.mubr.msk.f32.mxu1 %vm298_vm2, %v15935_v60  ;;  %10334 = vmatprep.subr.msk.mxu1 %vm371_vm0, %v13047_v32  ;;  %v15942_v60 = vld [vmem:[#allocation95_spill] sm:$0xff] }
 0x1c6   :  { %15927 = vst [vmem:[#allocation139_spill] sm:$0xff] %v13050_v40  ;;  %v13064_v62 = vadd.f32 %v2678_v39, %v15933_v38  ;;  %v2935_v33 = vpop.f32.mrf.mxu1  ;;  %v15941_v38 = vld [vmem:[#allocation93_spill] sm:$0xff]  ;;  %10062 = vmatprep.mubr.msk.f32.mxu0 %vm298_vm2, %v15942_v60  ;;  %v15950_v40 = vld [vmem:[#allocation99_spill] sm:$0xff] }
 0x1c7   :  { %15931 = vst [vmem:[#allocation177_spill] sm:$0xff] %v13057_v20  ;;  %v13071_v30 = vadd.f32 %v2935_v33, %v15936_v9  ;;  %v9743_v57 = vpop.f32.mrf.mxu0  ;;  %10116 = vmatmul.mubr.msk.f32.gmra.mxu1 %vm298_vm2, %v15941_v38  ;;  %v15951_v38 = vld [vmem:[#allocation101_spill] sm:$0xff] }
 0x1c8   :  { %15934 = vst [vmem:[#allocation140_spill] sm:$0xff] %v13064_v62  ;;  %v13078_v39 = vadd.f32 %v9743_v57, %v15939_v50  ;;  %v9799_v36 = vpop.f32.mrf.mxu1  ;;  %v15943_v62 = vld [vmem:[#allocation96_spill] sm:$0xff]  ;;  %10063 = vmatmul.mubr.msk.f32.gmra.mxu0 %vm298_vm2, %v15950_v40 }
 0x1c9   :  { %15937 = vst [vmem:[#allocation178_spill] sm:$0xff] %v13071_v30  ;;  %v13085_v33 = vadd.f32 %v9799_v36, %v15943_v62  ;;  %v2688_v9 = vpop.f32.mrf.mxu0  ;;  %v15945_v30 = vld [vmem:[#allocation97_spill] sm:$0xff]  ;;  %v15948_v57 = vld [vmem:[#allocation100_spill] sm:$0xff]  ;;  %v15953_v36 = vld [vmem:[#allocation102_spill] sm:$0xff] }
 0x1ca   :  { %15940 = vst [vmem:[#allocation71_spill] sm:$0xff] %v13078_v39  ;;  %10118 = vmatprep.mubr.msk.f32.mxu1 %vm298_vm2, %v15945_v30  ;;  %v13090_v20 = vadd.f32 %v2688_v9, %v15946_v8  ;;  %v2945_v32 = vpop.f32.mrf.mxu1  ;;  %v15955_v30 = vld [vmem:[#allocation103_spill] sm:$0xff] }
 0x1cb   :  { %15944 = vst [vmem:[#allocation179_spill] sm:$0xff] %v13085_v33  ;;  %v13093_v50 = vadd.f32 %v2945_v32, %v15948_v57  ;;  %v9746_v39 = vpop.f32.mrf.mxu0  ;;  %10119 = vmatmul.mubr.msk.f32.gmra.mxu1 %vm298_vm2, %v15953_v36  ;;  %v15954_v33 = vld [vmem:[#allocation104_spill] sm:$0xff]  ;;  %v15957_v32 = vld [vmem:[#allocation105_spill] sm:$0xff]  ;;  %v15958_v57 = vld [vmem:[#allocation3_spill] sm:$0xff] }
 0x1cc   :  { %15947 = vst [vmem:[#allocation72_spill] sm:$0xff] %v13090_v20  ;;  %v13098_v60 = vadd.f32 %v9746_v39, %v15951_v38  ;;  %v9802_v62 = vpop.f32.mrf.mxu1  ;;  %10065 = vmatprep.mubr.msk.f32.mxu0 %vm298_vm2, %v15954_v33  ;;  %10121 = vmatprep.mubr.msk.f32.mxu1 %vm298_vm2, %v15957_v32  ;;  %v15960_v39 = vld [vmem:[#allocation4_spill] sm:$0xff]  ;;  %v15962_v20 = vld [vmem:[#allocation106_spill] sm:$0xff]  ;;  %v15963_v36 = vld [vmem:[#allocation107_spill] sm:$0xff] }
 0x1cd   :  { %15949 = vst [vmem:[#allocation180_spill] sm:$0xff] %v13093_v50  ;;  %v13105_v9 = vadd.f32 %v9802_v62, %v15955_v30  ;;  %v2698_v8 = vpop.f32.mrf.mxu0  ;;  %10066 = vmatmul.mubr.msk.f32.gmra.mxu0 %vm298_vm2, %v15962_v20  ;;  %v15965_v30 = vld [vmem:[#allocation2_spill] sm:$0xff] }
 0x1ce   :  { %15952 = vst [vmem:[#allocation141_spill] sm:$0xff] %v13098_v60  ;;  %v13110_v50 = vadd.f32 %v2698_v8, %v15958_v57  ;;  %v2955_v40 = vpop.f32.mrf.mxu1  ;;  %v15967_v8 = vld [vmem:[#allocation108_spill] sm:$0xff] }
 0x1cf   :  { %15956 = vst [vmem:[#allocation181_spill] sm:$0xff] %v13105_v9  ;;  %v13113_v38 = vadd.f32 %v2955_v40, %v15960_v39  ;;  %v9749_v60 = vpop.f32.mrf.mxu0  ;;  %10122 = vmatmul.mubr.msk.f32.gmra.mxu1 %vm298_vm2, %v15965_v30  ;;  %v15966_v9 = vld [vmem:[#allocation5_spill] sm:$0xff]  ;;  %v15969_v40 = vld [vmem:[#allocation146_spill] sm:$0xff] }
 0x1d0   :  { %15959 = vst [vmem:[#allocation73_spill] sm:$0xff] %v13110_v50  ;;  %v13118_v33 = vadd.f32 %v9749_v60, %v15963_v36  ;;  %v9805_v62 = vpop.f32.mrf.mxu1  ;;  %10068 = vmatprep.mubr.msk.f32.mxu0 %vm298_vm2, %v15966_v9  ;;  %10124 = vmatprep.mubr.msk.f32.mxu1 %vm298_vm2, %v15969_v40  ;;  %v15970_v39 = vld [vmem:[#allocation109_spill] sm:$0xff]  ;;  %v15974_v50 = vld [vmem:[#allocation147_spill] sm:$0xff]  ;;  %v15975_v30 = vld [vmem:[#allocation110_spill] sm:$0xff] }
 0x1d1   :  { %15961 = vst [vmem:[#allocation182_spill] sm:$0xff] %v13113_v38  ;;  %v13125_v32 = vadd.f32 %v9805_v62, %v15967_v8  ;;  %v2708_v57 = vpop.f32.mrf.mxu0  ;;  %v15972_v60 = vld [vmem:[#allocation145_spill] sm:$0xff]  ;;  %10069 = vmatmul.mubr.msk.f32.gmra.mxu0 %vm298_vm2, %v15974_v50  ;;  %v15977_v8 = vld [vmem:[#allocation148_spill] sm:$0xff] }
 0x1d2   :  { %15964 = vst [vmem:[#allocation74_spill] sm:$0xff] %v13118_v33  ;;  %v13130_v38 = vadd.f32 %v2708_v57, %v15970_v39  ;;  %v2965_v20 = vpop.f32.mrf.mxu1  ;;  %v15979_v57 = vld [vmem:[#allocation111_spill] sm:$0xff] }
 0x1d3   :  { %15968 = vst [vmem:[#allocation183_spill] sm:$0xff] %v13125_v32  ;;  %v13133_v36 = vadd.f32 %v2965_v20, %v15972_v60  ;;  %v9752_v33 = vpop.f32.mrf.mxu0  ;;  %10125 = vmatmul.mubr.msk.f32.gmra.mxu1 %vm298_vm2, %v15977_v8  ;;  %v15978_v32 = vld [vmem:[#allocation149_spill] sm:$0xff]  ;;  %v15981_v20 = vld [vmem:[#allocation150_spill] sm:$0xff]  ;;  %v15982_v60 = vld [vmem:[#allocation112_spill] sm:$0xff] }
 0x1d4   :  { %15971 = vst [vmem:[#allocation75_spill] sm:$0xff] %v13130_v38  ;;  %v13138_v9 = vadd.f32 %v9752_v33, %v15975_v30  ;;  %v9808_v62 = vpop.f32.mrf.mxu1  ;;  %10071 = vmatprep.mubr.msk.f32.mxu0 %vm298_vm2, %v15978_v32  ;;  %10127 = vmatprep.mubr.msk.f32.mxu1 %vm298_vm2, %v15981_v20  ;;  %v15984_v33 = vld [vmem:[#allocation113_spill] sm:$0xff]  ;;  %v15986_v38 = vld [vmem:[#allocation151_spill] sm:$0xff]  ;;  %v15987_v8 = vld [vmem:[#allocation152_spill] sm:$0xff] }
 0x1d5   :  { %15973 = vst [vmem:[#allocation184_spill] sm:$0xff] %v13133_v36  ;;  %v13145_v40 = vadd.f32 %v9808_v62, %v15979_v57  ;;  %v2718_v39 = vpop.f32.mrf.mxu0  ;;  %10072 = vmatmul.mubr.msk.f32.gmra.mxu0 %vm298_vm2, %v15986_v38  ;;  %v15989_v57 = vld [vmem:[#allocation114_spill] sm:$0xff] }
 0x1d6   :  { %15976 = vst [vmem:[#allocation142_spill] sm:$0xff] %v13138_v9  ;;  %v13150_v36 = vadd.f32 %v2718_v39, %v15982_v60  ;;  %v2975_v50 = vpop.f32.mrf.mxu1  ;;  %v15991_v39 = vld [vmem:[#allocation153_spill] sm:$0xff] }
 0x1d7   :  { %15980 = vst [vmem:[#allocation185_spill] sm:$0xff] %v13145_v40  ;;  %v13153_v30 = vadd.f32 %v2975_v50, %v15984_v33  ;;  %v9755_v9 = vpop.f32.mrf.mxu0  ;;  %10128 = vmatmul.mubr.msk.f32.gmra.mxu1 %vm298_vm2, %v15989_v57  ;;  %v15990_v40 = vld [vmem:[#allocation115_spill] sm:$0xff]  ;;  %v15993_v50 = vld [vmem:[#allocation116_spill] sm:$0xff]  ;;  %v15994_v33 = vld [vmem:[#allocation154_spill] sm:$0xff] }
 0x1d8   :  { %15983 = vst [vmem:[#allocation76_spill] sm:$0xff] %v13150_v36  ;;  %v13158_v32 = vadd.f32 %v9755_v9, %v15987_v8  ;;  %v9811_v62 = vpop.f32.mrf.mxu1  ;;  %10074 = vmatprep.mubr.msk.f32.mxu0 %vm298_vm2, %v15990_v40  ;;  %10130 = vmatprep.mubr.msk.f32.mxu1 %vm298_vm2, %v15993_v50  ;;  %v10409_v9 = vmov 0   ;;  %v7297_v8 = vld [vmem:[%s15092_s5] sm:$0xff]  ;;  %v15996_v57 = vld [vmem:[#allocation155_spill] sm:$0xff] }
 0x1d9   :  { %15985 = vst [vmem:[#allocation186_spill] sm:$0xff] %v13153_v30  ;;  %v13165_v20 = vadd.f32 %v9811_v62, %v15991_v39  ;;  %v2728_v60 = vpop.f32.mrf.mxu0  ;;  %10405 = vset.pattern.permute.xlu0 %v10409_v9  ;;  %10406 = vset.pattern.permute.xlu1 %v10409_v9  ;;  %v15998_v39 = vld [vmem:[#allocation117_spill] sm:$0xff]  ;;  %v15999_v50 = vld [vmem:[#allocation118_spill] sm:$0xff] }
 0x1da   :  { %15988 = vst [vmem:[#allocation77_spill] sm:$0xff] %v13158_v32  ;;  %v13170_v30 = vadd.f32 %v2728_v60, %v15994_v33  ;;  %v2985_v38 = vpop.f32.mrf.mxu1  ;;  %10075 = vmatmul.mubr.msk.f32.gmra.mxu0 %vm298_vm2, %v15998_v39  ;;  %7335 = vperm.xlu0 %10405, %v7297_v8   ;;  %v16001_v33 = vld [vmem:[#allocation156_spill] sm:$0xff]  ;;  %v16003_v32 = vld [vmem:[#allocation119_spill] sm:$0xff] }
 0x1db   :  { %15992 = vst [vmem:[#allocation187_spill] sm:$0xff] %v13165_v20  ;;  %v13176_v40 = vadd.f32 %v2985_v38, %v15996_v57  ;;  %v9758_v62 = vpop.f32.mrf.mxu0  ;;  %10131 = vmatmul.mubr.msk.f32.gmra.mxu1 %vm298_vm2, %v16001_v33  ;;  %v16005_v57 = vld [vmem:[#allocation158_spill] sm:$0xff] }
 0x1dc   :  { %15995 = vst [vmem:[#allocation78_spill] sm:$0xff] %v13170_v30  ;;  %v13181_v20 = vadd.f32 %v9758_v62, %v15999_v50  ;;  %v9814_v60 = vpop.f32.mrf.mxu1  ;;  %v16002_v30 = vld [vmem:[#allocation157_spill] sm:$0xff]  ;;  %10133 = vmatprep.mubr.msk.f32.mxu1 %vm298_vm2, %v16005_v57  ;;  %v7299_v62 = vld [vmem:[%s15092_s5 + $0x10] sm:$0xff]  ;;  %v7298_v50 = vld [vmem:[%s15092_s5 + $0x8] sm:$0xff] }
 0x1dd   :  { %15997 = vst [vmem:[#allocation188_spill] sm:$0xff] %v13176_v40  ;;  %10077 = vmatprep.mubr.msk.f32.mxu0 %vm298_vm2, %v16002_v30  ;;  %v13188_v9 = vadd.f32 %v9814_v60, %v16003_v32  ;;  %v2738_v38 = vpop.f32.mrf.mxu0  ;;  %v16006_v40 = vld [vmem:[#allocation120_spill] sm:$0xff]  ;;  %v16008_v30 = vld [vmem:[#allocation121_spill] sm:$0xff]  ;;  %v16010_v60 = vld [vmem:[#allocation159_spill] sm:$0xff]  ;;  %7345 = vperm.xlu1 %10406, %v7299_v62  }
 0x1de   :  { %16000 = vst [vmem:[#allocation143_spill] sm:$0xff] %v13181_v20  ;;  %v13193_v39 = vadd.f32 %v2738_v38, %v16006_v40  ;;  %v2995_v8 = vpop.f32.mrf.mxu1  ;;  %10078 = vmatmul.mubr.msk.f32.gmra.mxu0 %vm298_vm2, %v16010_v60  ;;  %v16011_v57 = vld [vmem:[#allocation160_spill] sm:$0xff]  ;;  %v16015_v20 = vld [vmem:[#allocation161_spill] sm:$0xff]  ;;  %7340 = vperm.xlu0 %10405, %v7298_v50   ;;  %v16018_v60 = vld [vmem:[#allocation162_spill] sm:$0xff] }
 0x1df   :  { %16004 = vst [vmem:[#allocation189_spill] sm:$0xff] %v13188_v9  ;;  %v13202_v33 = vadd.f32 %v2995_v8, %v16008_v30  ;;  %v9761_v32 = vpop.f32.mrf.mxu0  ;;  %v16014_v9 = vld [vmem:[#allocation123_spill] sm:$0xff]  ;;  %v16017_v30 = vld [vmem:[#allocation124_spill] sm:$0xff]  ;;  %v16022_v50 = vld [vmem:[#allocation126_spill] sm:$0xff] }
 0x1e0   :  { %16007 = vst [vmem:[#allocation144_spill] sm:$0xff] %v13193_v39  ;;  %v13207_v40 = vadd.f32 %v9761_v32, %v16011_v57  ;;  %v9817_v38 = vpop.f32.mrf.mxu1  ;;  %v16013_v39 = vld [vmem:[#allocation122_spill] sm:$0xff]  ;;  %10080 = vmatprep.mubr.msk.f32.mxu0 %vm298_vm2, %v16014_v9  ;;  %v7300_v57 = vld [vmem:[%s15092_s5 + $0x18] sm:$0xff] }
 0x1e1   :  { %16009 = vst [vmem:[#allocation190_spill] sm:$0xff] %v13202_v33  ;;  %10134 = vmatmul.mubr.msk.f32.gmra.mxu1 %vm298_vm2, %v16013_v39  ;;  %v13214_v36 = vadd.f32 %v9817_v38, %v16015_v20  ;;  %v2748_v8 = vpop.f32.mrf.mxu0  ;;  %v7301_v9 = vld [vmem:[%s15092_s5 + $0x20] sm:$0xff]  ;;  %v16020_v39 = vld [vmem:[#allocation163_spill] sm:$0xff]  ;;  %7350 = vperm.xlu1 %10406, %v7300_v57  }
 0x1e2   :  { %16012 = vst [vmem:[#allocation79_spill] sm:$0xff] %v13207_v40  ;;  %10136 = vmatprep.mubr.msk.f32.mxu1 %vm298_vm2, %v16017_v30  ;;  %v13219_v62 = vadd.f32 %v2748_v8, %v16018_v60  ;;  %v3005_v32 = vpop.f32.mrf.mxu1  ;;  %v16023_v60 = vld [vmem:[#allocation164_spill] sm:$0xff]  ;;  %v16025_v40 = vld [vmem:[#allocation127_spill] sm:$0xff]  ;;  %7355 = vperm.xlu0 %10405, %v7301_v9  }
 0x1e3   :  { %16016 = vst [vmem:[#allocation191_spill] sm:$0xff] %v13214_v36  ;;  %v13228_v20 = vadd.f32 %v3005_v32, %v16020_v39  ;;  %v9764_v38 = vpop.f32.mrf.mxu0  ;;  %v16021_v36 = vld [vmem:[#allocation125_spill] sm:$0xff]  ;;  %v16027_v39 = vld [vmem:[#allocation166_spill] sm:$0xff]  ;;  %v16031_v9 = vld [vmem:[#allocation167_spill] sm:$0xff] }
 0x1e4   :  { %16019 = vst [vmem:[#allocation80_spill] sm:$0xff] %v13219_v62  ;;  %10081 = vmatmul.mubr.msk.f32.gmra.mxu0 %vm298_vm2, %v16021_v36  ;;  %v13233_v8 = vadd.f32 %v9764_v38, %v16022_v50  ;;  %v9820_v30 = vpop.f32.mrf.mxu1  ;;  %v16024_v62 = vld [vmem:[#allocation165_spill] sm:$0xff]  ;;  %v16028_v36 = vld [vmem:[#allocation128_spill] sm:$0xff]  ;;  %v7302_v50 = vld [vmem:[%s15092_s5 + $0x28] sm:$0xff] }
 0x1e5   :  { %10137 = vmatmul.mubr.msk.f32.gmra.mxu1 %vm298_vm2, %v16023_v60  ;;  %10083 = vmatprep.mubr.msk.f32.mxu0 %vm298_vm2, %v16024_v62  ;;  %v13240_v33 = vadd.f32 %v9820_v30, %v16025_v40  ;;  %v2758_v32 = vpop.f32.mrf.mxu0  ;;  %v7303_v62 = vld [vmem:[%s15092_s5 + $0x30] sm:$0xff]  ;;  %v16030_v60 = vld [vmem:[#allocation129_spill] sm:$0xff] }
 0x1e6   :  { %10139 = vmatprep.mubr.msk.f32.mxu1 %vm298_vm2, %v16027_v39  ;;  %v13245_v57 = vadd.f32 %v2758_v32, %v16028_v36  ;;  %v3015_v38 = vpop.f32.mrf.mxu1  ;;  %7360 = vperm.xlu1 %10406, %v7302_v50   ;;  %v16033_v36 = vld [vmem:[#allocation130_spill] sm:$0xff] }
 0x1e7   :  { %16026 = vst [vmem:[#allocation81_spill] sm:$0xff] %v13240_v33  ;;  %v13254_v40 = vadd.f32 %v3015_v38, %v16030_v60  ;;  %v9767_v30 = vpop.f32.mrf.mxu0  ;;  %v16036_v60 = vld [vmem:[#allocation131_spill] sm:$0xff]  ;;  %7365 = vperm.xlu0 %10405, %v7303_v62   ;;  %v16041_v62 = vld [vmem:[#allocation133_spill] sm:$0xff] }
 0x1e8   :  { %16029 = vst [vmem:[#allocation82_spill] sm:$0xff] %v13245_v57  ;;  %10084 = vmatmul.mubr.msk.f32.gmra.mxu0 %vm298_vm2, %v12738_v23  ;;  %v13259_v32 = vadd.f32 %v9767_v30, %v16031_v9  ;;  %v9823_v39 = vpop.f32.mrf.mxu1  ;;  %v16034_v57 = vld [vmem:[#allocation168_spill] sm:$0xff]  ;;  %v16037_v23 = vld [vmem:[#allocation169_spill] sm:$0xff] }
 0x1e9   :  { %10140 = vmatmul.mubr.msk.f32.gmra.mxu1 %vm298_vm2, %v12741_v44  ;;  %10086 = vmatprep.mubr.msk.f32.mxu0 %vm298_vm2, %v16033_v36  ;;  %v13266_v33 = vadd.f32 %v9823_v39, %v16034_v57  ;;  %v2768_v38 = vpop.f32.mrf.mxu0  ;;  %v7304_v9 = vld [vmem:[%s15092_s5 + $0x38] sm:$0xff]  ;;  %v7305_v44 = vld [vmem:[%s15092_s5 + $0x40] sm:$0xff] }
 0x1ea   :  { %16032 = vst [vmem:[#allocation83_spill] sm:$0xff] %v13259_v32  ;;  %10142 = vmatprep.mubr.msk.f32.mxu1 %vm298_vm2, %v16036_v60  ;;  %v13271_v50 = vadd.f32 %v2768_v38, %v16037_v23  ;;  %v3025_v30 = vpop.f32.mrf.mxu1  ;;  %v16039_v36 = vld [vmem:[#allocation170_spill] sm:$0xff]  ;;  %7370 = vperm.xlu1 %10406, %v7304_v9  }
 0x1eb   :  { %16035 = vst [vmem:[#allocation87_spill] sm:$0xff] %v13266_v33  ;;  %v13280_v57 = vadd.f32 %v3025_v30, %v16039_v36  ;;  %v9770_v39 = vpop.f32.mrf.mxu0  ;;  %v16040_v33 = vld [vmem:[#allocation132_spill] sm:$0xff]  ;;  %v16042_v23 = vld [vmem:[#allocation134_spill] sm:$0xff]  ;;  %7375 = vperm.xlu0 %10405, %v7305_v44  }
 0x1ec   :  { %16038 = vst [vmem:[#allocation86_spill] sm:$0xff] %v13271_v50  ;;  %10087 = vmatmul.mubr.msk.f32.gmra.mxu0 %vm298_vm2, %v16040_v33  ;;  %v13285_v38 = vadd.f32 %v9770_v39, %v16041_v62  ;;  %v9826_v60 = vpop.f32.mrf.mxu1  ;;  %v16043_v50 = vld [vmem:[#allocation171_spill] sm:$0xff]  ;;  %v16044_v33 = vld [vmem:[#allocation172_spill] sm:$0xff] }
 0x1ed   :  { %10143 = vmatmul.mubr.msk.f32.gmra.mxu1 %vm298_vm2, %v12790_v27  ;;  %10089 = vmatprep.mubr.msk.f32.mxu0 %vm298_vm2, %v16042_v23  ;;  %v13292_v32 = vadd.f32 %v9826_v60, %v16043_v50  ;;  %v2778_v30 = vpop.f32.mrf.mxu0  ;;  %v7306_v39 = vld [vmem:[%s15092_s5 + $0x48] sm:$0xff]  ;;  %v7307_v27 = vld [vmem:[%s15092_s5 + $0x50] sm:$0xff] }
 0x1ee   :  { %10145 = vmatprep.mubr.msk.f32.mxu1 %vm298_vm2, %v12807_v51  ;;  %v13297_v9 = vadd.f32 %v2778_v30, %v16044_v33  ;;  %v3035_v36 = vpop.f32.mrf.mxu1  ;;  %v16045_v62 = vld [vmem:[#allocation135_spill] sm:$0xff]  ;;  %7380 = vperm.xlu1 %10406, %v7306_v39   ;;  %v16046_v51 = vld [vmem:[#allocation173_spill] sm:$0xff] }
 0x1ef   :  { %v13306_v50 = vadd.f32 %v3035_v36, %v16045_v62  ;;  %v9773_v60 = vpop.f32.mrf.mxu0  ;;  %7385 = vperm.xlu0 %10405, %v7307_v27   ;;  %v7308_v39 = vld [vmem:[%s15092_s5 + $0x58] sm:$0xff]  ;;  %v16048_v62 = vld [vmem:[#allocation174_spill] sm:$0xff] }
 0x1f0   :  { %10090 = vmatmul.mubr.msk.f32.gmra.mxu0 %vm298_vm2, %v12817_v31  ;;  %v13311_v44 = vadd.f32 %v9773_v60, %v16046_v51  ;;  %v9829_v23 = vpop.f32.mrf.mxu1 }
 0x1f1   :  { %10146 = vmatmul.mubr.msk.f32.gmra.mxu1 %vm298_vm2, %v12820_v52  ;;  %10092 = vmatprep.mubr.msk.f32.mxu0 %vm298_vm2, %v12839_v55  ;;  %v13318_v30 = vadd.f32 %v9829_v23, %v12834_v45  ;;  %v2788_v33 = vpop.f32.mrf.mxu0  ;;  %v7309_v52 = vld [vmem:[%s15092_s5 + $0x60] sm:$0xff] }
 0x1f2   :  { %10148 = vmatprep.mubr.msk.f32.mxu1 %vm298_vm2, %v12845_v63  ;;  %v13323_v31 = vadd.f32 %v2788_v33, %v12842_v6  ;;  %v3045_v36 = vpop.f32.mrf.mxu1  ;;  %7390 = vperm.xlu1 %10406, %v7308_v39   ;;  %v16047_v63 = vld [vmem:[#allocation136_spill] sm:$0xff]  ;;  %v103_v23 = vld [vmem:[%s15091_s0 + $0x140] sm:$0xf] }
 0x1f3   :  { %v13332_v45 = vadd.f32 %v3045_v36, %v12848_v35  ;;  %v9834_v55 = vpop.f32.mrf.mxu0  ;;  %7395 = vperm.xlu0 %10405, %v7309_v52  }
 0x1f4   :  { %10093 = vmatmul.mubr.msk.f32.gmra.mxu0 %vm298_vm2, %v12860_v41  ;;  %v13337_v6 = vadd.f32 %v9834_v55, %v16047_v63  ;;  %v9890_v27 = vpop.f32.mrf.mxu1  ;;  %v16051_v55 = vld [vmem:[#allocation175_spill] sm:$0xff] }
 0x1f5   :  { %10149 = vmatmul.mubr.msk.f32.gmra.mxu1 %vm298_vm2, %v12863_v43  ;;  %10095 = vmatprep.mubr.msk.f32.mxu0 %vm298_vm2, %v12872_v14  ;;  %v13344_v60 = vadd.f32 %v9890_v27, %v16048_v62  ;;  %v3344_v35 = vpop.f32.mrf.mxu0  ;;  %v7310_v43 = vld [vmem:[%s15092_s5 + $0x68] sm:$0xff]  ;;  %v7311_v14 = vld [vmem:[%s15092_s5 + $0x70] sm:$0xff]  ;;  %v13382_v27 = vunpack.c.l.bf16 %v103_v23 }
 0x1f6   :  { %10151 = vmatprep.mubr.msk.f32.mxu1 %vm298_vm2, %v12880_v56  ;;  %v13349_v41 = vadd.f32 %v3344_v35, %v12877_v4  ;;  %v3735_v51 = vpop.f32.mrf.mxu1  ;;  %7400 = vperm.xlu1 %10406, %v7310_v43   ;;  %v16049_v4 = vld [vmem:[#allocation137_spill] sm:$0xff] }
 0x1f7   :  { %v13361_v33 = vadd.f32 %v3735_v51, %v12884_v7  ;;  %v9837_v56 = vpop.f32.mrf.mxu0  ;;  %v10407_v7 = vld [vmem:[%s15091_s0 + $0x98] sm:$0xff]   ;;  %7405 = vperm.xlu0 %10405, %v7311_v14  }
 0x1f8   :  { %10096 = vmatmul.mubr.msk.f32.gmra.mxu0 %vm298_vm2, %v12896_v11  ;;  %v13366_v36 = vadd.f32 %v9837_v56, %v16049_v4  ;;  %v9893_v39 = vpop.f32.mrf.mxu1  ;;  %v13375_v52 = vunpack.c.h.bf16 %v10407_v7  ;;  %v7312_v51 = vld [vmem:[%s15092_s5 + $0x78] sm:$0xff] }
 0x1f9   :  { %10152 = vmatmul.mubr.msk.f32.gmra.mxu1 %vm298_vm2, %v12906_v58  ;;  %10098 = vmatprep.mubr.msk.f32.mxu0 %vm298_vm2, %v12909_v49  ;;  %v13378_v63 = vadd.f32 %v9893_v39, %v16051_v55  ;;  %v3354_v11 = vpop.f32.mrf.mxu0  ;;  %v63_v58 = vld [vmem:[%s15091_s0 + $0xa0] sm:$0x3]  ;;  %v104_v49 = vld [vmem:[%s15091_s0 + $0x144] sm:$0x3]  ;;  %v7314_v55 = vld [vmem:[%s15092_s5 + $0x88] sm:$0xff] }
 0x1fa   :  { %16050 = vst [vmem:[#allocation89_spill] sm:$0xff] %v13375_v52  ;;  %10154 = vmatprep.mubr.msk.f32.mxu1 %vm298_vm2, %v12916_v10  ;;  %v13391_v62 = vadd.f32 %v3354_v11, %v12913_v59  ;;  %v3745_v35 = vpop.f32.mrf.mxu1  ;;  %v7313_v10 = vld [vmem:[%s15092_s5 + $0x80] sm:$0xff]  ;;  %7410 = vperm.xlu1 %10406, %v7312_v51   ;;  %v4847_v56 = vrot.slane %v13375_v52, 4  ;;  %v13412_v4 = vunpack.c.l.bf16 %v63_v58  ;;  %v7315_v11 = vld [vmem:[%s15092_s5 + $0x90] sm:$0xff] }
 0x1fb   :  { %v13400_v23 = vadd.f32 %v3745_v35, %v12920_v26  ;;  %v9840_v43 = vpop.f32.mrf.mxu0  ;;  %v13414_v26 = vunpack.c.l.bf16 %v104_v49  ;;  %v16054_v39 = vld [vmem:[#allocation138_spill] sm:$0xff]  ;;  %7415 = vperm.xlu0 %10405, %v7313_v10   ;;  %v16055_v35 = vrot.slane %v12241_v24, 4 }
 0x1fc   :  { %10099 = vmatmul.mubr.msk.f32.gmra.mxu0 %vm298_vm2, %v12932_v0  ;;  %v13405_v59 = vadd.f32 %v9840_v43, %v12925_v3  ;;  %v9896_v14 = vpop.f32.mrf.mxu1  ;;  %16052 = vst [vmem:[#allocation88_spill] sm:$0xff] %v13412_v4  ;;  %v5105_v3 = vrot.slane %v13382_v27, 4  ;;  %v4849_v51 = vrot.slane %v13412_v4, 4 }
 0x1fd   :  { %10155 = vmatmul.mubr.msk.f32.gmra.mxu1 %vm298_vm2, %v12935_v12  ;;  %10101 = vmatprep.mubr.msk.f32.mxu0 %vm298_vm2, %v12944_v19  ;;  %16053 = vst [vmem:[#allocation92_spill] sm:$0xff] %v13414_v26  ;;  %v13417_v7 = vadd.f32 %v9896_v14, %v16054_v39  ;;  %v3364_v0 = vpop.f32.mrf.mxu0  ;;  %v5107_v10 = vrot.slane %v13414_v26, 4  ;;  %v16058_v39 = vld [vmem:[#allocation8_spill] sm:$0xff] }
 0x1fe   :  { %10157 = vmatprep.mubr.msk.f32.mxu1 %vm298_vm2, %v12952_v21  ;;  %v13423_v12 = vadd.f32 %v3364_v0, %v12949_v34  ;;  %v3755_v19 = vpop.f32.mrf.mxu1  ;;  %7420 = vperm.xlu1 %10406, %v7314_v55   ;;  %v5434_v0 = vrot.slane %v16058_v39, 5 }
 0x1ff   :  { %v13432_v58 = vadd.f32 %v3755_v19, %v12956_v37  ;;  %v9843_v49 = vpop.f32.mrf.mxu0  ;;  %v4848_v37 = vsel %vm371_vm0, %v16055_v35, %v4847_v56  ;;  %7425 = vperm.xlu0 %10405, %v7315_v11  }
 0x200   :  { %10102 = vmatmul.mubr.msk.f32.gmra.mxu0 %vm298_vm2, %v12968_v29  ;;  %v13437_v34 = vadd.f32 %v9843_v49, %v12961_v25  ;;  %v9899_v21 = vpop.f32.mrf.mxu1 }
 0x201   :  { %10158 = vmatmul.mubr.msk.f32.gmra.mxu1 %vm298_vm2, %v12977_v1  ;;  %10104 = vmatprep.mubr.msk.f32.mxu0 %vm298_vm2, %v12980_v47  ;;  %v13449_v29 = vadd.f32 %v9899_v21, %v12972_v5  ;;  %v3374_v25 = vpop.f32.mrf.mxu0  ;;  %v16056_v1 = vrot.slane %v12244_v28, 4  ;;  %v16057_v47 = vld [vmem:[#allocation7_spill] sm:$0xff]  ;;  %v16060_v5 = vld [vmem:[#allocation6_spill] sm:$0xff]  ;;  %v16061_v21 = vld [vmem:[#allocation9_spill] sm:$0xff] }
 0x202   :  { %10160 = vmatprep.mubr.msk.f32.mxu1 %vm298_vm2, %v12987_v61  ;;  %v5433_v14 = vrot.slane %v16057_v47, 5  ;;  %v13459_v19 = vadd.f32 %v3374_v25, %v12984_v18  ;;  %v3765_v55 = vpop.f32.mrf.mxu1  ;;  %v5826_v49 = vrot.slane %v16060_v5, 5  ;;  %v5827_v35 = vrot.slane %v16061_v21, 5  ;;  %v7316_v61 = vld [vmem:[%s15092_s5 + $0x98] sm:$0xff]  ;;  %v16062_v5 = vld [vmem:[#allocation10_spill] sm:$0xff] }
 0x203   :  { %v5106_v43 = vsel %vm371_vm0, %v16056_v1, %v5105_v3  ;;  %v7317_v1 = vld [vmem:[%s15092_s5 + $0xa0] sm:$0xff]  ;;  %v13470_v39 = vadd.f32 %v3765_v55, %v12990_v22  ;;  %v9846_v11 = vpop.f32.mrf.mxu0  ;;  %7430 = vperm.xlu1 %10406, %v7316_v61   ;;  %v4850_v21 = vsel %vm371_vm0, %v4847_v56, %v4849_v51  ;;  %v16063_v61 = vld [vmem:[#allocation11_spill] sm:$0xff]  ;;  %v16065_v51 = vld [vmem:[#allocation12_spill] sm:$0xff] }
 0x204   :  { %16059 = vst [vmem:[#allocation90_spill] sm:$0xff] %v13459_v19  ;;  %10105 = vmatmul.mubr.msk.f32.gmra.mxu0 %vm298_vm2, %v13004_v54  ;;  %v13475_v18 = vadd.f32 %v9846_v11, %v12995_v13  ;;  %v9902_v25 = vpop.f32.mrf.mxu1  ;;  %v5436_v19 = vrot.slane %v16062_v5, 5  ;;  %v5108_v54 = vsel %vm371_vm0, %v5105_v3, %v5107_v10  ;;  %v5435_v13 = vsel %vm5432_vm5, %v5433_v14, %v5434_v0  ;;  %v7319_v3 = vld [vmem:[%s15092_s5 + $0xb0] sm:$0xff] }
 0x205   :  { %10161 = vmatmul.mubr.msk.f32.gmra.mxu1 %vm298_vm2, %v13014_v16  ;;  %10107 = vmatprep.mubr.msk.f32.mxu0 %vm298_vm2, %v4848_v37  ;;  %v13483_v22 = vadd.f32 %v9902_v25, %v13007_v2  ;;  %v3384_v55 = vpop.f32.mrf.mxu0  ;;  %v5829_v11 = vrot.slane %v16063_v61, 5  ;;  %v5828_v56 = vsel %vm5432_vm5, %v5826_v49, %v5827_v35  ;;  %v5438_v5 = vrot.slane %v16065_v51, 5  ;;  %v7318_v2 = vld [vmem:[%s15092_s5 + $0xa8] sm:$0xff] }
 0x206   :  { %10163 = vmatprep.mubr.msk.f32.mxu1 %vm298_vm2, %v5106_v43  ;;  %7435 = vperm.xlu0 %10405, %v7317_v1   ;;  %v13490_v16 = vadd.f32 %v3384_v55, %v13017_v53  ;;  %v3775_v37 = vpop.f32.mrf.mxu1  ;;  %v16067_v53 = vld [vmem:[#allocation13_spill] sm:$0xff]  ;;  %v5437_v25 = vsel %vm5432_vm5, %v5434_v0, %v5436_v19  ;;  %v16069_v55 = vld [vmem:[#allocation14_spill] sm:$0xff] }
 0x207   :  { %v13501_v10 = vadd.f32 %v3775_v37, %v13020_v15  ;;  %v9849_v43 = vpop.f32.mrf.mxu0  ;;  %v5831_v14 = vrot.slane %v16067_v53, 5  ;;  %7440 = vperm.xlu1 %10406, %v7318_v2   ;;  %v16071_v2 = vld [vmem:[#allocation15_spill] sm:$0xff]  ;;  %v5439_v0 = vsel %vm5432_vm5, %v5436_v19, %v5438_v5 }
 0x208   :  { %16064 = vst [vmem:[#allocation94_spill] sm:$0xff] %v13490_v16  ;;  %10108 = vmatmul.mubr.msk.f32.gmra.mxu0 %vm298_vm2, %v4850_v21  ;;  %v13506_v49 = vadd.f32 %v9849_v43, %v13025_v42  ;;  %v9905_v1 = vpop.f32.mrf.mxu1  ;;  %v5440_v16 = vrot.slane %v16069_v55, 5  ;;  %v5830_v21 = vsel %vm5432_vm5, %v5827_v35, %v5829_v11  ;;  %v5833_v42 = vrot.slane %v16071_v2, 5  ;;  %v16072_v43 = vld [vmem:[#allocation16_spill] sm:$0xff]  ;;  %v16074_v55 = vld [vmem:[#allocation17_spill] sm:$0xff]  ;;  %v16076_v19 = vld [vmem:[#allocation139_spill] sm:$0xff] }
 0x209   :  { %16066 = vst [vmem:[#allocation93_spill] sm:$0xff] %v13501_v10  ;;  %10164 = vmatmul.mubr.msk.f32.gmra.mxu1 %vm298_vm2, %v5108_v54  ;;  %10168 = vmatprep.mubr.msk.f32.mxu0 %vm298_vm2, %v5435_v13  ;;  %v13513_v15 = vadd.f32 %v9905_v1, %v13032_v46  ;;  %v3394_v37 = vpop.f32.mrf.mxu0  ;;  %v5835_v10 = vrot.slane %v16074_v55, 5  ;;  %v7320_v46 = vld [vmem:[%s15092_s5 + $0xb8] sm:$0xff]  ;;  %v16078_v55 = vld [vmem:[#allocation176_spill] sm:$0xff] }
 0x20a   :  { %16068 = vst [vmem:[#allocation95_spill] sm:$0xff] %v13506_v49  ;;  %10224 = vmatprep.mubr.msk.f32.mxu1 %vm298_vm2, %v5828_v56  ;;  %v5442_v49 = vrot.slane %v16072_v43, 5  ;;  %7445 = vperm.xlu0 %10405, %v7319_v3   ;;  %v13520_v54 = vadd.f32 %v3394_v37, %v13037_v48  ;;  %v3785_v13 = vpop.f32.mrf.mxu1  ;;  %v5832_v3 = vsel %vm5432_vm5, %v5829_v11, %v5831_v14  ;;  %v7321_v48 = vld [vmem:[%s15092_s5 + $0xc0] sm:$0xff] }
 0x20b   :  { %16070 = vst [vmem:[#allocation96_spill] sm:$0xff] %v13513_v15  ;;  %v13528_v56 = vadd.f32 %v3785_v13, %v13040_v17  ;;  %v9852_v35 = vpop.f32.mrf.mxu0  ;;  %7450 = vperm.xlu1 %10406, %v7320_v46   ;;  %v5441_v17 = vsel %vm5432_vm5, %v5438_v5, %v5440_v16  ;;  %v16079_v13 = vld [vmem:[#allocation18_spill] sm:$0xff]  ;;  %v16081_v46 = vld [vmem:[#allocation177_spill] sm:$0xff]  ;;  %v16084_v5 = vld [vmem:[#allocation140_spill] sm:$0xff] }
 0x20c   :  { %16073 = vst [vmem:[#allocation97_spill] sm:$0xff] %v13520_v54  ;;  %10169 = vmatmul.mubr.msk.f32.vlgmr.msra.gmra.mxu0 %vm298_vm2, %v5437_v25  ;;  %v13536_v1 = vadd.f32 %v9852_v35, %v16076_v19  ;;  %v9908_v37 = vpop.f32.mrf.mxu1  ;;  %v5444_v25 = vrot.slane %v16079_v13, 5  ;;  %v5443_v19 = vsel %vm5432_vm5, %v5440_v16, %v5442_v49 }
 0x20d   :  { %16075 = vst [vmem:[#allocation98_spill] sm:$0xff] %v13528_v56  ;;  %10225 = vmatmul.mubr.msk.f32.vlgmr.msra.gmra.mxu1 %vm298_vm2, %v5830_v21  ;;  %10279 = vmatpush3.msk.msra.mxu0 %vm371_vm0, %v16078_v55  ;;  %v16080_v56 = vld [vmem:[#allocation19_spill] sm:$0xff]  ;;  %v13545_v54 = vadd.f32 %v9908_v37, %v16081_v46  ;;  %v3404_v35 = vpop.f32.mrf.mxu0  ;;  %v5834_v21 = vsel %vm5432_vm5, %v5831_v14, %v5833_v42  ;;  %v16086_v46 = vld [vmem:[#allocation21_spill] sm:$0xff]  ;;  %v16087_v14 = vld [vmem:[#allocation178_spill] sm:$0xff] }
 0x20e   :  { %16077 = vst [vmem:[#allocation100_spill] sm:$0xff] %v13536_v1  ;;  %v5837_v11 = vrot.slane %v16080_v56, 5  ;;  %10335 = vmatpush3.msk.msra.mxu1 %vm371_vm0, %v16078_v55  ;;  %10171 = vmatprep.mubr.msk.f32.mxu0 %vm298_vm2, %v5439_v0  ;;  %v16083_v1 = vld [vmem:[#allocation20_spill] sm:$0xff]  ;;  %v13554_v15 = vadd.f32 %v3404_v35, %v16084_v5  ;;  %v3795_v13 = vpop.f32.mrf.mxu1  ;;  %v5836_v37 = vsel %vm5432_vm5, %v5833_v42, %v5835_v10  ;;  %v5839_v56 = vrot.slane %v16086_v46, 5  ;;  %v7322_v55 = vld [vmem:[%s15092_s5 + $0xc8] sm:$0xff] }
 0x20f   :  { %16082 = vst [vmem:[#allocation99_spill] sm:$0xff] %v13545_v54  ;;  %v5446_v43 = vrot.slane %v16083_v1, 5  ;;  %10227 = vmatprep.mubr.msk.f32.mxu1 %vm298_vm2, %v5832_v3  ;;  %7455 = vperm.xlu0 %10405, %v7321_v48   ;;  %v13563_v0 = vadd.f32 %v3795_v13, %v16087_v14  ;;  %v9855_v16 = vpop.f32.mrf.mxu0  ;;  %v7323_v3 = vld [vmem:[%s15092_s5 + $0xd0] sm:$0xff]  ;;  %v16089_v35 = vld [vmem:[#allocation71_spill] sm:$0xff]  ;;  %v5445_v48 = vsel %vm5432_vm5, %v5442_v49, %v5444_v25  ;;  %v16091_v14 = vld [vmem:[#allocation22_spill] sm:$0xff] }
 0x210   :  { %16085 = vst [vmem:[#allocation101_spill] sm:$0xff] %v13554_v15  ;;  %10172 = vmatmul.mubr.msk.f32.gmra.mxu0 %vm298_vm2, %v5441_v17  ;;  %7460 = vperm.xlu1 %10406, %v7322_v55   ;;  %v13570_v42 = vadd.f32 %v9855_v16, %v16089_v35  ;;  %v9911_v5 = vpop.f32.mrf.mxu1  ;;  %v5838_v13 = vsel %vm5432_vm5, %v5835_v10, %v5837_v11  ;;  %v16092_v17 = vld [vmem:[#allocation179_spill] sm:$0xff]  ;;  %v16095_v15 = vld [vmem:[#allocation24_spill] sm:$0xff]  ;;  %v16098_v54 = vld [vmem:[#allocation25_spill] sm:$0xff] }
 0x211   :  { %16088 = vst [vmem:[#allocation102_spill] sm:$0xff] %v13563_v0  ;;  %10228 = vmatmul.mubr.msk.f32.gmra.mxu1 %vm298_vm2, %v5834_v21  ;;  %10174 = vmatprep.mubr.msk.f32.mxu0 %vm298_vm2, %v5443_v19  ;;  %v5448_v0 = vrot.slane %v16091_v14, 5  ;;  %v13578_v55 = vadd.f32 %v9911_v5, %v16092_v17  ;;  %v3414_v46 = vpop.f32.mrf.mxu0  ;;  %v5447_v16 = vsel %vm5432_vm5, %v5444_v25, %v5446_v43  ;;  %v16094_v35 = vld [vmem:[#allocation23_spill] sm:$0xff]  ;;  %v5450_v21 = vrot.slane %v16095_v15, 5  ;;  %v16096_v1 = vld [vmem:[#allocation72_spill] sm:$0xff]  ;;  %v7324_v5 = vld [vmem:[%s15092_s5 + $0xd8] sm:$0xff] }
 0x212   :  { %16090 = vst [vmem:[#allocation104_spill] sm:$0xff] %v13570_v42  ;;  %10230 = vmatprep.mubr.msk.f32.mxu1 %vm298_vm2, %v5836_v37  ;;  %v5841_v42 = vrot.slane %v16094_v35, 5  ;;  %v13585_v19 = vadd.f32 %v3414_v46, %v16096_v1  ;;  %v3805_v49 = vpop.f32.mrf.mxu1  ;;  %v5840_v10 = vsel %vm5432_vm5, %v5837_v11, %v5839_v56  ;;  %v5843_v14 = vrot.slane %v16098_v54, 5  ;;  %v16099_v37 = vld [vmem:[#allocation180_spill] sm:$0xff]  ;;  %v7325_v1 = vld [vmem:[%s15092_s5 + $0xe0] sm:$0xff]  ;;  %v16101_v46 = vld [vmem:[#allocation141_spill] sm:$0xff] }
 0x213   :  { %16093 = vst [vmem:[#allocation103_spill] sm:$0xff] %v13578_v55  ;;  %7465 = vperm.xlu0 %10405, %v7323_v3   ;;  %v13593_v17 = vadd.f32 %v3805_v49, %v16099_v37  ;;  %v9858_v25 = vpop.f32.mrf.mxu0  ;;  %v5449_v3 = vsel %vm5432_vm5, %v5446_v43, %v5448_v0  ;;  %v16103_v49 = vld [vmem:[#allocation26_spill] sm:$0xff]  ;;  %v16108_v55 = vld [vmem:[#allocation73_spill] sm:$0xff] }
 0x214   :  { %16097 = vst [vmem:[#allocation105_spill] sm:$0xff] %v13585_v19  ;;  %10175 = vmatmul.mubr.msk.f32.gmra.mxu0 %vm298_vm2, %v5445_v48  ;;  %7470 = vperm.xlu1 %10406, %v7324_v5   ;;  %v13600_v11 = vadd.f32 %v9858_v25, %v16101_v46  ;;  %v9914_v54 = vpop.f32.mrf.mxu1  ;;  %v5452_v37 = vrot.slane %v16103_v49, 5  ;;  %v16105_v48 = vld [vmem:[#allocation181_spill] sm:$0xff]  ;;  %v5842_v25 = vsel %vm5432_vm5, %v5839_v56, %v5841_v42 }
 0x215   :  { %16100 = vst [vmem:[#allocation3_spill] sm:$0xff] %v13593_v17  ;;  %10231 = vmatmul.mubr.msk.f32.gmra.mxu1 %vm298_vm2, %v5838_v13  ;;  %10177 = vmatprep.mubr.msk.f32.mxu0 %vm298_vm2, %v5447_v16  ;;  %v16104_v17 = vld [vmem:[#allocation27_spill] sm:$0xff]  ;;  %v13608_v5 = vadd.f32 %v9914_v54, %v16105_v48  ;;  %v3424_v15 = vpop.f32.mrf.mxu0  ;;  %v5451_v46 = vsel %vm5432_vm5, %v5448_v0, %v5450_v21  ;;  %v16110_v35 = vld [vmem:[#allocation29_spill] sm:$0xff]  ;;  %v16113_v0 = vld [vmem:[#allocation74_spill] sm:$0xff] }
 0x216   :  { %16102 = vst [vmem:[#allocation4_spill] sm:$0xff] %v13600_v11  ;;  %v5845_v19 = vrot.slane %v16104_v17, 5  ;;  %10233 = vmatprep.mubr.msk.f32.mxu1 %vm298_vm2, %v5840_v10  ;;  %v16107_v11 = vld [vmem:[#allocation28_spill] sm:$0xff]  ;;  %v13615_v16 = vadd.f32 %v3424_v15, %v16108_v55  ;;  %v3815_v43 = vpop.f32.mrf.mxu1  ;;  %v5844_v49 = vsel %vm5432_vm5, %v5841_v42, %v5843_v14  ;;  %v5847_v17 = vrot.slane %v16110_v35, 5  ;;  %v7326_v54 = vld [vmem:[%s15092_s5 + $0xe8] sm:$0xff]  ;;  %v16111_v10 = vld [vmem:[#allocation182_spill] sm:$0xff] }
 0x217   :  { %16106 = vst [vmem:[#allocation106_spill] sm:$0xff] %v13608_v5  ;;  %v5454_v13 = vrot.slane %v16107_v11, 5  ;;  %7475 = vperm.xlu0 %10405, %v7325_v1   ;;  %v13623_v48 = vadd.f32 %v3815_v43, %v16111_v10  ;;  %v9861_v56 = vpop.f32.mrf.mxu0  ;;  %v7327_v15 = vld [vmem:[%s15092_s5 + $0xf0] sm:$0xff]  ;;  %v5453_v1 = vsel %vm5432_vm5, %v5450_v21, %v5452_v37  ;;  %v16115_v10 = vld [vmem:[#allocation30_spill] sm:$0xff]  ;;  %v16120_v11 = vld [vmem:[#allocation75_spill] sm:$0xff] }
 0x218   :  { %16109 = vst [vmem:[#allocation107_spill] sm:$0xff] %v13615_v16  ;;  %10178 = vmatmul.mubr.msk.f32.gmra.mxu0 %vm298_vm2, %v5449_v3  ;;  %7480 = vperm.xlu1 %10406, %v7326_v54   ;;  %v13630_v42 = vadd.f32 %v9861_v56, %v16113_v0  ;;  %v9917_v55 = vpop.f32.mrf.mxu1  ;;  %v5846_v43 = vsel %vm5432_vm5, %v5843_v14, %v5845_v19  ;;  %v16116_v3 = vld [vmem:[#allocation183_spill] sm:$0xff]  ;;  %v16119_v16 = vld [vmem:[#allocation32_spill] sm:$0xff]  ;;  %v16122_v5 = vld [vmem:[#allocation33_spill] sm:$0xff] }
 0x219   :  { %16112 = vst [vmem:[#allocation2_spill] sm:$0xff] %v13623_v48  ;;  %10234 = vmatmul.mubr.msk.f32.gmra.mxu1 %vm298_vm2, %v5842_v25  ;;  %10180 = vmatprep.mubr.msk.f32.mxu0 %vm298_vm2, %v5451_v46  ;;  %v5456_v48 = vrot.slane %v16115_v10, 5  ;;  %v13638_v54 = vadd.f32 %v9917_v55, %v16116_v3  ;;  %v3434_v35 = vpop.f32.mrf.mxu0  ;;  %v5455_v56 = vsel %vm5432_vm5, %v5452_v37, %v5454_v13  ;;  %v16118_v0 = vld [vmem:[#allocation31_spill] sm:$0xff]  ;;  %v5458_v25 = vrot.slane %v16119_v16, 5  ;;  %v7328_v55 = vld [vmem:[%s15092_s5 + $0xf8] sm:$0xff] }
 0x21a   :  { %16114 = vst [vmem:[#allocation5_spill] sm:$0xff] %v13630_v42  ;;  %10236 = vmatprep.mubr.msk.f32.mxu1 %vm298_vm2, %v5844_v49  ;;  %v5849_v42 = vrot.slane %v16118_v0, 5  ;;  %v13645_v46 = vadd.f32 %v3434_v35, %v16120_v11  ;;  %v3825_v21 = vpop.f32.mrf.mxu1  ;;  %v5848_v14 = vsel %vm5432_vm5, %v5845_v19, %v5847_v17  ;;  %v5851_v10 = vrot.slane %v16122_v5, 5  ;;  %v16123_v49 = vld [vmem:[#allocation184_spill] sm:$0xff]  ;;  %v7329_v35 = vld [vmem:[%s15092_s5 + $0x100] sm:$0xff]  ;;  %v16134_v0 = vld [vmem:[#allocation37_spill] sm:$0xff] }
 0x21b   :  { %16117 = vst [vmem:[#allocation108_spill] sm:$0xff] %v13638_v54  ;;  %7485 = vperm.xlu0 %10405, %v7327_v15   ;;  %v13653_v3 = vadd.f32 %v3825_v21, %v16123_v49  ;;  %v9864_v37 = vpop.f32.mrf.mxu0  ;;  %v16125_v11 = vld [vmem:[#allocation142_spill] sm:$0xff]  ;;  %v5457_v15 = vsel %vm5432_vm5, %v5454_v13, %v5456_v48  ;;  %v16132_v54 = vld [vmem:[#allocation76_spill] sm:$0xff] }
 0x21c   :  { %16121 = vst [vmem:[#allocation146_spill] sm:$0xff] %v13645_v46  ;;  %10181 = vmatmul.mubr.msk.f32.gmra.mxu0 %vm298_vm2, %v5453_v1  ;;  %7490 = vperm.xlu1 %10406, %v7328_v55   ;;  %v13660_v19 = vadd.f32 %v9864_v37, %v16125_v11  ;;  %v9920_v5 = vpop.f32.mrf.mxu1  ;;  %v16127_v21 = vld [vmem:[#allocation34_spill] sm:$0xff]  ;;  %v16129_v1 = vld [vmem:[#allocation185_spill] sm:$0xff]  ;;  %v5850_v37 = vsel %vm5432_vm5, %v5847_v17, %v5849_v42 }
 0x21d   :  { %16124 = vst [vmem:[#allocation109_spill] sm:$0xff] %v13653_v3  ;;  %10237 = vmatmul.mubr.msk.f32.gmra.mxu1 %vm298_vm2, %v5846_v43  ;;  %10183 = vmatprep.mubr.msk.f32.mxu0 %vm298_vm2, %v5455_v56  ;;  %v5460_v49 = vrot.slane %v16127_v21, 5  ;;  %v16128_v3 = vld [vmem:[#allocation35_spill] sm:$0xff]  ;;  %v13668_v55 = vadd.f32 %v9920_v5, %v16129_v1  ;;  %v3444_v16 = vpop.f32.mrf.mxu0  ;;  %v5459_v11 = vsel %vm5432_vm5, %v5456_v48, %v5458_v25  ;;  %v16137_v48 = vld [vmem:[#allocation77_spill] sm:$0xff] }
 0x21e   :  { %16126 = vst [vmem:[#allocation145_spill] sm:$0xff] %v13660_v19  ;;  %v5853_v46 = vrot.slane %v16128_v3, 5  ;;  %10239 = vmatprep.mubr.msk.f32.mxu1 %vm298_vm2, %v5848_v14  ;;  %v16131_v19 = vld [vmem:[#allocation36_spill] sm:$0xff]  ;;  %v13675_v56 = vadd.f32 %v3444_v16, %v16132_v54  ;;  %v3835_v13 = vpop.f32.mrf.mxu1  ;;  %v5852_v21 = vsel %vm5432_vm5, %v5849_v42, %v5851_v10  ;;  %v5855_v3 = vrot.slane %v16134_v0, 5  ;;  %v7330_v5 = vld [vmem:[%s15092_s5 + $0x108] sm:$0xff]  ;;  %v16135_v14 = vld [vmem:[#allocation186_spill] sm:$0xff] }
 0x21f   :  { %16130 = vst [vmem:[#allocation147_spill] sm:$0xff] %v13668_v55  ;;  %v5462_v43 = vrot.slane %v16131_v19, 5  ;;  %7495 = vperm.xlu0 %10405, %v7329_v35   ;;  %v13683_v1 = vadd.f32 %v3835_v13, %v16135_v14  ;;  %v9867_v17 = vpop.f32.mrf.mxu0  ;;  %v7331_v16 = vld [vmem:[%s15092_s5 + $0x110] sm:$0xff]  ;;  %v5461_v35 = vsel %vm5432_vm5, %v5458_v25, %v5460_v49  ;;  %v16139_v14 = vld [vmem:[#allocation38_spill] sm:$0xff]  ;;  %v16146_v55 = vld [vmem:[#allocation41_spill] sm:$0xff] }
 0x220   :  { %16133 = vst [vmem:[#allocation110_spill] sm:$0xff] %v13675_v56  ;;  %10184 = vmatmul.mubr.msk.f32.gmra.mxu0 %vm298_vm2, %v5457_v15  ;;  %7500 = vperm.xlu1 %10406, %v7330_v5   ;;  %v13690_v42 = vadd.f32 %v9867_v17, %v16137_v48  ;;  %v9923_v54 = vpop.f32.mrf.mxu1  ;;  %v5854_v13 = vsel %vm5432_vm5, %v5851_v10, %v5853_v46  ;;  %v16140_v15 = vld [vmem:[#allocation187_spill] sm:$0xff]  ;;  %v16143_v56 = vld [vmem:[#allocation40_spill] sm:$0xff]  ;;  %v16144_v19 = vld [vmem:[#allocation78_spill] sm:$0xff] }
 0x221   :  { %16136 = vst [vmem:[#allocation148_spill] sm:$0xff] %v13683_v1  ;;  %10240 = vmatmul.mubr.msk.f32.gmra.mxu1 %vm298_vm2, %v5850_v37  ;;  %10186 = vmatprep.mubr.msk.f32.mxu0 %vm298_vm2, %v5459_v11  ;;  %v5464_v1 = vrot.slane %v16139_v14, 5  ;;  %v13698_v5 = vadd.f32 %v9923_v54, %v16140_v15  ;;  %v3454_v0 = vpop.f32.mrf.mxu0  ;;  %v5463_v17 = vsel %vm5432_vm5, %v5460_v49, %v5462_v43  ;;  %v16142_v48 = vld [vmem:[#allocation39_spill] sm:$0xff]  ;;  %v5466_v37 = vrot.slane %v16143_v56, 5  ;;  %v7332_v54 = vld [vmem:[%s15092_s5 + $0x118] sm:$0x3f] }
 0x222   :  { %16138 = vst [vmem:[#allocation149_spill] sm:$0xff] %v13690_v42  ;;  %10242 = vmatprep.mubr.msk.f32.mxu1 %vm298_vm2, %v5852_v21  ;;  %v5857_v42 = vrot.slane %v16142_v48, 5  ;;  %v13705_v11 = vadd.f32 %v3454_v0, %v16144_v19  ;;  %v3845_v25 = vpop.f32.mrf.mxu1  ;;  %v5856_v10 = vsel %vm5432_vm5, %v5853_v46, %v5855_v3  ;;  %v5859_v14 = vrot.slane %v16146_v55, 5  ;;  %v16147_v21 = vld [vmem:[#allocation188_spill] sm:$0xff]  ;;  %v16149_v56 = vld [vmem:[#allocation143_spill] sm:$0xff]  ;;  %v16158_v48 = vld [vmem:[#allocation190_spill] sm:$0xff] }
 0x223   :  { %16141 = vst [vmem:[#allocation111_spill] sm:$0xff] %v13698_v5  ;;  %7505 = vperm.xlu0 %10405, %v7331_v16   ;;  %v13713_v15 = vadd.f32 %v3845_v25, %v16147_v21  ;;  %v9870_v49 = vpop.f32.mrf.mxu0  ;;  %v5465_v46 = vsel %vm5432_vm5, %v5462_v43, %v5464_v1  ;;  %v16151_v16 = vld [vmem:[#allocation42_spill] sm:$0xff]  ;;  %v16153_v25 = vld [vmem:[#allocation189_spill] sm:$0xff] }
 0x224   :  { %16145 = vst [vmem:[#allocation150_spill] sm:$0xff] %v13705_v11  ;;  %10187 = vmatmul.mubr.msk.f32.gmra.mxu0 %vm298_vm2, %v5461_v35  ;;  %7510 = vperm.xlu1 %10406, %v7332_v54   ;;  %v13717_v0 = vadd.f32 %v9870_v49, %v16149_v56  ;;  %v9926_v19 = vpop.f32.mrf.mxu1  ;;  %v5468_v55 = vrot.slane %v16151_v16, 5  ;;  %v16152_v11 = vld [vmem:[#allocation43_spill] sm:$0xff]  ;;  %v5858_v56 = vsel %vm5432_vm5, %v5855_v3, %v5857_v42  ;;  %v16154_v54 = vld [vmem:[#allocation44_spill] sm:$0xff] }
 0x225   :  { %16148 = vst [vmem:[#allocation112_spill] sm:$0xff] %v13713_v15  ;;  %10243 = vmatmul.mubr.msk.f32.gmra.mxu1 %vm298_vm2, %v5854_v13  ;;  %10189 = vmatprep.mubr.msk.f32.mxu0 %vm298_vm2, %v5463_v17  ;;  %v5861_v5 = vrot.slane %v16152_v11, 5  ;;  %v13725_v21 = vadd.f32 %v9926_v19, %v16153_v25  ;;  %v3464_v15 = vpop.f32.mrf.mxu0  ;;  %v5467_v35 = vsel %vm5432_vm5, %v5464_v1, %v5466_v37  ;;  %v5470_v13 = vrot.slane %v16154_v54, 5  ;;  %v16155_v49 = vld [vmem:[#allocation144_spill] sm:$0xff]  ;;  %v16168_v54 = vld [vmem:[#allocation49_spill] sm:$0xff] }
 0x226   :  { %16150 = vst [vmem:[#allocation113_spill] sm:$0xff] %v13717_v0  ;;  %10245 = vmatprep.mubr.msk.f32.mxu1 %vm298_vm2, %v5856_v10  ;;  %v13732_v17 = vadd.f32 %v3464_v15, %v16155_v49  ;;  %v3855_v43 = vpop.f32.mrf.mxu1  ;;  %v5860_v16 = vsel %vm5432_vm5, %v5857_v42, %v5859_v14  ;;  %v16157_v0 = vld [vmem:[#allocation45_spill] sm:$0xff]  ;;  %v16160_v10 = vld [vmem:[#allocation79_spill] sm:$0xff]  ;;  %v5469_v15 = vsel %vm5432_vm5, %v5466_v37, %v5468_v55  ;;  %v16162_v49 = vld [vmem:[#allocation46_spill] sm:$0xff] }
 0x227   :  { %v5863_v11 = vrot.slane %v16157_v0, 5  ;;  %v13737_v19 = vadd.f32 %v3855_v43, %v16158_v48  ;;  %v9873_v25 = vpop.f32.mrf.mxu0  ;;  %v5862_v42 = vsel %vm5432_vm5, %v5859_v14, %v5861_v5  ;;  %v5472_v0 = vrot.slane %v16162_v49, 5 }
 0x228   :  { %16156 = vst [vmem:[#allocation151_spill] sm:$0xff] %v13732_v17  ;;  %10190 = vmatmul.mubr.msk.f32.gmra.mxu0 %vm298_vm2, %v5465_v46  ;;  %v13741_v3 = vadd.f32 %v9873_v25, %v16160_v10  ;;  %v9929_v1 = vpop.f32.mrf.mxu1  ;;  %v16163_v17 = vld [vmem:[#allocation191_spill] sm:$0xff]  ;;  %v5471_v46 = vsel %vm5432_vm5, %v5468_v55, %v5470_v13  ;;  %v5867_v49 = vrot.slane %v16168_v54, 5 }
 0x229   :  { %16159 = vst [vmem:[#allocation152_spill] sm:$0xff] %v13737_v19  ;;  %10246 = vmatmul.mubr.msk.f32.gmra.mxu1 %vm298_vm2, %v5858_v56  ;;  %10192 = vmatprep.mubr.msk.f32.mxu0 %vm298_vm2, %v5467_v35  ;;  %v13749_v48 = vadd.f32 %v9929_v1, %v16163_v17  ;;  %v3474_v43 = vpop.f32.mrf.mxu0  ;;  %v16164_v25 = vld [vmem:[#allocation47_spill] sm:$0xff]  ;;  %v16166_v19 = vld [vmem:[#allocation80_spill] sm:$0xff]  ;;  %v5864_v14 = vsel %vm5432_vm5, %v5861_v5, %v5863_v11 }
 0x22a   :  { %16161 = vst [vmem:[#allocation114_spill] sm:$0xff] %v13741_v3  ;;  %10248 = vmatprep.mubr.msk.f32.mxu1 %vm298_vm2, %v5860_v16  ;;  %v5865_v10 = vrot.slane %v16164_v25, 5  ;;  %v16165_v3 = vld [vmem:[#allocation48_spill] sm:$0xff]  ;;  %v13756_v35 = vadd.f32 %v3474_v43, %v16166_v19  ;;  %v3865_v37 = vpop.f32.mrf.mxu1  ;;  %v5473_v19 = vsel %vm5432_vm5, %v5470_v13, %v5472_v0  ;;  %v16171_v43 = vld [vmem:[#allocation50_spill] sm:$0xff] }
 0x22b   :  { %v5474_v56 = vrot.slane %v16165_v3, 5  ;;  %v13761_v17 = vadd.f32 %v3865_v37, %v13228_v20  ;;  %v9876_v1 = vpop.f32.mrf.mxu0  ;;  %v5476_v5 = vrot.slane %v16171_v43, 5  ;;  %v16173_v3 = vld [vmem:[#allocation81_spill] sm:$0xff] }
 0x22c   :  { %16167 = vst [vmem:[#allocation115_spill] sm:$0xff] %v13756_v35  ;;  %10193 = vmatmul.mubr.msk.f32.gmra.mxu0 %vm298_vm2, %v5469_v15  ;;  %v13765_v55 = vadd.f32 %v9876_v1, %v13233_v8  ;;  %v9932_v16 = vpop.f32.mrf.mxu1  ;;  %v16172_v35 = vld [vmem:[#allocation51_spill] sm:$0xff]  ;;  %v5866_v8 = vsel %vm5432_vm5, %v5863_v11, %v5865_v10  ;;  %v16174_v1 = vld [vmem:[#allocation52_spill] sm:$0xff]  ;;  %v5868_v43 = vsel %vm5432_vm5, %v5865_v10, %v5867_v49 }
 0x22d   :  { %16169 = vst [vmem:[#allocation153_spill] sm:$0xff] %v13761_v17  ;;  %10249 = vmatmul.mubr.msk.f32.gmra.mxu1 %vm298_vm2, %v5862_v42  ;;  %10195 = vmatprep.mubr.msk.f32.mxu0 %vm298_vm2, %v5471_v46  ;;  %v5869_v54 = vrot.slane %v16172_v35, 5  ;;  %v13773_v20 = vadd.f32 %v9932_v16, %v16173_v3  ;;  %v3484_v37 = vpop.f32.mrf.mxu0  ;;  %v5475_v15 = vsel %vm5432_vm5, %v5472_v0, %v5474_v56  ;;  %v5478_v42 = vrot.slane %v16174_v1, 5  ;;  %v16177_v17 = vld [vmem:[#allocation53_spill] sm:$0xff] }
 0x22e   :  { %16170 = vst [vmem:[#allocation116_spill] sm:$0xff] %v13765_v55  ;;  %10251 = vmatprep.mubr.msk.f32.mxu1 %vm298_vm2, %v5864_v14  ;;  %v16175_v55 = vld [vmem:[#allocation82_spill] sm:$0xff]  ;;  %v3875_v13 = vpop.f32.mrf.mxu1  ;;  %v5871_v35 = vrot.slane %v16177_v17, 5  ;;  %v16179_v14 = vld [vmem:[#allocation83_spill] sm:$0xff]  ;;  %v16187_v1 = vld [vmem:[#allocation57_spill] sm:$0xff] }
 0x22f   :  { %v13780_v46 = vadd.f32 %v3484_v37, %v16175_v55  ;;  %v13785_v3 = vadd.f32 %v3875_v13, %v13254_v40  ;;  %v9879_v16 = vpop.f32.mrf.mxu0  ;;  %v5477_v55 = vsel %vm5432_vm5, %v5474_v56, %v5476_v5  ;;  %v5870_v10 = vsel %vm5432_vm5, %v5867_v49, %v5869_v54  ;;  %v16181_v37 = vld [vmem:[#allocation54_spill] sm:$0xff] }
 0x230   :  { %10196 = vmatmul.mubr.msk.f32.gmra.mxu0 %vm298_vm2, %v5473_v19  ;;  %v13789_v11 = vadd.f32 %v9879_v16, %v16179_v14  ;;  %v9935_v0 = vpop.f32.mrf.mxu1  ;;  %v5480_v17 = vrot.slane %v16181_v37, 5  ;;  %v5479_v19 = vsel %vm5432_vm5, %v5476_v5, %v5478_v42  ;;  %v16183_v16 = vld [vmem:[#allocation55_spill] sm:$0xff]  ;;  %v5872_v49 = vsel %vm5432_vm5, %v5869_v54, %v5871_v35 }
 0x231   :  { %16176 = vst [vmem:[#allocation154_spill] sm:$0xff] %v13780_v46  ;;  %16178 = vst [vmem:[#allocation155_spill] sm:$0xff] %v13785_v3  ;;  %10252 = vmatmul.mubr.msk.f32.gmra.mxu1 %vm298_vm2, %v5866_v8  ;;  %10198 = vmatprep.mubr.msk.f32.mxu0 %vm298_vm2, %v5475_v15  ;;  %v16182_v46 = vld [vmem:[#allocation87_spill] sm:$0xff]  ;;  %v3494_v13 = vpop.f32.mrf.mxu0  ;;  %v5873_v14 = vrot.slane %v16183_v16, 5  ;;  %v16185_v3 = vld [vmem:[#allocation86_spill] sm:$0xff]  ;;  %v5875_v37 = vrot.slane %v16187_v1, 5 }
 0x232   :  { %16180 = vst [vmem:[#allocation117_spill] sm:$0xff] %v13789_v11  ;;  %v13797_v40 = vadd.f32 %v9935_v0, %v16182_v46  ;;  %10254 = vmatprep.mubr.msk.f32.mxu1 %vm298_vm2, %v5868_v43  ;;  %v16184_v11 = vld [vmem:[#allocation56_spill] sm:$0xff]  ;;  %v13804_v15 = vadd.f32 %v3494_v13, %v16185_v3  ;;  %v3885_v56 = vpop.f32.mrf.mxu1  ;;  %v5481_v3 = vsel %vm5432_vm5, %v5478_v42, %v5480_v17  ;;  %v16189_v13 = vld [vmem:[#allocation58_spill] sm:$0xff] }
 0x233   :  { %v5482_v8 = vrot.slane %v16184_v11, 5  ;;  %v13809_v46 = vadd.f32 %v3885_v56, %v13280_v57  ;;  %v9882_v0 = vpop.f32.mrf.mxu0  ;;  %v5484_v54 = vrot.slane %v16189_v13, 5  ;;  %v5876_v13 = vsel %vm5432_vm5, %v5873_v14, %v5875_v37 }
 0x234   :  { %16186 = vst [vmem:[#allocation118_spill] sm:$0xff] %v13804_v15  ;;  %10199 = vmatmul.mubr.msk.f32.gmra.mxu0 %vm298_vm2, %v5477_v55  ;;  %v13813_v43 = vadd.f32 %v9882_v0, %v13285_v38  ;;  %v9938_v5 = vpop.f32.mrf.mxu1  ;;  %v16190_v15 = vld [vmem:[#allocation59_spill] sm:$0xff]  ;;  %v5874_v38 = vsel %vm5432_vm5, %v5871_v35, %v5873_v14  ;;  %v16191_v0 = vld [vmem:[#allocation60_spill] sm:$0xff] }
 0x235   :  { %10255 = vmatmul.mubr.msk.f32.gmra.mxu1 %vm298_vm2, %v5870_v10  ;;  %10201 = vmatprep.mubr.msk.f32.mxu0 %vm298_vm2, %v5479_v19  ;;  %v5877_v1 = vrot.slane %v16190_v15, 5  ;;  %v13821_v57 = vadd.f32 %v9938_v5, %v13292_v32  ;;  %v3504_v56 = vpop.f32.mrf.mxu0  ;;  %v5483_v55 = vsel %vm5432_vm5, %v5480_v17, %v5482_v8  ;;  %v5486_v10 = vrot.slane %v16191_v0, 5 }
 0x236   :  { %16188 = vst [vmem:[#allocation156_spill] sm:$0xff] %v13813_v43  ;;  %10257 = vmatprep.mubr.msk.f32.mxu1 %vm298_vm2, %v5872_v49  ;;  %v13828_v19 = vadd.f32 %v3504_v56, %v13297_v9  ;;  %v3895_v42 = vpop.f32.mrf.mxu1  ;;  %v16193_v43 = vld [vmem:[#allocation61_spill] sm:$0xff]  ;;  %v5485_v9 = vsel %vm5432_vm5, %v5482_v8, %v5484_v54  ;;  %v16195_v49 = vld [vmem:[#allocation62_spill] sm:$0xff] }
 0x237   :  { %v5879_v15 = vrot.slane %v16193_v43, 5  ;;  %v13833_v32 = vadd.f32 %v3895_v42, %v13306_v50  ;;  %v9885_v5 = vpop.f32.mrf.mxu0  ;;  %v5878_v14 = vsel %vm5432_vm5, %v5875_v37, %v5877_v1  ;;  %v5488_v56 = vrot.slane %v16195_v49, 5 }
 0x238   :  { %16192 = vst [vmem:[#allocation157_spill] sm:$0xff] %v13828_v19  ;;  %10202 = vmatmul.mubr.msk.f32.gmra.mxu0 %vm298_vm2, %v5481_v3  ;;  %v13837_v35 = vadd.f32 %v9885_v5, %v13311_v44  ;;  %v9941_v17 = vpop.f32.mrf.mxu1  ;;  %v5487_v44 = vsel %vm5432_vm5, %v5484_v54, %v5486_v10  ;;  %v16196_v3 = vld [vmem:[#allocation63_spill] sm:$0xff]  ;;  %v16197_v19 = vld [vmem:[#allocation64_spill] sm:$0xff] }
 0x239   :  { %10258 = vmatmul.mubr.msk.f32.gmra.mxu1 %vm298_vm2, %v5874_v38  ;;  %10204 = vmatprep.mubr.msk.f32.mxu0 %vm298_vm2, %v5483_v55  ;;  %v13845_v50 = vadd.f32 %v9941_v17, %v13318_v30  ;;  %v3514_v42 = vpop.f32.mrf.mxu0  ;;  %v5881_v5 = vrot.slane %v16196_v3, 5  ;;  %v5490_v38 = vrot.slane %v16197_v19, 5  ;;  %v5880_v37 = vsel %vm5432_vm5, %v5877_v1, %v5879_v15 }
 0x23a   :  { %16194 = vst [vmem:[#allocation119_spill] sm:$0xff] %v13837_v35  ;;  %10260 = vmatprep.mubr.msk.f32.mxu1 %vm298_vm2, %v5876_v13  ;;  %v13852_v55 = vadd.f32 %v3514_v42, %v13323_v31  ;;  %v3905_v8 = vpop.f32.mrf.mxu1  ;;  %v16199_v35 = vld [vmem:[#allocation65_spill] sm:$0xff]  ;;  %v5489_v31 = vsel %vm5432_vm5, %v5486_v10, %v5488_v56  ;;  %v16201_v42 = vld [vmem:[#allocation67_spill] sm:$0xff] }
 0x23b   :  { %v5883_v49 = vrot.slane %v16199_v35, 5  ;;  %v13857_v30 = vadd.f32 %v3905_v8, %v13332_v45  ;;  %v9946_v17 = vpop.f32.mrf.mxu0  ;;  %v5492_v1 = vrot.slane %v16201_v42, 5 }
 0x23c   :  { %16198 = vst [vmem:[#allocation158_spill] sm:$0xff] %v13852_v55  ;;  %10205 = vmatmul.mubr.msk.f32.gmra.mxu0 %vm298_vm2, %v5485_v9  ;;  %v13861_v13 = vadd.f32 %v9946_v17, %v13337_v6  ;;  %v10002_v54 = vpop.f32.mrf.mxu1  ;;  %v16202_v55 = vld [vmem:[#allocation68_spill] sm:$0xff]  ;;  %v5882_v6 = vsel %vm5432_vm5, %v5879_v15, %v5881_v5  ;;  %v5491_v9 = vsel %vm5432_vm5, %v5488_v56, %v5490_v38  ;;  %v16203_v17 = vld [vmem:[#allocation69_spill] sm:$0xff] }
 0x23d   :  { %10261 = vmatmul.mubr.msk.f32.gmra.mxu1 %vm298_vm2, %v5878_v14  ;;  %10207 = vmatprep.mubr.msk.f32.mxu0 %vm298_vm2, %v5487_v44  ;;  %v5885_v35 = vrot.slane %v16202_v55, 5  ;;  %v13869_v45 = vadd.f32 %v10002_v54, %v13344_v60  ;;  %v4202_v8 = vpop.f32.mrf.mxu0  ;;  %v5494_v14 = vrot.slane %v16203_v17, 5  ;;  %v5884_v42 = vsel %vm5432_vm5, %v5881_v5, %v5883_v49 }
 0x23e   :  { %16200 = vst [vmem:[#allocation120_spill] sm:$0xff] %v13861_v13  ;;  %10263 = vmatprep.mubr.msk.f32.mxu1 %vm298_vm2, %v5880_v37  ;;  %v13876_v44 = vadd.f32 %v4202_v8, %v13349_v41  ;;  %v4592_v10 = vpop.f32.mrf.mxu1  ;;  %v16204_v13 = vld [vmem:[#allocation70_spill] sm:$0xff]  ;;  %v5493_v41 = vsel %vm5432_vm5, %v5490_v38, %v5492_v1  ;;  %v16207_v37 = vld [vmem:[#allocation84_spill] sm:$0xff] }
 0x23f   :  { %v5887_v55 = vrot.slane %v16204_v13, 5  ;;  %v13881_v60 = vadd.f32 %v4592_v10, %v13361_v33  ;;  %v9949_v54 = vpop.f32.mrf.mxu0  ;;  %v5886_v5 = vsel %vm5432_vm5, %v5883_v49, %v5885_v35  ;;  %v5496_v8 = vrot.slane %v16207_v37, 5 }
 0x240   :  { %10208 = vmatmul.mubr.msk.f32.gmra.mxu0 %vm298_vm2, %v5489_v31  ;;  %v13885_v15 = vadd.f32 %v9949_v54, %v13366_v36  ;;  %v10005_v56 = vpop.f32.mrf.mxu1  ;;  %v5495_v36 = vsel %vm5432_vm5, %v5492_v1, %v5494_v14  ;;  %v16208_v31 = vld [vmem:[#allocation85_spill] sm:$0xff]  ;;  %v5893_v1 = vrot.slane %v12244_v28, 5 }
 0x241   :  { %16205 = vst [vmem:[#allocation121_spill] sm:$0xff] %v13881_v60  ;;  %10264 = vmatmul.mubr.msk.f32.gmra.mxu1 %vm298_vm2, %v5882_v6  ;;  %10210 = vmatprep.mubr.msk.f32.mxu0 %vm298_vm2, %v5491_v9  ;;  %v13893_v33 = vadd.f32 %v10005_v56, %v13378_v63  ;;  %v4212_v10 = vpop.f32.mrf.mxu0  ;;  %v5889_v54 = vrot.slane %v16208_v31, 5  ;;  %v5888_v49 = vsel %vm5432_vm5, %v5885_v35, %v5887_v55  ;;  %v16210_v60 = vld [vmem:[#allocation66_spill] sm:$0xff] }
 0x242   :  { %16206 = vst [vmem:[#allocation159_spill] sm:$0xff] %v13885_v15  ;;  %10266 = vmatprep.mubr.msk.f32.mxu1 %vm298_vm2, %v5884_v42  ;;  %v16209_v15 = vld [vmem:[#allocation91_spill] sm:$0xff]  ;;  %v13900_v9 = vadd.f32 %v4212_v10, %v13391_v62  ;;  %v4602_v38 = vpop.f32.mrf.mxu1  ;;  %v5891_v37 = vrot.slane %v16210_v60, 5  ;;  %v5500_v42 = vrot.slane %v12241_v24, 5  ;;  %v5497_v35 = vsel %vm5432_vm5, %v5494_v14, %v5496_v8 }
 0x243   :  { %v5498_v6 = vrot.slane %v16209_v15, 5  ;;  %v13905_v63 = vadd.f32 %v4602_v38, %v13400_v23  ;;  %v9952_v56 = vpop.f32.mrf.mxu0  ;;  %v5502_v23 = vrot.slane %v13375_v52, 5  ;;  %v5890_v38 = vsel %vm5432_vm5, %v5887_v55, %v5889_v54 }
 0x244   :  { %10211 = vmatmul.mubr.msk.f32.gmra.mxu0 %vm298_vm2, %v5493_v41  ;;  %v13911_v15 = vadd.f32 %v9952_v56, %v13405_v59  ;;  %v10008_v62 = vpop.f32.mrf.mxu1  ;;  %v5895_v56 = vrot.slane %v13382_v27, 5  ;;  %v5892_v14 = vsel %vm5432_vm5, %v5889_v54, %v5891_v37  ;;  %v5894_v55 = vsel %vm5432_vm5, %v5891_v37, %v5893_v1 }
 0x245   :  { %10267 = vmatmul.mubr.msk.f32.gmra.mxu1 %vm298_vm2, %v5886_v5  ;;  %10213 = vmatprep.mubr.msk.f32.mxu0 %vm298_vm2, %v5495_v36  ;;  %v13918_v10 = vadd.f32 %v10008_v62, %v13417_v7  ;;  %v4222_v41 = vpop.f32.mrf.mxu0  ;;  %v5499_v59 = vsel %vm5432_vm5, %v5496_v8, %v5498_v6  ;;  %v5897_v54 = vrot.slane %v13414_v26, 5  ;;  %v6291_v37 = vrot.slane %v16057_v47, 6  ;;  %v16215_v26 = vld [vmem:[#allocation9_spill] sm:$0xff] }
 0x246   :  { %10269 = vmatprep.mubr.msk.f32.mxu1 %vm298_vm2, %v5888_v49  ;;  %v13925_v5 = vadd.f32 %v4222_v41, %v13423_v12  ;;  %v4612_v36 = vpop.f32.mrf.mxu1  ;;  %v5501_v49 = vsel %vm5432_vm5, %v5498_v6, %v5500_v42  ;;  %v5503_v12 = vsel %vm5432_vm5, %v5500_v42, %v5502_v23  ;;  %v16212_v41 = vld [vmem:[#allocation8_spill] sm:$0xff] }
 0x247   :  { %v13929_v52 = vadd.f32 %v4612_v36, %v13432_v58  ;;  %v9955_v7 = vpop.f32.mrf.mxu0  ;;  %v5504_v58 = vrot.slane %v13412_v4, 5  ;;  %v16213_v36 = vld [vmem:[#allocation90_spill] sm:$0xff] }
 0x248   :  { %10214 = vmatmul.mubr.msk.f32.gmra.mxu0 %vm298_vm2, %v5497_v35  ;;  %v13935_v8 = vadd.f32 %v9955_v7, %v13437_v34  ;;  %v10011_v62 = vpop.f32.mrf.mxu1  ;;  %v5896_v34 = vsel %vm5432_vm5, %v5893_v1, %v5895_v56  ;;  %v16214_v7 = vld [vmem:[#allocation6_spill] sm:$0xff] }
 0x249   :  { %10270 = vmatmul.mubr.msk.f32.gmra.mxu1 %vm298_vm2, %v5890_v38  ;;  %10216 = vmatprep.mubr.msk.f32.mxu0 %vm298_vm2, %v5499_v59  ;;  %v13943_v35 = vadd.f32 %v10011_v62, %v13449_v29  ;;  %v4232_v6 = vpop.f32.mrf.mxu0  ;;  %v6292_v38 = vrot.slane %v16212_v41, 6  ;;  %v6684_v4 = vrot.slane %v16214_v7, 6  ;;  %v16216_v41 = vld [vmem:[#allocation10_spill] sm:$0xff] }
 0x24a   :  { %16211 = vst [vmem:[#allocation160_spill] sm:$0xff] %v13935_v8  ;;  %10272 = vmatprep.mubr.msk.f32.mxu1 %vm298_vm2, %v5892_v14  ;;  %v13950_v59 = vadd.f32 %v4232_v6, %v16213_v36  ;;  %v4622_v42 = vpop.f32.mrf.mxu1  ;;  %v6685_v8 = vrot.slane %v16215_v26, 6  ;;  %v5505_v14 = vsel %vm5432_vm5, %v5502_v23, %v5504_v58  ;;  %v5898_v6 = vsel %vm5432_vm5, %v5895_v56, %v5897_v54  ;;  %v16218_v54 = vld [vmem:[#allocation93_spill] sm:$0xff] }
 0x24b   :  { %v13955_v29 = vadd.f32 %v4622_v42, %v13470_v39  ;;  %v9958_v62 = vpop.f32.mrf.mxu0  ;;  %v6294_v26 = vrot.slane %v16216_v41, 6  ;;  %v16217_v42 = vld [vmem:[#allocation94_spill] sm:$0xff]  ;;  %v6689_v58 = vrot.slane %v16067_v53, 6  ;;  %v6691_v53 = vrot.slane %v16071_v2, 6 }
 0x24c   :  { %10217 = vmatmul.mubr.msk.f32.gmra.mxu0 %vm298_vm2, %v5501_v49  ;;  %v13959_v1 = vadd.f32 %v9958_v62, %v13475_v18  ;;  %v10014_v47 = vpop.f32.mrf.mxu1  ;;  %v6293_v18 = vsel %vm6290_vm6, %v6291_v37, %v6292_v38  ;;  %v6687_v49 = vrot.slane %v16063_v61, 6  ;;  %v6686_v56 = vsel %vm6290_vm6, %v6684_v4, %v6685_v8  ;;  %v16220_v62 = vld [vmem:[#allocation14_spill] sm:$0xff] }
 0x24d   :  { %10273 = vmatmul.mubr.msk.f32.gmra.mxu1 %vm298_vm2, %v5894_v55  ;;  %10219 = vmatprep.mubr.msk.f32.mxu0 %vm298_vm2, %v5503_v12  ;;  %v13967_v39 = vadd.f32 %v10014_v47, %v13483_v22  ;;  %v4242_v36 = vpop.f32.mrf.mxu0  ;;  %v6296_v55 = vrot.slane %v16065_v51, 6  ;;  %v6295_v51 = vsel %vm6290_vm6, %v6292_v38, %v6294_v26  ;;  %v6298_v4 = vrot.slane %v16220_v62, 6  ;;  %v16221_v47 = vld [vmem:[#allocation96_spill] sm:$0xff]  ;;  %v16227_v62 = vld [vmem:[#allocation98_spill] sm:$0xff] }
 0x24e   :  { %10275 = vmatprep.mubr.msk.f32.mxu1 %vm298_vm2, %v5896_v34  ;;  %v13974_v12 = vadd.f32 %v4242_v36, %v16217_v42  ;;  %v4632_v23 = vpop.f32.mrf.mxu1  ;;  %v16219_v34 = vld [vmem:[#allocation95_spill] sm:$0xff] }
 0x24f   :  { %v13979_v22 = vadd.f32 %v4632_v23, %v16218_v54  ;;  %v9961_v7 = vpop.f32.mrf.mxu0  ;;  %v6297_v42 = vsel %vm6290_vm6, %v6294_v26, %v6296_v55  ;;  %v16223_v23 = vld [vmem:[#allocation16_spill] sm:$0xff]  ;;  %v16224_v54 = vld [vmem:[#allocation97_spill] sm:$0xff] }
 0x250   :  { %10220 = vmatmul.mubr.msk.f32.gmra.mxu0 %vm298_vm2, %v5505_v14  ;;  %v13983_v37 = vadd.f32 %v9961_v7, %v16219_v34  ;;  %v10017_v61 = vpop.f32.mrf.mxu1  ;;  %v6688_v14 = vsel %vm6290_vm6, %v6685_v8, %v6687_v49  ;;  %v6690_v7 = vsel %vm6290_vm6, %v6687_v49, %v6689_v58  ;;  %v16226_v34 = vld [vmem:[#allocation17_spill] sm:$0xff]  ;;  %v6692_v49 = vsel %vm6290_vm6, %v6689_v58, %v6691_v53 }
 0x251   :  { %10276 = vmatmul.mubr.msk.f32.gmra.mxu1 %vm298_vm2, %v5898_v6  ;;  %10280 = vmatprep.mubr.msk.f32.mxu0 %vm298_vm2, %v6293_v18  ;;  %v13991_v41 = vadd.f32 %v10017_v61, %v16221_v47  ;;  %v4252_v36 = vpop.f32.mrf.mxu0  ;;  %v6300_v6 = vrot.slane %v16223_v23, 6  ;;  %v6693_v2 = vrot.slane %v16226_v34, 6  ;;  %v16231_v23 = vld [vmem:[#allocation18_spill] sm:$0xff]  ;;  %v16232_v34 = vld [vmem:[#allocation99_spill] sm:$0xff] }
 0x252   :  { %10336 = vmatprep.mubr.msk.f32.mxu1 %vm298_vm2, %v6686_v56  ;;  %v13998_v18 = vadd.f32 %v4252_v36, %v16224_v54  ;;  %v4642_v38 = vpop.f32.mrf.mxu1  ;;  %v16229_v56 = vld [vmem:[#allocation100_spill] sm:$0xff]  ;;  %v6299_v36 = vsel %vm6290_vm6, %v6296_v55, %v6298_v4  ;;  %v6302_v54 = vrot.slane %v16231_v23, 6 }
 0x253   :  { %16222 = vst [vmem:[#allocation122_spill] sm:$0xff] %v13991_v41  ;;  %v14003_v61 = vadd.f32 %v4642_v38, %v16227_v62  ;;  %v9964_v47 = vpop.f32.mrf.mxu0  ;;  %v6694_v58 = vsel %vm6290_vm6, %v6691_v53, %v6693_v2  ;;  %v16239_v41 = vld [vmem:[#allocation102_spill] sm:$0xff] }
 0x254   :  { %16225 = vst [vmem:[#allocation123_spill] sm:$0xff] %v13998_v18  ;;  %10281 = vmatmul.mubr.msk.f32.vlgmr.msra.gmra.mxu0 %vm298_vm2, %v6295_v51  ;;  %v14007_v8 = vadd.f32 %v9964_v47, %v16229_v56  ;;  %v10020_v26 = vpop.f32.mrf.mxu1  ;;  %v6301_v51 = vsel %vm6290_vm6, %v6298_v4, %v6300_v6  ;;  %v16234_v47 = vld [vmem:[#allocation19_spill] sm:$0xff]  ;;  %v16238_v18 = vld [vmem:[#allocation21_spill] sm:$0xff] }
 0x255   :  { %16228 = vst [vmem:[#allocation161_spill] sm:$0xff] %v14003_v61  ;;  %10337 = vmatmul.mubr.msk.f32.vlgmr.msra.gmra.mxu1 %vm298_vm2, %v6688_v14  ;;  %10283 = vmatprep.mubr.msk.f32.mxu0 %vm298_vm2, %v6297_v42  ;;  %v14015_v38 = vadd.f32 %v10020_v26, %v16232_v34  ;;  %v4262_v62 = vpop.f32.mrf.mxu0  ;;  %v6695_v56 = vrot.slane %v16234_v47, 6  ;;  %v16236_v61 = vld [vmem:[#allocation101_spill] sm:$0xff]  ;;  %v6697_v23 = vrot.slane %v16238_v18, 6 }
 0x256   :  { %16230 = vst [vmem:[#allocation124_spill] sm:$0xff] %v14007_v8  ;;  %10339 = vmatprep.mubr.msk.f32.mxu1 %vm298_vm2, %v6690_v7  ;;  %v16235_v8 = vld [vmem:[#allocation20_spill] sm:$0xff]  ;;  %v14022_v42 = vadd.f32 %v4262_v62, %v16236_v61  ;;  %v4652_v55 = vpop.f32.mrf.mxu1  ;;  %v6303_v61 = vsel %vm6290_vm6, %v6300_v6, %v6302_v54  ;;  %v16244_v62 = vld [vmem:[#allocation23_spill] sm:$0xff] }
 0x257   :  { %16233 = vst [vmem:[#allocation162_spill] sm:$0xff] %v14015_v38  ;;  %v6304_v14 = vrot.slane %v16235_v8, 6  ;;  %v14027_v26 = vadd.f32 %v4652_v55, %v16239_v41  ;;  %v9967_v34 = vpop.f32.mrf.mxu0  ;;  %v16241_v7 = vld [vmem:[#allocation104_spill] sm:$0xff]  ;;  %v16243_v8 = vld [vmem:[#allocation22_spill] sm:$0xff]  ;;  %v6699_v18 = vrot.slane %v16244_v62, 6  ;;  %v16251_v38 = vld [vmem:[#allocation3_spill] sm:$0xff] }
 0x258   :  { %16237 = vst [vmem:[#allocation163_spill] sm:$0xff] %v14022_v42  ;;  %10284 = vmatmul.mubr.msk.f32.gmra.mxu0 %vm298_vm2, %v6299_v36  ;;  %v14031_v4 = vadd.f32 %v9967_v34, %v16241_v7  ;;  %v10023_v47 = vpop.f32.mrf.mxu1  ;;  %v6306_v53 = vrot.slane %v16243_v8, 6  ;;  %v16245_v42 = vld [vmem:[#allocation103_spill] sm:$0xff]  ;;  %v6696_v36 = vsel %vm6290_vm6, %v6693_v2, %v6695_v56  ;;  %v16247_v7 = vld [vmem:[#allocation24_spill] sm:$0xff]  ;;  %v6698_v8 = vsel %vm6290_vm6, %v6695_v56, %v6697_v23 }
 0x259   :  { %16240 = vst [vmem:[#allocation125_spill] sm:$0xff] %v14027_v26  ;;  %10340 = vmatmul.mubr.msk.f32.gmra.mxu1 %vm298_vm2, %v6692_v49  ;;  %10286 = vmatprep.mubr.msk.f32.mxu0 %vm298_vm2, %v6301_v51  ;;  %v14039_v41 = vadd.f32 %v10023_v47, %v16245_v42  ;;  %v4272_v55 = vpop.f32.mrf.mxu0  ;;  %v6305_v34 = vsel %vm6290_vm6, %v6302_v54, %v6304_v14  ;;  %v6308_v49 = vrot.slane %v16247_v7, 6  ;;  %v16250_v26 = vld [vmem:[#allocation25_spill] sm:$0xff]  ;;  %v16256_v7 = vld [vmem:[#allocation106_spill] sm:$0xff] }
 0x25a   :  { %16242 = vst [vmem:[#allocation126_spill] sm:$0xff] %v14031_v4  ;;  %10342 = vmatprep.mubr.msk.f32.mxu1 %vm298_vm2, %v6694_v58  ;;  %v16248_v4 = vld [vmem:[#allocation105_spill] sm:$0xff]  ;;  %v4662_v6 = vpop.f32.mrf.mxu1  ;;  %v6701_v62 = vrot.slane %v16250_v26, 6  ;;  %v16253_v58 = vld [vmem:[#allocation4_spill] sm:$0xff]  ;;  %v6700_v56 = vsel %vm6290_vm6, %v6697_v23, %v6699_v18 }
 0x25b   :  { %16246 = vst [vmem:[#allocation164_spill] sm:$0xff] %v14039_v41  ;;  %v14046_v51 = vadd.f32 %v4272_v55, %v16248_v4  ;;  %v14051_v42 = vadd.f32 %v4662_v6, %v16251_v38  ;;  %v9970_v47 = vpop.f32.mrf.mxu0  ;;  %v6307_v4 = vsel %vm6290_vm6, %v6304_v14, %v6306_v53  ;;  %v16255_v55 = vld [vmem:[#allocation26_spill] sm:$0xff] }
 0x25c   :  { %10287 = vmatmul.mubr.msk.f32.gmra.mxu0 %vm298_vm2, %v6303_v61  ;;  %v14055_v2 = vadd.f32 %v9970_v47, %v16253_v58  ;;  %v10026_v54 = vpop.f32.mrf.mxu1  ;;  %v6310_v26 = vrot.slane %v16255_v55, 6  ;;  %v6309_v61 = vsel %vm6290_vm6, %v6306_v53, %v6308_v49  ;;  %v16258_v47 = vld [vmem:[#allocation27_spill] sm:$0xff]  ;;  %v6702_v23 = vsel %vm6290_vm6, %v6699_v18, %v6701_v62  ;;  %v16263_v41 = vld [vmem:[#allocation2_spill] sm:$0xff] }
 0x25d   :  { %16249 = vst [vmem:[#allocation165_spill] sm:$0xff] %v14046_v51  ;;  %16252 = vst [vmem:[#allocation127_spill] sm:$0xff] %v14051_v42  ;;  %10343 = vmatmul.mubr.msk.f32.gmra.mxu1 %vm298_vm2, %v6696_v36  ;;  %10289 = vmatprep.mubr.msk.f32.mxu0 %vm298_vm2, %v6305_v34  ;;  %v14063_v38 = vadd.f32 %v10026_v54, %v16256_v7  ;;  %v4282_v6 = vpop.f32.mrf.mxu0  ;;  %v6703_v58 = vrot.slane %v16258_v47, 6  ;;  %v16260_v42 = vld [vmem:[#allocation107_spill] sm:$0xff]  ;;  %v16262_v51 = vld [vmem:[#allocation29_spill] sm:$0xff] }
 0x25e   :  { %16254 = vst [vmem:[#allocation166_spill] sm:$0xff] %v14055_v2  ;;  %10345 = vmatprep.mubr.msk.f32.mxu1 %vm298_vm2, %v6698_v8  ;;  %v16259_v2 = vld [vmem:[#allocation28_spill] sm:$0xff]  ;;  %v14070_v34 = vadd.f32 %v4282_v6, %v16260_v42  ;;  %v4672_v14 = vpop.f32.mrf.mxu1  ;;  %v6705_v55 = vrot.slane %v16262_v51, 6  ;;  %v16265_v8 = vld [vmem:[#allocation5_spill] sm:$0xff]  ;;  %v6311_v42 = vsel %vm6290_vm6, %v6308_v49, %v6310_v26  ;;  %v16268_v6 = vld [vmem:[#allocation31_spill] sm:$0xff] }
 0x25f   :  { %16257 = vst [vmem:[#allocation128_spill] sm:$0xff] %v14063_v38  ;;  %v6312_v36 = vrot.slane %v16259_v2, 6  ;;  %v14075_v54 = vadd.f32 %v4672_v14, %v16263_v41  ;;  %v9973_v7 = vpop.f32.mrf.mxu0  ;;  %v16267_v2 = vld [vmem:[#allocation30_spill] sm:$0xff]  ;;  %v6707_v51 = vrot.slane %v16268_v6, 6  ;;  %v16275_v38 = vld [vmem:[#allocation109_spill] sm:$0xff] }
 0x260   :  { %16261 = vst [vmem:[#allocation129_spill] sm:$0xff] %v14070_v34  ;;  %10290 = vmatmul.mubr.msk.f32.gmra.mxu0 %vm298_vm2, %v6307_v4  ;;  %v14079_v53 = vadd.f32 %v9973_v7, %v16265_v8  ;;  %v10029_v47 = vpop.f32.mrf.mxu1  ;;  %v6314_v18 = vrot.slane %v16267_v2, 6  ;;  %v16269_v34 = vld [vmem:[#allocation108_spill] sm:$0xff]  ;;  %v6704_v4 = vsel %vm6290_vm6, %v6701_v62, %v6703_v58  ;;  %v6706_v2 = vsel %vm6290_vm6, %v6703_v58, %v6705_v55 }
 0x261   :  { %16264 = vst [vmem:[#allocation167_spill] sm:$0xff] %v14075_v54  ;;  %10346 = vmatmul.mubr.msk.f32.gmra.mxu1 %vm298_vm2, %v6700_v56  ;;  %10292 = vmatprep.mubr.msk.f32.mxu0 %vm298_vm2, %v6309_v61  ;;  %v14087_v41 = vadd.f32 %v10029_v47, %v16269_v34  ;;  %v4292_v14 = vpop.f32.mrf.mxu0  ;;  %v6313_v7 = vsel %vm6290_vm6, %v6310_v26, %v6312_v36  ;;  %v16271_v8 = vld [vmem:[#allocation32_spill] sm:$0xff]  ;;  %v16274_v54 = vld [vmem:[#allocation33_spill] sm:$0xff] }
 0x262   :  { %16266 = vst [vmem:[#allocation130_spill] sm:$0xff] %v14079_v53  ;;  %10348 = vmatprep.mubr.msk.f32.mxu1 %vm298_vm2, %v6702_v23  ;;  %v6316_v56 = vrot.slane %v16271_v8, 6  ;;  %v16272_v53 = vld [vmem:[#allocation146_spill] sm:$0xff]  ;;  %v4682_v49 = vpop.f32.mrf.mxu1  ;;  %v6709_v6 = vrot.slane %v16274_v54, 6  ;;  %v16277_v23 = vld [vmem:[#allocation145_spill] sm:$0xff]  ;;  %v6708_v58 = vsel %vm6290_vm6, %v6705_v55, %v6707_v51  ;;  %v16280_v8 = vld [vmem:[#allocation147_spill] sm:$0xff] }
 0x263   :  { %16270 = vst [vmem:[#allocation168_spill] sm:$0xff] %v14087_v41  ;;  %v14094_v61 = vadd.f32 %v4292_v14, %v16272_v53  ;;  %v14099_v34 = vadd.f32 %v4682_v49, %v16275_v38  ;;  %v9976_v47 = vpop.f32.mrf.mxu0  ;;  %v6315_v53 = vsel %vm6290_vm6, %v6312_v36, %v6314_v18  ;;  %v16279_v14 = vld [vmem:[#allocation34_spill] sm:$0xff]  ;;  %v16287_v41 = vld [vmem:[#allocation148_spill] sm:$0xff] }
 0x264   :  { %10293 = vmatmul.mubr.msk.f32.gmra.mxu0 %vm298_vm2, %v6311_v42  ;;  %v14103_v62 = vadd.f32 %v9976_v47, %v16277_v23  ;;  %v10032_v26 = vpop.f32.mrf.mxu1  ;;  %v6318_v54 = vrot.slane %v16279_v14, 6  ;;  %v6317_v42 = vsel %vm6290_vm6, %v6314_v18, %v6316_v56  ;;  %v16282_v47 = vld [vmem:[#allocation35_spill] sm:$0xff]  ;;  %v6710_v55 = vsel %vm6290_vm6, %v6707_v51, %v6709_v6 }
 0x265   :  { %16273 = vst [vmem:[#allocation131_spill] sm:$0xff] %v14094_v61  ;;  %16276 = vst [vmem:[#allocation169_spill] sm:$0xff] %v14099_v34  ;;  %10349 = vmatmul.mubr.msk.f32.gmra.mxu1 %vm298_vm2, %v6704_v4  ;;  %10295 = vmatprep.mubr.msk.f32.mxu0 %vm298_vm2, %v6313_v7  ;;  %v14111_v38 = vadd.f32 %v10032_v26, %v16280_v8  ;;  %v4302_v49 = vpop.f32.mrf.mxu0  ;;  %v6711_v23 = vrot.slane %v16282_v47, 6  ;;  %v16284_v34 = vld [vmem:[#allocation110_spill] sm:$0xff]  ;;  %v16286_v61 = vld [vmem:[#allocation37_spill] sm:$0xff] }
 0x266   :  { %16278 = vst [vmem:[#allocation170_spill] sm:$0xff] %v14103_v62  ;;  %10351 = vmatprep.mubr.msk.f32.mxu1 %vm298_vm2, %v6706_v2  ;;  %v16283_v62 = vld [vmem:[#allocation36_spill] sm:$0xff]  ;;  %v14118_v7 = vadd.f32 %v4302_v49, %v16284_v34  ;;  %v4692_v36 = vpop.f32.mrf.mxu1  ;;  %v6713_v14 = vrot.slane %v16286_v61, 6  ;;  %v16289_v2 = vld [vmem:[#allocation149_spill] sm:$0xff]  ;;  %v6319_v34 = vsel %vm6290_vm6, %v6316_v56, %v6318_v54  ;;  %v16292_v49 = vld [vmem:[#allocation39_spill] sm:$0xff] }
 0x267   :  { %16281 = vst [vmem:[#allocation132_spill] sm:$0xff] %v14111_v38  ;;  %v6320_v4 = vrot.slane %v16283_v62, 6  ;;  %v14123_v26 = vadd.f32 %v4692_v36, %v16287_v41  ;;  %v9979_v8 = vpop.f32.mrf.mxu0  ;;  %v16291_v62 = vld [vmem:[#allocation38_spill] sm:$0xff]  ;;  %v6715_v61 = vrot.slane %v16292_v49, 6  ;;  %v16298_v38 = vld [vmem:[#allocation112_spill] sm:$0xff] }
 0x268   :  { %16285 = vst [vmem:[#allocation133_spill] sm:$0xff] %v14118_v7  ;;  %10296 = vmatmul.mubr.msk.f32.gmra.mxu0 %vm298_vm2, %v6315_v53  ;;  %v14127_v18 = vadd.f32 %v9979_v8, %v16289_v2  ;;  %v10035_v47 = vpop.f32.mrf.mxu1  ;;  %v6322_v51 = vrot.slane %v16291_v62, 6  ;;  %v16293_v7 = vld [vmem:[#allocation111_spill] sm:$0xff]  ;;  %v6712_v53 = vsel %vm6290_vm6, %v6709_v6, %v6711_v23  ;;  %v16294_v2 = vld [vmem:[#allocation40_spill] sm:$0xff]  ;;  %v6714_v62 = vsel %vm6290_vm6, %v6711_v23, %v6713_v14 }
 0x269   :  { %16288 = vst [vmem:[#allocation134_spill] sm:$0xff] %v14123_v26  ;;  %10352 = vmatmul.mubr.msk.f32.gmra.mxu1 %vm298_vm2, %v6708_v58  ;;  %10298 = vmatprep.mubr.msk.f32.mxu0 %vm298_vm2, %v6317_v42  ;;  %v14135_v41 = vadd.f32 %v10035_v47, %v16293_v7  ;;  %v4312_v36 = vpop.f32.mrf.mxu0  ;;  %v6321_v8 = vsel %vm6290_vm6, %v6318_v54, %v6320_v4  ;;  %v6324_v58 = vrot.slane %v16294_v2, 6  ;;  %v16297_v26 = vld [vmem:[#allocation41_spill] sm:$0xff] }
 0x26a   :  { %16290 = vst [vmem:[#allocation171_spill] sm:$0xff] %v14127_v18  ;;  %10354 = vmatprep.mubr.msk.f32.mxu1 %vm298_vm2, %v6710_v55  ;;  %v16295_v18 = vld [vmem:[#allocation150_spill] sm:$0xff]  ;;  %v4702_v56 = vpop.f32.mrf.mxu1  ;;  %v6717_v49 = vrot.slane %v16297_v26, 6  ;;  %v16300_v55 = vld [vmem:[#allocation113_spill] sm:$0xff]  ;;  %v6716_v23 = vsel %vm6290_vm6, %v6713_v14, %v6715_v61 }
 0x26b   :  { %v14142_v42 = vadd.f32 %v4312_v36, %v16295_v18  ;;  %v14147_v7 = vadd.f32 %v4702_v56, %v16298_v38  ;;  %v9982_v47 = vpop.f32.mrf.mxu0  ;;  %v6323_v18 = vsel %vm6290_vm6, %v6320_v4, %v6322_v51  ;;  %v16302_v36 = vld [vmem:[#allocation42_spill] sm:$0xff]  ;;  %v16303_v56 = vld [vmem:[#allocation43_spill] sm:$0xff] }
 0x26c   :  { %10299 = vmatmul.mubr.msk.f32.gmra.mxu0 %vm298_vm2, %v6319_v34  ;;  %v14151_v6 = vadd.f32 %v9982_v47, %v16300_v55  ;;  %v10038_v54 = vpop.f32.mrf.mxu1  ;;  %v6326_v26 = vrot.slane %v16302_v36, 6  ;;  %v6325_v34 = vsel %vm6290_vm6, %v6322_v51, %v6324_v58  ;;  %v6719_v47 = vrot.slane %v16303_v56, 6  ;;  %v16304_v55 = vld [vmem:[#allocation44_spill] sm:$0xff] }
 0x26d   :  { %16296 = vst [vmem:[#allocation172_spill] sm:$0xff] %v14142_v42  ;;  %16299 = vst [vmem:[#allocation135_spill] sm:$0xff] %v14147_v7  ;;  %10355 = vmatmul.mubr.msk.f32.gmra.mxu1 %vm298_vm2, %v6712_v53  ;;  %10301 = vmatprep.mubr.msk.f32.mxu0 %vm298_vm2, %v6321_v8  ;;  %v14159_v38 = vadd.f32 %v10038_v54, %v13725_v21  ;;  %v4322_v2 = vpop.f32.mrf.mxu0  ;;  %v6328_v53 = vrot.slane %v16304_v55, 6  ;;  %v6718_v14 = vsel %vm6290_vm6, %v6715_v61, %v6717_v49  ;;  %v16306_v7 = vld [vmem:[#allocation45_spill] sm:$0xff]  ;;  %v16307_v42 = vld [vmem:[#allocation152_spill] sm:$0xff] }
 0x26e   :  { %16301 = vst [vmem:[#allocation173_spill] sm:$0xff] %v14151_v6  ;;  %10357 = vmatprep.mubr.msk.f32.mxu1 %vm298_vm2, %v6714_v62  ;;  %v16305_v6 = vld [vmem:[#allocation151_spill] sm:$0xff]  ;;  %v4712_v4 = vpop.f32.mrf.mxu1  ;;  %v6721_v36 = vrot.slane %v16306_v7, 6  ;;  %v16309_v62 = vld [vmem:[#allocation114_spill] sm:$0xff]  ;;  %v6723_v7 = vrot.slane %v16164_v25, 6 }
 0x26f   :  { %v14166_v8 = vadd.f32 %v4322_v2, %v16305_v6  ;;  %v14171_v21 = vadd.f32 %v4712_v4, %v16307_v42  ;;  %v9985_v54 = vpop.f32.mrf.mxu0  ;;  %v6327_v6 = vsel %vm6290_vm6, %v6324_v58, %v6326_v26  ;;  %v16311_v2 = vld [vmem:[#allocation46_spill] sm:$0xff]  ;;  %v6329_v4 = vsel %vm6290_vm6, %v6326_v26, %v6328_v53 }
 0x270   :  { %10302 = vmatmul.mubr.msk.f32.gmra.mxu0 %vm298_vm2, %v6323_v18  ;;  %v14175_v51 = vadd.f32 %v9985_v54, %v16309_v62  ;;  %v10041_v56 = vpop.f32.mrf.mxu1  ;;  %v6330_v61 = vrot.slane %v16311_v2, 6  ;;  %v6720_v18 = vsel %vm6290_vm6, %v6717_v49, %v6719_v47  ;;  %v16312_v54 = vld [vmem:[#allocation48_spill] sm:$0xff]  ;;  %v16313_v62 = vld [vmem:[#allocation115_spill] sm:$0xff]  ;;  %v6722_v2 = vsel %vm6290_vm6, %v6719_v47, %v6721_v36 }
 0x271   :  { %16308 = vst [vmem:[#allocation136_spill] sm:$0xff] %v14171_v21  ;;  %10358 = vmatmul.mubr.msk.f32.gmra.mxu1 %vm298_vm2, %v6716_v23  ;;  %10304 = vmatprep.mubr.msk.f32.mxu0 %vm298_vm2, %v6325_v34  ;;  %v14183_v42 = vadd.f32 %v10041_v56, %v13749_v48  ;;  %v4332_v55 = vpop.f32.mrf.mxu0  ;;  %v6332_v23 = vrot.slane %v16312_v54, 6  ;;  %v16316_v21 = vld [vmem:[#allocation153_spill] sm:$0xff]  ;;  %v6724_v47 = vsel %vm6290_vm6, %v6721_v36, %v6723_v7  ;;  %v16320_v54 = vld [vmem:[#allocation50_spill] sm:$0xff] }
 0x272   :  { %16310 = vst [vmem:[#allocation174_spill] sm:$0xff] %v14175_v51  ;;  %10360 = vmatprep.mubr.msk.f32.mxu1 %vm298_vm2, %v6718_v14  ;;  %v14190_v34 = vadd.f32 %v4332_v55, %v16313_v62  ;;  %v4722_v58 = vpop.f32.mrf.mxu1  ;;  %v16315_v51 = vld [vmem:[#allocation49_spill] sm:$0xff]  ;;  %v16318_v14 = vld [vmem:[#allocation116_spill] sm:$0xff]  ;;  %v6331_v55 = vsel %vm6290_vm6, %v6328_v53, %v6330_v61 }
 0x273   :  { %v6725_v25 = vrot.slane %v16315_v51, 6  ;;  %v14195_v48 = vadd.f32 %v4722_v58, %v16316_v21  ;;  %v9988_v56 = vpop.f32.mrf.mxu0  ;;  %v6334_v51 = vrot.slane %v16320_v54, 6  ;;  %v16321_v58 = vld [vmem:[#allocation51_spill] sm:$0xff] }
 0x274   :  { %16314 = vst [vmem:[#allocation137_spill] sm:$0xff] %v14190_v34  ;;  %10305 = vmatmul.mubr.msk.f32.gmra.mxu0 %vm298_vm2, %v6327_v6  ;;  %v14199_v49 = vadd.f32 %v9988_v56, %v16318_v14  ;;  %v10044_v26 = vpop.f32.mrf.mxu1  ;;  %v6333_v6 = vsel %vm6290_vm6, %v6330_v61, %v6332_v23  ;;  %v6727_v56 = vrot.slane %v16321_v58, 6  ;;  %v16322_v14 = vld [vmem:[#allocation52_spill] sm:$0xff]  ;;  %v16325_v34 = vld [vmem:[#allocation155_spill] sm:$0xff] }
 0x275   :  { %16317 = vst [vmem:[#allocation175_spill] sm:$0xff] %v14195_v48  ;;  %10361 = vmatmul.mubr.msk.f32.gmra.mxu1 %vm298_vm2, %v6720_v18  ;;  %10307 = vmatprep.mubr.msk.f32.mxu0 %vm298_vm2, %v6329_v4  ;;  %v14207_v21 = vadd.f32 %v10044_v26, %v13773_v20  ;;  %v4342_v62 = vpop.f32.mrf.mxu0  ;;  %v6336_v18 = vrot.slane %v16322_v14, 6  ;;  %v6726_v36 = vsel %vm6290_vm6, %v6723_v7, %v6725_v25  ;;  %v16324_v48 = vld [vmem:[#allocation53_spill] sm:$0xff] }
 0x276   :  { %16319 = vst [vmem:[#allocation138_spill] sm:$0xff] %v14199_v49  ;;  %10363 = vmatprep.mubr.msk.f32.mxu1 %vm298_vm2, %v6722_v2  ;;  %v16323_v49 = vld [vmem:[#allocation154_spill] sm:$0xff]  ;;  %v4732_v53 = vpop.f32.mrf.mxu1  ;;  %v6729_v54 = vrot.slane %v16324_v48, 6  ;;  %v16326_v2 = vld [vmem:[#allocation117_spill] sm:$0xff]  ;;  %v6731_v48 = vrot.slane %v16183_v16, 6 }
 0x277   :  { %v14214_v4 = vadd.f32 %v4342_v62, %v16323_v49  ;;  %v14219_v20 = vadd.f32 %v4732_v53, %v16325_v34  ;;  %v9991_v26 = vpop.f32.mrf.mxu0  ;;  %v6335_v49 = vsel %vm6290_vm6, %v6332_v23, %v6334_v51  ;;  %v16327_v62 = vld [vmem:[#allocation54_spill] sm:$0xff]  ;;  %v6337_v53 = vsel %vm6290_vm6, %v6334_v51, %v6336_v18 }
 0x278   :  { %10308 = vmatmul.mubr.msk.f32.gmra.mxu0 %vm298_vm2, %v6331_v55  ;;  %v14223_v61 = vadd.f32 %v9991_v26, %v16326_v2  ;;  %v10047_v58 = vpop.f32.mrf.mxu1  ;;  %v6338_v7 = vrot.slane %v16327_v62, 6  ;;  %v6728_v55 = vsel %vm6290_vm6, %v6725_v25, %v6727_v56  ;;  %v16328_v26 = vld [vmem:[#allocation118_spill] sm:$0xff]  ;;  %v6730_v2 = vsel %vm6290_vm6, %v6727_v56, %v6729_v54  ;;  %v16329_v62 = vld [vmem:[#allocation57_spill] sm:$0xff] }
 0x279   :  { %10364 = vmatmul.mubr.msk.f32.gmra.mxu1 %vm298_vm2, %v6724_v47  ;;  %10310 = vmatprep.mubr.msk.f32.mxu0 %vm298_vm2, %v6333_v6  ;;  %v14231_v34 = vadd.f32 %v10047_v58, %v13797_v40  ;;  %v4352_v14 = vpop.f32.mrf.mxu0  ;;  %v6340_v47 = vrot.slane %v16184_v11, 6  ;;  %v6733_v16 = vrot.slane %v16329_v62, 6  ;;  %v6732_v56 = vsel %vm6290_vm6, %v6729_v54, %v6731_v48  ;;  %v16332_v62 = vld [vmem:[#allocation59_spill] sm:$0xff] }
 0x27a   :  { %10366 = vmatprep.mubr.msk.f32.mxu1 %vm298_vm2, %v6726_v36  ;;  %v14238_v6 = vadd.f32 %v4352_v14, %v16328_v26  ;;  %v4742_v23 = vpop.f32.mrf.mxu1  ;;  %v16330_v36 = vld [vmem:[#allocation156_spill] sm:$0xff]  ;;  %v6339_v11 = vsel %vm6290_vm6, %v6336_v18, %v6338_v7  ;;  %v16331_v14 = vld [vmem:[#allocation58_spill] sm:$0xff]  ;;  %v6737_v54 = vrot.slane %v16193_v43, 6  ;;  %v6739_v43 = vrot.slane %v16196_v3, 6 }
 0x27b   :  { %v14243_v40 = vadd.f32 %v4742_v23, %v13809_v46  ;;  %v9994_v58 = vpop.f32.mrf.mxu0  ;;  %v6342_v26 = vrot.slane %v16331_v14, 6  ;;  %v6734_v18 = vsel %vm6290_vm6, %v6731_v48, %v6733_v16 }
 0x27c   :  { %10311 = vmatmul.mubr.msk.f32.gmra.mxu0 %vm298_vm2, %v6335_v49  ;;  %v14247_v25 = vadd.f32 %v9994_v58, %v16330_v36  ;;  %v10050_v51 = vpop.f32.mrf.mxu1  ;;  %v6341_v49 = vsel %vm6290_vm6, %v6338_v7, %v6340_v47  ;;  %v6735_v58 = vrot.slane %v16332_v62, 6  ;;  %v16334_v7 = vld [vmem:[#allocation62_spill] sm:$0xff] }
 0x27d   :  { %10367 = vmatmul.mubr.msk.f32.gmra.mxu1 %vm298_vm2, %v6728_v55  ;;  %10313 = vmatprep.mubr.msk.f32.mxu0 %vm298_vm2, %v6337_v53  ;;  %v14255_v46 = vadd.f32 %v10050_v51, %v13821_v57  ;;  %v14257_v23 = vpop.f32.mrf.mxu0  ;;  %v6344_v55 = vrot.slane %v16191_v0, 6  ;;  %v16333_v51 = vld [vmem:[#allocation119_spill] sm:$0xff]  ;;  %v6343_v0 = vsel %vm6290_vm6, %v6340_v47, %v6342_v26  ;;  %v6346_v48 = vrot.slane %v16334_v7, 6  ;;  %v16336_v7 = vld [vmem:[#allocation65_spill] sm:$0xff] }
 0x27e   :  { %10369 = vmatprep.mubr.msk.f32.mxu1 %vm298_vm2, %v6730_v2  ;;  %v4752_v53 = vpop.f32.mrf.mxu1  ;;  %v6741_v3 = vrot.slane %v16336_v7, 6  ;;  %v16339_v7 = vld [vmem:[#allocation68_spill] sm:$0xff] }
 0x27f   :  { %v14266_v36 = vadd.f32 %v4752_v53, %v13833_v32  ;;  %v9997_v57 = vpop.f32.mrf.mxu0  ;;  %v6345_v53 = vsel %vm6290_vm6, %v6342_v26, %v6344_v55 }
 0x280   :  { %10314 = vmatmul.mubr.msk.f32.gmra.mxu0 %vm298_vm2, %v6339_v11  ;;  %v14270_v14 = vadd.f32 %v9997_v57, %v16333_v51  ;;  %v10053_v2 = vpop.f32.mrf.mxu1  ;;  %v6736_v11 = vsel %vm6290_vm6, %v6733_v16, %v6735_v58  ;;  %v16335_v57 = vld [vmem:[#allocation158_spill] sm:$0xff]  ;;  %v6738_v51 = vsel %vm6290_vm6, %v6735_v58, %v6737_v54  ;;  %v6740_v58 = vsel %vm6290_vm6, %v6737_v54, %v6739_v43 }
 0x281   :  { %10370 = vmatmul.mubr.msk.f32.gmra.mxu1 %vm298_vm2, %v6732_v56  ;;  %10316 = vmatprep.mubr.msk.f32.mxu0 %vm298_vm2, %v6341_v49  ;;  %v14278_v32 = vadd.f32 %v10053_v2, %v13845_v50  ;;  %v4372_v62 = vpop.f32.mrf.mxu0  ;;  %v6348_v56 = vrot.slane %v16197_v19, 6  ;;  %v6347_v19 = vsel %vm6290_vm6, %v6344_v55, %v6346_v48  ;;  %v6742_v54 = vsel %vm6290_vm6, %v6739_v43, %v6741_v3 }
 0x282   :  { %10372 = vmatprep.mubr.msk.f32.mxu1 %vm298_vm2, %v6734_v18  ;;  %v14285_v49 = vadd.f32 %v4372_v62, %v16335_v57  ;;  %v4762_v47 = vpop.f32.mrf.mxu1  ;;  %v16337_v18 = vld [vmem:[#allocation120_spill] sm:$0xff]  ;;  %v16338_v62 = vld [vmem:[#allocation67_spill] sm:$0xff] }
 0x283   :  { %v14290_v50 = vadd.f32 %v4762_v47, %v13857_v30  ;;  %v10058_v2 = vpop.f32.mrf.mxu0  ;;  %v6350_v57 = vrot.slane %v16338_v62, 6  ;;  %v16340_v62 = vld [vmem:[#allocation121_spill] sm:$0xff] }
 0x284   :  { %10317 = vmatmul.mubr.msk.f32.gmra.mxu0 %vm298_vm2, %v6343_v0  ;;  %v14294_v16 = vadd.f32 %v10058_v2, %v16337_v18  ;;  %v10114_v26 = vpop.f32.mrf.mxu1  ;;  %v6349_v0 = vsel %vm6290_vm6, %v6346_v48, %v6348_v56  ;;  %v6743_v2 = vrot.slane %v16339_v7, 6  ;;  %v6745_v18 = vrot.slane %v16204_v13, 6 }
 0x285   :  { %10373 = vmatmul.mubr.msk.f32.gmra.mxu1 %vm298_vm2, %v6736_v11  ;;  %10319 = vmatprep.mubr.msk.f32.mxu0 %vm298_vm2, %v6345_v53  ;;  %v14302_v30 = vadd.f32 %v10114_v26, %v13869_v45  ;;  %v4924_v47 = vpop.f32.mrf.mxu0  ;;  %v6352_v11 = vrot.slane %v16203_v17, 6  ;;  %v6351_v17 = vsel %vm6290_vm6, %v6348_v56, %v6350_v57  ;;  %v6747_v13 = vrot.slane %v16208_v31, 6 }
 0x286   :  { %10375 = vmatprep.mubr.msk.f32.mxu1 %vm298_vm2, %v6738_v51  ;;  %v14309_v53 = vadd.f32 %v4924_v47, %v13876_v44  ;;  %v5179_v55 = vpop.f32.mrf.mxu1  ;;  %v16341_v51 = vld [vmem:[#allocation159_spill] sm:$0xff]  ;;  %v16342_v44 = vld [vmem:[#allocation84_spill] sm:$0xff]  ;;  %v6749_v31 = vrot.slane %v16210_v60, 6  ;;  %v6358_v60 = vrot.slane %v12241_v24, 6  ;;  %v6753_v24 = vrot.slane %v13382_v27, 6 }
 0x287   :  { %v14314_v45 = vadd.f32 %v5179_v55, %v16340_v62  ;;  %v10061_v26 = vpop.f32.mrf.mxu0  ;;  %v6354_v43 = vrot.slane %v16342_v44, 6  ;;  %v6353_v62 = vsel %vm6290_vm6, %v6350_v57, %v6352_v11  ;;  %v16344_v44 = vld [vmem:[#allocation89_spill] sm:$0xff] }
 0x288   :  { %10320 = vmatmul.mubr.msk.f32.gmra.mxu0 %vm298_vm2, %v6347_v19  ;;  %v14318_v48 = vadd.f32 %v10061_v26, %v16341_v51  ;;  %v10117_v7 = vpop.f32.mrf.mxu1  ;;  %v6744_v19 = vsel %vm6290_vm6, %v6741_v3, %v6743_v2  ;;  %v16343_v26 = vld [vmem:[#allocation91_spill] sm:$0xff]  ;;  %v6746_v51 = vsel %vm6290_vm6, %v6743_v2, %v6745_v18  ;;  %v6748_v2 = vsel %vm6290_vm6, %v6745_v18, %v6747_v13 }
 0x289   :  { %10376 = vmatmul.mubr.msk.f32.gmra.mxu1 %vm298_vm2, %v6740_v58  ;;  %10322 = vmatprep.mubr.msk.f32.mxu0 %vm298_vm2, %v6349_v0  ;;  %v14326_v47 = vadd.f32 %v10117_v7, %v13893_v33  ;;  %v4934_v55 = vpop.f32.mrf.mxu0  ;;  %v6356_v58 = vrot.slane %v16343_v26, 6  ;;  %v6750_v18 = vsel %vm6290_vm6, %v6747_v13, %v6749_v31  ;;  %v16345_v26 = vld [vmem:[#allocation160_spill] sm:$0xff] }
 0x28a   :  { %10378 = vmatprep.mubr.msk.f32.mxu1 %vm298_vm2, %v6742_v54  ;;  %v14333_v0 = vadd.f32 %v4934_v55, %v13900_v9  ;;  %v5189_v56 = vpop.f32.mrf.mxu1  ;;  %v6355_v9 = vsel %vm6290_vm6, %v6352_v11, %v6354_v43  ;;  %v6360_v55 = vrot.slane %v16344_v44, 6 }
 0x28b   :  { %v14338_v33 = vadd.f32 %v5189_v56, %v13905_v63  ;;  %v10064_v7 = vpop.f32.mrf.mxu0  ;;  %v16346_v56 = vld [vmem:[#allocation88_spill] sm:$0xff] }
 0x28c   :  { %10323 = vmatmul.mubr.msk.f32.gmra.mxu0 %vm298_vm2, %v6351_v17  ;;  %v14342_v3 = vadd.f32 %v10064_v7, %v13911_v15  ;;  %v10120_v57 = vpop.f32.mrf.mxu1  ;;  %v6357_v15 = vsel %vm6290_vm6, %v6354_v43, %v6356_v58  ;;  %v6751_v17 = vrot.slane %v12244_v28, 6  ;;  %v6362_v13 = vrot.slane %v16346_v56, 6 }
 0x28d   :  { %10379 = vmatmul.mubr.msk.f32.gmra.mxu1 %vm298_vm2, %v6744_v19  ;;  %10325 = vmatprep.mubr.msk.f32.mxu0 %vm298_vm2, %v6353_v62  ;;  %v14350_v63 = vadd.f32 %v10120_v57, %v13918_v10  ;;  %v4944_v54 = vpop.f32.mrf.mxu0  ;;  %v6361_v7 = vsel %vm6290_vm6, %v6358_v60, %v6360_v55  ;;  %v16347_v57 = vld [vmem:[#allocation92_spill] sm:$0xff] }
 0x28e   :  { %10381 = vmatprep.mubr.msk.f32.mxu1 %vm298_vm2, %v6746_v51  ;;  %v14357_v19 = vadd.f32 %v4944_v54, %v13925_v5  ;;  %v5199_v11 = vpop.f32.mrf.mxu1  ;;  %v6359_v5 = vsel %vm6290_vm6, %v6356_v58, %v6358_v60  ;;  %v6752_v51 = vsel %vm6290_vm6, %v6749_v31, %v6751_v17  ;;  %v6754_v58 = vsel %vm6290_vm6, %v6751_v17, %v6753_v24 }
 0x28f   :  { %v14362_v10 = vadd.f32 %v5199_v11, %v13929_v52  ;;  %v10067_v62 = vpop.f32.mrf.mxu0 }
 0x290   :  { %10326 = vmatmul.mubr.msk.f32.gmra.mxu0 %vm298_vm2, %v6355_v9  ;;  %v14366_v43 = vadd.f32 %v10067_v62, %v16345_v26  ;;  %v10123_v28 = vpop.f32.mrf.mxu1  ;;  %v6755_v9 = vrot.slane %v16347_v57, 6  ;;  %v16348_v26 = vld [vmem:[#allocation122_spill] sm:$0xff] }
 0x291   :  { %10382 = vmatmul.mubr.msk.f32.gmra.mxu1 %vm298_vm2, %v6748_v2  ;;  %10328 = vmatprep.mubr.msk.f32.mxu0 %vm298_vm2, %v6357_v15  ;;  %v14373_v27 = vadd.f32 %v10123_v28, %v13943_v35  ;;  %v4954_v52 = vpop.f32.mrf.mxu0  ;;  %v16352_v57 = vld [vmem:[#allocation162_spill] sm:$0xff] }
 0x292   :  { %10384 = vmatprep.mubr.msk.f32.mxu1 %vm298_vm2, %v6750_v18  ;;  %v14380_v2 = vadd.f32 %v4954_v52, %v13950_v59  ;;  %v5209_v54 = vpop.f32.mrf.mxu1  ;;  %v6363_v59 = vsel %vm6290_vm6, %v6360_v55, %v6362_v13  ;;  %v16350_v13 = vld [vmem:[#allocation161_spill] sm:$0xff] }
 0x293   :  { %v14384_v15 = vadd.f32 %v5209_v54, %v13955_v29  ;;  %v10070_v35 = vpop.f32.mrf.mxu0  ;;  %v6756_v29 = vsel %vm6290_vm6, %v6753_v24, %v6755_v9 }
 0x294   :  { %10329 = vmatmul.mubr.msk.f32.gmra.mxu0 %vm298_vm2, %v6359_v5  ;;  %v14388_v44 = vadd.f32 %v10070_v35, %v13959_v1  ;;  %v10126_v31 = vpop.f32.mrf.mxu1  ;;  %v16349_v5 = vld [vmem:[#allocation123_spill] sm:$0xff] }
 0x295   :  { %10385 = vmatmul.mubr.msk.f32.gmra.mxu1 %vm298_vm2, %v6752_v51  ;;  %10331 = vmatprep.mubr.msk.f32.mxu0 %vm298_vm2, %v6361_v7  ;;  %v14394_v60 = vadd.f32 %v10126_v31, %v13967_v39  ;;  %v4964_v17 = vpop.f32.mrf.mxu0  ;;  %v16351_v51 = vld [vmem:[#allocation124_spill] sm:$0xff] }
 0x296   :  { %10387 = vmatprep.mubr.msk.f32.mxu1 %vm298_vm2, %v6754_v58  ;;  %v14399_v11 = vadd.f32 %v4964_v17, %v13974_v12  ;;  %v5219_v1 = vpop.f32.mrf.mxu1  ;;  %v16353_v58 = vld [vmem:[#allocation163_spill] sm:$0xff] }
 0x297   :  { %v14402_v18 = vadd.f32 %v5219_v1, %v13979_v22  ;;  %v10073_v62 = vpop.f32.mrf.mxu0  ;;  %v16355_v1 = vld [vmem:[#allocation126_spill] sm:$0xff] }
 0x298   :  { %10332 = vmatmul.mubr.msk.f32.gmra.mxu0 %vm298_vm2, %v6363_v59  ;;  %v14406_v55 = vadd.f32 %v10073_v62, %v13983_v37  ;;  %v10129_v39 = vpop.f32.mrf.mxu1  ;;  %v16354_v59 = vld [vmem:[#allocation125_spill] sm:$0xff] }
 0x299   :  { %10388 = vmatmul.mubr.msk.f32.gmra.mxu1 %vm298_vm2, %v6756_v29  ;;  %v14410_v28 = vadd.f32 %v10129_v39, %v16348_v26  ;;  %v4974_v24 = vpop.f32.mrf.mxu0  ;;  %v16357_v26 = vld [vmem:[#allocation164_spill] sm:$0xff] }
 0x29a   :  { %v14413_v12 = vadd.f32 %v4974_v24, %v16349_v5  ;;  %v5229_v56 = vpop.f32.mrf.mxu1 }
 0x29b   :  { %v14416_v22 = vadd.f32 %v5229_v56, %v16350_v13  ;;  %v10076_v52 = vpop.f32.mrf.mxu0  ;;  %v16359_v56 = vld [vmem:[#allocation165_spill] sm:$0xff] }
 0x29c   :  { %v14419_v7 = vadd.f32 %v10076_v52, %v16351_v51  ;;  %v10132_v37 = vpop.f32.mrf.mxu1  ;;  %v16361_v51 = vld [vmem:[#allocation127_spill] sm:$0xff] }
 0x29d   :  { %v14422_v9 = vadd.f32 %v10132_v37, %v16352_v57  ;;  %v4984_v54 = vpop.f32.mrf.mxu0 }
 0x29e   :  { %v14425_v35 = vadd.f32 %v4984_v54, %v16353_v58  ;;  %v5239_v31 = vpop.f32.mrf.mxu1  ;;  %v16363_v54 = vld [vmem:[#allocation166_spill] sm:$0xff] }
 0x29f   :  { %v14428_v17 = vadd.f32 %v5239_v31, %v16354_v59  ;;  %v10079_v29 = vpop.f32.mrf.mxu0  ;;  %v16365_v59 = vld [vmem:[#allocation128_spill] sm:$0xff] }
 0x2a0   :  { %v14431_v62 = vadd.f32 %v10079_v29, %v16355_v1 }
 0x2a1   :  { %v10135_v39 = vpop.f32.mrf.mxu1  ;;  %v4994_v5 = vpop.f32.mrf.mxu0 }
 0x2a2   :  { %16356 = vst [vmem:[#allocation7_spill] sm:$0xff] %v14431_v62  ;;  %v14434_v24 = vadd.f32 %v10135_v39, %v16357_v26  ;;  %v14437_v13 = vadd.f32 %v4994_v5, %v16359_v56  ;;  %v16367_v62 = vld [vmem:[#allocation129_spill] sm:$0xff] }
 0x2a3   :  { %v5249_v52 = vpop.f32.mrf.mxu1 }
 0x2a4   :  { %16358 = vst [vmem:[#allocation11_spill] sm:$0xff] %v14434_v24  ;;  %16360 = vst [vmem:[#allocation12_spill] sm:$0xff] %v14437_v13  ;;  %v14440_v37 = vadd.f32 %v5249_v52, %v16361_v51  ;;  %v10082_v57 = vpop.f32.mrf.mxu0  ;;  %v16369_v24 = vld [vmem:[#allocation167_spill] sm:$0xff]  ;;  %v16371_v13 = vld [vmem:[#allocation130_spill] sm:$0xff] }
 0x2a5   :  { %v14443_v58 = vadd.f32 %v10082_v57, %v16363_v54  ;;  %v10138_v31 = vpop.f32.mrf.mxu1 }
 0x2a6   :  { %16362 = vst [vmem:[#allocation13_spill] sm:$0xff] %v14440_v37  ;;  %v14446_v29 = vadd.f32 %v10138_v31, %v16365_v59  ;;  %v5004_v1 = vpop.f32.mrf.mxu0  ;;  %v16373_v37 = vld [vmem:[#allocation168_spill] sm:$0xff] }
 0x2a7   :  { %16364 = vst [vmem:[#allocation15_spill] sm:$0xff] %v14443_v58  ;;  %v14449_v39 = vadd.f32 %v5004_v1, %v16367_v62  ;;  %v5259_v26 = vpop.f32.mrf.mxu1  ;;  %v16375_v58 = vld [vmem:[#allocation131_spill] sm:$0xff] }
 0x2a8   :  { %16366 = vst [vmem:[#allocation139_spill] sm:$0xff] %v14446_v29  ;;  %v14452_v5 = vadd.f32 %v5259_v26, %v16369_v24  ;;  %v10085_v56 = vpop.f32.mrf.mxu0  ;;  %v16377_v29 = vld [vmem:[#allocation169_spill] sm:$0xff] }
 0x2a9   :  { %16368 = vst [vmem:[#allocation176_spill] sm:$0xff] %v14449_v39  ;;  %v14455_v52 = vadd.f32 %v10085_v56, %v16371_v13  ;;  %v10141_v51 = vpop.f32.mrf.mxu1  ;;  %v16378_v39 = vld [vmem:[#allocation170_spill] sm:$0xff] }
 0x2aa   :  { %16370 = vst [vmem:[#allocation177_spill] sm:$0xff] %v14452_v5  ;;  %v14458_v57 = vadd.f32 %v10141_v51, %v16373_v37  ;;  %v5014_v54 = vpop.f32.mrf.mxu0  ;;  %v16380_v5 = vld [vmem:[#allocation132_spill] sm:$0xff] }
 0x2ab   :  { %16372 = vst [vmem:[#allocation140_spill] sm:$0xff] %v14455_v52  ;;  %v14461_v31 = vadd.f32 %v5014_v54, %v16375_v58  ;;  %v5269_v59 = vpop.f32.mrf.mxu1  ;;  %v16382_v52 = vld [vmem:[#allocation133_spill] sm:$0xff] }
 0x2ac   :  { %16374 = vst [vmem:[#allocation178_spill] sm:$0xff] %v14458_v57  ;;  %v14464_v62 = vadd.f32 %v5269_v59, %v16377_v29  ;;  %v10088_v1 = vpop.f32.mrf.mxu0  ;;  %v16384_v57 = vld [vmem:[#allocation134_spill] sm:$0xff] }
 0x2ad   :  { %16376 = vst [vmem:[#allocation71_spill] sm:$0xff] %v14461_v31  ;;  %v14467_v24 = vadd.f32 %v10088_v1, %v16378_v39  ;;  %v10144_v26 = vpop.f32.mrf.mxu1  ;;  %v16385_v31 = vld [vmem:[#allocation171_spill] sm:$0xff] }
 0x2ae   :  { %v14470_v13 = vadd.f32 %v10144_v26, %v16380_v5  ;;  %v5024_v56 = vpop.f32.mrf.mxu0 }
 0x2af   :  { %16379 = vst [vmem:[#allocation179_spill] sm:$0xff] %v14467_v24  ;;  %v14473_v37 = vadd.f32 %v5024_v56, %v16382_v52  ;;  %v5279_v51 = vpop.f32.mrf.mxu1  ;;  %v16387_v24 = vld [vmem:[#allocation172_spill] sm:$0xff] }
 0x2b0   :  { %16381 = vst [vmem:[#allocation72_spill] sm:$0xff] %v14470_v13  ;;  %v14476_v58 = vadd.f32 %v5279_v51, %v16384_v57  ;;  %v10091_v54 = vpop.f32.mrf.mxu0  ;;  %v16389_v13 = vld [vmem:[#allocation135_spill] sm:$0xff] }
 0x2b1   :  { %16383 = vst [vmem:[#allocation180_spill] sm:$0xff] %v14473_v37  ;;  %v14479_v29 = vadd.f32 %v10091_v54, %v16385_v31  ;;  %v10147_v59 = vpop.f32.mrf.mxu1  ;;  %v16390_v37 = vld [vmem:[#allocation173_spill] sm:$0xff] }
 0x2b2   :  { %v14482_v39 = vadd.f32 %v10147_v59, %v14135_v41  ;;  %v5034_v1 = vpop.f32.mrf.mxu0 }
 0x2b3   :  { %v14485_v5 = vadd.f32 %v5034_v1, %v16387_v24  ;;  %v5289_v26 = vpop.f32.mrf.mxu1 }
 0x2b4   :  { %16386 = vst [vmem:[#allocation141_spill] sm:$0xff] %v14482_v39  ;;  %v14488_v52 = vadd.f32 %v5289_v26, %v16389_v13  ;;  %v10094_v56 = vpop.f32.mrf.mxu0  ;;  %v16394_v39 = vld [vmem:[#allocation136_spill] sm:$0xff] }
 0x2b5   :  { %16388 = vst [vmem:[#allocation181_spill] sm:$0xff] %v14485_v5  ;;  %v14491_v57 = vadd.f32 %v10094_v56, %v16390_v37  ;;  %v10150_v51 = vpop.f32.mrf.mxu1  ;;  %v16395_v5 = vld [vmem:[#allocation174_spill] sm:$0xff] }
 0x2b6   :  { %v14494_v31 = vadd.f32 %v10150_v51, %v14159_v38  ;;  %v5044_v54 = vpop.f32.mrf.mxu0 }
 0x2b7   :  { %16391 = vst [vmem:[#allocation73_spill] sm:$0xff] %v14491_v57  ;;  %v14497_v41 = vadd.f32 %v5044_v54, %v14166_v8  ;;  %v5299_v59 = vpop.f32.mrf.mxu1  ;;  %v16396_v57 = vld [vmem:[#allocation137_spill] sm:$0xff] }
 0x2b8   :  { %16392 = vst [vmem:[#allocation182_spill] sm:$0xff] %v14494_v31  ;;  %v14500_v24 = vadd.f32 %v5299_v59, %v16394_v39  ;;  %v10097_v1 = vpop.f32.mrf.mxu0  ;;  %v16397_v31 = vld [vmem:[#allocation175_spill] sm:$0xff] }
 0x2b9   :  { %16393 = vst [vmem:[#allocation74_spill] sm:$0xff] %v14497_v41  ;;  %v14503_v13 = vadd.f32 %v10097_v1, %v16395_v5  ;;  %v10153_v26 = vpop.f32.mrf.mxu1  ;;  %v16399_v41 = vld [vmem:[#allocation138_spill] sm:$0xff] }
 0x2ba   :  { %v14506_v37 = vadd.f32 %v10153_v26, %v14183_v42  ;;  %v5054_v56 = vpop.f32.mrf.mxu0 }
 0x2bb   :  { %v14509_v38 = vadd.f32 %v5054_v56, %v16396_v57  ;;  %v5309_v51 = vpop.f32.mrf.mxu1 }
 0x2bc   :  { %v14512_v8 = vadd.f32 %v5309_v51, %v16397_v31  ;;  %v10100_v54 = vpop.f32.mrf.mxu0 }
 0x2bd   :  { %v14515_v39 = vadd.f32 %v10100_v54, %v16399_v41  ;;  %v10156_v59 = vpop.f32.mrf.mxu1 }
 0x2be   :  { %16398 = vst [vmem:[#allocation183_spill] sm:$0xff] %v14512_v8  ;;  %v14518_v5 = vadd.f32 %v10156_v59, %v14207_v21  ;;  %v5064_v1 = vpop.f32.mrf.mxu0  ;;  %v15324_v8 = vmov 0.0   ;;  %v7744_v21 = vld [vmem:[%s15093_s3 + $0x18] sm:$0xff] }
 0x2bf   :  { %v14521_v42 = vadd.f32 %v5064_v1, %v14214_v4  ;;  %v5319_v26 = vpop.f32.mrf.mxu1  ;;  %10390 = vmatprep.subr.mxu0 %v15324_v8  ;;  %v16401_v1 = vld [vmem:[#allocation157_spill] sm:$0xff] }
 0x2c0   :  { %v14524_v57 = vadd.f32 %v5319_v26, %v14219_v20  ;;  %v10103_v56 = vpop.f32.mrf.mxu0  ;;  %10391 = vmatpush3.msra.mxu0 %v7744_v21  ;;  %v4803_v26 = vadd.f32 %v14257_v23, %v16401_v1 }
 0x2c1   :  { %v14527_v31 = vadd.f32 %v10103_v56, %v14223_v61  ;;  %v10159_v51 = vpop.f32.mrf.mxu1  ;;  %10392 = vmatprep.subr.mxu0 %v15324_v8 }
 0x2c2   :  { %v14534_v41 = vadd.f32 %v10159_v51, %v14231_v34  ;;  %v5074_v4 = vpop.f32.mrf.mxu0 }
 0x2c3   :  { %v14537_v20 = vadd.f32 %v5074_v4, %v14238_v6  ;;  %v5329_v54 = vpop.f32.mrf.mxu1 }
 0x2c4   :  { %v14541_v61 = vadd.f32 %v5329_v54, %v14243_v40  ;;  %v10106_v59 = vpop.f32.mrf.mxu0 }
 0x2c5   :  { %v14546_v56 = vadd.f32 %v10106_v59, %v14247_v25  ;;  %v10162_v34 = vpop.f32.mrf.mxu1 }
 0x2c6   :  { %16400 = vst [vmem:[#allocation75_spill] sm:$0xff] %v14541_v61  ;;  %v14549_v51 = vadd.f32 %v10162_v34, %v14255_v46  ;;  %v5084_v21 = vpop.f32.mrf.mxu0 }
 0x2c7   :  { %v14551_v6 = vadd.f32 %v5084_v21, %v4803_v26  ;;  %v5339_v4 = vpop.f32.mrf.mxu1 }
 0x2c8   :  { %v14554_v8 = vadd.f32 %v5339_v4, %v14266_v36  ;;  %v10109_v40 = vpop.f32.mrf.mxu0 }
 0x2c9   :  { %v14557_v54 = vadd.f32 %v10109_v40, %v14270_v14  ;;  %v10165_v61 = vpop.f32.mrf.mxu1 }
 0x2ca   :  { %v14560_v23 = vadd.f32 %v10165_v61, %v14278_v32  ;;  %v5094_v25 = vpop.f32.mrf.mxu0 }
 0x2cb   :  { %v14563_v59 = vadd.f32 %v5094_v25, %v14285_v49  ;;  %v5349_v46 = vpop.f32.mrf.mxu1 }
 0x2cc   :  { %v14566_v1 = vadd.f32 %v5349_v46, %v14290_v50  ;;  %v10170_v26 = vpop.f32.mrf.mxu0 }
 0x2cd   :  { %v14569_v36 = vadd.f32 %v10170_v26, %v14294_v16  ;;  %v10226_v34 = vpop.f32.mrf.mxu1 }
 0x2ce   :  { %v14572_v14 = vadd.f32 %v10226_v34, %v14302_v30  ;;  %v5647_v21 = vpop.f32.mrf.mxu0 }
 0x2cf   :  { %v14575_v32 = vadd.f32 %v5647_v21, %v14309_v53  ;;  %v6037_v61 = vpop.f32.mrf.mxu1 }
 0x2d0   :  { %v14578_v49 = vadd.f32 %v6037_v61, %v14314_v45  ;;  %v10173_v4 = vpop.f32.mrf.mxu0 }
 0x2d1   :  { %v14581_v50 = vadd.f32 %v10173_v4, %v14318_v48  ;;  %v10229_v40 = vpop.f32.mrf.mxu1 }
 0x2d2   :  { %v14584_v16 = vadd.f32 %v10229_v40, %v14326_v47  ;;  %v5657_v25 = vpop.f32.mrf.mxu0 }
 0x2d3   :  { %v14587_v30 = vadd.f32 %v5657_v25, %v14333_v0  ;;  %v6047_v46 = vpop.f32.mrf.mxu1 }
 0x2d4   :  { %v14590_v53 = vadd.f32 %v6047_v46, %v14338_v33  ;;  %v10176_v26 = vpop.f32.mrf.mxu0 }
 0x2d5   :  { %v14593_v45 = vadd.f32 %v10176_v26, %v14342_v3  ;;  %v10232_v34 = vpop.f32.mrf.mxu1 }
 0x2d6   :  { %v14596_v48 = vadd.f32 %v10232_v34, %v14350_v63  ;;  %v5667_v21 = vpop.f32.mrf.mxu0 }
 0x2d7   :  { %v14599_v47 = vadd.f32 %v5667_v21, %v14357_v19  ;;  %v6057_v61 = vpop.f32.mrf.mxu1 }
 0x2d8   :  { %v14602_v0 = vadd.f32 %v6057_v61, %v14362_v10  ;;  %v10179_v4 = vpop.f32.mrf.mxu0 }
 0x2d9   :  { %v14605_v33 = vadd.f32 %v10179_v4, %v14366_v43  ;;  %v10235_v40 = vpop.f32.mrf.mxu1  ;;  %v7743_v43 = vld [vmem:[%s15093_s3 + $0x10] sm:$0xff] }
 0x2da   :  { %v14608_v3 = vadd.f32 %v10235_v40, %v14373_v27  ;;  %v5677_v25 = vpop.f32.mrf.mxu0  ;;  %10393 = vmatpush3.msra.mxu0 %v7743_v43 }
 0x2db   :  { %v14611_v63 = vadd.f32 %v5677_v25, %v14380_v2  ;;  %v6067_v46 = vpop.f32.mrf.mxu1 }
 0x2dc   :  { %v14614_v19 = vadd.f32 %v6067_v46, %v14384_v15  ;;  %v10182_v26 = vpop.f32.mrf.mxu0  ;;  %v16402_v15 = vmov 0.0  }
 0x2dd   :  { %v14617_v10 = vadd.f32 %v10182_v26, %v14388_v44  ;;  %v10238_v34 = vpop.f32.mrf.mxu1  ;;  %10394 = vmatprep.subr.mxu0 %v16402_v15  ;;  %10398 = vmatprep.mubr.msk.f32.mxu0 %vm10411_vm7, %v16402_v15 }
 0x2de   :  { %v14623_v27 = vadd.f32 %v10238_v34, %v14394_v60  ;;  %v5687_v21 = vpop.f32.mrf.mxu0 }
 0x2df   :  { %v14626_v2 = vadd.f32 %v5687_v21, %v14399_v11  ;;  %v6077_v61 = vpop.f32.mrf.mxu1 }
 0x2e0   :  { %v14630_v4 = vadd.f32 %v6077_v61, %v14402_v18  ;;  %v10185_v44 = vpop.f32.mrf.mxu0 }
 0x2e1   :  { %v14633_v40 = vadd.f32 %v10185_v44, %v14406_v55  ;;  %v10241_v25 = vpop.f32.mrf.mxu1 }
 0x2e2   :  { %v14636_v46 = vadd.f32 %v10241_v25, %v14410_v28  ;;  %v5697_v60 = vpop.f32.mrf.mxu0 }
 0x2e3   :  { %v14639_v26 = vadd.f32 %v5697_v60, %v14413_v12  ;;  %v6087_v11 = vpop.f32.mrf.mxu1  ;;  %v16408_v60 = vld [vmem:[#allocation7_spill] sm:$0xff] }
 0x2e4   :  { %v14642_v34 = vadd.f32 %v6087_v11, %v14416_v22  ;;  %v10188_v43 = vpop.f32.mrf.mxu0 }
 0x2e5   :  { %v14645_v18 = vadd.f32 %v10188_v43, %v14419_v7  ;;  %v10244_v21 = vpop.f32.mrf.mxu1 }
 0x2e6   :  { %16403 = vst [vmem:[#allocation184_spill] sm:$0xff] %v14642_v34  ;;  %v14648_v55 = vadd.f32 %v10244_v21, %v14422_v9  ;;  %v5707_v61 = vpop.f32.mrf.mxu0  ;;  %v16410_v34 = vld [vmem:[#allocation11_spill] sm:$0xff] }
 0x2e7   :  { %16404 = vst [vmem:[#allocation142_spill] sm:$0xff] %v14645_v18  ;;  %v14651_v28 = vadd.f32 %v5707_v61, %v14425_v35  ;;  %v6097_v44 = vpop.f32.mrf.mxu1  ;;  %v16412_v18 = vld [vmem:[#allocation12_spill] sm:$0xff] }
 0x2e8   :  { %16405 = vst [vmem:[#allocation185_spill] sm:$0xff] %v14648_v55  ;;  %v14654_v12 = vadd.f32 %v6097_v44, %v14428_v17  ;;  %v10191_v25 = vpop.f32.mrf.mxu0  ;;  %v16414_v55 = vld [vmem:[#allocation13_spill] sm:$0xff] }
 0x2e9   :  { %16406 = vst [vmem:[#allocation76_spill] sm:$0xff] %v14651_v28  ;;  %v14657_v22 = vadd.f32 %v10191_v25, %v16408_v60  ;;  %v10247_v11 = vpop.f32.mrf.mxu1  ;;  %v16416_v28 = vld [vmem:[#allocation15_spill] sm:$0xff] }
 0x2ea   :  { %16407 = vst [vmem:[#allocation186_spill] sm:$0xff] %v14654_v12  ;;  %v14660_v7 = vadd.f32 %v10247_v11, %v16410_v34  ;;  %v5717_v43 = vpop.f32.mrf.mxu0  ;;  %v16418_v12 = vld [vmem:[#allocation139_spill] sm:$0xff] }
 0x2eb   :  { %16409 = vst [vmem:[#allocation77_spill] sm:$0xff] %v14657_v22  ;;  %v14663_v9 = vadd.f32 %v5717_v43, %v16412_v18  ;;  %v6107_v21 = vpop.f32.mrf.mxu1  ;;  %v16419_v22 = vld [vmem:[#allocation176_spill] sm:$0xff] }
 0x2ec   :  { %16411 = vst [vmem:[#allocation187_spill] sm:$0xff] %v14660_v7  ;;  %v14666_v35 = vadd.f32 %v6107_v21, %v16414_v55  ;;  %v10194_v61 = vpop.f32.mrf.mxu0  ;;  %v16421_v7 = vld [vmem:[#allocation177_spill] sm:$0xff] }
 0x2ed   :  { %16413 = vst [vmem:[#allocation78_spill] sm:$0xff] %v14663_v9  ;;  %v14669_v17 = vadd.f32 %v10194_v61, %v16416_v28  ;;  %v10250_v44 = vpop.f32.mrf.mxu1  ;;  %v16422_v9 = vld [vmem:[#allocation140_spill] sm:$0xff] }
 0x2ee   :  { %16415 = vst [vmem:[#allocation188_spill] sm:$0xff] %v14666_v35  ;;  %v14672_v25 = vadd.f32 %v10250_v44, %v16418_v12  ;;  %v5727_v60 = vpop.f32.mrf.mxu0  ;;  %v16423_v35 = vld [vmem:[#allocation178_spill] sm:$0xff] }
 0x2ef   :  { %16417 = vst [vmem:[#allocation143_spill] sm:$0xff] %v14669_v17  ;;  %v14675_v34 = vadd.f32 %v5727_v60, %v16419_v22  ;;  %v6117_v11 = vpop.f32.mrf.mxu1  ;;  %v16424_v17 = vld [vmem:[#allocation71_spill] sm:$0xff] }
 0x2f0   :  { %v14678_v18 = vadd.f32 %v6117_v11, %v16421_v7  ;;  %v10197_v43 = vpop.f32.mrf.mxu0 }
 0x2f1   :  { %16420 = vst [vmem:[#allocation189_spill] sm:$0xff] %v14675_v34  ;;  %v14681_v55 = vadd.f32 %v10197_v43, %v16422_v9  ;;  %v10253_v21 = vpop.f32.mrf.mxu1  ;;  %v16427_v34 = vld [vmem:[#allocation179_spill] sm:$0xff]  ;;  %v16429_v43 = vld [vmem:[#allocation72_spill] sm:$0xff] }
 0x2f2   :  { %v14684_v28 = vadd.f32 %v10253_v21, %v16423_v35  ;;  %v5737_v61 = vpop.f32.mrf.mxu0  ;;  %v7742_v9 = vld [vmem:[%s15093_s3 + $0x8] sm:$0xff] }
 0x2f3   :  { %v14687_v12 = vadd.f32 %v5737_v61, %v16424_v17  ;;  %v6127_v44 = vpop.f32.mrf.mxu1  ;;  %10395 = vmatpush3.msra.mxu0 %v7742_v9  ;;  %v16431_v17 = vld [vmem:[#allocation180_spill] sm:$0xff] }
 0x2f4   :  { %v14690_v22 = vadd.f32 %v6127_v44, %v14464_v62  ;;  %v10200_v60 = vpop.f32.mrf.mxu0  ;;  %10396 = vmatprep.subr.mxu0 %v16402_v15 }
 0x2f5   :  { %16425 = vst [vmem:[#allocation144_spill] sm:$0xff] %v14687_v12  ;;  %v14693_v7 = vadd.f32 %v10200_v60, %v16427_v34  ;;  %v10256_v11 = vpop.f32.mrf.mxu1 }
 0x2f6   :  { %16426 = vst [vmem:[#allocation190_spill] sm:$0xff] %v14690_v22  ;;  %v14699_v35 = vadd.f32 %v10256_v11, %v16429_v43  ;;  %v5747_v21 = vpop.f32.mrf.mxu0  ;;  %v16436_v43 = vld [vmem:[#allocation181_spill] sm:$0xff] }
 0x2f7   :  { %16428 = vst [vmem:[#allocation79_spill] sm:$0xff] %v14693_v7  ;;  %v14702_v61 = vadd.f32 %v5747_v21, %v16431_v17  ;;  %v6137_v12 = vpop.f32.mrf.mxu1  ;;  %v16435_v7 = vld [vmem:[#allocation141_spill] sm:$0xff] }
 0x2f8   :  { %16430 = vst [vmem:[#allocation191_spill] sm:$0xff] %v14699_v35  ;;  %v14706_v62 = vadd.f32 %v6137_v12, %v14476_v58  ;;  %v10203_v34 = vpop.f32.mrf.mxu0  ;;  %v16437_v35 = vld [vmem:[#allocation73_spill] sm:$0xff] }
 0x2f9   :  { %16432 = vst [vmem:[#allocation47_spill] sm:$0xff] %v14702_v61  ;;  %v14709_v44 = vadd.f32 %v10203_v34, %v14479_v29  ;;  %v10259_v60 = vpop.f32.mrf.mxu1 }
 0x2fa   :  { %16433 = vst [vmem:[#allocation80_spill] sm:$0xff] %v14706_v62  ;;  %v14712_v22 = vadd.f32 %v10259_v60, %v16435_v7  ;;  %v5757_v11 = vpop.f32.mrf.mxu0  ;;  %v16438_v62 = vld [vmem:[#allocation182_spill] sm:$0xff] }
 0x2fb   :  { %16434 = vst [vmem:[#allocation81_spill] sm:$0xff] %v14709_v44  ;;  %v14715_v9 = vadd.f32 %v5757_v11, %v16436_v43  ;;  %v6147_v21 = vpop.f32.mrf.mxu1  ;;  %v16440_v44 = vld [vmem:[#allocation74_spill] sm:$0xff] }
 0x2fc   :  { %v14718_v17 = vadd.f32 %v6147_v21, %v14488_v52  ;;  %v10206_v61 = vpop.f32.mrf.mxu0 }
 0x2fd   :  { %v14721_v58 = vadd.f32 %v10206_v61, %v16437_v35  ;;  %v10262_v12 = vpop.f32.mrf.mxu1 }
 0x2fe   :  { %v14724_v29 = vadd.f32 %v10262_v12, %v16438_v62  ;;  %v5767_v34 = vpop.f32.mrf.mxu0 }
 0x2ff   :  { %v14727_v7 = vadd.f32 %v5767_v34, %v16440_v44  ;;  %v6157_v60 = vpop.f32.mrf.mxu1 }
 0x300   :  { %16439 = vst [vmem:[#allocation82_spill] sm:$0xff] %v14724_v29  ;;  %v14730_v11 = vadd.f32 %v6157_v60, %v14500_v24  ;;  %v10209_v43 = vpop.f32.mrf.mxu0  ;;  %v16441_v29 = vld [vmem:[#allocation183_spill] sm:$0xff] }
 0x301   :  { %v14733_v52 = vadd.f32 %v10209_v43, %v14503_v13  ;;  %v10265_v21 = vpop.f32.mrf.mxu1 }
 0x302   :  { %v14736_v35 = vadd.f32 %v10265_v21, %v14506_v37  ;;  %v5777_v61 = vpop.f32.mrf.mxu0 }
 0x303   :  { %v14739_v62 = vadd.f32 %v5777_v61, %v14509_v38  ;;  %v6167_v12 = vpop.f32.mrf.mxu1 }
 0x304   :  { %v14742_v44 = vadd.f32 %v6167_v12, %v16441_v29  ;;  %v10212_v34 = vpop.f32.mrf.mxu0 }
 0x305   :  { %v14745_v24 = vadd.f32 %v10212_v34, %v14515_v39  ;;  %v10268_v60 = vpop.f32.mrf.mxu1 }
 0x306   :  { %v14748_v13 = vadd.f32 %v10268_v60, %v14518_v5  ;;  %v5787_v43 = vpop.f32.mrf.mxu0 }
 0x307   :  { %v14751_v37 = vadd.f32 %v5787_v43, %v14521_v42  ;;  %v6177_v21 = vpop.f32.mrf.mxu1 }
 0x308   :  { %16442 = vst [vmem:[#allocation83_spill] sm:$0xff] %v14748_v13  ;;  %v14754_v38 = vadd.f32 %v6177_v21, %v14524_v57  ;;  %v10215_v61 = vpop.f32.mrf.mxu0  ;;  %v16444_v13 = vld [vmem:[#allocation75_spill] sm:$0xff] }
 0x309   :  { %v14757_v29 = vadd.f32 %v10215_v61, %v14527_v31  ;;  %v10271_v12 = vpop.f32.mrf.mxu1 }
 0x30a   :  { %v14760_v39 = vadd.f32 %v10271_v12, %v14534_v41  ;;  %v5797_v34 = vpop.f32.mrf.mxu0 }
 0x30b   :  { %v14763_v5 = vadd.f32 %v5797_v34, %v14537_v20  ;;  %v6187_v60 = vpop.f32.mrf.mxu1 }
 0x30c   :  { %v14766_v42 = vadd.f32 %v6187_v60, %v16444_v13  ;;  %v10218_v43 = vpop.f32.mrf.mxu0 }
 0x30d   :  { %16443 = vst [vmem:[#allocation87_spill] sm:$0xff] %v14763_v5  ;;  %v14769_v57 = vadd.f32 %v10218_v43, %v14546_v56  ;;  %v10274_v21 = vpop.f32.mrf.mxu1 }
 0x30e   :  { %16445 = vst [vmem:[#allocation55_spill] sm:$0xff] %v14766_v42  ;;  %v14772_v31 = vadd.f32 %v10274_v21, %v14549_v51  ;;  %v5807_v61 = vpop.f32.mrf.mxu0 }
 0x30f   :  { %16446 = vst [vmem:[#allocation56_spill] sm:$0xff] %v14769_v57  ;;  %v14775_v41 = vadd.f32 %v5807_v61, %v14551_v6  ;;  %v6197_v12 = vpop.f32.mrf.mxu1 }
 0x310   :  { %16447 = vst [vmem:[#allocation86_spill] sm:$0xff] %v14772_v31  ;;  %v14778_v20 = vadd.f32 %v6197_v12, %v14554_v8  ;;  %v10221_v34 = vpop.f32.mrf.mxu0  ;;  %v7336_v31 = vpop.permute.xlu0 %7335  ;;  %v14795_v8 = vld [vmem:[%s15094_s2] ss:$0 sm:$0xff] }
 0x311   :  { %16448 = vst [vmem:[#allocation60_spill] sm:$0xff] %v14775_v41  ;;  %v14781_v13 = vadd.f32 %v10221_v34, %v14557_v54  ;;  %v10277_v60 = vpop.f32.mrf.mxu1  ;;  %v7741_v54 = vld [vmem:[%s15093_s3] sm:$0xff] }
 0x312   :  { %16449 = vst [vmem:[#allocation61_spill] sm:$0xff] %v14778_v20  ;;  %v14784_v56 = vadd.f32 %v10277_v60, %v14560_v23  ;;  %v5817_v43 = vpop.f32.mrf.mxu0  ;;  %10397 = vmatpush3.msra.mxu0 %v7741_v54 }
 0x313   :  { %16450 = vst [vmem:[#allocation63_spill] sm:$0xff] %v14781_v13  ;;  %v14787_v51 = vadd.f32 %v5817_v43, %v14563_v59  ;;  %v6207_v21 = vpop.f32.mrf.mxu1  ;;  %v7346_v59 = vpop.permute.xlu1 %7345 }
 0x314   :  { %16451 = vst [vmem:[#allocation64_spill] sm:$0xff] %v14784_v56  ;;  %v14790_v6 = vadd.f32 %v6207_v21, %v14566_v1  ;;  %v10282_v61 = vpop.f32.mrf.mxu0  ;;  %v7341_v13 = vpop.permute.xlu0 %7340 }
 0x315   :  { %16452 = vst [vmem:[#allocation69_spill] sm:$0xff] %v14787_v51  ;;  %v7075_v23 = vadd.f32 %v10282_v61, %v14569_v36  ;;  %v10338_v12 = vpop.f32.mrf.mxu1 }
 0x316   :  { %16453 = vst [vmem:[#allocation70_spill] sm:$0xff] %v14790_v6  ;;  %v7111_v1 = vadd.f32 %v10338_v12, %v14572_v14  ;;  %v6505_v34 = vpop.f32.mrf.mxu0 }
 0x317   :  { %v7154_v60 = vadd.f32 %v14795_v8, %v7075_v23  ;;  %v7074_v43 = vadd.f32 %v6505_v34, %v14575_v32  ;;  %v6895_v21 = vpop.f32.mrf.mxu1 }
 0x318   :  { %v7190_v6 = vadd.f32 %v14795_v8, %v7111_v1  ;;  %v7110_v51 = vadd.f32 %v6895_v21, %v14578_v49  ;;  %v10285_v56 = vpop.f32.mrf.mxu0  ;;  %v7351_v21 = vpop.permute.xlu1 %7350 }
 0x319   :  { %v7226_v36 = vmax.f32 %v7154_v60, 0.0  ;;  %v7153_v61 = vadd.f32 %v14795_v8, %v7074_v43  ;;  %v7077_v54 = vadd.f32 %v10285_v56, %v14581_v50  ;;  %v10341_v15 = vpop.f32.mrf.mxu1 }
 0x31a   :  { %v7262_v14 = vmax.f32 %v7190_v6, 0.0  ;;  %v7189_v12 = vadd.f32 %v14795_v8, %v7110_v51  ;;  %v7113_v23 = vadd.f32 %v10341_v15, %v14584_v16  ;;  %v6515_v32 = vpop.f32.mrf.mxu0 }
 0x31b   :  { %v7514_v34 = vmul.f32 %v7341_v13, %v7226_v36  ;;  %v7225_v20 = vmax.f32 %v7153_v61, 0.0  ;;  %v7156_v1 = vadd.f32 %v14795_v8, %v7077_v54  ;;  %v7076_v49 = vadd.f32 %v6515_v32, %v14587_v30  ;;  %v6905_v60 = vpop.f32.mrf.mxu1 }
 0x31c   :  { %v7550_v43 = vmul.f32 %v7341_v13, %v7262_v14  ;;  %v7261_v41 = vmax.f32 %v7189_v12, 0.0  ;;  %v7192_v50 = vadd.f32 %v14795_v8, %v7113_v23  ;;  %v7112_v56 = vadd.f32 %v6905_v60, %v14590_v53  ;;  %v10288_v6 = vpop.f32.mrf.mxu0 }
 0x31d   :  { %v7587_v51 = vsel %vm7585_vm8, %v7514_v34, 0.0  ;;  %v7513_v57 = vmul.f32 %v7336_v31, %v7225_v20  ;;  %v7228_v16 = vmax.f32 %v7156_v1, 0.0  ;;  %v7155_v36 = vadd.f32 %v14795_v8, %v7076_v49  ;;  %v10344_v61 = vpop.f32.mrf.mxu1 }
 0x31e   :  { %v7665_v54 = vsel %vm7585_vm8, %v7550_v43, 0.0  ;;  %v7549_v15 = vmul.f32 %v7336_v31, %v7261_v41  ;;  %v7264_v30 = vmax.f32 %v7192_v50, 0.0  ;;  %v7191_v32 = vadd.f32 %v14795_v8, %v7112_v56  ;;  %v6525_v13 = vpop.f32.mrf.mxu0  ;;  %v7361_v56 = vpop.permute.xlu1 %7360 }
 0x31f   :  { %v7586_v14 = vsel %vm7585_vm8, %v7513_v57, 0.0  ;;  %v7516_v12 = vmul.f32 %v7351_v21, %v7228_v16  ;;  %v7227_v23 = vmax.f32 %v7155_v36, 0.0  ;;  %v7079_v53 = vadd.f32 %v10288_v6, %v14593_v45  ;;  %v6915_v60 = vpop.f32.mrf.mxu1 }
 0x320   :  { %v7588_v34 = vadd.f32 %v7587_v51, %v7586_v14  ;;  %v7664_v20 = vsel %vm7585_vm8, %v7549_v15, 0.0  ;;  %v7552_v1 = vmul.f32 %v7351_v21, %v7264_v30  ;;  %v7263_v49 = vmax.f32 %v7191_v32, 0.0  ;;  %v10291_v42 = vpop.f32.mrf.mxu0 }
 0x321   :  { %v7666_v5 = vadd.f32 %v7665_v54, %v7664_v20  ;;  %v7591_v31 = vsel %vm7585_vm8, %v7516_v12, 0.0  ;;  %v7515_v41 = vmul.f32 %v7346_v59, %v7227_v23  ;;  %v7158_v43 = vadd.f32 %v14795_v8, %v7079_v53  ;;  %v10347_v50 = vpop.f32.mrf.mxu1  ;;  %v7356_v20 = vpop.permute.xlu0 %7355 }
 0x322   :  { %v7669_v57 = vsel %vm7585_vm8, %v7552_v1, 0.0  ;;  %v7551_v16 = vmul.f32 %v7346_v59, %v7263_v49  ;;  %v7115_v45 = vadd.f32 %v10344_v61, %v14596_v48  ;;  %v7078_v6 = vadd.f32 %v6525_v13, %v14599_v47  ;;  %v6535_v51 = vpop.f32.mrf.mxu0 }
 0x323   :  { %v7589_v21 = vsel %vm7585_vm8, %v7515_v41, 0.0  ;;  %v7230_v36 = vmax.f32 %v7158_v43, 0.0  ;;  %v7114_v54 = vadd.f32 %v6915_v60, %v14602_v0  ;;  %v7081_v15 = vadd.f32 %v10291_v42, %v14605_v33  ;;  %v6925_v30 = vpop.f32.mrf.mxu1 }
 0x324   :  { %v7590_v32 = vadd.f32 %v7589_v21, %v7588_v34  ;;  %v7667_v14 = vsel %vm7585_vm8, %v7551_v16, 0.0  ;;  %v7194_v12 = vadd.f32 %v14795_v8, %v7115_v45  ;;  %v7157_v59 = vadd.f32 %v14795_v8, %v7078_v6  ;;  %v10294_v23 = vpop.f32.mrf.mxu0  ;;  %v7371_v16 = vpop.permute.xlu1 %7370 }
 0x325   :  { %v7668_v48 = vadd.f32 %v7667_v14, %v7666_v5  ;;  %v7518_v61 = vmul.f32 %v7361_v56, %v7230_v36  ;;  %v7193_v47 = vadd.f32 %v14795_v8, %v7114_v54  ;;  %v7160_v13 = vadd.f32 %v14795_v8, %v7081_v15  ;;  %v10350_v53 = vpop.f32.mrf.mxu1 }
 0x326   :  { %v7266_v0 = vmax.f32 %v7194_v12, 0.0  ;;  %v7229_v60 = vmax.f32 %v7157_v59, 0.0  ;;  %v7592_v33 = vadd.f32 %v7591_v31, %v7590_v32  ;;  %v7117_v42 = vadd.f32 %v10347_v50, %v14608_v3  ;;  %v6545_v34 = vpop.f32.mrf.mxu0 }
 0x327   :  { %v7265_v1 = vmax.f32 %v7193_v47, 0.0  ;;  %v7670_v49 = vadd.f32 %v7669_v57, %v7668_v48  ;;  %v7232_v41 = vmax.f32 %v7160_v13, 0.0  ;;  %v6935_v43 = vpop.f32.mrf.mxu1  ;;  %v7080_v21 = vadd.f32 %v6535_v51, %v14611_v63 }
 0x328   :  { %v7554_v45 = vmul.f32 %v7361_v56, %v7266_v0  ;;  %v7517_v5 = vmul.f32 %v7356_v20, %v7229_v60  ;;  %v7196_v6 = vadd.f32 %v14795_v8, %v7117_v42  ;;  %v10297_v36 = vpop.f32.mrf.mxu0  ;;  %v7116_v14 = vadd.f32 %v6925_v30, %v14614_v19  ;;  %v7366_v19 = vpop.permute.xlu0 %7365 }
 0x329   :  { %v7553_v54 = vmul.f32 %v7356_v20, %v7265_v1  ;;  %v7520_v15 = vmul.f32 %v7371_v16, %v7232_v41  ;;  %v7083_v31 = vadd.f32 %v10294_v23, %v14617_v10  ;;  %v10353_v3 = vpop.f32.mrf.mxu1  ;;  %v7595_v50 = vsel %vm7585_vm8, %v7518_v61, 0.0 }
 0x32a   :  { %v7593_v57 = vsel %vm7585_vm8, %v7517_v5, 0.0  ;;  %v7268_v32 = vmax.f32 %v7196_v6, 0.0  ;;  %v7159_v56 = vadd.f32 %v14795_v8, %v7080_v21  ;;  %v6555_v12 = vpop.f32.mrf.mxu0  ;;  %v7673_v59 = vsel %vm7585_vm8, %v7554_v45, 0.0  ;;  %v7381_v21 = vpop.permute.xlu1 %7380 }
 0x32b   :  { %v7594_v48 = vadd.f32 %v7593_v57, %v7592_v33  ;;  %v7671_v63 = vsel %vm7585_vm8, %v7553_v54, 0.0  ;;  %v7195_v51 = vadd.f32 %v14795_v8, %v7116_v14  ;;  %v6945_v47 = vpop.f32.mrf.mxu1  ;;  %v7599_v10 = vsel %vm7585_vm8, %v7520_v15, 0.0 }
 0x32c   :  { %v7672_v30 = vadd.f32 %v7671_v63, %v7670_v49  ;;  %v7231_v23 = vmax.f32 %v7159_v56, 0.0  ;;  %v7162_v61 = vadd.f32 %v14795_v8, %v7083_v31  ;;  %v10300_v13 = vpop.f32.mrf.mxu0  ;;  %v7119_v60 = vadd.f32 %v10350_v53, %v14623_v27 }
 0x32d   :  { %v7596_v20 = vadd.f32 %v7595_v50, %v7594_v48  ;;  %v7267_v0 = vmax.f32 %v7195_v51, 0.0  ;;  %v7082_v42 = vadd.f32 %v6545_v34, %v14626_v2  ;;  %v10356_v33 = vpop.f32.mrf.mxu1  ;;  %v7556_v1 = vmul.f32 %v7371_v16, %v7268_v32  ;;  %v7376_v48 = vpop.permute.xlu0 %7375 }
 0x32e   :  { %v7519_v41 = vmul.f32 %v7366_v19, %v7231_v23  ;;  %v7674_v45 = vadd.f32 %v7673_v59, %v7672_v30  ;;  %v7234_v5 = vmax.f32 %v7162_v61, 0.0  ;;  %v6565_v6 = vpop.f32.mrf.mxu0  ;;  %v7198_v54 = vadd.f32 %v14795_v8, %v7119_v60 }
 0x32f   :  { %v7555_v49 = vmul.f32 %v7366_v19, %v7267_v0  ;;  %v7161_v15 = vadd.f32 %v14795_v8, %v7082_v42  ;;  %v7118_v14 = vadd.f32 %v6935_v43, %v14630_v4  ;;  %v6955_v31 = vpop.f32.mrf.mxu1  ;;  %v7085_v2 = vadd.f32 %v10297_v36, %v14633_v40  ;;  %v7391_v42 = vpop.permute.xlu1 %7390 }
 0x330   :  { %v7597_v50 = vsel %vm7585_vm8, %v7519_v41, 0.0  ;;  %v7522_v27 = vmul.f32 %v7381_v21, %v7234_v5  ;;  %v7121_v53 = vadd.f32 %v10353_v3, %v14636_v46  ;;  %v10303_v34 = vpop.f32.mrf.mxu0  ;;  %v7270_v32 = vmax.f32 %v7198_v54, 0.0  ;;  %v16454_v5 = vld [vmem:[#allocation184_spill] sm:$0xff] }
 0x331   :  { %v7598_v16 = vadd.f32 %v7597_v50, %v7596_v20  ;;  %v7675_v57 = vsel %vm7585_vm8, %v7555_v49, 0.0  ;;  %v7233_v56 = vmax.f32 %v7161_v15, 0.0  ;;  %v14857_v59 = vpop.f32.mrf.mxu1  ;;  %v7677_v63 = vsel %vm7585_vm8, %v7556_v1, 0.0 }
 0x332   :  { %v7676_v4 = vadd.f32 %v7675_v57, %v7674_v45  ;;  %v7197_v43 = vadd.f32 %v14795_v8, %v7118_v14  ;;  %v7164_v51 = vadd.f32 %v14795_v8, %v7085_v2  ;;  %v14862_v19 = vpop.f32.mrf.mxu0  ;;  %v7558_v40 = vmul.f32 %v7381_v21, %v7270_v32  ;;  %v16455_v2 = vld [vmem:[#allocation142_spill] sm:$0xff] }
 0x333   :  { %v7521_v46 = vmul.f32 %v7376_v48, %v7233_v56  ;;  %v7600_v36 = vadd.f32 %v7599_v10, %v7598_v16  ;;  %v7200_v3 = vadd.f32 %v14795_v8, %v7121_v53  ;;  %v14865_v30 = vpop.f32.mrf.mxu1  ;;  %v7084_v0 = vadd.f32 %v6555_v12, %v14639_v26  ;;  %v16456_v53 = vld [vmem:[#allocation185_spill] sm:$0xff] }
 0x334   :  { %v7269_v23 = vmax.f32 %v7197_v43, 0.0  ;;  %v7678_v61 = vadd.f32 %v7677_v63, %v7676_v4  ;;  %v7236_v20 = vmax.f32 %v7164_v51, 0.0  ;;  %v14868_v60 = vpop.f32.mrf.mxu0  ;;  %v7603_v1 = vsel %vm7585_vm8, %v7522_v27, 0.0 }
 0x335   :  { %v7601_v41 = vsel %vm7585_vm8, %v7521_v46, 0.0  ;;  %v7272_v45 = vmax.f32 %v7200_v3, 0.0  ;;  %v7120_v21 = vadd.f32 %v6945_v47, %v16454_v5  ;;  %v14873_v10 = vpop.f32.mrf.mxu1  ;;  %v7163_v14 = vadd.f32 %v14795_v8, %v7084_v0  ;;  %v7386_v47 = vpop.permute.xlu0 %7385  ;;  %v16457_v3 = vld [vmem:[#allocation76_spill] sm:$0xff]  ;;  %v16459_v5 = vld [vmem:[#allocation77_spill] sm:$0xff] }
 0x336   :  { %v7602_v49 = vadd.f32 %v7601_v41, %v7600_v36  ;;  %v7557_v54 = vmul.f32 %v7376_v48, %v7269_v23  ;;  %v7524_v15 = vmul.f32 %v7391_v42, %v7236_v20  ;;  %v14876_v50 = vpop.f32.mrf.mxu0  ;;  %v7681_v26 = vsel %vm7585_vm8, %v7558_v40, 0.0  ;;  %v16458_v20 = vld [vmem:[#allocation186_spill] sm:$0xff] }
 0x337   :  { %v7199_v12 = vadd.f32 %v14795_v8, %v7120_v21  ;;  %v7087_v27 = vadd.f32 %v10300_v13, %v16455_v2  ;;  %v7123_v16 = vadd.f32 %v10356_v33, %v16456_v53  ;;  %v14882_v57 = vpop.f32.mrf.mxu1  ;;  %v7560_v56 = vmul.f32 %v7391_v42, %v7272_v45 }
 0x338   :  { %v7679_v32 = vsel %vm7585_vm8, %v7557_v54, 0.0  ;;  %v7235_v48 = vmax.f32 %v7163_v14, 0.0  ;;  %v7604_v63 = vadd.f32 %v7603_v1, %v7602_v49  ;;  %v14885_v4 = vpop.f32.mrf.mxu0  ;;  %v7607_v51 = vsel %vm7585_vm8, %v7524_v15, 0.0  ;;  %v7401_v1 = vpop.permute.xlu1 %7400 }
 0x339   :  { %v7680_v43 = vadd.f32 %v7679_v32, %v7678_v61  ;;  %v7271_v40 = vmax.f32 %v7199_v12, 0.0  ;;  %v7166_v46 = vadd.f32 %v14795_v8, %v7087_v27  ;;  %v14889_v36 = vpop.f32.mrf.mxu1  ;;  %v7202_v33 = vadd.f32 %v14795_v8, %v7123_v16 }
 0x33a   :  { %v7523_v13 = vmul.f32 %v7386_v47, %v7235_v48  ;;  %v7086_v23 = vadd.f32 %v6565_v6, %v16457_v3  ;;  %v7122_v0 = vadd.f32 %v6955_v31, %v16458_v20  ;;  %v14894_v42 = vpop.f32.mrf.mxu0  ;;  %v7089_v21 = vadd.f32 %v10303_v34, %v16459_v5  ;;  %v7396_v34 = vpop.permute.xlu0 %7395 }
 0x33b   :  { %v7559_v41 = vmul.f32 %v7386_v47, %v7271_v40  ;;  %v7682_v45 = vadd.f32 %v7681_v26, %v7680_v43  ;;  %v7238_v61 = vmax.f32 %v7166_v46, 0.0  ;;  %v14897_v49 = vpop.f32.mrf.mxu1  ;;  %v7274_v15 = vmax.f32 %v7202_v33, 0.0 }
 0x33c   :  { %v7605_v54 = vsel %vm7585_vm8, %v7523_v13, 0.0  ;;  %v7165_v14 = vadd.f32 %v14795_v8, %v7086_v23  ;;  %v7201_v12 = vadd.f32 %v14795_v8, %v7122_v0  ;;  %v14902_v6 = vpop.f32.mrf.mxu0  ;;  %v7168_v26 = vadd.f32 %v14795_v8, %v7089_v21  ;;  %v16460_v13 = vld [vmem:[#allocation187_spill] sm:$0xff] }
 0x33d   :  { %v7606_v31 = vadd.f32 %v7605_v54, %v7604_v63  ;;  %v7683_v2 = vsel %vm7585_vm8, %v7559_v41, 0.0  ;;  %v7526_v27 = vmul.f32 %v7401_v1, %v7238_v61  ;;  %v14906_v53 = vpop.f32.mrf.mxu1  ;;  %v7562_v47 = vmul.f32 %v7401_v1, %v7274_v15  ;;  %v7411_v41 = vpop.permute.xlu1 %7410  ;;  %v16461_v61 = vld [vmem:[#allocation78_spill] sm:$0xff]  ;;  %v16463_v15 = vld [vmem:[#allocation143_spill] sm:$0xff] }
 0x33e   :  { %v7684_v16 = vadd.f32 %v7683_v2, %v7682_v45  ;;  %v7237_v32 = vmax.f32 %v7165_v14, 0.0  ;;  %v7273_v48 = vmax.f32 %v7201_v12, 0.0  ;;  %v7685_v43 = vsel %vm7585_vm8, %v7560_v56, 0.0  ;;  %v14912_v0 = vpop.f32.mrf.mxu0 }
 0x33f   :  { %v7608_v40 = vadd.f32 %v7607_v51, %v7606_v31  ;;  %v7240_v46 = vmax.f32 %v7168_v26, 0.0  ;;  %v7125_v33 = vadd.f32 %v14857_v59, %v16460_v13  ;;  %v7611_v63 = vsel %vm7585_vm8, %v7526_v27, 0.0  ;;  %v16462_v51 = vld [vmem:[#allocation188_spill] sm:$0xff]  ;;  %v14920_v21 = vpop.f32.mrf.mxu1  ;;  %v16464_v13 = vld [vmem:[#allocation189_spill] sm:$0xff] }
 0x340   :  { %v7525_v3 = vmul.f32 %v7396_v34, %v7237_v32  ;;  %v7561_v23 = vmul.f32 %v7396_v34, %v7273_v48  ;;  %v7686_v20 = vadd.f32 %v7685_v43, %v7684_v16  ;;  %v7689_v45 = vsel %vm7585_vm8, %v7562_v47, 0.0  ;;  %v14932_v32 = vpop.f32.mrf.mxu0 }
 0x341   :  { %v7204_v1 = vadd.f32 %v14795_v8, %v7125_v33  ;;  %v7088_v56 = vadd.f32 %v14862_v19, %v16461_v61  ;;  %v7124_v5 = vadd.f32 %v14865_v30, %v16462_v51  ;;  %v7091_v14 = vadd.f32 %v14868_v60, %v16463_v15  ;;  %v7406_v19 = vpop.permute.xlu0 %7405 }
 0x342   :  { %v7609_v59 = vsel %vm7585_vm8, %v7525_v3, 0.0  ;;  %v7687_v54 = vsel %vm7585_vm8, %v7561_v23, 0.0  ;;  %v7127_v12 = vadd.f32 %v14873_v10, %v14672_v25  ;;  %v7528_v27 = vmul.f32 %v7411_v41, %v7240_v46  ;;  %v14936_v10 = vpop.f32.mrf.mxu1  ;;  %v7421_v23 = vpop.permute.xlu1 %7420 }
 0x343   :  { %v7610_v31 = vadd.f32 %v7609_v59, %v7608_v40  ;;  %v7688_v2 = vadd.f32 %v7687_v54, %v7686_v20  ;;  %v7276_v26 = vmax.f32 %v7204_v1, 0.0  ;;  %v7167_v34 = vadd.f32 %v14795_v8, %v7088_v56  ;;  %v14945_v51 = vpop.f32.mrf.mxu0 }
 0x344   :  { %v7203_v30 = vadd.f32 %v14795_v8, %v7124_v5  ;;  %v7170_v16 = vadd.f32 %v14795_v8, %v7091_v14  ;;  %v7206_v47 = vadd.f32 %v14795_v8, %v7127_v12  ;;  %v7090_v25 = vadd.f32 %v14876_v50, %v16464_v13  ;;  %v14951_v14 = vpop.f32.mrf.mxu1 }
 0x345   :  { %v7564_v48 = vmul.f32 %v7411_v41, %v7276_v26  ;;  %v7612_v60 = vadd.f32 %v7611_v63, %v7610_v31  ;;  %v7690_v43 = vadd.f32 %v7689_v45, %v7688_v2  ;;  %v7239_v40 = vmax.f32 %v7167_v34, 0.0 }
 0x346   :  { %v7275_v46 = vmax.f32 %v7203_v30, 0.0  ;;  %v7242_v33 = vmax.f32 %v7170_v16, 0.0  ;;  %v7278_v3 = vmax.f32 %v7206_v47, 0.0  ;;  %v7615_v20 = vsel %vm7585_vm8, %v7528_v27, 0.0  ;;  %v16465_v30 = vld [vmem:[#allocation144_spill] sm:$0xff]  ;;  %v14961_v47 = vpop.f32.mrf.mxu0 }
 0x347   :  { %v7169_v1 = vadd.f32 %v14795_v8, %v7090_v25  ;;  %v7126_v61 = vadd.f32 %v14882_v57, %v14678_v18  ;;  %v7093_v63 = vadd.f32 %v14885_v4, %v14681_v55  ;;  %v7693_v41 = vsel %vm7585_vm8, %v7564_v48, 0.0  ;;  %v7416_v18 = vpop.permute.xlu0 %7415  ;;  %v7431_v48 = vpop.permute.xlu1 %7430 }
 0x348   :  { %v7527_v50 = vmul.f32 %v7406_v19, %v7239_v40  ;;  %v7563_v45 = vmul.f32 %v7406_v19, %v7275_v46  ;;  %v7530_v56 = vmul.f32 %v7421_v23, %v7242_v33  ;;  %v7129_v15 = vadd.f32 %v14889_v36, %v14684_v28  ;;  %v16466_v36 = vld [vmem:[#allocation190_spill] sm:$0xff] }
 0x349   :  { %v7241_v5 = vmax.f32 %v7169_v1, 0.0  ;;  %v7205_v59 = vadd.f32 %v14795_v8, %v7126_v61  ;;  %v7172_v54 = vadd.f32 %v14795_v8, %v7093_v63  ;;  %v7566_v12 = vmul.f32 %v7421_v23, %v7278_v3  ;;  %v16467_v61 = vld [vmem:[#allocation79_spill] sm:$0xff] }
 0x34a   :  { %v7613_v55 = vsel %vm7585_vm8, %v7527_v50, 0.0  ;;  %v7691_v57 = vsel %vm7585_vm8, %v7563_v45, 0.0  ;;  %v7619_v4 = vsel %vm7585_vm8, %v7530_v56, 0.0  ;;  %v7208_v34 = vadd.f32 %v14795_v8, %v7129_v15  ;;  %v16468_v63 = vld [vmem:[#allocation191_spill] sm:$0xff] }
 0x34b   :  { %v7614_v31 = vadd.f32 %v7613_v55, %v7612_v60  ;;  %v7692_v2 = vadd.f32 %v7691_v57, %v7690_v43  ;;  %v7529_v27 = vmul.f32 %v7416_v18, %v7241_v5  ;;  %v7277_v26 = vmax.f32 %v7205_v59, 0.0  ;;  %v10374_v43 = vpop.f32.mrf.mxu1  ;;  %v14972_v5 = vpop.f32.mrf.mxu0 }
 0x34c   :  { %v7244_v19 = vmax.f32 %v7172_v54, 0.0  ;;  %v7092_v28 = vadd.f32 %v14894_v42, %v16465_v30  ;;  %v7128_v16 = vadd.f32 %v14897_v49, %v16466_v36  ;;  %v7280_v33 = vmax.f32 %v7208_v34, 0.0  ;;  %v7426_v59 = vpop.permute.xlu0 %7425  ;;  %v16470_v30 = vld [vmem:[#allocation80_spill] sm:$0xff] }
 0x34d   :  { %v7616_v13 = vadd.f32 %v7615_v20, %v7614_v31  ;;  %v7617_v25 = vsel %vm7585_vm8, %v7529_v27, 0.0  ;;  %v7565_v40 = vmul.f32 %v7416_v18, %v7277_v26  ;;  %v7694_v60 = vadd.f32 %v7693_v41, %v7692_v2  ;;  %v14976_v57 = vpop.f32.mrf.mxu1  ;;  %v16469_v2 = vld [vmem:[#allocation47_spill] sm:$0xff]  ;;  %v7441_v27 = vpop.permute.xlu1 %7440 }
 0x34e   :  { %v7532_v46 = vmul.f32 %v7431_v48, %v7244_v19  ;;  %v7171_v3 = vadd.f32 %v14795_v8, %v7092_v28  ;;  %v7207_v23 = vadd.f32 %v14795_v8, %v7128_v16  ;;  %v7095_v49 = vadd.f32 %v14902_v6, %v16467_v61  ;;  %v16471_v16 = vld [vmem:[#allocation81_spill] sm:$0xff] }
 0x34f   :  { %v7618_v1 = vadd.f32 %v7617_v25, %v7616_v13  ;;  %v7695_v42 = vsel %vm7585_vm8, %v7565_v40, 0.0  ;;  %v7131_v20 = vadd.f32 %v14906_v53, %v16468_v63  ;;  %v7697_v50 = vsel %vm7585_vm8, %v7566_v12, 0.0  ;;  %v10321_v25 = vpop.f32.mrf.mxu0 }
 0x350   :  { %v7696_v45 = vadd.f32 %v7695_v42, %v7694_v60  ;;  %v7568_v41 = vmul.f32 %v7431_v48, %v7280_v33  ;;  %v7243_v56 = vmax.f32 %v7171_v3, 0.0  ;;  %v7279_v15 = vmax.f32 %v7207_v23, 0.0  ;;  %v10377_v33 = vpop.f32.mrf.mxu1  ;;  %v7436_v42 = vpop.permute.xlu0 %7435 }
 0x351   :  { %v7620_v54 = vadd.f32 %v7619_v4, %v7618_v1  ;;  %v7174_v18 = vadd.f32 %v14795_v8, %v7095_v49  ;;  %v7210_v55 = vadd.f32 %v14795_v8, %v7131_v20  ;;  %v7623_v6 = vsel %vm7585_vm8, %v7532_v46, 0.0 }
 0x352   :  { %v7531_v31 = vmul.f32 %v7426_v59, %v7243_v56  ;;  %v7698_v53 = vadd.f32 %v7697_v50, %v7696_v45  ;;  %v7094_v12 = vadd.f32 %v14912_v0, %v16469_v2  ;;  %v7567_v26 = vmul.f32 %v7426_v59, %v7279_v15  ;;  %v6635_v45 = vpop.f32.mrf.mxu0 }
 0x353   :  { %v7246_v19 = vmax.f32 %v7174_v18, 0.0  ;;  %v7282_v34 = vmax.f32 %v7210_v55, 0.0  ;;  %v7130_v4 = vadd.f32 %v14920_v21, %v16470_v30  ;;  %v7097_v48 = vadd.f32 %v14932_v32, %v16471_v16  ;;  %v7025_v18 = vpop.f32.mrf.mxu1 }
 0x354   :  { %v7621_v28 = vsel %vm7585_vm8, %v7531_v31, 0.0  ;;  %v7173_v36 = vadd.f32 %v14795_v8, %v7094_v12  ;;  %v7133_v13 = vadd.f32 %v14936_v10, %v14712_v22  ;;  %v7701_v0 = vsel %vm7585_vm8, %v7568_v41, 0.0  ;;  %v7451_v41 = vpop.permute.xlu1 %7450 }
 0x355   :  { %v7622_v40 = vadd.f32 %v7621_v28, %v7620_v54  ;;  %v7699_v60 = vsel %vm7585_vm8, %v7567_v26, 0.0  ;;  %v7534_v46 = vmul.f32 %v7441_v27, %v7246_v19  ;;  %v7209_v23 = vadd.f32 %v14795_v8, %v7130_v4  ;;  %v7446_v19 = vpop.permute.xlu0 %7445  ;;  %v10380_v28 = vpop.f32.mrf.mxu1 }
 0x356   :  { %v7700_v3 = vadd.f32 %v7699_v60, %v7698_v53  ;;  %v7245_v21 = vmax.f32 %v7173_v36, 0.0  ;;  %v7176_v1 = vadd.f32 %v14795_v8, %v7097_v48  ;;  %v7570_v61 = vmul.f32 %v7441_v27, %v7282_v34  ;;  %v16472_v53 = vld [vmem:[#allocation82_spill] sm:$0xff] }
 0x357   :  { %v7627_v32 = vsel %vm7585_vm8, %v7534_v46, 0.0  ;;  %v7624_v49 = vadd.f32 %v7623_v6, %v7622_v40  ;;  %v7212_v22 = vadd.f32 %v14795_v8, %v7133_v13  ;;  %v7281_v63 = vmax.f32 %v7209_v23, 0.0 }
 0x358   :  { %v7533_v10 = vmul.f32 %v7436_v42, %v7245_v21  ;;  %v7702_v20 = vadd.f32 %v7701_v0, %v7700_v3  ;;  %v7248_v50 = vmax.f32 %v7176_v1, 0.0  ;;  %v7096_v59 = vadd.f32 %v14945_v51, %v14715_v9  ;;  %v7461_v0 = vpop.permute.xlu1 %7460 }
 0x359   :  { %v7284_v56 = vmax.f32 %v7212_v22, 0.0  ;;  %v7132_v54 = vadd.f32 %v14951_v14, %v14718_v17  ;;  %v7099_v15 = vadd.f32 %v14961_v47, %v14721_v58  ;;  %v7569_v6 = vmul.f32 %v7436_v42, %v7281_v63  ;;  %v10324_v47 = vpop.f32.mrf.mxu0  ;;  %v7035_v22 = vpop.f32.mrf.mxu1 }
 0x35a   :  { %v7625_v55 = vsel %vm7585_vm8, %v7533_v10, 0.0  ;;  %v7536_v31 = vmul.f32 %v7451_v41, %v7248_v50  ;;  %v7135_v2 = vadd.f32 %v10374_v43, %v16472_v53  ;;  %v7705_v12 = vsel %vm7585_vm8, %v7570_v61, 0.0 }
 0x35b   :  { %v7626_v27 = vadd.f32 %v7625_v55, %v7624_v49  ;;  %v7175_v26 = vadd.f32 %v14795_v8, %v7096_v59  ;;  %v7211_v9 = vadd.f32 %v14795_v8, %v7132_v54  ;;  %v7703_v51 = vsel %vm7585_vm8, %v7569_v6, 0.0  ;;  %v10383_v53 = vpop.f32.mrf.mxu1 }
 0x35c   :  { %v7572_v17 = vmul.f32 %v7451_v41, %v7284_v56  ;;  %v7178_v14 = vadd.f32 %v14795_v8, %v7099_v15  ;;  %v7214_v58 = vadd.f32 %v14795_v8, %v7135_v2  ;;  %v7704_v34 = vadd.f32 %v7703_v51, %v7702_v20  ;;  %v7471_v2 = vpop.permute.xlu1 %7470 }
 0x35d   :  { %v7631_v30 = vsel %vm7585_vm8, %v7536_v31, 0.0  ;;  %v7247_v43 = vmax.f32 %v7175_v26, 0.0  ;;  %v7628_v4 = vadd.f32 %v7627_v32, %v7626_v27  ;;  %v7283_v36 = vmax.f32 %v7211_v9, 0.0  ;;  %v6645_v32 = vpop.f32.mrf.mxu0 }
 0x35e   :  { %v7250_v16 = vmax.f32 %v7178_v14, 0.0  ;;  %v7286_v48 = vmax.f32 %v7214_v58, 0.0  ;;  %v7098_v13 = vadd.f32 %v14972_v5, %v14727_v7  ;;  %v7706_v60 = vadd.f32 %v7705_v12, %v7704_v34 }
 0x35f   :  { %v7535_v40 = vmul.f32 %v7446_v19, %v7247_v43  ;;  %v7134_v46 = vadd.f32 %v14976_v57, %v14730_v11  ;;  %v7101_v3 = vadd.f32 %v10321_v25, %v14733_v52  ;;  %v7571_v21 = vmul.f32 %v7446_v19, %v7283_v36  ;;  %v7456_v25 = vpop.permute.xlu0 %7455 }
 0x360   :  { %v7538_v23 = vmul.f32 %v7461_v0, %v7250_v16  ;;  %v7574_v1 = vmul.f32 %v7461_v0, %v7286_v48  ;;  %v7177_v42 = vadd.f32 %v14795_v8, %v7098_v13  ;;  %v7137_v5 = vadd.f32 %v10377_v33, %v14736_v35  ;;  %v10327_v33 = vpop.f32.mrf.mxu0 }
 0x361   :  { %v7629_v61 = vsel %vm7585_vm8, %v7535_v40, 0.0  ;;  %v7213_v49 = vadd.f32 %v14795_v8, %v7134_v46  ;;  %v7180_v7 = vadd.f32 %v14795_v8, %v7101_v3  ;;  %v7709_v10 = vsel %vm7585_vm8, %v7572_v17, 0.0 }
 0x362   :  { %v7630_v11 = vadd.f32 %v7629_v61, %v7628_v4  ;;  %v7707_v52 = vsel %vm7585_vm8, %v7571_v21, 0.0  ;;  %v7635_v57 = vsel %vm7585_vm8, %v7538_v23, 0.0  ;;  %v7249_v20 = vmax.f32 %v7177_v42, 0.0  ;;  %v6655_v34 = vpop.f32.mrf.mxu0  ;;  %v7481_v42 = vpop.permute.xlu1 %7480 }
 0x363   :  { %v7708_v63 = vadd.f32 %v7707_v52, %v7706_v60  ;;  %v7285_v50 = vmax.f32 %v7213_v49, 0.0  ;;  %v7252_v41 = vmax.f32 %v7180_v7, 0.0  ;;  %v7216_v59 = vadd.f32 %v14795_v8, %v7137_v5 }
 0x364   :  { %v7632_v56 = vadd.f32 %v7631_v30, %v7630_v11  ;;  %v7100_v54 = vadd.f32 %v6635_v45, %v14739_v62  ;;  %v7136_v35 = vadd.f32 %v7025_v18, %v14742_v44  ;;  %v7713_v15 = vsel %vm7585_vm8, %v7574_v1, 0.0  ;;  %v16473_v45 = vld [vmem:[#allocation83_spill] sm:$0xff]  ;;  %v7466_v30 = vpop.permute.xlu0 %7465  ;;  %v10330_v1 = vpop.f32.mrf.mxu0 }
 0x365   :  { %v7537_v55 = vmul.f32 %v7456_v25, %v7249_v20  ;;  %v7573_v6 = vmul.f32 %v7456_v25, %v7285_v50  ;;  %v7710_v31 = vadd.f32 %v7709_v10, %v7708_v63  ;;  %v7288_v12 = vmax.f32 %v7216_v59, 0.0 }
 0x366   :  { %v7179_v27 = vadd.f32 %v14795_v8, %v7100_v54  ;;  %v7215_v26 = vadd.f32 %v14795_v8, %v7136_v35  ;;  %v7103_v9 = vadd.f32 %v10324_v47, %v14745_v24  ;;  %v7540_v44 = vmul.f32 %v7471_v2, %v7252_v41  ;;  %v7045_v47 = vpop.f32.mrf.mxu1  ;;  %v6665_v41 = vpop.f32.mrf.mxu0  ;;  %v16475_v54 = vld [vmem:[#allocation55_spill] sm:$0xff] }
 0x367   :  { %v7633_v51 = vsel %vm7585_vm8, %v7537_v55, 0.0  ;;  %v7711_v62 = vsel %vm7585_vm8, %v7573_v6, 0.0  ;;  %v7139_v18 = vadd.f32 %v10380_v28, %v16473_v45  ;;  %v7576_v58 = vmul.f32 %v7471_v2, %v7288_v12  ;;  %v16477_v2 = vld [vmem:[#allocation86_spill] sm:$0xff] }
 0x368   :  { %v7634_v17 = vadd.f32 %v7633_v51, %v7632_v56  ;;  %v7712_v14 = vadd.f32 %v7711_v62, %v7710_v31  ;;  %v7251_v19 = vmax.f32 %v7179_v27, 0.0  ;;  %v7287_v43 = vmax.f32 %v7215_v26, 0.0  ;;  %v10386_v7 = vpop.f32.mrf.mxu1  ;;  %v16474_v56 = vld [vmem:[#allocation87_spill] sm:$0xff]  ;;  %v7491_v27 = vpop.permute.xlu1 %7490 }
 0x369   :  { %v7182_v4 = vadd.f32 %v14795_v8, %v7103_v9  ;;  %v7218_v36 = vadd.f32 %v14795_v8, %v7139_v18  ;;  %v7102_v24 = vadd.f32 %v6645_v32, %v14751_v37  ;;  %v7138_v3 = vadd.f32 %v7035_v22, %v14754_v38  ;;  %v7476_v22 = vpop.permute.xlu0 %7475 }
 0x36a   :  { %v7539_v16 = vmul.f32 %v7466_v30, %v7251_v19  ;;  %v7636_v48 = vadd.f32 %v7635_v57, %v7634_v17  ;;  %v7714_v13 = vadd.f32 %v7713_v15, %v7712_v14  ;;  %v7575_v0 = vmul.f32 %v7466_v30, %v7287_v43  ;;  %v7055_v55 = vpop.f32.mrf.mxu1  ;;  %v10333_v14 = vpop.f32.mrf.mxu0 }
 0x36b   :  { %v7254_v40 = vmax.f32 %v7182_v4, 0.0  ;;  %v7290_v28 = vmax.f32 %v7218_v36, 0.0  ;;  %v7181_v60 = vadd.f32 %v14795_v8, %v7102_v24  ;;  %v7105_v21 = vadd.f32 %v10327_v33, %v14757_v29  ;;  %v16476_v33 = vld [vmem:[#allocation56_spill] sm:$0xff] }
 0x36c   :  { %v7637_v46 = vsel %vm7585_vm8, %v7539_v16, 0.0  ;;  %v7141_v23 = vadd.f32 %v10383_v53, %v14760_v39  ;;  %v7639_v37 = vsel %vm7585_vm8, %v7540_v44, 0.0  ;;  %v7717_v32 = vsel %vm7585_vm8, %v7576_v58, 0.0  ;;  %v10389_v4 = vpop.f32.mrf.mxu1  ;;  %v16478_v16 = vld [vmem:[#allocation60_spill] sm:$0xff] }
 0x36d   :  { %v7638_v61 = vadd.f32 %v7637_v46, %v7636_v48  ;;  %v7715_v49 = vsel %vm7585_vm8, %v7575_v0, 0.0  ;;  %v7253_v10 = vmax.f32 %v7181_v60, 0.0  ;;  %v7217_v11 = vadd.f32 %v14795_v8, %v7138_v3  ;;  %v7486_v58 = vpop.permute.xlu0 %7485  ;;  %v16480_v60 = vld [vmem:[#allocation63_spill] sm:$0xff] }
 0x36e   :  { %v7716_v5 = vadd.f32 %v7715_v49, %v7714_v13  ;;  %v7184_v38 = vadd.f32 %v14795_v8, %v7105_v21  ;;  %v7542_v29 = vmul.f32 %v7481_v42, %v7254_v40  ;;  %v7578_v52 = vmul.f32 %v7481_v42, %v7290_v28  ;;  %v16479_v40 = vld [vmem:[#allocation61_spill] sm:$0xff]  ;;  %v6675_v49 = vpop.f32.mrf.mxu0 }
 0x36f   :  { %v7640_v39 = vadd.f32 %v7639_v37, %v7638_v61  ;;  %v7220_v57 = vadd.f32 %v14795_v8, %v7141_v23  ;;  %v7541_v25 = vmul.f32 %v7476_v22, %v7253_v10  ;;  %v7289_v63 = vmax.f32 %v7217_v11, 0.0 }
 0x370   :  { %v7718_v20 = vadd.f32 %v7717_v32, %v7716_v5  ;;  %v7256_v50 = vmax.f32 %v7184_v38, 0.0  ;;  %v7104_v59 = vadd.f32 %v6655_v34, %v16474_v56  ;;  %v7140_v35 = vadd.f32 %v7045_v47, %v16475_v54  ;;  %v16481_v32 = vld [vmem:[#allocation64_spill] sm:$0xff]  ;;  %v7501_v5 = vpop.permute.xlu1 %7500  ;;  %v16483_v56 = vld [vmem:[#allocation70_spill] sm:$0xff] }
 0x371   :  { %v7107_v15 = vadd.f32 %v10330_v1, %v16476_v33  ;;  %v7641_v6 = vsel %vm7585_vm8, %v7541_v25, 0.0  ;;  %v7577_v31 = vmul.f32 %v7476_v22, %v7289_v63  ;;  %v7292_v53 = vmax.f32 %v7220_v57, 0.0 }
 0x372   :  { %v7143_v12 = vadd.f32 %v10386_v7, %v16477_v2  ;;  %v7643_v26 = vsel %vm7585_vm8, %v7542_v29, 0.0  ;;  %v7642_v9 = vadd.f32 %v7641_v6, %v7640_v39  ;;  %v7183_v51 = vadd.f32 %v14795_v8, %v7104_v59  ;;  %v7065_v7 = vpop.f32.mrf.mxu1  ;;  %v7496_v29 = vpop.permute.xlu0 %7495  ;;  %v10408_v6 = vld [vmem:[%s15094_s2] ss:$0 sm:$0xff] }
 0x373   :  { %v7219_v62 = vadd.f32 %v14795_v8, %v7140_v35  ;;  %v7721_v44 = vsel %vm7585_vm8, %v7578_v52, 0.0  ;;  %v7719_v45 = vsel %vm7585_vm8, %v7577_v31, 0.0  ;;  %v7544_v18 = vmul.f32 %v7491_v27, %v7256_v50  ;;  %v16482_v50 = vld [vmem:[#allocation69_spill] sm:$0xff] }
 0x374   :  { %v7186_v17 = vadd.f32 %v14795_v8, %v7107_v15  ;;  %v7720_v19 = vadd.f32 %v7719_v45, %v7718_v20  ;;  %v7255_v34 = vmax.f32 %v7183_v51, 0.0  ;;  %v7644_v30 = vadd.f32 %v7643_v26, %v7642_v9 }
 0x375   :  { %v7222_v43 = vadd.f32 %v14795_v8, %v7143_v12  ;;  %v7580_v36 = vmul.f32 %v7491_v27, %v7292_v53  ;;  %v7291_v24 = vmax.f32 %v7219_v62, 0.0  ;;  %v7106_v48 = vadd.f32 %v6665_v41, %v16478_v16  ;;  %v7511_v62 = vpop.permute.xlu1 %7510 }
 0x376   :  { %v7258_v47 = vmax.f32 %v7186_v17, 0.0  ;;  %v7543_v13 = vmul.f32 %v7486_v58, %v7255_v34  ;;  %v7722_v0 = vadd.f32 %v7721_v44, %v7720_v19  ;;  %v7142_v28 = vadd.f32 %v7055_v55, %v16479_v40  ;;  %v7506_v51 = vpop.permute.xlu0 %7505 }
 0x377   :  { %v7109_v46 = vadd.f32 %v10333_v14, %v16480_v60  ;;  %v7647_v3 = vsel %vm7585_vm8, %v7544_v18, 0.0  ;;  %v7579_v21 = vmul.f32 %v7486_v58, %v7291_v24  ;;  %v7185_v23 = vadd.f32 %v14795_v8, %v7106_v48 }
 0x378   :  { %v7645_v1 = vsel %vm7585_vm8, %v7543_v13, 0.0  ;;  %v7294_v42 = vmax.f32 %v7222_v43, 0.0  ;;  %v7221_v37 = vadd.f32 %v14795_v8, %v7142_v28  ;;  %v7145_v61 = vadd.f32 %v10389_v4, %v16481_v32 }
 0x379   :  { %v7725_v10 = vsel %vm7585_vm8, %v7580_v36, 0.0  ;;  %v7646_v11 = vadd.f32 %v7645_v1, %v7644_v30  ;;  %v7723_v38 = vsel %vm7585_vm8, %v7579_v21, 0.0  ;;  %v7188_v22 = vadd.f32 %v14795_v8, %v7109_v46 }
 0x37a   :  { %v7724_v52 = vadd.f32 %v7723_v38, %v7722_v0  ;;  %v7546_v39 = vmul.f32 %v7501_v5, %v7258_v47  ;;  %v7257_v57 = vmax.f32 %v7185_v23, 0.0  ;;  %v7293_v25 = vmax.f32 %v7221_v37, 0.0 }
 0x37b   :  { %v7648_v63 = vadd.f32 %v7647_v3, %v7646_v11  ;;  %v7224_v20 = vadd.f32 %v14795_v8, %v7145_v61  ;;  %v7108_v41 = vadd.f32 %v6675_v49, %v16482_v50  ;;  %v7144_v59 = vadd.f32 %v7065_v7, %v16483_v56  ;;  %v8515_v49 = vld [vmem:[%s15095_s4] ss:$0 sm:$0xff] }
 0x37c   :  { %v7582_v54 = vmul.f32 %v7501_v5, %v7294_v42  ;;  %v7545_v35 = vmul.f32 %v7496_v29, %v7257_v57  ;;  %v7581_v33 = vmul.f32 %v7496_v29, %v7293_v25  ;;  %v7726_v15 = vadd.f32 %v7725_v10, %v7724_v52 }
 0x37d   :  { %v7260_v55 = vmax.f32 %v7188_v22, 0.0  ;;  %v7187_v31 = vadd.f32 %v10408_v6, %v7108_v41  ;;  %v7223_v53 = vadd.f32 %v10408_v6, %v7144_v59  ;;  %v7296_v8 = vmax.f32 %v7224_v20, 0.0 }
 0x37e   :  { %v7649_v2 = vsel %vm7585_vm8, %v7545_v35, 0.0  ;;  %v7727_v12 = vsel %vm7585_vm8, %v7581_v33, 0.0  ;;  %v7651_v44 = vsel %vm7585_vm8, %v7546_v39, 0.0  ;;  %v7729_v45 = vsel %vm7585_vm8, %v7582_v54, 0.0 }
 0x37f   :  { %v7650_v27 = vadd.f32 %v7649_v2, %v7648_v63  ;;  %v7728_v26 = vadd.f32 %v7727_v12, %v7726_v15  ;;  %v7259_v9 = vmax.f32 %v7187_v31, 0.0  ;;  %v7295_v18 = vmax.f32 %v7223_v53, 0.0 }
 0x380   :  { %v7548_v17 = vmul.f32 %v7511_v62, %v7260_v55  ;;  %v7584_v34 = vmul.f32 %v7511_v62, %v7296_v8 }
 0x381   :  { %v7547_v14 = vmul.f32 %v7506_v51, %v7259_v9  ;;  %v7652_v58 = vadd.f32 %v7651_v44, %v7650_v27  ;;  %v7730_v19 = vadd.f32 %v7729_v45, %v7728_v26  ;;  %v7583_v30 = vmul.f32 %v7506_v51, %v7295_v18 }
 0x382   :  { %v7656_v24 = vsel %vm7655_vm9, %v7548_v17, 0.0  ;;  %v7733_v16 = vsel %vm7655_vm9, %v7584_v34, 0.0 }
 0x383   :  { %v7653_v43 = vsel %vm7585_vm8, %v7547_v14, 0.0  ;;  %v7731_v36 = vsel %vm7585_vm8, %v7583_v30, 0.0 }
 0x384   :  { %v7654_v4 = vadd.f32 %v7653_v43, %v7652_v58  ;;  %v7732_v47 = vadd.f32 %v7731_v36, %v7730_v19 }
 0x386   :  { %v7657_v48 = vadd.f32 %v7656_v24, %v7654_v4  ;;  %v7734_v13 = vadd.f32 %v7733_v16, %v7732_v47 }
 0x388   :  { %v7658_v0 = vrot.slane %v7657_v48, 4  ;;  %v7735_v40 = vrot.slane %v7734_v13, 4 }
 0x38a   :  { %v7659_v28 = vadd.f32 %v7658_v0, %v7657_v48  ;;  %v7736_v60 = vadd.f32 %v7735_v40, %v7734_v13 }
 0x38c   :  { %v7660_v46 = vrot.slane %v7659_v28, 2  ;;  %v7737_v3 = vrot.slane %v7736_v60, 2 }
 0x38e   :  { %v7661_v21 = vadd.f32 %v7660_v46, %v7659_v28  ;;  %v7738_v23 = vadd.f32 %v7737_v3, %v7736_v60 }
 0x390   :  { %v7662_v1 = vrot.slane %v7661_v21, 1  ;;  %v7739_v42 = vrot.slane %v7738_v23, 1 }
 0x392   :  { %v7663_v37 = vadd.f32 %v7662_v1, %v7661_v21  ;;  %v7740_v32 = vadd.f32 %v7739_v42, %v7738_v23 }
 0x394   :  { %v7755_v61 = vsel %vm7754_vm10, %v7740_v32, %v7663_v37 }
 0x395   :  { %10399 = vmatmul.mubr.msk.f32.vlgmr.msra.gmra.mxu0 %vm7585_vm8, %v7755_v61 }
 0x455   :  { %v7824_v7 = vpop.f32.mrf.mxu0 }
 0x456   :  { %v7825_v5 = vadd.f32 %v8515_v49, %v7824_v7 }
 0x457   :  { %v10400_v10 = vpop.f32.mrf.mxu0 }
 0x458   :  { %7830 = vrot.lane.b32.xlu0 %v7825_v5, %s10412_s12 }
 0x4ca   :  { %v7831_v11 = vpop.permute.xlu0 %7830 }
 0x4cb   :  { %v7833_v38 = vsel %vm7585_vm8, %v7755_v61, %v7831_v11 }
 0x4cc   :  { %7835 = vst.msk [vmem:[%s15096_s6] sm:$0x3] %vm7834_vm11, %v7833_v38 }

</bundles_post_ra>
